<compile_context>
chip_gen: v5e
topology: v5e:2x2
jax: 0.10.0
libtpu: 0.0.40
codegen_flags: <defaults>
</compile_context>

<pallas_src>
import functools

import jax
import jax.numpy as jnp
from jax.experimental import pallas as pl
from jax.experimental.pallas import tpu as pltpu


# ----------------------------------------------------------------------------
# Fused multi-layer (bi)directional GRU stack: one pallas_call for ALL layers.
# ----------------------------------------------------------------------------
def gru_stack_kernel(num_dir, hidden, seq_len, num_layers, *refs):
    """refs = x_ref, [wi, wh, bi, bh] * num_layers, o_ref, gx_ref.

    x_ref : (S*B, E)              bf16  rows ordered (t, b) -> t*B + b
    wi    : (in_l, num_dir*Gp)    bf16  fused input-proj weights [fwd | rev], r|z|n (+pad)
    wh    : (num_dir*H, num_dir*Gp) bf16  block-diagonal recurrent weights
    bi,bh : (1, num_dir*Gp)       f32
    o_ref : (S*B, num_dir*H)      f32   also the inter-layer activation buffer
    gx_ref: (S*B, num_dir*Gp)     bf16  hoisted input-projection scratch
    """
    H, S = hidden, seq_len
    G = 3 * H
    Dh = H * num_dir
    x_ref = refs[0]
    w_refs = refs[1:1 + 4 * num_layers]
    o_ref = refs[1 + 4 * num_layers]
    gx_ref = refs[2 + 4 * num_layers]

    SB = x_ref.shape[0]
    B = SB // S
    Gp = gx_ref.shape[1] // num_dir          # per-direction (128-aligned) column stride

    for layer in range(num_layers):
        wi, wh, bi, bh = w_refs[4 * layer:4 * layer + 4]
        src = x_ref if layer == 0 else o_ref   # layer l reads layer l-1's output in VMEM

        # ---- hoisted input projection: one fused (S*B, E) x (E, num_dir*Gp) matmul ----
        gx_ref[...] = (jnp.dot(src[...].astype(jnp.bfloat16), wi[...],
                               preferred_element_type=jnp.float32)
                       + bi[...]).astype(jnp.bfloat16)

        # ---- serial recurrence: ONE block-diagonal (B,2H)x(2H,2Gp) matmul per step ----
        def step(t, h_cat, wh=wh, bh=bh):
            gh = jnp.dot(h_cat.astype(jnp.bfloat16), wh[...],
                         preferred_element_type=jnp.float32) + bh[...]
            outs = []
            for d in range(num_dir):
                td = t if d == 0 else (S - 1) - t            # reverse dir without flips
                row0 = pl.multiple_of(td * B, B)
                gi = gx_ref[pl.ds(row0, B), pl.ds(d * Gp, G)].astype(jnp.float32)
                ghd = gh[:, d * Gp:d * Gp + G]
                hd = h_cat[:, d * H:(d + 1) * H]
                rz = jax.nn.sigmoid(gi[:, 0:2 * H] + ghd[:, 0:2 * H])   # fused r|z (64 lanes)
                r, z = rz[:, 0:H], rz[:, H:2 * H]
                n = jnp.tanh(gi[:, 2 * H:3 * H] + r * ghd[:, 2 * H:3 * H])
                h_new = (1.0 - z) * n + z * hd
                o_ref[pl.ds(row0, B), pl.ds(d * H, H)] = h_new          # direct store
                outs.append(h_new)
            return outs[0] if num_dir == 1 else jnp.concatenate(outs, axis=-1)

        h0 = jnp.zeros((B, Dh), jnp.float32)
        jax.lax.fori_loop(0, S, step, h0, unroll=min(8, S))


def run_gru_stack(x2d, layer_params, seq_len, hidden, num_dir):
    """x2d: (S*B, E) bf16, rows ordered (t, b). Returns (S*B, H*num_dir) f32."""
    SB = x2d.shape[0]
    Dh = hidden * num_dir
    Gd_pad = layer_params[0]["wi"].shape[1]   # num_dir * Gp (same for every layer)

    flat = []
    for lp in layer_params:
        flat += [lp["wi"], lp["wh"], lp["bi"], lp["bh"]]

    kernel = functools.partial(gru_stack_kernel, num_dir, hidden, seq_len,
                               len(layer_params))
    return pl.pallas_call(
        kernel,
        out_shape=jax.ShapeDtypeStruct((SB, Dh), jnp.float32),
        scratch_shapes=[pltpu.VMEM((SB, Gd_pad), jnp.bfloat16)],
        compiler_params=pltpu.CompilerParams(vmem_limit_bytes=32 * 1024 * 1024),
    )(x2d, *flat)


# ----------------------------------------------------------------------------
# Fused k-max pooling (top-k along S, kept in sequence order) + classifier
# (Linear -> BatchNorm1d(batch stats) -> ReLU -> Linear).
# Input x: (B, S, C); outputs: logits (B, num_label), conv_out (B, C*K).
# ----------------------------------------------------------------------------
def kmax_classifier_kernel(k, x_ref, w1_ref, b1_ref, g_ref, be_ref, w2_ref, b2_ref,
                           logits_ref, conv_ref):
    x = x_ref[...]                           # (B, S, C): C on the lane axis
    B, S, C = x.shape
    K = k

    idx = jax.lax.broadcasted_iota(jnp.int32, (B, S, C), 1)

    # Iterative top-K over the sequence axis: max value + first index per round.
    cur = x
    sel_idx, sel_val = [], []
    for _ in range(K):
        mx = jnp.max(cur, axis=1, keepdims=True)                       # (B, 1, C)
        is_max = cur == mx                                             # exact (same elems)
        first = jnp.min(jnp.where(is_max, idx, S), axis=1, keepdims=True)
        sel_idx.append(first[:, 0, :])                                 # (B, C) int32
        sel_val.append(mx[:, 0, :])                                    # (B, C) f32
        cur = jnp.where(idx == first, -jnp.inf, cur)

    # Reorder the K picks into ascending sequence order (tiny sorting network);
    # matches torch.topk(...)[1].sort(...)[0] -> gather.
    for i in range(K):
        for j in range(i + 1, K):
            swap = sel_idx[j] < sel_idx[i]
            ii, jj = sel_idx[i], sel_idx[j]
            sel_idx[i] = jnp.where(swap, jj, ii)
            sel_idx[j] = jnp.where(swap, ii, jj)
            vi, vj = sel_val[i], sel_val[j]
            sel_val[i] = jnp.where(swap, vj, vi)
            sel_val[j] = jnp.where(swap, vi, vj)

    # Place values into PyTorch's (B, C, K).view(B, -1) order (lane = c*K + m) via
    # tiny 0/1 permutation matmuls -> one lane-dense conv_out store. Operands stay
    # f32 deliberately: conv_out must reproduce the gathered values (no bf16 casts).
    row = jax.lax.broadcasted_iota(jnp.int32, (C, C * K), 0)
    col = jax.lax.broadcasted_iota(jnp.int32, (C, C * K), 1)
    conv = jnp.zeros((B, C * K), jnp.float32)
    for m in range(K):
        perm = (col == row * K + m).astype(jnp.float32)
        conv = conv + jnp.dot(sel_val[m], perm, preferred_element_type=jnp.float32)
    conv_ref[...] = conv

    # Classifier: Linear -> BatchNorm1d (training-mode batch stats) -> ReLU -> Linear.
    # Tiny f32 matmuls kept in f32 (parity over throughput; deliberate choice).
    h1 = jnp.dot(conv, w1_ref[...], preferred_element_type=jnp.float32) + b1_ref[...]
    mu = jnp.mean(h1, axis=0, keepdims=True)
    var = jnp.mean((h1 - mu) * (h1 - mu), axis=0, keepdims=True)
    xhat = (h1 - mu) * jax.lax.rsqrt(var + 1e-5)
    h = jnp.maximum(xhat * g_ref[...] + be_ref[...], 0.0)
    logits_ref[...] = (jnp.dot(h, w2_ref[...], preferred_element_type=jnp.float32)
                       + b2_ref[...])


def run_kmax_classifier(x_bsc, k, w1, b1, gamma, beta, w2, b2):
    # TODO(synk): at large B/C/S, block over the batch dim instead of one VMEM block.
    B, _, C = x_bsc.shape
    num_label = w2.shape[-1]
    kernel = functools.partial(kmax_classifier_kernel, k)
    return pl.pallas_call(
        kernel,
        out_shape=(jax.ShapeDtypeStruct((B, num_label), jnp.float32),
                   jax.ShapeDtypeStruct((B, C * k), jnp.float32)),
    )(x_bsc, w1, b1, gamma, beta, w2, b2)


# ----------------------------------------------------------------------------
# Parameter init (deterministic, PyTorch-style ranges). GRU weights are fused,
# direction-padded to a 128-lane stride, and cast to bf16 ONCE here.
# ----------------------------------------------------------------------------
def init_params(key, vocab, emb, hidden, num_layers, bidirectional, k,
                linear_hidden, num_label):
    num_dir = 2 if bidirectional else 1
    H = hidden
    G = 3 * H
    Gp = ((G + 127) // 128) * 128            # per-direction padded column stride

    def nk():
        nonlocal key
        key, sub = jax.random.split(key)
        return sub

    def pad_g(a):                             # pad last dim G -> Gp with zeros
        return jnp.pad(a, ((0, 0), (0, Gp - G))) if Gp != G else a

    params = {}
    params["embedding"] = jax.random.normal(nk(), (vocab, emb), dtype=jnp.float32)

    stdv = 1.0 / (hidden ** 0.5)
    layers = []
    for layer in range(num_layers):
        in_size = emb if layer == 0 else hidden * num_dir
        wi_d, wh_d, bi_d, bh_d = [], [], [], []
        for _ in range(num_dir):
            wi_d.append(pad_g(jax.random.uniform(nk(), (in_size, G), jnp.float32, -stdv, stdv)))
            wh_d.append(pad_g(jax.random.uniform(nk(), (H, G), jnp.float32, -stdv, stdv)))
            bi_d.append(pad_g(jax.random.uniform(nk(), (1, G), jnp.float32, -stdv, stdv)))
            bh_d.append(pad_g(jax.random.uniform(nk(), (1, G), jnp.float32, -stdv, stdv)))
        wi_cat = jnp.concatenate(wi_d, axis=1)                      # (in, num_dir*Gp)
        bi_cat = jnp.concatenate(bi_d, axis=1)
        bh_cat = jnp.concatenate(bh_d, axis=1)
        if num_dir == 2:
            z = jnp.zeros((H, Gp), jnp.float32)
            wh_bd = jnp.concatenate(
                [jnp.concatenate([wh_d[0], z], axis=1),
                 jnp.concatenate([z, wh_d[1]], axis=1)], axis=0)    # (2H, 2Gp) block-diag
        else:
            wh_bd = wh_d[0]
        layers.append({"wi": wi_cat.astype(jnp.bfloat16),
                       "wh": wh_bd.astype(jnp.bfloat16),
                       "bi": bi_cat, "bh": bh_cat})
    params["gru_layers"] = layers

    d1 = k * hidden * num_dir
    b1v = 1.0 / (d1 ** 0.5)
    b2v = 1.0 / (linear_hidden ** 0.5)
    params["w1"] = jax.random.uniform(nk(), (d1, linear_hidden), jnp.float32, -b1v, b1v)
    params["b1"] = jax.random.uniform(nk(), (1, linear_hidden), jnp.float32, -b1v, b1v)
    params["gamma"] = jnp.ones((1, linear_hidden), jnp.float32)
    params["beta"] = jnp.zeros((1, linear_hidden), jnp.float32)
    params["w2"] = jax.random.uniform(nk(), (linear_hidden, num_label), jnp.float32, -b2v, b2v)
    params["b2"] = jax.random.uniform(nk(), (1, num_label), jnp.float32, -b2v, b2v)
    return params


# ----------------------------------------------------------------------------
# Full forward pass.
# ----------------------------------------------------------------------------
def rnn_forward(content, params, *, num_layers, bidirectional, k, hidden):
    num_dir = 2 if bidirectional else 1
    B, S = content.shape
    Dh = hidden * num_dir

    emb = params["embedding"][content]                 # (B, S, E)  embedding gather (XLA glue)
    x = jnp.transpose(emb, (1, 0, 2))                  # (S, B, E)  time-major

    # Pad batch to a multiple of 16 (bf16 sublane packing on the MXU-M dim); GRU only.
    B_pad = max(16, ((B + 15) // 16) * 16)
    if B_pad != B:
        x = jnp.pad(x, ((0, 0), (0, B_pad - B), (0, 0)))
    x2d = x.reshape(S * B_pad, -1).astype(jnp.bfloat16)   # rows ordered (t, b)

    out2d = run_gru_stack(x2d, params["gru_layers"], S, hidden, num_dir)

    out = out2d.reshape(S, B_pad, Dh)[:, :B, :]        # drop padded batch rows
    out_bsc = jnp.transpose(out, (1, 0, 2))            # (B, S, C): cheap major-axis swap

    logits, conv_out = run_kmax_classifier(
        out_bsc, k, params["w1"], params["b1"], params["gamma"], params["beta"],
        params["w2"], params["b2"])
    return logits, conv_out


if __name__ == "__main__":
    VOCAB, EMB, HIDDEN = 50, 16, 32
    NUM_LAYERS, BIDIRECTIONAL, KMAX = 2, True, 2
    LINEAR_HIDDEN, NUM_LABEL = 64, 5
    B, S = 2, 8

    key = jax.random.PRNGKey(0)
    pkey, dkey = jax.random.split(key)
    params = init_params(pkey, VOCAB, EMB, HIDDEN, NUM_LAYERS, BIDIRECTIONAL,
                         KMAX, LINEAR_HIDDEN, NUM_LABEL)
    content = jax.random.randint(dkey, (B, S), 0, VOCAB, dtype=jnp.int32)

    logits, conv_out = rnn_forward(content, params,
                                   num_layers=NUM_LAYERS,
                                   bidirectional=BIDIRECTIONAL,
                                   k=KMAX, hidden=HIDDEN)
    jax.block_until_ready((logits, conv_out))

    num_dir = 2 if BIDIRECTIONAL else 1
    assert logits.shape == (B, NUM_LABEL)
    assert conv_out.shape == (B, KMAX * HIDDEN * num_dir)
    print("KERNEL_OK")
</pallas_src>

<mosaic_0001>
module attributes {stable_mosaic.version = 11 : i64} {
  func.func @gru_stack_kernel(%arg0: memref<128x16xbf16, #tpu.memory_space<vmem>>, %arg1: memref<16x256xbf16, #tpu.memory_space<vmem>>, %arg2: memref<64x256xbf16, #tpu.memory_space<vmem>>, %arg3: memref<1x256xf32, #tpu.memory_space<vmem>>, %arg4: memref<1x256xf32, #tpu.memory_space<vmem>>, %arg5: memref<64x256xbf16, #tpu.memory_space<vmem>>, %arg6: memref<64x256xbf16, #tpu.memory_space<vmem>>, %arg7: memref<1x256xf32, #tpu.memory_space<vmem>>, %arg8: memref<1x256xf32, #tpu.memory_space<vmem>>, %arg9: memref<128x64xf32, #tpu.memory_space<vmem>>, %arg10: memref<128x256xbf16, #tpu.memory_space<vmem>>) attributes {dimension_semantics = [], scalar_prefetch = 0 : i64, scratch_operands = 1 : i64, tpu.core_type = #tpu.core_type<tc>} {
    %c0 = arith.constant 0 : index
    %c0_0 = arith.constant 0 : index
    %0 = vector.load %arg0[%c0, %c0_0] : memref<128x16xbf16, #tpu.memory_space<vmem>>, vector<128x16xbf16>
    %c0_1 = arith.constant 0 : index
    %c0_2 = arith.constant 0 : index
    %1 = vector.load %arg1[%c0_1, %c0_2] : memref<16x256xbf16, #tpu.memory_space<vmem>>, vector<16x256xbf16>
    %cst = arith.constant dense<0.000000e+00> : vector<128x256xf32>
    %2 = tpu.matmul %0, %1, %cst {dimension_numbers = #tpu.dot_dimension_numbers<[1], [0], [0], [1], [0, 0, 1, 1], [], []>} : vector<128x16xbf16>, vector<16x256xbf16>, vector<128x256xf32> -> vector<128x256xf32>
    %c0_3 = arith.constant 0 : index
    %c0_4 = arith.constant 0 : index
    %3 = vector.load %arg3[%c0_3, %c0_4] : memref<1x256xf32, #tpu.memory_space<vmem>>, vector<1x256xf32>
    %4 = vector.broadcast %3 : vector<1x256xf32> to vector<128x256xf32>
    %5 = arith.addf %2, %4 : vector<128x256xf32>
    %6 = arith.truncf %5 : vector<128x256xf32> to vector<128x256xbf16>
    %c0_5 = arith.constant 0 : index
    %c0_6 = arith.constant 0 : index
    %7 = vector.load %arg10[%c0_5, %c0_6] : memref<128x256xbf16, #tpu.memory_space<vmem>>, vector<128x256xbf16>
    tpu.vector_store %arg10[%c0_5, %c0_6], %6 {strides = array<i32>} : memref<128x256xbf16, #tpu.memory_space<vmem>>, vector<128x256xbf16>,
    %cst_7 = arith.constant 0.000000e+00 : f32
    %8 = vector.broadcast %cst_7 : f32 to vector<16x64xf32>
    %c0_i32 = arith.constant 0 : i32
    %9 = arith.truncf %8 : vector<16x64xf32> to vector<16x64xbf16>
    %c0_8 = arith.constant 0 : index
    %c0_9 = arith.constant 0 : index
    %10 = vector.load %arg2[%c0_8, %c0_9] : memref<64x256xbf16, #tpu.memory_space<vmem>>, vector<64x256xbf16>
    %cst_10 = arith.constant dense<0.000000e+00> : vector<16x256xf32>
    %11 = tpu.matmul %9, %10, %cst_10 {dimension_numbers = #tpu.dot_dimension_numbers<[1], [0], [0], [1], [0, 0, 1, 1], [], []>} : vector<16x64xbf16>, vector<64x256xbf16>, vector<16x256xf32> -> vector<16x256xf32>
    %c0_11 = arith.constant 0 : index
    %c0_12 = arith.constant 0 : index
    %12 = vector.load %arg4[%c0_11, %c0_12] : memref<1x256xf32, #tpu.memory_space<vmem>>, vector<1x256xf32>
    %13 = vector.broadcast %12 : vector<1x256xf32> to vector<16x256xf32>
    %14 = arith.addf %11, %13 : vector<16x256xf32>
    %c16_i32 = arith.constant 16 : i32
    %15 = arith.muli %c0_i32, %c16_i32 : i32
    %16 = tpu.assume_multiple %15, 16 : i32
    %17 = arith.index_cast %16 : i32 to index
    %c0_13 = arith.constant 0 : index
    %18 = vector.load %arg10[%17, %c0_13] : memref<128x256xbf16, #tpu.memory_space<vmem>>, vector<16x96xbf16>
    %19 = arith.extf %18 : vector<16x96xbf16> to vector<16x96xf32>
    %20 = vector.extract_strided_slice %14 {offsets = [0, 0], sizes = [16, 96], strides = [1, 1]} : vector<16x256xf32> to vector<16x96xf32>
    %21 = vector.extract_strided_slice %8 {offsets = [0, 0], sizes = [16, 32], strides = [1, 1]} : vector<16x64xf32> to vector<16x32xf32>
    %22 = vector.extract_strided_slice %19 {offsets = [0, 0], sizes = [16, 64], strides = [1, 1]} : vector<16x96xf32> to vector<16x64xf32>
    %23 = vector.extract_strided_slice %20 {offsets = [0, 0], sizes = [16, 64], strides = [1, 1]} : vector<16x96xf32> to vector<16x64xf32>
    %24 = arith.addf %22, %23 : vector<16x64xf32>
    %25 = arith.negf %24 : vector<16x64xf32>
    %26 = math.exp %25 : vector<16x64xf32>
    %cst_14 = arith.constant 1.000000e+00 : f32
    %27 = vector.broadcast %cst_14 : f32 to vector<16x64xf32>
    %28 = arith.addf %27, %26 : vector<16x64xf32>
    %29 = arith.divf %27, %28 : vector<16x64xf32>
    %30 = vector.extract_strided_slice %29 {offsets = [0, 0], sizes = [16, 32], strides = [1, 1]} : vector<16x64xf32> to vector<16x32xf32>
    %31 = vector.extract_strided_slice %29 {offsets = [0, 32], sizes = [16, 32], strides = [1, 1]} : vector<16x64xf32> to vector<16x32xf32>
    %32 = vector.extract_strided_slice %19 {offsets = [0, 64], sizes = [16, 32], strides = [1, 1]} : vector<16x96xf32> to vector<16x32xf32>
    %33 = vector.extract_strided_slice %20 {offsets = [0, 64], sizes = [16, 32], strides = [1, 1]} : vector<16x96xf32> to vector<16x32xf32>
    %34 = arith.mulf %30, %33 : vector<16x32xf32>
    %35 = arith.addf %32, %34 : vector<16x32xf32>
    %36 = math.tanh %35 : vector<16x32xf32>
    %cst_15 = arith.constant 1.000000e+00 : f32
    %37 = vector.broadcast %cst_15 : f32 to vector<16x32xf32>
    %38 = arith.subf %37, %31 : vector<16x32xf32>
    %39 = arith.mulf %38, %36 : vector<16x32xf32>
    %40 = arith.mulf %31, %21 : vector<16x32xf32>
    %41 = arith.addf %39, %40 : vector<16x32xf32>
    %42 = arith.index_cast %16 : i32 to index
    %c0_16 = arith.constant 0 : index
    %43 = vector.load %arg9[%42, %c0_16] : memref<128x64xf32, #tpu.memory_space<vmem>>, vector<16x32xf32>
    tpu.vector_store %arg9[%42, %c0_16], %41 {strides = array<i32>} : memref<128x64xf32, #tpu.memory_space<vmem>>, vector<16x32xf32>,
    %c7_i32 = arith.constant 7 : i32
    %44 = arith.subi %c7_i32, %c0_i32 : i32
    %c16_i32_17 = arith.constant 16 : i32
    %45 = arith.muli %44, %c16_i32_17 : i32
    %46 = tpu.assume_multiple %45, 16 : i32
    %47 = arith.index_cast %46 : i32 to index
    %c128 = arith.constant 128 : index
    %48 = vector.load %arg10[%47, %c128] : memref<128x256xbf16, #tpu.memory_space<vmem>>, vector<16x96xbf16>
    %49 = arith.extf %48 : vector<16x96xbf16> to vector<16x96xf32>
    %50 = vector.extract_strided_slice %14 {offsets = [0, 128], sizes = [16, 96], strides = [1, 1]} : vector<16x256xf32> to vector<16x96xf32>
    %51 = vector.extract_strided_slice %8 {offsets = [0, 32], sizes = [16, 32], strides = [1, 1]} : vector<16x64xf32> to vector<16x32xf32>
    %52 = vector.extract_strided_slice %49 {offsets = [0, 0], sizes = [16, 64], strides = [1, 1]} : vector<16x96xf32> to vector<16x64xf32>
    %53 = vector.extract_strided_slice %50 {offsets = [0, 0], sizes = [16, 64], strides = [1, 1]} : vector<16x96xf32> to vector<16x64xf32>
    %54 = arith.addf %52, %53 : vector<16x64xf32>
    %55 = arith.negf %54 : vector<16x64xf32>
    %56 = math.exp %55 : vector<16x64xf32>
    %cst_18 = arith.constant 1.000000e+00 : f32
    %57 = vector.broadcast %cst_18 : f32 to vector<16x64xf32>
    %58 = arith.addf %57, %56 : vector<16x64xf32>
    %59 = arith.divf %57, %58 : vector<16x64xf32>
    %60 = vector.extract_strided_slice %59 {offsets = [0, 0], sizes = [16, 32], strides = [1, 1]} : vector<16x64xf32> to vector<16x32xf32>
    %61 = vector.extract_strided_slice %59 {offsets = [0, 32], sizes = [16, 32], strides = [1, 1]} : vector<16x64xf32> to vector<16x32xf32>
    %62 = vector.extract_strided_slice %49 {offsets = [0, 64], sizes = [16, 32], strides = [1, 1]} : vector<16x96xf32> to vector<16x32xf32>
    %63 = vector.extract_strided_slice %50 {offsets = [0, 64], sizes = [16, 32], strides = [1, 1]} : vector<16x96xf32> to vector<16x32xf32>
    %64 = arith.mulf %60, %63 : vector<16x32xf32>
    %65 = arith.addf %62, %64 : vector<16x32xf32>
    %66 = math.tanh %65 : vector<16x32xf32>
    %cst_19 = arith.constant 1.000000e+00 : f32
    %67 = vector.broadcast %cst_19 : f32 to vector<16x32xf32>
    %68 = arith.subf %67, %61 : vector<16x32xf32>
    %69 = arith.mulf %68, %66 : vector<16x32xf32>
    %70 = arith.mulf %61, %51 : vector<16x32xf32>
    %71 = arith.addf %69, %70 : vector<16x32xf32>
    %72 = arith.index_cast %46 : i32 to index
    %c32 = arith.constant 32 : index
    %73 = vector.load %arg9[%72, %c32] : memref<128x64xf32, #tpu.memory_space<vmem>>, vector<16x32xf32>
    tpu.vector_store %arg9[%72, %c32], %71 {strides = array<i32>} : memref<128x64xf32, #tpu.memory_space<vmem>>, vector<16x32xf32>,
    %74 = tpu.concatenate %41, %71 in 1 : vector<16x32xf32>, vector<16x32xf32> -> vector<16x64xf32>
    %c1_i32 = arith.constant 1 : i32
    %75 = arith.truncf %74 : vector<16x64xf32> to vector<16x64xbf16>
    %c0_20 = arith.constant 0 : index
    %c0_21 = arith.constant 0 : index
    %76 = vector.load %arg2[%c0_20, %c0_21] : memref<64x256xbf16, #tpu.memory_space<vmem>>, vector<64x256xbf16>
    %cst_22 = arith.constant dense<0.000000e+00> : vector<16x256xf32>
    %77 = tpu.matmul %75, %76, %cst_22 {dimension_numbers = #tpu.dot_dimension_numbers<[1], [0], [0], [1], [0, 0, 1, 1], [], []>} : vector<16x64xbf16>, vector<64x256xbf16>, vector<16x256xf32> -> vector<16x256xf32>
    %c0_23 = arith.constant 0 : index
    %c0_24 = arith.constant 0 : index
    %78 = vector.load %arg4[%c0_23, %c0_24] : memref<1x256xf32, #tpu.memory_space<vmem>>, vector<1x256xf32>
    %79 = vector.broadcast %78 : vector<1x256xf32> to vector<16x256xf32>
    %80 = arith.addf %77, %79 : vector<16x256xf32>
    %c16_i32_25 = arith.constant 16 : i32
    %81 = arith.muli %c1_i32, %c16_i32_25 : i32
    %82 = tpu.assume_multiple %81, 16 : i32
    %83 = arith.index_cast %82 : i32 to index
    %c0_26 = arith.constant 0 : index
    %84 = vector.load %arg10[%83, %c0_26] : memref<128x256xbf16, #tpu.memory_space<vmem>>, vector<16x96xbf16>
    %85 = arith.extf %84 : vector<16x96xbf16> to vector<16x96xf32>
    %86 = vector.extract_strided_slice %80 {offsets = [0, 0], sizes = [16, 96], strides = [1, 1]} : vector<16x256xf32> to vector<16x96xf32>
    %87 = vector.extract_strided_slice %74 {offsets = [0, 0], sizes = [16, 32], strides = [1, 1]} : vector<16x64xf32> to vector<16x32xf32>
    %88 = vector.extract_strided_slice %85 {offsets = [0, 0], sizes = [16, 64], strides = [1, 1]} : vector<16x96xf32> to vector<16x64xf32>
    %89 = vector.extract_strided_slice %86 {offsets = [0, 0], sizes = [16, 64], strides = [1, 1]} : vector<16x96xf32> to vector<16x64xf32>
    %90 = arith.addf %88, %89 : vector<16x64xf32>
    %91 = arith.negf %90 : vector<16x64xf32>
    %92 = math.exp %91 : vector<16x64xf32>
    %cst_27 = arith.constant 1.000000e+00 : f32
    %93 = vector.broadcast %cst_27 : f32 to vector<16x64xf32>
    %94 = arith.addf %93, %92 : vector<16x64xf32>
    %95 = arith.divf %93, %94 : vector<16x64xf32>
    %96 = vector.extract_strided_slice %95 {offsets = [0, 0], sizes = [16, 32], strides = [1, 1]} : vector<16x64xf32> to vector<16x32xf32>
    %97 = vector.extract_strided_slice %95 {offsets = [0, 32], sizes = [16, 32], strides = [1, 1]} : vector<16x64xf32> to vector<16x32xf32>
    %98 = vector.extract_strided_slice %85 {offsets = [0, 64], sizes = [16, 32], strides = [1, 1]} : vector<16x96xf32> to vector<16x32xf32>
    %99 = vector.extract_strided_slice %86 {offsets = [0, 64], sizes = [16, 32], strides = [1, 1]} : vector<16x96xf32> to vector<16x32xf32>
    %100 = arith.mulf %96, %99 : vector<16x32xf32>
    %101 = arith.addf %98, %100 : vector<16x32xf32>
    %102 = math.tanh %101 : vector<16x32xf32>
    %cst_28 = arith.constant 1.000000e+00 : f32
    %103 = vector.broadcast %cst_28 : f32 to vector<16x32xf32>
    %104 = arith.subf %103, %97 : vector<16x32xf32>
    %105 = arith.mulf %104, %102 : vector<16x32xf32>
    %106 = arith.mulf %97, %87 : vector<16x32xf32>
    %107 = arith.addf %105, %106 : vector<16x32xf32>
    %108 = arith.index_cast %82 : i32 to index
    %c0_29 = arith.constant 0 : index
    %109 = vector.load %arg9[%108, %c0_29] : memref<128x64xf32, #tpu.memory_space<vmem>>, vector<16x32xf32>
    tpu.vector_store %arg9[%108, %c0_29], %107 {strides = array<i32>} : memref<128x64xf32, #tpu.memory_space<vmem>>, vector<16x32xf32>,
    %c7_i32_30 = arith.constant 7 : i32
    %110 = arith.subi %c7_i32_30, %c1_i32 : i32
    %c16_i32_31 = arith.constant 16 : i32
    %111 = arith.muli %110, %c16_i32_31 : i32
    %112 = tpu.assume_multiple %111, 16 : i32
    %113 = arith.index_cast %112 : i32 to index
    %c128_32 = arith.constant 128 : index
    %114 = vector.load %arg10[%113, %c128_32] : memref<128x256xbf16, #tpu.memory_space<vmem>>, vector<16x96xbf16>
    %115 = arith.extf %114 : vector<16x96xbf16> to vector<16x96xf32>
    %116 = vector.extract_strided_slice %80 {offsets = [0, 128], sizes = [16, 96], strides = [1, 1]} : vector<16x256xf32> to vector<16x96xf32>
    %117 = vector.extract_strided_slice %74 {offsets = [0, 32], sizes = [16, 32], strides = [1, 1]} : vector<16x64xf32> to vector<16x32xf32>
    %118 = vector.extract_strided_slice %115 {offsets = [0, 0], sizes = [16, 64], strides = [1, 1]} : vector<16x96xf32> to vector<16x64xf32>
    %119 = vector.extract_strided_slice %116 {offsets = [0, 0], sizes = [16, 64], strides = [1, 1]} : vector<16x96xf32> to vector<16x64xf32>
    %120 = arith.addf %118, %119 : vector<16x64xf32>
    %121 = arith.negf %120 : vector<16x64xf32>
    %122 = math.exp %121 : vector<16x64xf32>
    %cst_33 = arith.constant 1.000000e+00 : f32
    %123 = vector.broadcast %cst_33 : f32 to vector<16x64xf32>
    %124 = arith.addf %123, %122 : vector<16x64xf32>
    %125 = arith.divf %123, %124 : vector<16x64xf32>
    %126 = vector.extract_strided_slice %125 {offsets = [0, 0], sizes = [16, 32], strides = [1, 1]} : vector<16x64xf32> to vector<16x32xf32>
    %127 = vector.extract_strided_slice %125 {offsets = [0, 32], sizes = [16, 32], strides = [1, 1]} : vector<16x64xf32> to vector<16x32xf32>
    %128 = vector.extract_strided_slice %115 {offsets = [0, 64], sizes = [16, 32], strides = [1, 1]} : vector<16x96xf32> to vector<16x32xf32>
    %129 = vector.extract_strided_slice %116 {offsets = [0, 64], sizes = [16, 32], strides = [1, 1]} : vector<16x96xf32> to vector<16x32xf32>
    %130 = arith.mulf %126, %129 : vector<16x32xf32>
    %131 = arith.addf %128, %130 : vector<16x32xf32>
    %132 = math.tanh %131 : vector<16x32xf32>
    %cst_34 = arith.constant 1.000000e+00 : f32
    %133 = vector.broadcast %cst_34 : f32 to vector<16x32xf32>
    %134 = arith.subf %133, %127 : vector<16x32xf32>
    %135 = arith.mulf %134, %132 : vector<16x32xf32>
    %136 = arith.mulf %127, %117 : vector<16x32xf32>
    %137 = arith.addf %135, %136 : vector<16x32xf32>
    %138 = arith.index_cast %112 : i32 to index
    %c32_35 = arith.constant 32 : index
    %139 = vector.load %arg9[%138, %c32_35] : memref<128x64xf32, #tpu.memory_space<vmem>>, vector<16x32xf32>
    tpu.vector_store %arg9[%138, %c32_35], %137 {strides = array<i32>} : memref<128x64xf32, #tpu.memory_space<vmem>>, vector<16x32xf32>,
    %140 = tpu.concatenate %107, %137 in 1 : vector<16x32xf32>, vector<16x32xf32> -> vector<16x64xf32>
    %c2_i32 = arith.constant 2 : i32
    %141 = arith.truncf %140 : vector<16x64xf32> to vector<16x64xbf16>
    %c0_36 = arith.constant 0 : index
    %c0_37 = arith.constant 0 : index
    %142 = vector.load %arg2[%c0_36, %c0_37] : memref<64x256xbf16, #tpu.memory_space<vmem>>, vector<64x256xbf16>
    %cst_38 = arith.constant dense<0.000000e+00> : vector<16x256xf32>
    %143 = tpu.matmul %141, %142, %cst_38 {dimension_numbers = #tpu.dot_dimension_numbers<[1], [0], [0], [1], [0, 0, 1, 1], [], []>} : vector<16x64xbf16>, vector<64x256xbf16>, vector<16x256xf32> -> vector<16x256xf32>
    %c0_39 = arith.constant 0 : index
    %c0_40 = arith.constant 0 : index
    %144 = vector.load %arg4[%c0_39, %c0_40] : memref<1x256xf32, #tpu.memory_space<vmem>>, vector<1x256xf32>
    %145 = vector.broadcast %144 : vector<1x256xf32> to vector<16x256xf32>
    %146 = arith.addf %143, %145 : vector<16x256xf32>
    %c16_i32_41 = arith.constant 16 : i32
    %147 = arith.muli %c2_i32, %c16_i32_41 : i32
    %148 = tpu.assume_multiple %147, 16 : i32
    %149 = arith.index_cast %148 : i32 to index
    %c0_42 = arith.constant 0 : index
    %150 = vector.load %arg10[%149, %c0_42] : memref<128x256xbf16, #tpu.memory_space<vmem>>, vector<16x96xbf16>
    %151 = arith.extf %150 : vector<16x96xbf16> to vector<16x96xf32>
    %152 = vector.extract_strided_slice %146 {offsets = [0, 0], sizes = [16, 96], strides = [1, 1]} : vector<16x256xf32> to vector<16x96xf32>
    %153 = vector.extract_strided_slice %140 {offsets = [0, 0], sizes = [16, 32], strides = [1, 1]} : vector<16x64xf32> to vector<16x32xf32>
    %154 = vector.extract_strided_slice %151 {offsets = [0, 0], sizes = [16, 64], strides = [1, 1]} : vector<16x96xf32> to vector<16x64xf32>
    %155 = vector.extract_strided_slice %152 {offsets = [0, 0], sizes = [16, 64], strides = [1, 1]} : vector<16x96xf32> to vector<16x64xf32>
    %156 = arith.addf %154, %155 : vector<16x64xf32>
    %157 = arith.negf %156 : vector<16x64xf32>
    %158 = math.exp %157 : vector<16x64xf32>
    %cst_43 = arith.constant 1.000000e+00 : f32
    %159 = vector.broadcast %cst_43 : f32 to vector<16x64xf32>
    %160 = arith.addf %159, %158 : vector<16x64xf32>
    %161 = arith.divf %159, %160 : vector<16x64xf32>
    %162 = vector.extract_strided_slice %161 {offsets = [0, 0], sizes = [16, 32], strides = [1, 1]} : vector<16x64xf32> to vector<16x32xf32>
    %163 = vector.extract_strided_slice %161 {offsets = [0, 32], sizes = [16, 32], strides = [1, 1]} : vector<16x64xf32> to vector<16x32xf32>
    %164 = vector.extract_strided_slice %151 {offsets = [0, 64], sizes = [16, 32], strides = [1, 1]} : vector<16x96xf32> to vector<16x32xf32>
    %165 = vector.extract_strided_slice %152 {offsets = [0, 64], sizes = [16, 32], strides = [1, 1]} : vector<16x96xf32> to vector<16x32xf32>
    %166 = arith.mulf %162, %165 : vector<16x32xf32>
    %167 = arith.addf %164, %166 : vector<16x32xf32>
    %168 = math.tanh %167 : vector<16x32xf32>
    %cst_44 = arith.constant 1.000000e+00 : f32
    %169 = vector.broadcast %cst_44 : f32 to vector<16x32xf32>
    %170 = arith.subf %169, %163 : vector<16x32xf32>
    %171 = arith.mulf %170, %168 : vector<16x32xf32>
    %172 = arith.mulf %163, %153 : vector<16x32xf32>
    %173 = arith.addf %171, %172 : vector<16x32xf32>
    %174 = arith.index_cast %148 : i32 to index
    %c0_45 = arith.constant 0 : index
    %175 = vector.load %arg9[%174, %c0_45] : memref<128x64xf32, #tpu.memory_space<vmem>>, vector<16x32xf32>
    tpu.vector_store %arg9[%174, %c0_45], %173 {strides = array<i32>} : memref<128x64xf32, #tpu.memory_space<vmem>>, vector<16x32xf32>,
    %c7_i32_46 = arith.constant 7 : i32
    %176 = arith.subi %c7_i32_46, %c2_i32 : i32
    %c16_i32_47 = arith.constant 16 : i32
    %177 = arith.muli %176, %c16_i32_47 : i32
    %178 = tpu.assume_multiple %177, 16 : i32
    %179 = arith.index_cast %178 : i32 to index
    %c128_48 = arith.constant 128 : index
    %180 = vector.load %arg10[%179, %c128_48] : memref<128x256xbf16, #tpu.memory_space<vmem>>, vector<16x96xbf16>
    %181 = arith.extf %180 : vector<16x96xbf16> to vector<16x96xf32>
    %182 = vector.extract_strided_slice %146 {offsets = [0, 128], sizes = [16, 96], strides = [1, 1]} : vector<16x256xf32> to vector<16x96xf32>
    %183 = vector.extract_strided_slice %140 {offsets = [0, 32], sizes = [16, 32], strides = [1, 1]} : vector<16x64xf32> to vector<16x32xf32>
    %184 = vector.extract_strided_slice %181 {offsets = [0, 0], sizes = [16, 64], strides = [1, 1]} : vector<16x96xf32> to vector<16x64xf32>
    %185 = vector.extract_strided_slice %182 {offsets = [0, 0], sizes = [16, 64], strides = [1, 1]} : vector<16x96xf32> to vector<16x64xf32>
    %186 = arith.addf %184, %185 : vector<16x64xf32>
    %187 = arith.negf %186 : vector<16x64xf32>
    %188 = math.exp %187 : vector<16x64xf32>
    %cst_49 = arith.constant 1.000000e+00 : f32
    %189 = vector.broadcast %cst_49 : f32 to vector<16x64xf32>
    %190 = arith.addf %189, %188 : vector<16x64xf32>
    %191 = arith.divf %189, %190 : vector<16x64xf32>
    %192 = vector.extract_strided_slice %191 {offsets = [0, 0], sizes = [16, 32], strides = [1, 1]} : vector<16x64xf32> to vector<16x32xf32>
    %193 = vector.extract_strided_slice %191 {offsets = [0, 32], sizes = [16, 32], strides = [1, 1]} : vector<16x64xf32> to vector<16x32xf32>
    %194 = vector.extract_strided_slice %181 {offsets = [0, 64], sizes = [16, 32], strides = [1, 1]} : vector<16x96xf32> to vector<16x32xf32>
    %195 = vector.extract_strided_slice %182 {offsets = [0, 64], sizes = [16, 32], strides = [1, 1]} : vector<16x96xf32> to vector<16x32xf32>
    %196 = arith.mulf %192, %195 : vector<16x32xf32>
    %197 = arith.addf %194, %196 : vector<16x32xf32>
    %198 = math.tanh %197 : vector<16x32xf32>
    %cst_50 = arith.constant 1.000000e+00 : f32
    %199 = vector.broadcast %cst_50 : f32 to vector<16x32xf32>
    %200 = arith.subf %199, %193 : vector<16x32xf32>
    %201 = arith.mulf %200, %198 : vector<16x32xf32>
    %202 = arith.mulf %193, %183 : vector<16x32xf32>
    %203 = arith.addf %201, %202 : vector<16x32xf32>
    %204 = arith.index_cast %178 : i32 to index
    %c32_51 = arith.constant 32 : index
    %205 = vector.load %arg9[%204, %c32_51] : memref<128x64xf32, #tpu.memory_space<vmem>>, vector<16x32xf32>
    tpu.vector_store %arg9[%204, %c32_51], %203 {strides = array<i32>} : memref<128x64xf32, #tpu.memory_space<vmem>>, vector<16x32xf32>,
    %206 = tpu.concatenate %173, %203 in 1 : vector<16x32xf32>, vector<16x32xf32> -> vector<16x64xf32>
    %c3_i32 = arith.constant 3 : i32
    %207 = arith.truncf %206 : vector<16x64xf32> to vector<16x64xbf16>
    %c0_52 = arith.constant 0 : index
    %c0_53 = arith.constant 0 : index
    %208 = vector.load %arg2[%c0_52, %c0_53] : memref<64x256xbf16, #tpu.memory_space<vmem>>, vector<64x256xbf16>
    %cst_54 = arith.constant dense<0.000000e+00> : vector<16x256xf32>
    %209 = tpu.matmul %207, %208, %cst_54 {dimension_numbers = #tpu.dot_dimension_numbers<[1], [0], [0], [1], [0, 0, 1, 1], [], []>} : vector<16x64xbf16>, vector<64x256xbf16>, vector<16x256xf32> -> vector<16x256xf32>
    %c0_55 = arith.constant 0 : index
    %c0_56 = arith.constant 0 : index
    %210 = vector.load %arg4[%c0_55, %c0_56] : memref<1x256xf32, #tpu.memory_space<vmem>>, vector<1x256xf32>
    %211 = vector.broadcast %210 : vector<1x256xf32> to vector<16x256xf32>
    %212 = arith.addf %209, %211 : vector<16x256xf32>
    %c16_i32_57 = arith.constant 16 : i32
    %213 = arith.muli %c3_i32, %c16_i32_57 : i32
    %214 = tpu.assume_multiple %213, 16 : i32
    %215 = arith.index_cast %214 : i32 to index
    %c0_58 = arith.constant 0 : index
    %216 = vector.load %arg10[%215, %c0_58] : memref<128x256xbf16, #tpu.memory_space<vmem>>, vector<16x96xbf16>
    %217 = arith.extf %216 : vector<16x96xbf16> to vector<16x96xf32>
    %218 = vector.extract_strided_slice %212 {offsets = [0, 0], sizes = [16, 96], strides = [1, 1]} : vector<16x256xf32> to vector<16x96xf32>
    %219 = vector.extract_strided_slice %206 {offsets = [0, 0], sizes = [16, 32], strides = [1, 1]} : vector<16x64xf32> to vector<16x32xf32>
    %220 = vector.extract_strided_slice %217 {offsets = [0, 0], sizes = [16, 64], strides = [1, 1]} : vector<16x96xf32> to vector<16x64xf32>
    %221 = vector.extract_strided_slice %218 {offsets = [0, 0], sizes = [16, 64], strides = [1, 1]} : vector<16x96xf32> to vector<16x64xf32>
    %222 = arith.addf %220, %221 : vector<16x64xf32>
    %223 = arith.negf %222 : vector<16x64xf32>
    %224 = math.exp %223 : vector<16x64xf32>
    %cst_59 = arith.constant 1.000000e+00 : f32
    %225 = vector.broadcast %cst_59 : f32 to vector<16x64xf32>
    %226 = arith.addf %225, %224 : vector<16x64xf32>
    %227 = arith.divf %225, %226 : vector<16x64xf32>
    %228 = vector.extract_strided_slice %227 {offsets = [0, 0], sizes = [16, 32], strides = [1, 1]} : vector<16x64xf32> to vector<16x32xf32>
    %229 = vector.extract_strided_slice %227 {offsets = [0, 32], sizes = [16, 32], strides = [1, 1]} : vector<16x64xf32> to vector<16x32xf32>
    %230 = vector.extract_strided_slice %217 {offsets = [0, 64], sizes = [16, 32], strides = [1, 1]} : vector<16x96xf32> to vector<16x32xf32>
    %231 = vector.extract_strided_slice %218 {offsets = [0, 64], sizes = [16, 32], strides = [1, 1]} : vector<16x96xf32> to vector<16x32xf32>
    %232 = arith.mulf %228, %231 : vector<16x32xf32>
    %233 = arith.addf %230, %232 : vector<16x32xf32>
    %234 = math.tanh %233 : vector<16x32xf32>
    %cst_60 = arith.constant 1.000000e+00 : f32
    %235 = vector.broadcast %cst_60 : f32 to vector<16x32xf32>
    %236 = arith.subf %235, %229 : vector<16x32xf32>
    %237 = arith.mulf %236, %234 : vector<16x32xf32>
    %238 = arith.mulf %229, %219 : vector<16x32xf32>
    %239 = arith.addf %237, %238 : vector<16x32xf32>
    %240 = arith.index_cast %214 : i32 to index
    %c0_61 = arith.constant 0 : index
    %241 = vector.load %arg9[%240, %c0_61] : memref<128x64xf32, #tpu.memory_space<vmem>>, vector<16x32xf32>
    tpu.vector_store %arg9[%240, %c0_61], %239 {strides = array<i32>} : memref<128x64xf32, #tpu.memory_space<vmem>>, vector<16x32xf32>,
    %c7_i32_62 = arith.constant 7 : i32
    %242 = arith.subi %c7_i32_62, %c3_i32 : i32
    %c16_i32_63 = arith.constant 16 : i32
    %243 = arith.muli %242, %c16_i32_63 : i32
    %244 = tpu.assume_multiple %243, 16 : i32
    %245 = arith.index_cast %244 : i32 to index
    %c128_64 = arith.constant 128 : index
    %246 = vector.load %arg10[%245, %c128_64] : memref<128x256xbf16, #tpu.memory_space<vmem>>, vector<16x96xbf16>
    %247 = arith.extf %246 : vector<16x96xbf16> to vector<16x96xf32>
    %248 = vector.extract_strided_slice %212 {offsets = [0, 128], sizes = [16, 96], strides = [1, 1]} : vector<16x256xf32> to vector<16x96xf32>
    %249 = vector.extract_strided_slice %206 {offsets = [0, 32], sizes = [16, 32], strides = [1, 1]} : vector<16x64xf32> to vector<16x32xf32>
    %250 = vector.extract_strided_slice %247 {offsets = [0, 0], sizes = [16, 64], strides = [1, 1]} : vector<16x96xf32> to vector<16x64xf32>
    %251 = vector.extract_strided_slice %248 {offsets = [0, 0], sizes = [16, 64], strides = [1, 1]} : vector<16x96xf32> to vector<16x64xf32>
    %252 = arith.addf %250, %251 : vector<16x64xf32>
    %253 = arith.negf %252 : vector<16x64xf32>
    %254 = math.exp %253 : vector<16x64xf32>
    %cst_65 = arith.constant 1.000000e+00 : f32
    %255 = vector.broadcast %cst_65 : f32 to vector<16x64xf32>
    %256 = arith.addf %255, %254 : vector<16x64xf32>
    %257 = arith.divf %255, %256 : vector<16x64xf32>
    %258 = vector.extract_strided_slice %257 {offsets = [0, 0], sizes = [16, 32], strides = [1, 1]} : vector<16x64xf32> to vector<16x32xf32>
    %259 = vector.extract_strided_slice %257 {offsets = [0, 32], sizes = [16, 32], strides = [1, 1]} : vector<16x64xf32> to vector<16x32xf32>
    %260 = vector.extract_strided_slice %247 {offsets = [0, 64], sizes = [16, 32], strides = [1, 1]} : vector<16x96xf32> to vector<16x32xf32>
    %261 = vector.extract_strided_slice %248 {offsets = [0, 64], sizes = [16, 32], strides = [1, 1]} : vector<16x96xf32> to vector<16x32xf32>
    %262 = arith.mulf %258, %261 : vector<16x32xf32>
    %263 = arith.addf %260, %262 : vector<16x32xf32>
    %264 = math.tanh %263 : vector<16x32xf32>
    %cst_66 = arith.constant 1.000000e+00 : f32
    %265 = vector.broadcast %cst_66 : f32 to vector<16x32xf32>
    %266 = arith.subf %265, %259 : vector<16x32xf32>
    %267 = arith.mulf %266, %264 : vector<16x32xf32>
    %268 = arith.mulf %259, %249 : vector<16x32xf32>
    %269 = arith.addf %267, %268 : vector<16x32xf32>
    %270 = arith.index_cast %244 : i32 to index
    %c32_67 = arith.constant 32 : index
    %271 = vector.load %arg9[%270, %c32_67] : memref<128x64xf32, #tpu.memory_space<vmem>>, vector<16x32xf32>
    tpu.vector_store %arg9[%270, %c32_67], %269 {strides = array<i32>} : memref<128x64xf32, #tpu.memory_space<vmem>>, vector<16x32xf32>,
    %272 = tpu.concatenate %239, %269 in 1 : vector<16x32xf32>, vector<16x32xf32> -> vector<16x64xf32>
    %c4_i32 = arith.constant 4 : i32
    %273 = arith.truncf %272 : vector<16x64xf32> to vector<16x64xbf16>
    %c0_68 = arith.constant 0 : index
    %c0_69 = arith.constant 0 : index
    %274 = vector.load %arg2[%c0_68, %c0_69] : memref<64x256xbf16, #tpu.memory_space<vmem>>, vector<64x256xbf16>
    %cst_70 = arith.constant dense<0.000000e+00> : vector<16x256xf32>
    %275 = tpu.matmul %273, %274, %cst_70 {dimension_numbers = #tpu.dot_dimension_numbers<[1], [0], [0], [1], [0, 0, 1, 1], [], []>} : vector<16x64xbf16>, vector<64x256xbf16>, vector<16x256xf32> -> vector<16x256xf32>
    %c0_71 = arith.constant 0 : index
    %c0_72 = arith.constant 0 : index
    %276 = vector.load %arg4[%c0_71, %c0_72] : memref<1x256xf32, #tpu.memory_space<vmem>>, vector<1x256xf32>
    %277 = vector.broadcast %276 : vector<1x256xf32> to vector<16x256xf32>
    %278 = arith.addf %275, %277 : vector<16x256xf32>
    %c16_i32_73 = arith.constant 16 : i32
    %279 = arith.muli %c4_i32, %c16_i32_73 : i32
    %280 = tpu.assume_multiple %279, 16 : i32
    %281 = arith.index_cast %280 : i32 to index
    %c0_74 = arith.constant 0 : index
    %282 = vector.load %arg10[%281, %c0_74] : memref<128x256xbf16, #tpu.memory_space<vmem>>, vector<16x96xbf16>
    %283 = arith.extf %282 : vector<16x96xbf16> to vector<16x96xf32>
    %284 = vector.extract_strided_slice %278 {offsets = [0, 0], sizes = [16, 96], strides = [1, 1]} : vector<16x256xf32> to vector<16x96xf32>
    %285 = vector.extract_strided_slice %272 {offsets = [0, 0], sizes = [16, 32], strides = [1, 1]} : vector<16x64xf32> to vector<16x32xf32>
    %286 = vector.extract_strided_slice %283 {offsets = [0, 0], sizes = [16, 64], strides = [1, 1]} : vector<16x96xf32> to vector<16x64xf32>
    %287 = vector.extract_strided_slice %284 {offsets = [0, 0], sizes = [16, 64], strides = [1, 1]} : vector<16x96xf32> to vector<16x64xf32>
    %288 = arith.addf %286, %287 : vector<16x64xf32>
    %289 = arith.negf %288 : vector<16x64xf32>
    %290 = math.exp %289 : vector<16x64xf32>
    %cst_75 = arith.constant 1.000000e+00 : f32
    %291 = vector.broadcast %cst_75 : f32 to vector<16x64xf32>
    %292 = arith.addf %291, %290 : vector<16x64xf32>
    %293 = arith.divf %291, %292 : vector<16x64xf32>
    %294 = vector.extract_strided_slice %293 {offsets = [0, 0], sizes = [16, 32], strides = [1, 1]} : vector<16x64xf32> to vector<16x32xf32>
    %295 = vector.extract_strided_slice %293 {offsets = [0, 32], sizes = [16, 32], strides = [1, 1]} : vector<16x64xf32> to vector<16x32xf32>
    %296 = vector.extract_strided_slice %283 {offsets = [0, 64], sizes = [16, 32], strides = [1, 1]} : vector<16x96xf32> to vector<16x32xf32>
    %297 = vector.extract_strided_slice %284 {offsets = [0, 64], sizes = [16, 32], strides = [1, 1]} : vector<16x96xf32> to vector<16x32xf32>
    %298 = arith.mulf %294, %297 : vector<16x32xf32>
    %299 = arith.addf %296, %298 : vector<16x32xf32>
    %300 = math.tanh %299 : vector<16x32xf32>
    %cst_76 = arith.constant 1.000000e+00 : f32
    %301 = vector.broadcast %cst_76 : f32 to vector<16x32xf32>
    %302 = arith.subf %301, %295 : vector<16x32xf32>
    %303 = arith.mulf %302, %300 : vector<16x32xf32>
    %304 = arith.mulf %295, %285 : vector<16x32xf32>
    %305 = arith.addf %303, %304 : vector<16x32xf32>
    %306 = arith.index_cast %280 : i32 to index
    %c0_77 = arith.constant 0 : index
    %307 = vector.load %arg9[%306, %c0_77] : memref<128x64xf32, #tpu.memory_space<vmem>>, vector<16x32xf32>
    tpu.vector_store %arg9[%306, %c0_77], %305 {strides = array<i32>} : memref<128x64xf32, #tpu.memory_space<vmem>>, vector<16x32xf32>,
    %c7_i32_78 = arith.constant 7 : i32
    %308 = arith.subi %c7_i32_78, %c4_i32 : i32
    %c16_i32_79 = arith.constant 16 : i32
    %309 = arith.muli %308, %c16_i32_79 : i32
    %310 = tpu.assume_multiple %309, 16 : i32
    %311 = arith.index_cast %310 : i32 to index
    %c128_80 = arith.constant 128 : index
    %312 = vector.load %arg10[%311, %c128_80] : memref<128x256xbf16, #tpu.memory_space<vmem>>, vector<16x96xbf16>
    %313 = arith.extf %312 : vector<16x96xbf16> to vector<16x96xf32>
    %314 = vector.extract_strided_slice %278 {offsets = [0, 128], sizes = [16, 96], strides = [1, 1]} : vector<16x256xf32> to vector<16x96xf32>
    %315 = vector.extract_strided_slice %272 {offsets = [0, 32], sizes = [16, 32], strides = [1, 1]} : vector<16x64xf32> to vector<16x32xf32>
    %316 = vector.extract_strided_slice %313 {offsets = [0, 0], sizes = [16, 64], strides = [1, 1]} : vector<16x96xf32> to vector<16x64xf32>
    %317 = vector.extract_strided_slice %314 {offsets = [0, 0], sizes = [16, 64], strides = [1, 1]} : vector<16x96xf32> to vector<16x64xf32>
    %318 = arith.addf %316, %317 : vector<16x64xf32>
    %319 = arith.negf %318 : vector<16x64xf32>
    %320 = math.exp %319 : vector<16x64xf32>
    %cst_81 = arith.constant 1.000000e+00 : f32
    %321 = vector.broadcast %cst_81 : f32 to vector<16x64xf32>
    %322 = arith.addf %321, %320 : vector<16x64xf32>
    %323 = arith.divf %321, %322 : vector<16x64xf32>
    %324 = vector.extract_strided_slice %323 {offsets = [0, 0], sizes = [16, 32], strides = [1, 1]} : vector<16x64xf32> to vector<16x32xf32>
    %325 = vector.extract_strided_slice %323 {offsets = [0, 32], sizes = [16, 32], strides = [1, 1]} : vector<16x64xf32> to vector<16x32xf32>
    %326 = vector.extract_strided_slice %313 {offsets = [0, 64], sizes = [16, 32], strides = [1, 1]} : vector<16x96xf32> to vector<16x32xf32>
    %327 = vector.extract_strided_slice %314 {offsets = [0, 64], sizes = [16, 32], strides = [1, 1]} : vector<16x96xf32> to vector<16x32xf32>
    %328 = arith.mulf %324, %327 : vector<16x32xf32>
    %329 = arith.addf %326, %328 : vector<16x32xf32>
    %330 = math.tanh %329 : vector<16x32xf32>
    %cst_82 = arith.constant 1.000000e+00 : f32
    %331 = vector.broadcast %cst_82 : f32 to vector<16x32xf32>
    %332 = arith.subf %331, %325 : vector<16x32xf32>
    %333 = arith.mulf %332, %330 : vector<16x32xf32>
    %334 = arith.mulf %325, %315 : vector<16x32xf32>
    %335 = arith.addf %333, %334 : vector<16x32xf32>
    %336 = arith.index_cast %310 : i32 to index
    %c32_83 = arith.constant 32 : index
    %337 = vector.load %arg9[%336, %c32_83] : memref<128x64xf32, #tpu.memory_space<vmem>>, vector<16x32xf32>
    tpu.vector_store %arg9[%336, %c32_83], %335 {strides = array<i32>} : memref<128x64xf32, #tpu.memory_space<vmem>>, vector<16x32xf32>,
    %338 = tpu.concatenate %305, %335 in 1 : vector<16x32xf32>, vector<16x32xf32> -> vector<16x64xf32>
    %c5_i32 = arith.constant 5 : i32
    %339 = arith.truncf %338 : vector<16x64xf32> to vector<16x64xbf16>
    %c0_84 = arith.constant 0 : index
    %c0_85 = arith.constant 0 : index
    %340 = vector.load %arg2[%c0_84, %c0_85] : memref<64x256xbf16, #tpu.memory_space<vmem>>, vector<64x256xbf16>
    %cst_86 = arith.constant dense<0.000000e+00> : vector<16x256xf32>
    %341 = tpu.matmul %339, %340, %cst_86 {dimension_numbers = #tpu.dot_dimension_numbers<[1], [0], [0], [1], [0, 0, 1, 1], [], []>} : vector<16x64xbf16>, vector<64x256xbf16>, vector<16x256xf32> -> vector<16x256xf32>
    %c0_87 = arith.constant 0 : index
    %c0_88 = arith.constant 0 : index
    %342 = vector.load %arg4[%c0_87, %c0_88] : memref<1x256xf32, #tpu.memory_space<vmem>>, vector<1x256xf32>
    %343 = vector.broadcast %342 : vector<1x256xf32> to vector<16x256xf32>
    %344 = arith.addf %341, %343 : vector<16x256xf32>
    %c16_i32_89 = arith.constant 16 : i32
    %345 = arith.muli %c5_i32, %c16_i32_89 : i32
    %346 = tpu.assume_multiple %345, 16 : i32
    %347 = arith.index_cast %346 : i32 to index
    %c0_90 = arith.constant 0 : index
    %348 = vector.load %arg10[%347, %c0_90] : memref<128x256xbf16, #tpu.memory_space<vmem>>, vector<16x96xbf16>
    %349 = arith.extf %348 : vector<16x96xbf16> to vector<16x96xf32>
    %350 = vector.extract_strided_slice %344 {offsets = [0, 0], sizes = [16, 96], strides = [1, 1]} : vector<16x256xf32> to vector<16x96xf32>
    %351 = vector.extract_strided_slice %338 {offsets = [0, 0], sizes = [16, 32], strides = [1, 1]} : vector<16x64xf32> to vector<16x32xf32>
    %352 = vector.extract_strided_slice %349 {offsets = [0, 0], sizes = [16, 64], strides = [1, 1]} : vector<16x96xf32> to vector<16x64xf32>
    %353 = vector.extract_strided_slice %350 {offsets = [0, 0], sizes = [16, 64], strides = [1, 1]} : vector<16x96xf32> to vector<16x64xf32>
    %354 = arith.addf %352, %353 : vector<16x64xf32>
    %355 = arith.negf %354 : vector<16x64xf32>
    %356 = math.exp %355 : vector<16x64xf32>
    %cst_91 = arith.constant 1.000000e+00 : f32
    %357 = vector.broadcast %cst_91 : f32 to vector<16x64xf32>
    %358 = arith.addf %357, %356 : vector<16x64xf32>
    %359 = arith.divf %357, %358 : vector<16x64xf32>
    %360 = vector.extract_strided_slice %359 {offsets = [0, 0], sizes = [16, 32], strides = [1, 1]} : vector<16x64xf32> to vector<16x32xf32>
    %361 = vector.extract_strided_slice %359 {offsets = [0, 32], sizes = [16, 32], strides = [1, 1]} : vector<16x64xf32> to vector<16x32xf32>
    %362 = vector.extract_strided_slice %349 {offsets = [0, 64], sizes = [16, 32], strides = [1, 1]} : vector<16x96xf32> to vector<16x32xf32>
    %363 = vector.extract_strided_slice %350 {offsets = [0, 64], sizes = [16, 32], strides = [1, 1]} : vector<16x96xf32> to vector<16x32xf32>
    %364 = arith.mulf %360, %363 : vector<16x32xf32>
    %365 = arith.addf %362, %364 : vector<16x32xf32>
    %366 = math.tanh %365 : vector<16x32xf32>
    %cst_92 = arith.constant 1.000000e+00 : f32
    %367 = vector.broadcast %cst_92 : f32 to vector<16x32xf32>
    %368 = arith.subf %367, %361 : vector<16x32xf32>
    %369 = arith.mulf %368, %366 : vector<16x32xf32>
    %370 = arith.mulf %361, %351 : vector<16x32xf32>
    %371 = arith.addf %369, %370 : vector<16x32xf32>
    %372 = arith.index_cast %346 : i32 to index
    %c0_93 = arith.constant 0 : index
    %373 = vector.load %arg9[%372, %c0_93] : memref<128x64xf32, #tpu.memory_space<vmem>>, vector<16x32xf32>
    tpu.vector_store %arg9[%372, %c0_93], %371 {strides = array<i32>} : memref<128x64xf32, #tpu.memory_space<vmem>>, vector<16x32xf32>,
    %c7_i32_94 = arith.constant 7 : i32
    %374 = arith.subi %c7_i32_94, %c5_i32 : i32
    %c16_i32_95 = arith.constant 16 : i32
    %375 = arith.muli %374, %c16_i32_95 : i32
    %376 = tpu.assume_multiple %375, 16 : i32
    %377 = arith.index_cast %376 : i32 to index
    %c128_96 = arith.constant 128 : index
    %378 = vector.load %arg10[%377, %c128_96] : memref<128x256xbf16, #tpu.memory_space<vmem>>, vector<16x96xbf16>
    %379 = arith.extf %378 : vector<16x96xbf16> to vector<16x96xf32>
    %380 = vector.extract_strided_slice %344 {offsets = [0, 128], sizes = [16, 96], strides = [1, 1]} : vector<16x256xf32> to vector<16x96xf32>
    %381 = vector.extract_strided_slice %338 {offsets = [0, 32], sizes = [16, 32], strides = [1, 1]} : vector<16x64xf32> to vector<16x32xf32>
    %382 = vector.extract_strided_slice %379 {offsets = [0, 0], sizes = [16, 64], strides = [1, 1]} : vector<16x96xf32> to vector<16x64xf32>
    %383 = vector.extract_strided_slice %380 {offsets = [0, 0], sizes = [16, 64], strides = [1, 1]} : vector<16x96xf32> to vector<16x64xf32>
    %384 = arith.addf %382, %383 : vector<16x64xf32>
    %385 = arith.negf %384 : vector<16x64xf32>
    %386 = math.exp %385 : vector<16x64xf32>
    %cst_97 = arith.constant 1.000000e+00 : f32
    %387 = vector.broadcast %cst_97 : f32 to vector<16x64xf32>
    %388 = arith.addf %387, %386 : vector<16x64xf32>
    %389 = arith.divf %387, %388 : vector<16x64xf32>
    %390 = vector.extract_strided_slice %389 {offsets = [0, 0], sizes = [16, 32], strides = [1, 1]} : vector<16x64xf32> to vector<16x32xf32>
    %391 = vector.extract_strided_slice %389 {offsets = [0, 32], sizes = [16, 32], strides = [1, 1]} : vector<16x64xf32> to vector<16x32xf32>
    %392 = vector.extract_strided_slice %379 {offsets = [0, 64], sizes = [16, 32], strides = [1, 1]} : vector<16x96xf32> to vector<16x32xf32>
    %393 = vector.extract_strided_slice %380 {offsets = [0, 64], sizes = [16, 32], strides = [1, 1]} : vector<16x96xf32> to vector<16x32xf32>
    %394 = arith.mulf %390, %393 : vector<16x32xf32>
    %395 = arith.addf %392, %394 : vector<16x32xf32>
    %396 = math.tanh %395 : vector<16x32xf32>
    %cst_98 = arith.constant 1.000000e+00 : f32
    %397 = vector.broadcast %cst_98 : f32 to vector<16x32xf32>
    %398 = arith.subf %397, %391 : vector<16x32xf32>
    %399 = arith.mulf %398, %396 : vector<16x32xf32>
    %400 = arith.mulf %391, %381 : vector<16x32xf32>
    %401 = arith.addf %399, %400 : vector<16x32xf32>
    %402 = arith.index_cast %376 : i32 to index
    %c32_99 = arith.constant 32 : index
    %403 = vector.load %arg9[%402, %c32_99] : memref<128x64xf32, #tpu.memory_space<vmem>>, vector<16x32xf32>
    tpu.vector_store %arg9[%402, %c32_99], %401 {strides = array<i32>} : memref<128x64xf32, #tpu.memory_space<vmem>>, vector<16x32xf32>,
    %404 = tpu.concatenate %371, %401 in 1 : vector<16x32xf32>, vector<16x32xf32> -> vector<16x64xf32>
    %c6_i32 = arith.constant 6 : i32
    %405 = arith.truncf %404 : vector<16x64xf32> to vector<16x64xbf16>
    %c0_100 = arith.constant 0 : index
    %c0_101 = arith.constant 0 : index
    %406 = vector.load %arg2[%c0_100, %c0_101] : memref<64x256xbf16, #tpu.memory_space<vmem>>, vector<64x256xbf16>
    %cst_102 = arith.constant dense<0.000000e+00> : vector<16x256xf32>
    %407 = tpu.matmul %405, %406, %cst_102 {dimension_numbers = #tpu.dot_dimension_numbers<[1], [0], [0], [1], [0, 0, 1, 1], [], []>} : vector<16x64xbf16>, vector<64x256xbf16>, vector<16x256xf32> -> vector<16x256xf32>
    %c0_103 = arith.constant 0 : index
    %c0_104 = arith.constant 0 : index
    %408 = vector.load %arg4[%c0_103, %c0_104] : memref<1x256xf32, #tpu.memory_space<vmem>>, vector<1x256xf32>
    %409 = vector.broadcast %408 : vector<1x256xf32> to vector<16x256xf32>
    %410 = arith.addf %407, %409 : vector<16x256xf32>
    %c16_i32_105 = arith.constant 16 : i32
    %411 = arith.muli %c6_i32, %c16_i32_105 : i32
    %412 = tpu.assume_multiple %411, 16 : i32
    %413 = arith.index_cast %412 : i32 to index
    %c0_106 = arith.constant 0 : index
    %414 = vector.load %arg10[%413, %c0_106] : memref<128x256xbf16, #tpu.memory_space<vmem>>, vector<16x96xbf16>
    %415 = arith.extf %414 : vector<16x96xbf16> to vector<16x96xf32>
    %416 = vector.extract_strided_slice %410 {offsets = [0, 0], sizes = [16, 96], strides = [1, 1]} : vector<16x256xf32> to vector<16x96xf32>
    %417 = vector.extract_strided_slice %404 {offsets = [0, 0], sizes = [16, 32], strides = [1, 1]} : vector<16x64xf32> to vector<16x32xf32>
    %418 = vector.extract_strided_slice %415 {offsets = [0, 0], sizes = [16, 64], strides = [1, 1]} : vector<16x96xf32> to vector<16x64xf32>
    %419 = vector.extract_strided_slice %416 {offsets = [0, 0], sizes = [16, 64], strides = [1, 1]} : vector<16x96xf32> to vector<16x64xf32>
    %420 = arith.addf %418, %419 : vector<16x64xf32>
    %421 = arith.negf %420 : vector<16x64xf32>
    %422 = math.exp %421 : vector<16x64xf32>
    %cst_107 = arith.constant 1.000000e+00 : f32
    %423 = vector.broadcast %cst_107 : f32 to vector<16x64xf32>
    %424 = arith.addf %423, %422 : vector<16x64xf32>
    %425 = arith.divf %423, %424 : vector<16x64xf32>
    %426 = vector.extract_strided_slice %425 {offsets = [0, 0], sizes = [16, 32], strides = [1, 1]} : vector<16x64xf32> to vector<16x32xf32>
    %427 = vector.extract_strided_slice %425 {offsets = [0, 32], sizes = [16, 32], strides = [1, 1]} : vector<16x64xf32> to vector<16x32xf32>
    %428 = vector.extract_strided_slice %415 {offsets = [0, 64], sizes = [16, 32], strides = [1, 1]} : vector<16x96xf32> to vector<16x32xf32>
    %429 = vector.extract_strided_slice %416 {offsets = [0, 64], sizes = [16, 32], strides = [1, 1]} : vector<16x96xf32> to vector<16x32xf32>
    %430 = arith.mulf %426, %429 : vector<16x32xf32>
    %431 = arith.addf %428, %430 : vector<16x32xf32>
    %432 = math.tanh %431 : vector<16x32xf32>
    %cst_108 = arith.constant 1.000000e+00 : f32
    %433 = vector.broadcast %cst_108 : f32 to vector<16x32xf32>
    %434 = arith.subf %433, %427 : vector<16x32xf32>
    %435 = arith.mulf %434, %432 : vector<16x32xf32>
    %436 = arith.mulf %427, %417 : vector<16x32xf32>
    %437 = arith.addf %435, %436 : vector<16x32xf32>
    %438 = arith.index_cast %412 : i32 to index
    %c0_109 = arith.constant 0 : index
    %439 = vector.load %arg9[%438, %c0_109] : memref<128x64xf32, #tpu.memory_space<vmem>>, vector<16x32xf32>
    tpu.vector_store %arg9[%438, %c0_109], %437 {strides = array<i32>} : memref<128x64xf32, #tpu.memory_space<vmem>>, vector<16x32xf32>,
    %c7_i32_110 = arith.constant 7 : i32
    %440 = arith.subi %c7_i32_110, %c6_i32 : i32
    %c16_i32_111 = arith.constant 16 : i32
    %441 = arith.muli %440, %c16_i32_111 : i32
    %442 = tpu.assume_multiple %441, 16 : i32
    %443 = arith.index_cast %442 : i32 to index
    %c128_112 = arith.constant 128 : index
    %444 = vector.load %arg10[%443, %c128_112] : memref<128x256xbf16, #tpu.memory_space<vmem>>, vector<16x96xbf16>
    %445 = arith.extf %444 : vector<16x96xbf16> to vector<16x96xf32>
    %446 = vector.extract_strided_slice %410 {offsets = [0, 128], sizes = [16, 96], strides = [1, 1]} : vector<16x256xf32> to vector<16x96xf32>
    %447 = vector.extract_strided_slice %404 {offsets = [0, 32], sizes = [16, 32], strides = [1, 1]} : vector<16x64xf32> to vector<16x32xf32>
    %448 = vector.extract_strided_slice %445 {offsets = [0, 0], sizes = [16, 64], strides = [1, 1]} : vector<16x96xf32> to vector<16x64xf32>
    %449 = vector.extract_strided_slice %446 {offsets = [0, 0], sizes = [16, 64], strides = [1, 1]} : vector<16x96xf32> to vector<16x64xf32>
    %450 = arith.addf %448, %449 : vector<16x64xf32>
    %451 = arith.negf %450 : vector<16x64xf32>
    %452 = math.exp %451 : vector<16x64xf32>
    %cst_113 = arith.constant 1.000000e+00 : f32
    %453 = vector.broadcast %cst_113 : f32 to vector<16x64xf32>
    %454 = arith.addf %453, %452 : vector<16x64xf32>
    %455 = arith.divf %453, %454 : vector<16x64xf32>
    %456 = vector.extract_strided_slice %455 {offsets = [0, 0], sizes = [16, 32], strides = [1, 1]} : vector<16x64xf32> to vector<16x32xf32>
    %457 = vector.extract_strided_slice %455 {offsets = [0, 32], sizes = [16, 32], strides = [1, 1]} : vector<16x64xf32> to vector<16x32xf32>
    %458 = vector.extract_strided_slice %445 {offsets = [0, 64], sizes = [16, 32], strides = [1, 1]} : vector<16x96xf32> to vector<16x32xf32>
    %459 = vector.extract_strided_slice %446 {offsets = [0, 64], sizes = [16, 32], strides = [1, 1]} : vector<16x96xf32> to vector<16x32xf32>
    %460 = arith.mulf %456, %459 : vector<16x32xf32>
    %461 = arith.addf %458, %460 : vector<16x32xf32>
    %462 = math.tanh %461 : vector<16x32xf32>
    %cst_114 = arith.constant 1.000000e+00 : f32
    %463 = vector.broadcast %cst_114 : f32 to vector<16x32xf32>
    %464 = arith.subf %463, %457 : vector<16x32xf32>
    %465 = arith.mulf %464, %462 : vector<16x32xf32>
    %466 = arith.mulf %457, %447 : vector<16x32xf32>
    %467 = arith.addf %465, %466 : vector<16x32xf32>
    %468 = arith.index_cast %442 : i32 to index
    %c32_115 = arith.constant 32 : index
    %469 = vector.load %arg9[%468, %c32_115] : memref<128x64xf32, #tpu.memory_space<vmem>>, vector<16x32xf32>
    tpu.vector_store %arg9[%468, %c32_115], %467 {strides = array<i32>} : memref<128x64xf32, #tpu.memory_space<vmem>>, vector<16x32xf32>,
    %470 = tpu.concatenate %437, %467 in 1 : vector<16x32xf32>, vector<16x32xf32> -> vector<16x64xf32>
    %c7_i32_116 = arith.constant 7 : i32
    %471 = arith.truncf %470 : vector<16x64xf32> to vector<16x64xbf16>
    %c0_117 = arith.constant 0 : index
    %c0_118 = arith.constant 0 : index
    %472 = vector.load %arg2[%c0_117, %c0_118] : memref<64x256xbf16, #tpu.memory_space<vmem>>, vector<64x256xbf16>
    %cst_119 = arith.constant dense<0.000000e+00> : vector<16x256xf32>
    %473 = tpu.matmul %471, %472, %cst_119 {dimension_numbers = #tpu.dot_dimension_numbers<[1], [0], [0], [1], [0, 0, 1, 1], [], []>} : vector<16x64xbf16>, vector<64x256xbf16>, vector<16x256xf32> -> vector<16x256xf32>
    %c0_120 = arith.constant 0 : index
    %c0_121 = arith.constant 0 : index
    %474 = vector.load %arg4[%c0_120, %c0_121] : memref<1x256xf32, #tpu.memory_space<vmem>>, vector<1x256xf32>
    %475 = vector.broadcast %474 : vector<1x256xf32> to vector<16x256xf32>
    %476 = arith.addf %473, %475 : vector<16x256xf32>
    %c16_i32_122 = arith.constant 16 : i32
    %477 = arith.muli %c7_i32_116, %c16_i32_122 : i32
    %478 = tpu.assume_multiple %477, 16 : i32
    %479 = arith.index_cast %478 : i32 to index
    %c0_123 = arith.constant 0 : index
    %480 = vector.load %arg10[%479, %c0_123] : memref<128x256xbf16, #tpu.memory_space<vmem>>, vector<16x96xbf16>
    %481 = arith.extf %480 : vector<16x96xbf16> to vector<16x96xf32>
    %482 = vector.extract_strided_slice %476 {offsets = [0, 0], sizes = [16, 96], strides = [1, 1]} : vector<16x256xf32> to vector<16x96xf32>
    %483 = vector.extract_strided_slice %470 {offsets = [0, 0], sizes = [16, 32], strides = [1, 1]} : vector<16x64xf32> to vector<16x32xf32>
    %484 = vector.extract_strided_slice %481 {offsets = [0, 0], sizes = [16, 64], strides = [1, 1]} : vector<16x96xf32> to vector<16x64xf32>
    %485 = vector.extract_strided_slice %482 {offsets = [0, 0], sizes = [16, 64], strides = [1, 1]} : vector<16x96xf32> to vector<16x64xf32>
    %486 = arith.addf %484, %485 : vector<16x64xf32>
    %487 = arith.negf %486 : vector<16x64xf32>
    %488 = math.exp %487 : vector<16x64xf32>
    %cst_124 = arith.constant 1.000000e+00 : f32
    %489 = vector.broadcast %cst_124 : f32 to vector<16x64xf32>
    %490 = arith.addf %489, %488 : vector<16x64xf32>
    %491 = arith.divf %489, %490 : vector<16x64xf32>
    %492 = vector.extract_strided_slice %491 {offsets = [0, 0], sizes = [16, 32], strides = [1, 1]} : vector<16x64xf32> to vector<16x32xf32>
    %493 = vector.extract_strided_slice %491 {offsets = [0, 32], sizes = [16, 32], strides = [1, 1]} : vector<16x64xf32> to vector<16x32xf32>
    %494 = vector.extract_strided_slice %481 {offsets = [0, 64], sizes = [16, 32], strides = [1, 1]} : vector<16x96xf32> to vector<16x32xf32>
    %495 = vector.extract_strided_slice %482 {offsets = [0, 64], sizes = [16, 32], strides = [1, 1]} : vector<16x96xf32> to vector<16x32xf32>
    %496 = arith.mulf %492, %495 : vector<16x32xf32>
    %497 = arith.addf %494, %496 : vector<16x32xf32>
    %498 = math.tanh %497 : vector<16x32xf32>
    %cst_125 = arith.constant 1.000000e+00 : f32
    %499 = vector.broadcast %cst_125 : f32 to vector<16x32xf32>
    %500 = arith.subf %499, %493 : vector<16x32xf32>
    %501 = arith.mulf %500, %498 : vector<16x32xf32>
    %502 = arith.mulf %493, %483 : vector<16x32xf32>
    %503 = arith.addf %501, %502 : vector<16x32xf32>
    %504 = arith.index_cast %478 : i32 to index
    %c0_126 = arith.constant 0 : index
    %505 = vector.load %arg9[%504, %c0_126] : memref<128x64xf32, #tpu.memory_space<vmem>>, vector<16x32xf32>
    tpu.vector_store %arg9[%504, %c0_126], %503 {strides = array<i32>} : memref<128x64xf32, #tpu.memory_space<vmem>>, vector<16x32xf32>,
    %c7_i32_127 = arith.constant 7 : i32
    %506 = arith.subi %c7_i32_127, %c7_i32_116 : i32
    %c16_i32_128 = arith.constant 16 : i32
    %507 = arith.muli %506, %c16_i32_128 : i32
    %508 = tpu.assume_multiple %507, 16 : i32
    %509 = arith.index_cast %508 : i32 to index
    %c128_129 = arith.constant 128 : index
    %510 = vector.load %arg10[%509, %c128_129] : memref<128x256xbf16, #tpu.memory_space<vmem>>, vector<16x96xbf16>
    %511 = arith.extf %510 : vector<16x96xbf16> to vector<16x96xf32>
    %512 = vector.extract_strided_slice %476 {offsets = [0, 128], sizes = [16, 96], strides = [1, 1]} : vector<16x256xf32> to vector<16x96xf32>
    %513 = vector.extract_strided_slice %470 {offsets = [0, 32], sizes = [16, 32], strides = [1, 1]} : vector<16x64xf32> to vector<16x32xf32>
    %514 = vector.extract_strided_slice %511 {offsets = [0, 0], sizes = [16, 64], strides = [1, 1]} : vector<16x96xf32> to vector<16x64xf32>
    %515 = vector.extract_strided_slice %512 {offsets = [0, 0], sizes = [16, 64], strides = [1, 1]} : vector<16x96xf32> to vector<16x64xf32>
    %516 = arith.addf %514, %515 : vector<16x64xf32>
    %517 = arith.negf %516 : vector<16x64xf32>
    %518 = math.exp %517 : vector<16x64xf32>
    %cst_130 = arith.constant 1.000000e+00 : f32
    %519 = vector.broadcast %cst_130 : f32 to vector<16x64xf32>
    %520 = arith.addf %519, %518 : vector<16x64xf32>
    %521 = arith.divf %519, %520 : vector<16x64xf32>
    %522 = vector.extract_strided_slice %521 {offsets = [0, 0], sizes = [16, 32], strides = [1, 1]} : vector<16x64xf32> to vector<16x32xf32>
    %523 = vector.extract_strided_slice %521 {offsets = [0, 32], sizes = [16, 32], strides = [1, 1]} : vector<16x64xf32> to vector<16x32xf32>
    %524 = vector.extract_strided_slice %511 {offsets = [0, 64], sizes = [16, 32], strides = [1, 1]} : vector<16x96xf32> to vector<16x32xf32>
    %525 = vector.extract_strided_slice %512 {offsets = [0, 64], sizes = [16, 32], strides = [1, 1]} : vector<16x96xf32> to vector<16x32xf32>
    %526 = arith.mulf %522, %525 : vector<16x32xf32>
    %527 = arith.addf %524, %526 : vector<16x32xf32>
    %528 = math.tanh %527 : vector<16x32xf32>
    %cst_131 = arith.constant 1.000000e+00 : f32
    %529 = vector.broadcast %cst_131 : f32 to vector<16x32xf32>
    %530 = arith.subf %529, %523 : vector<16x32xf32>
    %531 = arith.mulf %530, %528 : vector<16x32xf32>
    %532 = arith.mulf %523, %513 : vector<16x32xf32>
    %533 = arith.addf %531, %532 : vector<16x32xf32>
    %534 = arith.index_cast %508 : i32 to index
    %c32_132 = arith.constant 32 : index
    %535 = vector.load %arg9[%534, %c32_132] : memref<128x64xf32, #tpu.memory_space<vmem>>, vector<16x32xf32>
    tpu.vector_store %arg9[%534, %c32_132], %533 {strides = array<i32>} : memref<128x64xf32, #tpu.memory_space<vmem>>, vector<16x32xf32>,
    %536 = tpu.concatenate %503, %533 in 1 : vector<16x32xf32>, vector<16x32xf32> -> vector<16x64xf32>
    %c8_i32 = arith.constant 8 : i32
    %c0_133 = arith.constant 0 : index
    %c0_134 = arith.constant 0 : index
    %537 = vector.load %arg9[%c0_133, %c0_134] : memref<128x64xf32, #tpu.memory_space<vmem>>, vector<128x64xf32>
    %538 = arith.truncf %537 : vector<128x64xf32> to vector<128x64xbf16>
    %c0_135 = arith.constant 0 : index
    %c0_136 = arith.constant 0 : index
    %539 = vector.load %arg5[%c0_135, %c0_136] : memref<64x256xbf16, #tpu.memory_space<vmem>>, vector<64x256xbf16>
    %cst_137 = arith.constant dense<0.000000e+00> : vector<128x256xf32>
    %540 = tpu.matmul %538, %539, %cst_137 {dimension_numbers = #tpu.dot_dimension_numbers<[1], [0], [0], [1], [0, 0, 1, 1], [], []>} : vector<128x64xbf16>, vector<64x256xbf16>, vector<128x256xf32> -> vector<128x256xf32>
    %c0_138 = arith.constant 0 : index
    %c0_139 = arith.constant 0 : index
    %541 = vector.load %arg7[%c0_138, %c0_139] : memref<1x256xf32, #tpu.memory_space<vmem>>, vector<1x256xf32>
    %542 = vector.broadcast %541 : vector<1x256xf32> to vector<128x256xf32>
    %543 = arith.addf %540, %542 : vector<128x256xf32>
    %544 = arith.truncf %543 : vector<128x256xf32> to vector<128x256xbf16>
    %c0_140 = arith.constant 0 : index
    %c0_141 = arith.constant 0 : index
    %545 = vector.load %arg10[%c0_140, %c0_141] : memref<128x256xbf16, #tpu.memory_space<vmem>>, vector<128x256xbf16>
    tpu.vector_store %arg10[%c0_140, %c0_141], %544 {strides = array<i32>} : memref<128x256xbf16, #tpu.memory_space<vmem>>, vector<128x256xbf16>,
    %cst_142 = arith.constant 0.000000e+00 : f32
    %546 = vector.broadcast %cst_142 : f32 to vector<16x64xf32>
    %c0_i32_143 = arith.constant 0 : i32
    %547 = arith.truncf %546 : vector<16x64xf32> to vector<16x64xbf16>
    %c0_144 = arith.constant 0 : index
    %c0_145 = arith.constant 0 : index
    %548 = vector.load %arg6[%c0_144, %c0_145] : memref<64x256xbf16, #tpu.memory_space<vmem>>, vector<64x256xbf16>
    %cst_146 = arith.constant dense<0.000000e+00> : vector<16x256xf32>
    %549 = tpu.matmul %547, %548, %cst_146 {dimension_numbers = #tpu.dot_dimension_numbers<[1], [0], [0], [1], [0, 0, 1, 1], [], []>} : vector<16x64xbf16>, vector<64x256xbf16>, vector<16x256xf32> -> vector<16x256xf32>
    %c0_147 = arith.constant 0 : index
    %c0_148 = arith.constant 0 : index
    %550 = vector.load %arg8[%c0_147, %c0_148] : memref<1x256xf32, #tpu.memory_space<vmem>>, vector<1x256xf32>
    %551 = vector.broadcast %550 : vector<1x256xf32> to vector<16x256xf32>
    %552 = arith.addf %549, %551 : vector<16x256xf32>
    %c16_i32_149 = arith.constant 16 : i32
    %553 = arith.muli %c0_i32_143, %c16_i32_149 : i32
    %554 = tpu.assume_multiple %553, 16 : i32
    %555 = arith.index_cast %554 : i32 to index
    %c0_150 = arith.constant 0 : index
    %556 = vector.load %arg10[%555, %c0_150] : memref<128x256xbf16, #tpu.memory_space<vmem>>, vector<16x96xbf16>
    %557 = arith.extf %556 : vector<16x96xbf16> to vector<16x96xf32>
    %558 = vector.extract_strided_slice %552 {offsets = [0, 0], sizes = [16, 96], strides = [1, 1]} : vector<16x256xf32> to vector<16x96xf32>
    %559 = vector.extract_strided_slice %546 {offsets = [0, 0], sizes = [16, 32], strides = [1, 1]} : vector<16x64xf32> to vector<16x32xf32>
    %560 = vector.extract_strided_slice %557 {offsets = [0, 0], sizes = [16, 64], strides = [1, 1]} : vector<16x96xf32> to vector<16x64xf32>
    %561 = vector.extract_strided_slice %558 {offsets = [0, 0], sizes = [16, 64], strides = [1, 1]} : vector<16x96xf32> to vector<16x64xf32>
    %562 = arith.addf %560, %561 : vector<16x64xf32>
    %563 = arith.negf %562 : vector<16x64xf32>
    %564 = math.exp %563 : vector<16x64xf32>
    %cst_151 = arith.constant 1.000000e+00 : f32
    %565 = vector.broadcast %cst_151 : f32 to vector<16x64xf32>
    %566 = arith.addf %565, %564 : vector<16x64xf32>
    %567 = arith.divf %565, %566 : vector<16x64xf32>
    %568 = vector.extract_strided_slice %567 {offsets = [0, 0], sizes = [16, 32], strides = [1, 1]} : vector<16x64xf32> to vector<16x32xf32>
    %569 = vector.extract_strided_slice %567 {offsets = [0, 32], sizes = [16, 32], strides = [1, 1]} : vector<16x64xf32> to vector<16x32xf32>
    %570 = vector.extract_strided_slice %557 {offsets = [0, 64], sizes = [16, 32], strides = [1, 1]} : vector<16x96xf32> to vector<16x32xf32>
    %571 = vector.extract_strided_slice %558 {offsets = [0, 64], sizes = [16, 32], strides = [1, 1]} : vector<16x96xf32> to vector<16x32xf32>
    %572 = arith.mulf %568, %571 : vector<16x32xf32>
    %573 = arith.addf %570, %572 : vector<16x32xf32>
    %574 = math.tanh %573 : vector<16x32xf32>
    %cst_152 = arith.constant 1.000000e+00 : f32
    %575 = vector.broadcast %cst_152 : f32 to vector<16x32xf32>
    %576 = arith.subf %575, %569 : vector<16x32xf32>
    %577 = arith.mulf %576, %574 : vector<16x32xf32>
    %578 = arith.mulf %569, %559 : vector<16x32xf32>
    %579 = arith.addf %577, %578 : vector<16x32xf32>
    %580 = arith.index_cast %554 : i32 to index
    %c0_153 = arith.constant 0 : index
    %581 = vector.load %arg9[%580, %c0_153] : memref<128x64xf32, #tpu.memory_space<vmem>>, vector<16x32xf32>
    tpu.vector_store %arg9[%580, %c0_153], %579 {strides = array<i32>} : memref<128x64xf32, #tpu.memory_space<vmem>>, vector<16x32xf32>,
    %c7_i32_154 = arith.constant 7 : i32
    %582 = arith.subi %c7_i32_154, %c0_i32_143 : i32
    %c16_i32_155 = arith.constant 16 : i32
    %583 = arith.muli %582, %c16_i32_155 : i32
    %584 = tpu.assume_multiple %583, 16 : i32
    %585 = arith.index_cast %584 : i32 to index
    %c128_156 = arith.constant 128 : index
    %586 = vector.load %arg10[%585, %c128_156] : memref<128x256xbf16, #tpu.memory_space<vmem>>, vector<16x96xbf16>
    %587 = arith.extf %586 : vector<16x96xbf16> to vector<16x96xf32>
    %588 = vector.extract_strided_slice %552 {offsets = [0, 128], sizes = [16, 96], strides = [1, 1]} : vector<16x256xf32> to vector<16x96xf32>
    %589 = vector.extract_strided_slice %546 {offsets = [0, 32], sizes = [16, 32], strides = [1, 1]} : vector<16x64xf32> to vector<16x32xf32>
    %590 = vector.extract_strided_slice %587 {offsets = [0, 0], sizes = [16, 64], strides = [1, 1]} : vector<16x96xf32> to vector<16x64xf32>
    %591 = vector.extract_strided_slice %588 {offsets = [0, 0], sizes = [16, 64], strides = [1, 1]} : vector<16x96xf32> to vector<16x64xf32>
    %592 = arith.addf %590, %591 : vector<16x64xf32>
    %593 = arith.negf %592 : vector<16x64xf32>
    %594 = math.exp %593 : vector<16x64xf32>
    %cst_157 = arith.constant 1.000000e+00 : f32
    %595 = vector.broadcast %cst_157 : f32 to vector<16x64xf32>
    %596 = arith.addf %595, %594 : vector<16x64xf32>
    %597 = arith.divf %595, %596 : vector<16x64xf32>
    %598 = vector.extract_strided_slice %597 {offsets = [0, 0], sizes = [16, 32], strides = [1, 1]} : vector<16x64xf32> to vector<16x32xf32>
    %599 = vector.extract_strided_slice %597 {offsets = [0, 32], sizes = [16, 32], strides = [1, 1]} : vector<16x64xf32> to vector<16x32xf32>
    %600 = vector.extract_strided_slice %587 {offsets = [0, 64], sizes = [16, 32], strides = [1, 1]} : vector<16x96xf32> to vector<16x32xf32>
    %601 = vector.extract_strided_slice %588 {offsets = [0, 64], sizes = [16, 32], strides = [1, 1]} : vector<16x96xf32> to vector<16x32xf32>
    %602 = arith.mulf %598, %601 : vector<16x32xf32>
    %603 = arith.addf %600, %602 : vector<16x32xf32>
    %604 = math.tanh %603 : vector<16x32xf32>
    %cst_158 = arith.constant 1.000000e+00 : f32
    %605 = vector.broadcast %cst_158 : f32 to vector<16x32xf32>
    %606 = arith.subf %605, %599 : vector<16x32xf32>
    %607 = arith.mulf %606, %604 : vector<16x32xf32>
    %608 = arith.mulf %599, %589 : vector<16x32xf32>
    %609 = arith.addf %607, %608 : vector<16x32xf32>
    %610 = arith.index_cast %584 : i32 to index
    %c32_159 = arith.constant 32 : index
    %611 = vector.load %arg9[%610, %c32_159] : memref<128x64xf32, #tpu.memory_space<vmem>>, vector<16x32xf32>
    tpu.vector_store %arg9[%610, %c32_159], %609 {strides = array<i32>} : memref<128x64xf32, #tpu.memory_space<vmem>>, vector<16x32xf32>,
    %612 = tpu.concatenate %579, %609 in 1 : vector<16x32xf32>, vector<16x32xf32> -> vector<16x64xf32>
    %c1_i32_160 = arith.constant 1 : i32
    %613 = arith.truncf %612 : vector<16x64xf32> to vector<16x64xbf16>
    %c0_161 = arith.constant 0 : index
    %c0_162 = arith.constant 0 : index
    %614 = vector.load %arg6[%c0_161, %c0_162] : memref<64x256xbf16, #tpu.memory_space<vmem>>, vector<64x256xbf16>
    %cst_163 = arith.constant dense<0.000000e+00> : vector<16x256xf32>
    %615 = tpu.matmul %613, %614, %cst_163 {dimension_numbers = #tpu.dot_dimension_numbers<[1], [0], [0], [1], [0, 0, 1, 1], [], []>} : vector<16x64xbf16>, vector<64x256xbf16>, vector<16x256xf32> -> vector<16x256xf32>
    %c0_164 = arith.constant 0 : index
    %c0_165 = arith.constant 0 : index
    %616 = vector.load %arg8[%c0_164, %c0_165] : memref<1x256xf32, #tpu.memory_space<vmem>>, vector<1x256xf32>
    %617 = vector.broadcast %616 : vector<1x256xf32> to vector<16x256xf32>
    %618 = arith.addf %615, %617 : vector<16x256xf32>
    %c16_i32_166 = arith.constant 16 : i32
    %619 = arith.muli %c1_i32_160, %c16_i32_166 : i32
    %620 = tpu.assume_multiple %619, 16 : i32
    %621 = arith.index_cast %620 : i32 to index
    %c0_167 = arith.constant 0 : index
    %622 = vector.load %arg10[%621, %c0_167] : memref<128x256xbf16, #tpu.memory_space<vmem>>, vector<16x96xbf16>
    %623 = arith.extf %622 : vector<16x96xbf16> to vector<16x96xf32>
    %624 = vector.extract_strided_slice %618 {offsets = [0, 0], sizes = [16, 96], strides = [1, 1]} : vector<16x256xf32> to vector<16x96xf32>
    %625 = vector.extract_strided_slice %612 {offsets = [0, 0], sizes = [16, 32], strides = [1, 1]} : vector<16x64xf32> to vector<16x32xf32>
    %626 = vector.extract_strided_slice %623 {offsets = [0, 0], sizes = [16, 64], strides = [1, 1]} : vector<16x96xf32> to vector<16x64xf32>
    %627 = vector.extract_strided_slice %624 {offsets = [0, 0], sizes = [16, 64], strides = [1, 1]} : vector<16x96xf32> to vector<16x64xf32>
    %628 = arith.addf %626, %627 : vector<16x64xf32>
    %629 = arith.negf %628 : vector<16x64xf32>
    %630 = math.exp %629 : vector<16x64xf32>
    %cst_168 = arith.constant 1.000000e+00 : f32
    %631 = vector.broadcast %cst_168 : f32 to vector<16x64xf32>
    %632 = arith.addf %631, %630 : vector<16x64xf32>
    %633 = arith.divf %631, %632 : vector<16x64xf32>
    %634 = vector.extract_strided_slice %633 {offsets = [0, 0], sizes = [16, 32], strides = [1, 1]} : vector<16x64xf32> to vector<16x32xf32>
    %635 = vector.extract_strided_slice %633 {offsets = [0, 32], sizes = [16, 32], strides = [1, 1]} : vector<16x64xf32> to vector<16x32xf32>
    %636 = vector.extract_strided_slice %623 {offsets = [0, 64], sizes = [16, 32], strides = [1, 1]} : vector<16x96xf32> to vector<16x32xf32>
    %637 = vector.extract_strided_slice %624 {offsets = [0, 64], sizes = [16, 32], strides = [1, 1]} : vector<16x96xf32> to vector<16x32xf32>
    %638 = arith.mulf %634, %637 : vector<16x32xf32>
    %639 = arith.addf %636, %638 : vector<16x32xf32>
    %640 = math.tanh %639 : vector<16x32xf32>
    %cst_169 = arith.constant 1.000000e+00 : f32
    %641 = vector.broadcast %cst_169 : f32 to vector<16x32xf32>
    %642 = arith.subf %641, %635 : vector<16x32xf32>
    %643 = arith.mulf %642, %640 : vector<16x32xf32>
    %644 = arith.mulf %635, %625 : vector<16x32xf32>
    %645 = arith.addf %643, %644 : vector<16x32xf32>
    %646 = arith.index_cast %620 : i32 to index
    %c0_170 = arith.constant 0 : index
    %647 = vector.load %arg9[%646, %c0_170] : memref<128x64xf32, #tpu.memory_space<vmem>>, vector<16x32xf32>
    tpu.vector_store %arg9[%646, %c0_170], %645 {strides = array<i32>} : memref<128x64xf32, #tpu.memory_space<vmem>>, vector<16x32xf32>,
    %c7_i32_171 = arith.constant 7 : i32
    %648 = arith.subi %c7_i32_171, %c1_i32_160 : i32
    %c16_i32_172 = arith.constant 16 : i32
    %649 = arith.muli %648, %c16_i32_172 : i32
    %650 = tpu.assume_multiple %649, 16 : i32
    %651 = arith.index_cast %650 : i32 to index
    %c128_173 = arith.constant 128 : index
    %652 = vector.load %arg10[%651, %c128_173] : memref<128x256xbf16, #tpu.memory_space<vmem>>, vector<16x96xbf16>
    %653 = arith.extf %652 : vector<16x96xbf16> to vector<16x96xf32>
    %654 = vector.extract_strided_slice %618 {offsets = [0, 128], sizes = [16, 96], strides = [1, 1]} : vector<16x256xf32> to vector<16x96xf32>
    %655 = vector.extract_strided_slice %612 {offsets = [0, 32], sizes = [16, 32], strides = [1, 1]} : vector<16x64xf32> to vector<16x32xf32>
    %656 = vector.extract_strided_slice %653 {offsets = [0, 0], sizes = [16, 64], strides = [1, 1]} : vector<16x96xf32> to vector<16x64xf32>
    %657 = vector.extract_strided_slice %654 {offsets = [0, 0], sizes = [16, 64], strides = [1, 1]} : vector<16x96xf32> to vector<16x64xf32>
    %658 = arith.addf %656, %657 : vector<16x64xf32>
    %659 = arith.negf %658 : vector<16x64xf32>
    %660 = math.exp %659 : vector<16x64xf32>
    %cst_174 = arith.constant 1.000000e+00 : f32
    %661 = vector.broadcast %cst_174 : f32 to vector<16x64xf32>
    %662 = arith.addf %661, %660 : vector<16x64xf32>
    %663 = arith.divf %661, %662 : vector<16x64xf32>
    %664 = vector.extract_strided_slice %663 {offsets = [0, 0], sizes = [16, 32], strides = [1, 1]} : vector<16x64xf32> to vector<16x32xf32>
    %665 = vector.extract_strided_slice %663 {offsets = [0, 32], sizes = [16, 32], strides = [1, 1]} : vector<16x64xf32> to vector<16x32xf32>
    %666 = vector.extract_strided_slice %653 {offsets = [0, 64], sizes = [16, 32], strides = [1, 1]} : vector<16x96xf32> to vector<16x32xf32>
    %667 = vector.extract_strided_slice %654 {offsets = [0, 64], sizes = [16, 32], strides = [1, 1]} : vector<16x96xf32> to vector<16x32xf32>
    %668 = arith.mulf %664, %667 : vector<16x32xf32>
    %669 = arith.addf %666, %668 : vector<16x32xf32>
    %670 = math.tanh %669 : vector<16x32xf32>
    %cst_175 = arith.constant 1.000000e+00 : f32
    %671 = vector.broadcast %cst_175 : f32 to vector<16x32xf32>
    %672 = arith.subf %671, %665 : vector<16x32xf32>
    %673 = arith.mulf %672, %670 : vector<16x32xf32>
    %674 = arith.mulf %665, %655 : vector<16x32xf32>
    %675 = arith.addf %673, %674 : vector<16x32xf32>
    %676 = arith.index_cast %650 : i32 to index
    %c32_176 = arith.constant 32 : index
    %677 = vector.load %arg9[%676, %c32_176] : memref<128x64xf32, #tpu.memory_space<vmem>>, vector<16x32xf32>
    tpu.vector_store %arg9[%676, %c32_176], %675 {strides = array<i32>} : memref<128x64xf32, #tpu.memory_space<vmem>>, vector<16x32xf32>,
    %678 = tpu.concatenate %645, %675 in 1 : vector<16x32xf32>, vector<16x32xf32> -> vector<16x64xf32>
    %c2_i32_177 = arith.constant 2 : i32
    %679 = arith.truncf %678 : vector<16x64xf32> to vector<16x64xbf16>
    %c0_178 = arith.constant 0 : index
    %c0_179 = arith.constant 0 : index
    %680 = vector.load %arg6[%c0_178, %c0_179] : memref<64x256xbf16, #tpu.memory_space<vmem>>, vector<64x256xbf16>
    %cst_180 = arith.constant dense<0.000000e+00> : vector<16x256xf32>
    %681 = tpu.matmul %679, %680, %cst_180 {dimension_numbers = #tpu.dot_dimension_numbers<[1], [0], [0], [1], [0, 0, 1, 1], [], []>} : vector<16x64xbf16>, vector<64x256xbf16>, vector<16x256xf32> -> vector<16x256xf32>
    %c0_181 = arith.constant 0 : index
    %c0_182 = arith.constant 0 : index
    %682 = vector.load %arg8[%c0_181, %c0_182] : memref<1x256xf32, #tpu.memory_space<vmem>>, vector<1x256xf32>
    %683 = vector.broadcast %682 : vector<1x256xf32> to vector<16x256xf32>
    %684 = arith.addf %681, %683 : vector<16x256xf32>
    %c16_i32_183 = arith.constant 16 : i32
    %685 = arith.muli %c2_i32_177, %c16_i32_183 : i32
    %686 = tpu.assume_multiple %685, 16 : i32
    %687 = arith.index_cast %686 : i32 to index
    %c0_184 = arith.constant 0 : index
    %688 = vector.load %arg10[%687, %c0_184] : memref<128x256xbf16, #tpu.memory_space<vmem>>, vector<16x96xbf16>
    %689 = arith.extf %688 : vector<16x96xbf16> to vector<16x96xf32>
    %690 = vector.extract_strided_slice %684 {offsets = [0, 0], sizes = [16, 96], strides = [1, 1]} : vector<16x256xf32> to vector<16x96xf32>
    %691 = vector.extract_strided_slice %678 {offsets = [0, 0], sizes = [16, 32], strides = [1, 1]} : vector<16x64xf32> to vector<16x32xf32>
    %692 = vector.extract_strided_slice %689 {offsets = [0, 0], sizes = [16, 64], strides = [1, 1]} : vector<16x96xf32> to vector<16x64xf32>
    %693 = vector.extract_strided_slice %690 {offsets = [0, 0], sizes = [16, 64], strides = [1, 1]} : vector<16x96xf32> to vector<16x64xf32>
    %694 = arith.addf %692, %693 : vector<16x64xf32>
    %695 = arith.negf %694 : vector<16x64xf32>
    %696 = math.exp %695 : vector<16x64xf32>
    %cst_185 = arith.constant 1.000000e+00 : f32
    %697 = vector.broadcast %cst_185 : f32 to vector<16x64xf32>
    %698 = arith.addf %697, %696 : vector<16x64xf32>
    %699 = arith.divf %697, %698 : vector<16x64xf32>
    %700 = vector.extract_strided_slice %699 {offsets = [0, 0], sizes = [16, 32], strides = [1, 1]} : vector<16x64xf32> to vector<16x32xf32>
    %701 = vector.extract_strided_slice %699 {offsets = [0, 32], sizes = [16, 32], strides = [1, 1]} : vector<16x64xf32> to vector<16x32xf32>
    %702 = vector.extract_strided_slice %689 {offsets = [0, 64], sizes = [16, 32], strides = [1, 1]} : vector<16x96xf32> to vector<16x32xf32>
    %703 = vector.extract_strided_slice %690 {offsets = [0, 64], sizes = [16, 32], strides = [1, 1]} : vector<16x96xf32> to vector<16x32xf32>
    %704 = arith.mulf %700, %703 : vector<16x32xf32>
    %705 = arith.addf %702, %704 : vector<16x32xf32>
    %706 = math.tanh %705 : vector<16x32xf32>
    %cst_186 = arith.constant 1.000000e+00 : f32
    %707 = vector.broadcast %cst_186 : f32 to vector<16x32xf32>
    %708 = arith.subf %707, %701 : vector<16x32xf32>
    %709 = arith.mulf %708, %706 : vector<16x32xf32>
    %710 = arith.mulf %701, %691 : vector<16x32xf32>
    %711 = arith.addf %709, %710 : vector<16x32xf32>
    %712 = arith.index_cast %686 : i32 to index
    %c0_187 = arith.constant 0 : index
    %713 = vector.load %arg9[%712, %c0_187] : memref<128x64xf32, #tpu.memory_space<vmem>>, vector<16x32xf32>
    tpu.vector_store %arg9[%712, %c0_187], %711 {strides = array<i32>} : memref<128x64xf32, #tpu.memory_space<vmem>>, vector<16x32xf32>,
    %c7_i32_188 = arith.constant 7 : i32
    %714 = arith.subi %c7_i32_188, %c2_i32_177 : i32
    %c16_i32_189 = arith.constant 16 : i32
    %715 = arith.muli %714, %c16_i32_189 : i32
    %716 = tpu.assume_multiple %715, 16 : i32
    %717 = arith.index_cast %716 : i32 to index
    %c128_190 = arith.constant 128 : index
    %718 = vector.load %arg10[%717, %c128_190] : memref<128x256xbf16, #tpu.memory_space<vmem>>, vector<16x96xbf16>
    %719 = arith.extf %718 : vector<16x96xbf16> to vector<16x96xf32>
    %720 = vector.extract_strided_slice %684 {offsets = [0, 128], sizes = [16, 96], strides = [1, 1]} : vector<16x256xf32> to vector<16x96xf32>
    %721 = vector.extract_strided_slice %678 {offsets = [0, 32], sizes = [16, 32], strides = [1, 1]} : vector<16x64xf32> to vector<16x32xf32>
    %722 = vector.extract_strided_slice %719 {offsets = [0, 0], sizes = [16, 64], strides = [1, 1]} : vector<16x96xf32> to vector<16x64xf32>
    %723 = vector.extract_strided_slice %720 {offsets = [0, 0], sizes = [16, 64], strides = [1, 1]} : vector<16x96xf32> to vector<16x64xf32>
    %724 = arith.addf %722, %723 : vector<16x64xf32>
    %725 = arith.negf %724 : vector<16x64xf32>
    %726 = math.exp %725 : vector<16x64xf32>
    %cst_191 = arith.constant 1.000000e+00 : f32
    %727 = vector.broadcast %cst_191 : f32 to vector<16x64xf32>
    %728 = arith.addf %727, %726 : vector<16x64xf32>
    %729 = arith.divf %727, %728 : vector<16x64xf32>
    %730 = vector.extract_strided_slice %729 {offsets = [0, 0], sizes = [16, 32], strides = [1, 1]} : vector<16x64xf32> to vector<16x32xf32>
    %731 = vector.extract_strided_slice %729 {offsets = [0, 32], sizes = [16, 32], strides = [1, 1]} : vector<16x64xf32> to vector<16x32xf32>
    %732 = vector.extract_strided_slice %719 {offsets = [0, 64], sizes = [16, 32], strides = [1, 1]} : vector<16x96xf32> to vector<16x32xf32>
    %733 = vector.extract_strided_slice %720 {offsets = [0, 64], sizes = [16, 32], strides = [1, 1]} : vector<16x96xf32> to vector<16x32xf32>
    %734 = arith.mulf %730, %733 : vector<16x32xf32>
    %735 = arith.addf %732, %734 : vector<16x32xf32>
    %736 = math.tanh %735 : vector<16x32xf32>
    %cst_192 = arith.constant 1.000000e+00 : f32
    %737 = vector.broadcast %cst_192 : f32 to vector<16x32xf32>
    %738 = arith.subf %737, %731 : vector<16x32xf32>
    %739 = arith.mulf %738, %736 : vector<16x32xf32>
    %740 = arith.mulf %731, %721 : vector<16x32xf32>
    %741 = arith.addf %739, %740 : vector<16x32xf32>
    %742 = arith.index_cast %716 : i32 to index
    %c32_193 = arith.constant 32 : index
    %743 = vector.load %arg9[%742, %c32_193] : memref<128x64xf32, #tpu.memory_space<vmem>>, vector<16x32xf32>
    tpu.vector_store %arg9[%742, %c32_193], %741 {strides = array<i32>} : memref<128x64xf32, #tpu.memory_space<vmem>>, vector<16x32xf32>,
    %744 = tpu.concatenate %711, %741 in 1 : vector<16x32xf32>, vector<16x32xf32> -> vector<16x64xf32>
    %c3_i32_194 = arith.constant 3 : i32
    %745 = arith.truncf %744 : vector<16x64xf32> to vector<16x64xbf16>
    %c0_195 = arith.constant 0 : index
    %c0_196 = arith.constant 0 : index
    %746 = vector.load %arg6[%c0_195, %c0_196] : memref<64x256xbf16, #tpu.memory_space<vmem>>, vector<64x256xbf16>
    %cst_197 = arith.constant dense<0.000000e+00> : vector<16x256xf32>
    %747 = tpu.matmul %745, %746, %cst_197 {dimension_numbers = #tpu.dot_dimension_numbers<[1], [0], [0], [1], [0, 0, 1, 1], [], []>} : vector<16x64xbf16>, vector<64x256xbf16>, vector<16x256xf32> -> vector<16x256xf32>
    %c0_198 = arith.constant 0 : index
    %c0_199 = arith.constant 0 : index
    %748 = vector.load %arg8[%c0_198, %c0_199] : memref<1x256xf32, #tpu.memory_space<vmem>>, vector<1x256xf32>
    %749 = vector.broadcast %748 : vector<1x256xf32> to vector<16x256xf32>
    %750 = arith.addf %747, %749 : vector<16x256xf32>
    %c16_i32_200 = arith.constant 16 : i32
    %751 = arith.muli %c3_i32_194, %c16_i32_200 : i32
    %752 = tpu.assume_multiple %751, 16 : i32
    %753 = arith.index_cast %752 : i32 to index
    %c0_201 = arith.constant 0 : index
    %754 = vector.load %arg10[%753, %c0_201] : memref<128x256xbf16, #tpu.memory_space<vmem>>, vector<16x96xbf16>
    %755 = arith.extf %754 : vector<16x96xbf16> to vector<16x96xf32>
    %756 = vector.extract_strided_slice %750 {offsets = [0, 0], sizes = [16, 96], strides = [1, 1]} : vector<16x256xf32> to vector<16x96xf32>
    %757 = vector.extract_strided_slice %744 {offsets = [0, 0], sizes = [16, 32], strides = [1, 1]} : vector<16x64xf32> to vector<16x32xf32>
    %758 = vector.extract_strided_slice %755 {offsets = [0, 0], sizes = [16, 64], strides = [1, 1]} : vector<16x96xf32> to vector<16x64xf32>
    %759 = vector.extract_strided_slice %756 {offsets = [0, 0], sizes = [16, 64], strides = [1, 1]} : vector<16x96xf32> to vector<16x64xf32>
    %760 = arith.addf %758, %759 : vector<16x64xf32>
    %761 = arith.negf %760 : vector<16x64xf32>
    %762 = math.exp %761 : vector<16x64xf32>
    %cst_202 = arith.constant 1.000000e+00 : f32
    %763 = vector.broadcast %cst_202 : f32 to vector<16x64xf32>
    %764 = arith.addf %763, %762 : vector<16x64xf32>
    %765 = arith.divf %763, %764 : vector<16x64xf32>
    %766 = vector.extract_strided_slice %765 {offsets = [0, 0], sizes = [16, 32], strides = [1, 1]} : vector<16x64xf32> to vector<16x32xf32>
    %767 = vector.extract_strided_slice %765 {offsets = [0, 32], sizes = [16, 32], strides = [1, 1]} : vector<16x64xf32> to vector<16x32xf32>
    %768 = vector.extract_strided_slice %755 {offsets = [0, 64], sizes = [16, 32], strides = [1, 1]} : vector<16x96xf32> to vector<16x32xf32>
    %769 = vector.extract_strided_slice %756 {offsets = [0, 64], sizes = [16, 32], strides = [1, 1]} : vector<16x96xf32> to vector<16x32xf32>
    %770 = arith.mulf %766, %769 : vector<16x32xf32>
    %771 = arith.addf %768, %770 : vector<16x32xf32>
    %772 = math.tanh %771 : vector<16x32xf32>
    %cst_203 = arith.constant 1.000000e+00 : f32
    %773 = vector.broadcast %cst_203 : f32 to vector<16x32xf32>
    %774 = arith.subf %773, %767 : vector<16x32xf32>
    %775 = arith.mulf %774, %772 : vector<16x32xf32>
    %776 = arith.mulf %767, %757 : vector<16x32xf32>
    %777 = arith.addf %775, %776 : vector<16x32xf32>
    %778 = arith.index_cast %752 : i32 to index
    %c0_204 = arith.constant 0 : index
    %779 = vector.load %arg9[%778, %c0_204] : memref<128x64xf32, #tpu.memory_space<vmem>>, vector<16x32xf32>
    tpu.vector_store %arg9[%778, %c0_204], %777 {strides = array<i32>} : memref<128x64xf32, #tpu.memory_space<vmem>>, vector<16x32xf32>,
    %c7_i32_205 = arith.constant 7 : i32
    %780 = arith.subi %c7_i32_205, %c3_i32_194 : i32
    %c16_i32_206 = arith.constant 16 : i32
    %781 = arith.muli %780, %c16_i32_206 : i32
    %782 = tpu.assume_multiple %781, 16 : i32
    %783 = arith.index_cast %782 : i32 to index
    %c128_207 = arith.constant 128 : index
    %784 = vector.load %arg10[%783, %c128_207] : memref<128x256xbf16, #tpu.memory_space<vmem>>, vector<16x96xbf16>
    %785 = arith.extf %784 : vector<16x96xbf16> to vector<16x96xf32>
    %786 = vector.extract_strided_slice %750 {offsets = [0, 128], sizes = [16, 96], strides = [1, 1]} : vector<16x256xf32> to vector<16x96xf32>
    %787 = vector.extract_strided_slice %744 {offsets = [0, 32], sizes = [16, 32], strides = [1, 1]} : vector<16x64xf32> to vector<16x32xf32>
    %788 = vector.extract_strided_slice %785 {offsets = [0, 0], sizes = [16, 64], strides = [1, 1]} : vector<16x96xf32> to vector<16x64xf32>
    %789 = vector.extract_strided_slice %786 {offsets = [0, 0], sizes = [16, 64], strides = [1, 1]} : vector<16x96xf32> to vector<16x64xf32>
    %790 = arith.addf %788, %789 : vector<16x64xf32>
    %791 = arith.negf %790 : vector<16x64xf32>
    %792 = math.exp %791 : vector<16x64xf32>
    %cst_208 = arith.constant 1.000000e+00 : f32
    %793 = vector.broadcast %cst_208 : f32 to vector<16x64xf32>
    %794 = arith.addf %793, %792 : vector<16x64xf32>
    %795 = arith.divf %793, %794 : vector<16x64xf32>
    %796 = vector.extract_strided_slice %795 {offsets = [0, 0], sizes = [16, 32], strides = [1, 1]} : vector<16x64xf32> to vector<16x32xf32>
    %797 = vector.extract_strided_slice %795 {offsets = [0, 32], sizes = [16, 32], strides = [1, 1]} : vector<16x64xf32> to vector<16x32xf32>
    %798 = vector.extract_strided_slice %785 {offsets = [0, 64], sizes = [16, 32], strides = [1, 1]} : vector<16x96xf32> to vector<16x32xf32>
    %799 = vector.extract_strided_slice %786 {offsets = [0, 64], sizes = [16, 32], strides = [1, 1]} : vector<16x96xf32> to vector<16x32xf32>
    %800 = arith.mulf %796, %799 : vector<16x32xf32>
    %801 = arith.addf %798, %800 : vector<16x32xf32>
    %802 = math.tanh %801 : vector<16x32xf32>
    %cst_209 = arith.constant 1.000000e+00 : f32
    %803 = vector.broadcast %cst_209 : f32 to vector<16x32xf32>
    %804 = arith.subf %803, %797 : vector<16x32xf32>
    %805 = arith.mulf %804, %802 : vector<16x32xf32>
    %806 = arith.mulf %797, %787 : vector<16x32xf32>
    %807 = arith.addf %805, %806 : vector<16x32xf32>
    %808 = arith.index_cast %782 : i32 to index
    %c32_210 = arith.constant 32 : index
    %809 = vector.load %arg9[%808, %c32_210] : memref<128x64xf32, #tpu.memory_space<vmem>>, vector<16x32xf32>
    tpu.vector_store %arg9[%808, %c32_210], %807 {strides = array<i32>} : memref<128x64xf32, #tpu.memory_space<vmem>>, vector<16x32xf32>,
    %810 = tpu.concatenate %777, %807 in 1 : vector<16x32xf32>, vector<16x32xf32> -> vector<16x64xf32>
    %c4_i32_211 = arith.constant 4 : i32
    %811 = arith.truncf %810 : vector<16x64xf32> to vector<16x64xbf16>
    %c0_212 = arith.constant 0 : index
    %c0_213 = arith.constant 0 : index
    %812 = vector.load %arg6[%c0_212, %c0_213] : memref<64x256xbf16, #tpu.memory_space<vmem>>, vector<64x256xbf16>
    %cst_214 = arith.constant dense<0.000000e+00> : vector<16x256xf32>
    %813 = tpu.matmul %811, %812, %cst_214 {dimension_numbers = #tpu.dot_dimension_numbers<[1], [0], [0], [1], [0, 0, 1, 1], [], []>} : vector<16x64xbf16>, vector<64x256xbf16>, vector<16x256xf32> -> vector<16x256xf32>
    %c0_215 = arith.constant 0 : index
    %c0_216 = arith.constant 0 : index
    %814 = vector.load %arg8[%c0_215, %c0_216] : memref<1x256xf32, #tpu.memory_space<vmem>>, vector<1x256xf32>
    %815 = vector.broadcast %814 : vector<1x256xf32> to vector<16x256xf32>
    %816 = arith.addf %813, %815 : vector<16x256xf32>
    %c16_i32_217 = arith.constant 16 : i32
    %817 = arith.muli %c4_i32_211, %c16_i32_217 : i32
    %818 = tpu.assume_multiple %817, 16 : i32
    %819 = arith.index_cast %818 : i32 to index
    %c0_218 = arith.constant 0 : index
    %820 = vector.load %arg10[%819, %c0_218] : memref<128x256xbf16, #tpu.memory_space<vmem>>, vector<16x96xbf16>
    %821 = arith.extf %820 : vector<16x96xbf16> to vector<16x96xf32>
    %822 = vector.extract_strided_slice %816 {offsets = [0, 0], sizes = [16, 96], strides = [1, 1]} : vector<16x256xf32> to vector<16x96xf32>
    %823 = vector.extract_strided_slice %810 {offsets = [0, 0], sizes = [16, 32], strides = [1, 1]} : vector<16x64xf32> to vector<16x32xf32>
    %824 = vector.extract_strided_slice %821 {offsets = [0, 0], sizes = [16, 64], strides = [1, 1]} : vector<16x96xf32> to vector<16x64xf32>
    %825 = vector.extract_strided_slice %822 {offsets = [0, 0], sizes = [16, 64], strides = [1, 1]} : vector<16x96xf32> to vector<16x64xf32>
    %826 = arith.addf %824, %825 : vector<16x64xf32>
    %827 = arith.negf %826 : vector<16x64xf32>
    %828 = math.exp %827 : vector<16x64xf32>
    %cst_219 = arith.constant 1.000000e+00 : f32
    %829 = vector.broadcast %cst_219 : f32 to vector<16x64xf32>
    %830 = arith.addf %829, %828 : vector<16x64xf32>
    %831 = arith.divf %829, %830 : vector<16x64xf32>
    %832 = vector.extract_strided_slice %831 {offsets = [0, 0], sizes = [16, 32], strides = [1, 1]} : vector<16x64xf32> to vector<16x32xf32>
    %833 = vector.extract_strided_slice %831 {offsets = [0, 32], sizes = [16, 32], strides = [1, 1]} : vector<16x64xf32> to vector<16x32xf32>
    %834 = vector.extract_strided_slice %821 {offsets = [0, 64], sizes = [16, 32], strides = [1, 1]} : vector<16x96xf32> to vector<16x32xf32>
    %835 = vector.extract_strided_slice %822 {offsets = [0, 64], sizes = [16, 32], strides = [1, 1]} : vector<16x96xf32> to vector<16x32xf32>
    %836 = arith.mulf %832, %835 : vector<16x32xf32>
    %837 = arith.addf %834, %836 : vector<16x32xf32>
    %838 = math.tanh %837 : vector<16x32xf32>
    %cst_220 = arith.constant 1.000000e+00 : f32
    %839 = vector.broadcast %cst_220 : f32 to vector<16x32xf32>
    %840 = arith.subf %839, %833 : vector<16x32xf32>
    %841 = arith.mulf %840, %838 : vector<16x32xf32>
    %842 = arith.mulf %833, %823 : vector<16x32xf32>
    %843 = arith.addf %841, %842 : vector<16x32xf32>
    %844 = arith.index_cast %818 : i32 to index
    %c0_221 = arith.constant 0 : index
    %845 = vector.load %arg9[%844, %c0_221] : memref<128x64xf32, #tpu.memory_space<vmem>>, vector<16x32xf32>
    tpu.vector_store %arg9[%844, %c0_221], %843 {strides = array<i32>} : memref<128x64xf32, #tpu.memory_space<vmem>>, vector<16x32xf32>,
    %c7_i32_222 = arith.constant 7 : i32
    %846 = arith.subi %c7_i32_222, %c4_i32_211 : i32
    %c16_i32_223 = arith.constant 16 : i32
    %847 = arith.muli %846, %c16_i32_223 : i32
    %848 = tpu.assume_multiple %847, 16 : i32
    %849 = arith.index_cast %848 : i32 to index
    %c128_224 = arith.constant 128 : index
    %850 = vector.load %arg10[%849, %c128_224] : memref<128x256xbf16, #tpu.memory_space<vmem>>, vector<16x96xbf16>
    %851 = arith.extf %850 : vector<16x96xbf16> to vector<16x96xf32>
    %852 = vector.extract_strided_slice %816 {offsets = [0, 128], sizes = [16, 96], strides = [1, 1]} : vector<16x256xf32> to vector<16x96xf32>
    %853 = vector.extract_strided_slice %810 {offsets = [0, 32], sizes = [16, 32], strides = [1, 1]} : vector<16x64xf32> to vector<16x32xf32>
    %854 = vector.extract_strided_slice %851 {offsets = [0, 0], sizes = [16, 64], strides = [1, 1]} : vector<16x96xf32> to vector<16x64xf32>
    %855 = vector.extract_strided_slice %852 {offsets = [0, 0], sizes = [16, 64], strides = [1, 1]} : vector<16x96xf32> to vector<16x64xf32>
    %856 = arith.addf %854, %855 : vector<16x64xf32>
    %857 = arith.negf %856 : vector<16x64xf32>
    %858 = math.exp %857 : vector<16x64xf32>
    %cst_225 = arith.constant 1.000000e+00 : f32
    %859 = vector.broadcast %cst_225 : f32 to vector<16x64xf32>
    %860 = arith.addf %859, %858 : vector<16x64xf32>
    %861 = arith.divf %859, %860 : vector<16x64xf32>
    %862 = vector.extract_strided_slice %861 {offsets = [0, 0], sizes = [16, 32], strides = [1, 1]} : vector<16x64xf32> to vector<16x32xf32>
    %863 = vector.extract_strided_slice %861 {offsets = [0, 32], sizes = [16, 32], strides = [1, 1]} : vector<16x64xf32> to vector<16x32xf32>
    %864 = vector.extract_strided_slice %851 {offsets = [0, 64], sizes = [16, 32], strides = [1, 1]} : vector<16x96xf32> to vector<16x32xf32>
    %865 = vector.extract_strided_slice %852 {offsets = [0, 64], sizes = [16, 32], strides = [1, 1]} : vector<16x96xf32> to vector<16x32xf32>
    %866 = arith.mulf %862, %865 : vector<16x32xf32>
    %867 = arith.addf %864, %866 : vector<16x32xf32>
    %868 = math.tanh %867 : vector<16x32xf32>
    %cst_226 = arith.constant 1.000000e+00 : f32
    %869 = vector.broadcast %cst_226 : f32 to vector<16x32xf32>
    %870 = arith.subf %869, %863 : vector<16x32xf32>
    %871 = arith.mulf %870, %868 : vector<16x32xf32>
    %872 = arith.mulf %863, %853 : vector<16x32xf32>
    %873 = arith.addf %871, %872 : vector<16x32xf32>
    %874 = arith.index_cast %848 : i32 to index
    %c32_227 = arith.constant 32 : index
    %875 = vector.load %arg9[%874, %c32_227] : memref<128x64xf32, #tpu.memory_space<vmem>>, vector<16x32xf32>
    tpu.vector_store %arg9[%874, %c32_227], %873 {strides = array<i32>} : memref<128x64xf32, #tpu.memory_space<vmem>>, vector<16x32xf32>,
    %876 = tpu.concatenate %843, %873 in 1 : vector<16x32xf32>, vector<16x32xf32> -> vector<16x64xf32>
    %c5_i32_228 = arith.constant 5 : i32
    %877 = arith.truncf %876 : vector<16x64xf32> to vector<16x64xbf16>
    %c0_229 = arith.constant 0 : index
    %c0_230 = arith.constant 0 : index
    %878 = vector.load %arg6[%c0_229, %c0_230] : memref<64x256xbf16, #tpu.memory_space<vmem>>, vector<64x256xbf16>
    %cst_231 = arith.constant dense<0.000000e+00> : vector<16x256xf32>
    %879 = tpu.matmul %877, %878, %cst_231 {dimension_numbers = #tpu.dot_dimension_numbers<[1], [0], [0], [1], [0, 0, 1, 1], [], []>} : vector<16x64xbf16>, vector<64x256xbf16>, vector<16x256xf32> -> vector<16x256xf32>
    %c0_232 = arith.constant 0 : index
    %c0_233 = arith.constant 0 : index
    %880 = vector.load %arg8[%c0_232, %c0_233] : memref<1x256xf32, #tpu.memory_space<vmem>>, vector<1x256xf32>
    %881 = vector.broadcast %880 : vector<1x256xf32> to vector<16x256xf32>
    %882 = arith.addf %879, %881 : vector<16x256xf32>
    %c16_i32_234 = arith.constant 16 : i32
    %883 = arith.muli %c5_i32_228, %c16_i32_234 : i32
    %884 = tpu.assume_multiple %883, 16 : i32
    %885 = arith.index_cast %884 : i32 to index
    %c0_235 = arith.constant 0 : index
    %886 = vector.load %arg10[%885, %c0_235] : memref<128x256xbf16, #tpu.memory_space<vmem>>, vector<16x96xbf16>
    %887 = arith.extf %886 : vector<16x96xbf16> to vector<16x96xf32>
    %888 = vector.extract_strided_slice %882 {offsets = [0, 0], sizes = [16, 96], strides = [1, 1]} : vector<16x256xf32> to vector<16x96xf32>
    %889 = vector.extract_strided_slice %876 {offsets = [0, 0], sizes = [16, 32], strides = [1, 1]} : vector<16x64xf32> to vector<16x32xf32>
    %890 = vector.extract_strided_slice %887 {offsets = [0, 0], sizes = [16, 64], strides = [1, 1]} : vector<16x96xf32> to vector<16x64xf32>
    %891 = vector.extract_strided_slice %888 {offsets = [0, 0], sizes = [16, 64], strides = [1, 1]} : vector<16x96xf32> to vector<16x64xf32>
    %892 = arith.addf %890, %891 : vector<16x64xf32>
    %893 = arith.negf %892 : vector<16x64xf32>
    %894 = math.exp %893 : vector<16x64xf32>
    %cst_236 = arith.constant 1.000000e+00 : f32
    %895 = vector.broadcast %cst_236 : f32 to vector<16x64xf32>
    %896 = arith.addf %895, %894 : vector<16x64xf32>
    %897 = arith.divf %895, %896 : vector<16x64xf32>
    %898 = vector.extract_strided_slice %897 {offsets = [0, 0], sizes = [16, 32], strides = [1, 1]} : vector<16x64xf32> to vector<16x32xf32>
    %899 = vector.extract_strided_slice %897 {offsets = [0, 32], sizes = [16, 32], strides = [1, 1]} : vector<16x64xf32> to vector<16x32xf32>
    %900 = vector.extract_strided_slice %887 {offsets = [0, 64], sizes = [16, 32], strides = [1, 1]} : vector<16x96xf32> to vector<16x32xf32>
    %901 = vector.extract_strided_slice %888 {offsets = [0, 64], sizes = [16, 32], strides = [1, 1]} : vector<16x96xf32> to vector<16x32xf32>
    %902 = arith.mulf %898, %901 : vector<16x32xf32>
    %903 = arith.addf %900, %902 : vector<16x32xf32>
    %904 = math.tanh %903 : vector<16x32xf32>
    %cst_237 = arith.constant 1.000000e+00 : f32
    %905 = vector.broadcast %cst_237 : f32 to vector<16x32xf32>
    %906 = arith.subf %905, %899 : vector<16x32xf32>
    %907 = arith.mulf %906, %904 : vector<16x32xf32>
    %908 = arith.mulf %899, %889 : vector<16x32xf32>
    %909 = arith.addf %907, %908 : vector<16x32xf32>
    %910 = arith.index_cast %884 : i32 to index
    %c0_238 = arith.constant 0 : index
    %911 = vector.load %arg9[%910, %c0_238] : memref<128x64xf32, #tpu.memory_space<vmem>>, vector<16x32xf32>
    tpu.vector_store %arg9[%910, %c0_238], %909 {strides = array<i32>} : memref<128x64xf32, #tpu.memory_space<vmem>>, vector<16x32xf32>,
    %c7_i32_239 = arith.constant 7 : i32
    %912 = arith.subi %c7_i32_239, %c5_i32_228 : i32
    %c16_i32_240 = arith.constant 16 : i32
    %913 = arith.muli %912, %c16_i32_240 : i32
    %914 = tpu.assume_multiple %913, 16 : i32
    %915 = arith.index_cast %914 : i32 to index
    %c128_241 = arith.constant 128 : index
    %916 = vector.load %arg10[%915, %c128_241] : memref<128x256xbf16, #tpu.memory_space<vmem>>, vector<16x96xbf16>
    %917 = arith.extf %916 : vector<16x96xbf16> to vector<16x96xf32>
    %918 = vector.extract_strided_slice %882 {offsets = [0, 128], sizes = [16, 96], strides = [1, 1]} : vector<16x256xf32> to vector<16x96xf32>
    %919 = vector.extract_strided_slice %876 {offsets = [0, 32], sizes = [16, 32], strides = [1, 1]} : vector<16x64xf32> to vector<16x32xf32>
    %920 = vector.extract_strided_slice %917 {offsets = [0, 0], sizes = [16, 64], strides = [1, 1]} : vector<16x96xf32> to vector<16x64xf32>
    %921 = vector.extract_strided_slice %918 {offsets = [0, 0], sizes = [16, 64], strides = [1, 1]} : vector<16x96xf32> to vector<16x64xf32>
    %922 = arith.addf %920, %921 : vector<16x64xf32>
    %923 = arith.negf %922 : vector<16x64xf32>
    %924 = math.exp %923 : vector<16x64xf32>
    %cst_242 = arith.constant 1.000000e+00 : f32
    %925 = vector.broadcast %cst_242 : f32 to vector<16x64xf32>
    %926 = arith.addf %925, %924 : vector<16x64xf32>
    %927 = arith.divf %925, %926 : vector<16x64xf32>
    %928 = vector.extract_strided_slice %927 {offsets = [0, 0], sizes = [16, 32], strides = [1, 1]} : vector<16x64xf32> to vector<16x32xf32>
    %929 = vector.extract_strided_slice %927 {offsets = [0, 32], sizes = [16, 32], strides = [1, 1]} : vector<16x64xf32> to vector<16x32xf32>
    %930 = vector.extract_strided_slice %917 {offsets = [0, 64], sizes = [16, 32], strides = [1, 1]} : vector<16x96xf32> to vector<16x32xf32>
    %931 = vector.extract_strided_slice %918 {offsets = [0, 64], sizes = [16, 32], strides = [1, 1]} : vector<16x96xf32> to vector<16x32xf32>
    %932 = arith.mulf %928, %931 : vector<16x32xf32>
    %933 = arith.addf %930, %932 : vector<16x32xf32>
    %934 = math.tanh %933 : vector<16x32xf32>
    %cst_243 = arith.constant 1.000000e+00 : f32
    %935 = vector.broadcast %cst_243 : f32 to vector<16x32xf32>
    %936 = arith.subf %935, %929 : vector<16x32xf32>
    %937 = arith.mulf %936, %934 : vector<16x32xf32>
    %938 = arith.mulf %929, %919 : vector<16x32xf32>
    %939 = arith.addf %937, %938 : vector<16x32xf32>
    %940 = arith.index_cast %914 : i32 to index
    %c32_244 = arith.constant 32 : index
    %941 = vector.load %arg9[%940, %c32_244] : memref<128x64xf32, #tpu.memory_space<vmem>>, vector<16x32xf32>
    tpu.vector_store %arg9[%940, %c32_244], %939 {strides = array<i32>} : memref<128x64xf32, #tpu.memory_space<vmem>>, vector<16x32xf32>,
    %942 = tpu.concatenate %909, %939 in 1 : vector<16x32xf32>, vector<16x32xf32> -> vector<16x64xf32>
    %c6_i32_245 = arith.constant 6 : i32
    %943 = arith.truncf %942 : vector<16x64xf32> to vector<16x64xbf16>
    %c0_246 = arith.constant 0 : index
    %c0_247 = arith.constant 0 : index
    %944 = vector.load %arg6[%c0_246, %c0_247] : memref<64x256xbf16, #tpu.memory_space<vmem>>, vector<64x256xbf16>
    %cst_248 = arith.constant dense<0.000000e+00> : vector<16x256xf32>
    %945 = tpu.matmul %943, %944, %cst_248 {dimension_numbers = #tpu.dot_dimension_numbers<[1], [0], [0], [1], [0, 0, 1, 1], [], []>} : vector<16x64xbf16>, vector<64x256xbf16>, vector<16x256xf32> -> vector<16x256xf32>
    %c0_249 = arith.constant 0 : index
    %c0_250 = arith.constant 0 : index
    %946 = vector.load %arg8[%c0_249, %c0_250] : memref<1x256xf32, #tpu.memory_space<vmem>>, vector<1x256xf32>
    %947 = vector.broadcast %946 : vector<1x256xf32> to vector<16x256xf32>
    %948 = arith.addf %945, %947 : vector<16x256xf32>
    %c16_i32_251 = arith.constant 16 : i32
    %949 = arith.muli %c6_i32_245, %c16_i32_251 : i32
    %950 = tpu.assume_multiple %949, 16 : i32
    %951 = arith.index_cast %950 : i32 to index
    %c0_252 = arith.constant 0 : index
    %952 = vector.load %arg10[%951, %c0_252] : memref<128x256xbf16, #tpu.memory_space<vmem>>, vector<16x96xbf16>
    %953 = arith.extf %952 : vector<16x96xbf16> to vector<16x96xf32>
    %954 = vector.extract_strided_slice %948 {offsets = [0, 0], sizes = [16, 96], strides = [1, 1]} : vector<16x256xf32> to vector<16x96xf32>
    %955 = vector.extract_strided_slice %942 {offsets = [0, 0], sizes = [16, 32], strides = [1, 1]} : vector<16x64xf32> to vector<16x32xf32>
    %956 = vector.extract_strided_slice %953 {offsets = [0, 0], sizes = [16, 64], strides = [1, 1]} : vector<16x96xf32> to vector<16x64xf32>
    %957 = vector.extract_strided_slice %954 {offsets = [0, 0], sizes = [16, 64], strides = [1, 1]} : vector<16x96xf32> to vector<16x64xf32>
    %958 = arith.addf %956, %957 : vector<16x64xf32>
    %959 = arith.negf %958 : vector<16x64xf32>
    %960 = math.exp %959 : vector<16x64xf32>
    %cst_253 = arith.constant 1.000000e+00 : f32
    %961 = vector.broadcast %cst_253 : f32 to vector<16x64xf32>
    %962 = arith.addf %961, %960 : vector<16x64xf32>
    %963 = arith.divf %961, %962 : vector<16x64xf32>
    %964 = vector.extract_strided_slice %963 {offsets = [0, 0], sizes = [16, 32], strides = [1, 1]} : vector<16x64xf32> to vector<16x32xf32>
    %965 = vector.extract_strided_slice %963 {offsets = [0, 32], sizes = [16, 32], strides = [1, 1]} : vector<16x64xf32> to vector<16x32xf32>
    %966 = vector.extract_strided_slice %953 {offsets = [0, 64], sizes = [16, 32], strides = [1, 1]} : vector<16x96xf32> to vector<16x32xf32>
    %967 = vector.extract_strided_slice %954 {offsets = [0, 64], sizes = [16, 32], strides = [1, 1]} : vector<16x96xf32> to vector<16x32xf32>
    %968 = arith.mulf %964, %967 : vector<16x32xf32>
    %969 = arith.addf %966, %968 : vector<16x32xf32>
    %970 = math.tanh %969 : vector<16x32xf32>
    %cst_254 = arith.constant 1.000000e+00 : f32
    %971 = vector.broadcast %cst_254 : f32 to vector<16x32xf32>
    %972 = arith.subf %971, %965 : vector<16x32xf32>
    %973 = arith.mulf %972, %970 : vector<16x32xf32>
    %974 = arith.mulf %965, %955 : vector<16x32xf32>
    %975 = arith.addf %973, %974 : vector<16x32xf32>
    %976 = arith.index_cast %950 : i32 to index
    %c0_255 = arith.constant 0 : index
    %977 = vector.load %arg9[%976, %c0_255] : memref<128x64xf32, #tpu.memory_space<vmem>>, vector<16x32xf32>
    tpu.vector_store %arg9[%976, %c0_255], %975 {strides = array<i32>} : memref<128x64xf32, #tpu.memory_space<vmem>>, vector<16x32xf32>,
    %c7_i32_256 = arith.constant 7 : i32
    %978 = arith.subi %c7_i32_256, %c6_i32_245 : i32
    %c16_i32_257 = arith.constant 16 : i32
    %979 = arith.muli %978, %c16_i32_257 : i32
    %980 = tpu.assume_multiple %979, 16 : i32
    %981 = arith.index_cast %980 : i32 to index
    %c128_258 = arith.constant 128 : index
    %982 = vector.load %arg10[%981, %c128_258] : memref<128x256xbf16, #tpu.memory_space<vmem>>, vector<16x96xbf16>
    %983 = arith.extf %982 : vector<16x96xbf16> to vector<16x96xf32>
    %984 = vector.extract_strided_slice %948 {offsets = [0, 128], sizes = [16, 96], strides = [1, 1]} : vector<16x256xf32> to vector<16x96xf32>
    %985 = vector.extract_strided_slice %942 {offsets = [0, 32], sizes = [16, 32], strides = [1, 1]} : vector<16x64xf32> to vector<16x32xf32>
    %986 = vector.extract_strided_slice %983 {offsets = [0, 0], sizes = [16, 64], strides = [1, 1]} : vector<16x96xf32> to vector<16x64xf32>
    %987 = vector.extract_strided_slice %984 {offsets = [0, 0], sizes = [16, 64], strides = [1, 1]} : vector<16x96xf32> to vector<16x64xf32>
    %988 = arith.addf %986, %987 : vector<16x64xf32>
    %989 = arith.negf %988 : vector<16x64xf32>
    %990 = math.exp %989 : vector<16x64xf32>
    %cst_259 = arith.constant 1.000000e+00 : f32
    %991 = vector.broadcast %cst_259 : f32 to vector<16x64xf32>
    %992 = arith.addf %991, %990 : vector<16x64xf32>
    %993 = arith.divf %991, %992 : vector<16x64xf32>
    %994 = vector.extract_strided_slice %993 {offsets = [0, 0], sizes = [16, 32], strides = [1, 1]} : vector<16x64xf32> to vector<16x32xf32>
    %995 = vector.extract_strided_slice %993 {offsets = [0, 32], sizes = [16, 32], strides = [1, 1]} : vector<16x64xf32> to vector<16x32xf32>
    %996 = vector.extract_strided_slice %983 {offsets = [0, 64], sizes = [16, 32], strides = [1, 1]} : vector<16x96xf32> to vector<16x32xf32>
    %997 = vector.extract_strided_slice %984 {offsets = [0, 64], sizes = [16, 32], strides = [1, 1]} : vector<16x96xf32> to vector<16x32xf32>
    %998 = arith.mulf %994, %997 : vector<16x32xf32>
    %999 = arith.addf %996, %998 : vector<16x32xf32>
    %1000 = math.tanh %999 : vector<16x32xf32>
    %cst_260 = arith.constant 1.000000e+00 : f32
    %1001 = vector.broadcast %cst_260 : f32 to vector<16x32xf32>
    %1002 = arith.subf %1001, %995 : vector<16x32xf32>
    %1003 = arith.mulf %1002, %1000 : vector<16x32xf32>
    %1004 = arith.mulf %995, %985 : vector<16x32xf32>
    %1005 = arith.addf %1003, %1004 : vector<16x32xf32>
    %1006 = arith.index_cast %980 : i32 to index
    %c32_261 = arith.constant 32 : index
    %1007 = vector.load %arg9[%1006, %c32_261] : memref<128x64xf32, #tpu.memory_space<vmem>>, vector<16x32xf32>
    tpu.vector_store %arg9[%1006, %c32_261], %1005 {strides = array<i32>} : memref<128x64xf32, #tpu.memory_space<vmem>>, vector<16x32xf32>,
    %1008 = tpu.concatenate %975, %1005 in 1 : vector<16x32xf32>, vector<16x32xf32> -> vector<16x64xf32>
    %c7_i32_262 = arith.constant 7 : i32
    %1009 = arith.truncf %1008 : vector<16x64xf32> to vector<16x64xbf16>
    %c0_263 = arith.constant 0 : index
    %c0_264 = arith.constant 0 : index
    %1010 = vector.load %arg6[%c0_263, %c0_264] : memref<64x256xbf16, #tpu.memory_space<vmem>>, vector<64x256xbf16>
    %cst_265 = arith.constant dense<0.000000e+00> : vector<16x256xf32>
    %1011 = tpu.matmul %1009, %1010, %cst_265 {dimension_numbers = #tpu.dot_dimension_numbers<[1], [0], [0], [1], [0, 0, 1, 1], [], []>} : vector<16x64xbf16>, vector<64x256xbf16>, vector<16x256xf32> -> vector<16x256xf32>
    %c0_266 = arith.constant 0 : index
    %c0_267 = arith.constant 0 : index
    %1012 = vector.load %arg8[%c0_266, %c0_267] : memref<1x256xf32, #tpu.memory_space<vmem>>, vector<1x256xf32>
    %1013 = vector.broadcast %1012 : vector<1x256xf32> to vector<16x256xf32>
    %1014 = arith.addf %1011, %1013 : vector<16x256xf32>
    %c16_i32_268 = arith.constant 16 : i32
    %1015 = arith.muli %c7_i32_262, %c16_i32_268 : i32
    %1016 = tpu.assume_multiple %1015, 16 : i32
    %1017 = arith.index_cast %1016 : i32 to index
    %c0_269 = arith.constant 0 : index
    %1018 = vector.load %arg10[%1017, %c0_269] : memref<128x256xbf16, #tpu.memory_space<vmem>>, vector<16x96xbf16>
    %1019 = arith.extf %1018 : vector<16x96xbf16> to vector<16x96xf32>
    %1020 = vector.extract_strided_slice %1014 {offsets = [0, 0], sizes = [16, 96], strides = [1, 1]} : vector<16x256xf32> to vector<16x96xf32>
    %1021 = vector.extract_strided_slice %1008 {offsets = [0, 0], sizes = [16, 32], strides = [1, 1]} : vector<16x64xf32> to vector<16x32xf32>
    %1022 = vector.extract_strided_slice %1019 {offsets = [0, 0], sizes = [16, 64], strides = [1, 1]} : vector<16x96xf32> to vector<16x64xf32>
    %1023 = vector.extract_strided_slice %1020 {offsets = [0, 0], sizes = [16, 64], strides = [1, 1]} : vector<16x96xf32> to vector<16x64xf32>
    %1024 = arith.addf %1022, %1023 : vector<16x64xf32>
    %1025 = arith.negf %1024 : vector<16x64xf32>
    %1026 = math.exp %1025 : vector<16x64xf32>
    %cst_270 = arith.constant 1.000000e+00 : f32
    %1027 = vector.broadcast %cst_270 : f32 to vector<16x64xf32>
    %1028 = arith.addf %1027, %1026 : vector<16x64xf32>
    %1029 = arith.divf %1027, %1028 : vector<16x64xf32>
    %1030 = vector.extract_strided_slice %1029 {offsets = [0, 0], sizes = [16, 32], strides = [1, 1]} : vector<16x64xf32> to vector<16x32xf32>
    %1031 = vector.extract_strided_slice %1029 {offsets = [0, 32], sizes = [16, 32], strides = [1, 1]} : vector<16x64xf32> to vector<16x32xf32>
    %1032 = vector.extract_strided_slice %1019 {offsets = [0, 64], sizes = [16, 32], strides = [1, 1]} : vector<16x96xf32> to vector<16x32xf32>
    %1033 = vector.extract_strided_slice %1020 {offsets = [0, 64], sizes = [16, 32], strides = [1, 1]} : vector<16x96xf32> to vector<16x32xf32>
    %1034 = arith.mulf %1030, %1033 : vector<16x32xf32>
    %1035 = arith.addf %1032, %1034 : vector<16x32xf32>
    %1036 = math.tanh %1035 : vector<16x32xf32>
    %cst_271 = arith.constant 1.000000e+00 : f32
    %1037 = vector.broadcast %cst_271 : f32 to vector<16x32xf32>
    %1038 = arith.subf %1037, %1031 : vector<16x32xf32>
    %1039 = arith.mulf %1038, %1036 : vector<16x32xf32>
    %1040 = arith.mulf %1031, %1021 : vector<16x32xf32>
    %1041 = arith.addf %1039, %1040 : vector<16x32xf32>
    %1042 = arith.index_cast %1016 : i32 to index
    %c0_272 = arith.constant 0 : index
    %1043 = vector.load %arg9[%1042, %c0_272] : memref<128x64xf32, #tpu.memory_space<vmem>>, vector<16x32xf32>
    tpu.vector_store %arg9[%1042, %c0_272], %1041 {strides = array<i32>} : memref<128x64xf32, #tpu.memory_space<vmem>>, vector<16x32xf32>,
    %c7_i32_273 = arith.constant 7 : i32
    %1044 = arith.subi %c7_i32_273, %c7_i32_262 : i32
    %c16_i32_274 = arith.constant 16 : i32
    %1045 = arith.muli %1044, %c16_i32_274 : i32
    %1046 = tpu.assume_multiple %1045, 16 : i32
    %1047 = arith.index_cast %1046 : i32 to index
    %c128_275 = arith.constant 128 : index
    %1048 = vector.load %arg10[%1047, %c128_275] : memref<128x256xbf16, #tpu.memory_space<vmem>>, vector<16x96xbf16>
    %1049 = arith.extf %1048 : vector<16x96xbf16> to vector<16x96xf32>
    %1050 = vector.extract_strided_slice %1014 {offsets = [0, 128], sizes = [16, 96], strides = [1, 1]} : vector<16x256xf32> to vector<16x96xf32>
    %1051 = vector.extract_strided_slice %1008 {offsets = [0, 32], sizes = [16, 32], strides = [1, 1]} : vector<16x64xf32> to vector<16x32xf32>
    %1052 = vector.extract_strided_slice %1049 {offsets = [0, 0], sizes = [16, 64], strides = [1, 1]} : vector<16x96xf32> to vector<16x64xf32>
    %1053 = vector.extract_strided_slice %1050 {offsets = [0, 0], sizes = [16, 64], strides = [1, 1]} : vector<16x96xf32> to vector<16x64xf32>
    %1054 = arith.addf %1052, %1053 : vector<16x64xf32>
    %1055 = arith.negf %1054 : vector<16x64xf32>
    %1056 = math.exp %1055 : vector<16x64xf32>
    %cst_276 = arith.constant 1.000000e+00 : f32
    %1057 = vector.broadcast %cst_276 : f32 to vector<16x64xf32>
    %1058 = arith.addf %1057, %1056 : vector<16x64xf32>
    %1059 = arith.divf %1057, %1058 : vector<16x64xf32>
    %1060 = vector.extract_strided_slice %1059 {offsets = [0, 0], sizes = [16, 32], strides = [1, 1]} : vector<16x64xf32> to vector<16x32xf32>
    %1061 = vector.extract_strided_slice %1059 {offsets = [0, 32], sizes = [16, 32], strides = [1, 1]} : vector<16x64xf32> to vector<16x32xf32>
    %1062 = vector.extract_strided_slice %1049 {offsets = [0, 64], sizes = [16, 32], strides = [1, 1]} : vector<16x96xf32> to vector<16x32xf32>
    %1063 = vector.extract_strided_slice %1050 {offsets = [0, 64], sizes = [16, 32], strides = [1, 1]} : vector<16x96xf32> to vector<16x32xf32>
    %1064 = arith.mulf %1060, %1063 : vector<16x32xf32>
    %1065 = arith.addf %1062, %1064 : vector<16x32xf32>
    %1066 = math.tanh %1065 : vector<16x32xf32>
    %cst_277 = arith.constant 1.000000e+00 : f32
    %1067 = vector.broadcast %cst_277 : f32 to vector<16x32xf32>
    %1068 = arith.subf %1067, %1061 : vector<16x32xf32>
    %1069 = arith.mulf %1068, %1066 : vector<16x32xf32>
    %1070 = arith.mulf %1061, %1051 : vector<16x32xf32>
    %1071 = arith.addf %1069, %1070 : vector<16x32xf32>
    %1072 = arith.index_cast %1046 : i32 to index
    %c32_278 = arith.constant 32 : index
    %1073 = vector.load %arg9[%1072, %c32_278] : memref<128x64xf32, #tpu.memory_space<vmem>>, vector<16x32xf32>
    tpu.vector_store %arg9[%1072, %c32_278], %1071 {strides = array<i32>} : memref<128x64xf32, #tpu.memory_space<vmem>>, vector<16x32xf32>,
    %1074 = tpu.concatenate %1041, %1071 in 1 : vector<16x32xf32>, vector<16x32xf32> -> vector<16x64xf32>
    %c8_i32_279 = arith.constant 8 : i32
    return
  }
}

</mosaic_0001>

<bundles_post_ra>
// kernel: tpu_custom_call.1
= control target key start
LH: loop header
LB: loop body
LE: loop exit
PB: predicated region body
PF: predicated region fallthrough
CT: control target
= control target key end

     0   :  { %14 = vsyncpa [#allocation4], 0  ;;  %s8297_s0 = inlined_call_operand.vmem [shape: bf16[128,16], index: 0, kind: input, shape index: {}]   ;;  %s8298_s1 = inlined_call_operand.hbm [shape: bf16[16,256], index: 1, kind: input, shape index: {}]   ;;  %s8299_s2 = inlined_call_operand.vmem [shape: bf16[64,256], index: 2, kind: input, shape index: {}]   ;;  %s8300_s3 = inlined_call_operand.vmem [shape: f32[1,256], index: 3, kind: input, shape index: {}]   ;;  %s8301_s4 = inlined_call_operand.vmem [shape: f32[1,256], index: 4, kind: input, shape index: {}]   ;;  %s8302_s5 = inlined_call_operand.hbm [shape: bf16[64,256], index: 5, kind: input, shape index: {}]   ;;  %s8303_s6 = inlined_call_operand.hbm [shape: bf16[64,256], index: 6, kind: input, shape index: {}]   ;;  %s8304_s7 = inlined_call_operand.vmem [shape: f32[1,256], index: 7, kind: input, shape index: {}]   ;;  %s8305_s8 = inlined_call_operand.vmem [shape: f32[1,256], index: 8, kind: input, shape index: {}]   ;;  %s8306_s9 = inlined_call_operand.vmem [shape: f32[128,64], index: 9, kind: output, shape index: {}]  }
   0x1   :  { %15 = vsyncpa [#allocation6], 0  ;;  %s41_s11 = sshll.u32 %s8302_s5, 4  ;;  %s6294_s12 = smov [#allocation5]   ;;  %s42_s11 = int_to_ptr.hbm [resolvable:$true] %s41_s11 }
   0x2   :  { %s43_s13 = sshll.u32 %s6294_s12, 4  ;;  %s22_s16 = sshll.u32 %s8298_s1, 4  ;;  %s44_s13 = int_to_ptr.vmem [resolvable:$true] %s43_s13  ;;  %s23_s16 = int_to_ptr.hbm [resolvable:$true] %s22_s16 }
   0x3   :  { %s6295_s17 = smov 128   ;;  %s6296_s18 = smov 8  }
   0x4   :  { %49 = dma.hbm_to_vmem [thread:$0]  %s42_s11, 1024, %s44_s13, [#allocation6], %s6295_s17, %s6295_s17, %s6296_s18  }
   0x5   :  { %s6297_s19 = smov [#allocation3]   ;;  %s54_s23 = sshll.u32 %s8303_s6, 4  ;;  %s55_s23 = int_to_ptr.hbm [resolvable:$true] %s54_s23 }
   0x6   :  { %s24_s20 = sshll.u32 %s6297_s19, 4  ;;  %s6298_s5 = smov [#allocation7]   ;;  %s25_s20 = int_to_ptr.vmem [resolvable:$true] %s24_s20 }
   0x7   :  { %30 = dma.hbm_to_vmem [thread:$0]  %s23_s16, 256, %s25_s20, [#allocation4], %s6295_s17, %s6295_s17, %s6296_s18  }
   0x8   :  { %s56_s24 = sshll.u32 %s6298_s5, 4  ;;  %s57_s24 = int_to_ptr.vmem [resolvable:$true] %s56_s24 }
   0x9   :  { %62 = dma.hbm_to_vmem [thread:$0]  %s55_s23, 1024, %s57_s24, [#allocation6], %s6295_s17, %s6295_s17, %s6296_s18  }
   0xa   :  { %6290 = dma.done.wait [#allocation4], 256  }
   0xb   :  { %6291 = vsyncadd [#allocation4], 4294967040 }
   0xc   :  { %6292 = dma.done.wait [#allocation6], 2048  }
   0xd   :  { %6293 = vsyncadd [#allocation6], 4294965248  ;;  %v4949_v0 = vld [vmem:[#allocation3] sm:$0xf]  ;;  %v5688_v1 = vld [vmem:[#allocation3 + $0x4] sm:$0xf0] }
   0xe   :  { %v5687_v2 = vld [vmem:[#allocation3 + $0x4] sm:$0xf]  ;;  %v4950_v3 = vor.u32 %v5688_v1, %v4949_v0  ;;  %v4951_v4 = vld [vmem:[#allocation3 + $0x8] sm:$0xf0]  ;;  %v4997_v5 = vld [vmem:[%s8299_s2 + $0x30] sm:$0xf] }
   0xf   :  { %v5696_v6 = vld [vmem:[%s8299_s2 + $0x34] sm:$0xf0]  ;;  %v4954_v7 = vor.u32 %v5687_v2, %v4951_v4  ;;  %v5679_v9 = vld [vmem:[%s8297_s0] sm:$0xff]  ;;  %v5694_v11 = vld [vmem:[%s8299_s2 + $0x24] sm:$0xf0]  ;;  %vm154_vm0 = vcmask 130048  }
  0x10   :  { %v4998_v8 = vor.u32 %v5696_v6, %v4997_v5  ;;  %v4989_v10 = vld [vmem:[%s8299_s2 + $0x20] sm:$0xf]  ;;  %186 = vmatpush.bf16.msra.mxu0 %v4950_v3  ;;  %v4981_v13 = vld [vmem:[%s8299_s2 + $0x10] sm:$0xf]  ;;  %v5692_v14 = vld [vmem:[%s8299_s2 + $0x14] sm:$0xf0] }
  0x11   :  { %235 = vmatpush.bf16.msra.mxu1 %v4954_v7  ;;  %v4990_v12 = vor.u32 %v5694_v11, %v4989_v10  ;;  %v5695_v15 = vld [vmem:[%s8299_s2 + $0x34] sm:$0xf]  ;;  %v4999_v16 = vld [vmem:[%s8299_s2 + $0x38] sm:$0xf0]  ;;  %v5693_v17 = vld [vmem:[%s8299_s2 + $0x24] sm:$0xf]  ;;  %v4982_v20 = vor.u32 %v5692_v14, %v4981_v13 }
  0x12   :  { %371 = vmatpush.bf16.msra.mxu2 %v4998_v8  ;;  %v4991_v18 = vld [vmem:[%s8299_s2 + $0x28] sm:$0xf0]  ;;  %v5002_v19 = vor.u32 %v5695_v15, %v4999_v16  ;;  %v4973_v21 = vld [vmem:[%s8299_s2] sm:$0xf]  ;;  %v5690_v23 = vld [vmem:[%s8299_s2 + $0x4] sm:$0xf0] }
  0x13   :  { %4955 = vmatmul.msk.bf16.vlgmr.msra.gmra.mxu0 %vm154_vm0, %v5679_v9  ;;  %v4994_v22 = vor.u32 %v5693_v17, %v4991_v18  ;;  %v5691_v24 = vld [vmem:[%s8299_s2 + $0x14] sm:$0xf]  ;;  %v4983_v25 = vld [vmem:[%s8299_s2 + $0x18] sm:$0xf0]  ;;  %v4974_v26 = vor.u32 %v5690_v23, %v4973_v21  ;;  %v5689_v28 = vld [vmem:[%s8299_s2 + $0x4] sm:$0xf] }
  0x14   :  { %4963 = vmatmul.msk.bf16.vlgmr.msra.gmra.mxu1 %vm154_vm0, %v5679_v9  ;;  %385 = vmatpush.bf16.msra.mxu3 %v5002_v19  ;;  %v4986_v27 = vor.u32 %v5691_v24, %v4983_v25  ;;  %v4975_v29 = vld [vmem:[%s8299_s2 + $0x8] sm:$0xf0]  ;;  %v6299_v32 = vmov 0   ;;  %v5681_v33 = vld [vmem:[%s8297_s0 + $0x10] sm:$0xff]  ;;  %v5682_v34 = vld [vmem:[%s8297_s0 + $0x18] sm:$0xff]  ;;  %s6300_s6 = smov 64  }
  0x15   :  { %v4978_v30 = vor.u32 %v5689_v28, %v4975_v29  ;;  %v5680_v31 = vld [vmem:[%s8297_s0 + $0x8] sm:$0xff]  ;;  %v5683_v35 = vld [vmem:[%s8297_s0 + $0x20] sm:$0xff]  ;;  %v5685_v37 = vld [vmem:[%s8297_s0 + $0x30] sm:$0xff]  ;;  %s6301_s26 = smov 96   ;;  %s6302_s5 = smov 32  }
  0x16   :  { %372 = vmatpush.bf16.msra.mxu2 %v4990_v12  ;;  %v5684_v36 = vld [vmem:[%s8297_s0 + $0x28] sm:$0xff]  ;;  %v5686_v38 = vld [vmem:[%s8297_s0 + $0x38] sm:$0xff]  ;;  %v98_v39 = vld [vmem:[%s8300_s3] sm:$0x3] }
  0x17   :  { %v6455_v40 = vperm.slane %v98_v39, 0  ;;  %v6457_v41 = vperm.slane %v98_v39, 1  ;;  %v317_v52 = vld [vmem:[%s8301_s4] sm:$0x3] }
  0x18   :  { %386 = vmatpush.bf16.msra.mxu3 %v4994_v22  ;;  %v319_v54 = vperm.slane %v317_v52, 0  ;;  %v320_v61 = vperm.slane %v317_v52, 1 }
  0x1a   :  { %373 = vmatpush.bf16.msra.mxu2 %v4982_v20 }
  0x1c   :  { %387 = vmatpush.bf16.msra.mxu3 %v4986_v27 }
  0x1e   :  { %374 = vmatpush.bf16.msra.mxu2 %v4974_v26 }
  0x20   :  { %388 = vmatpush.bf16.msra.mxu3 %v4978_v30 }
  0x21   :  { %375 = vmatmul.bf16.vlgmr.msra.gmra.mxu2 %v6299_v32 }
  0x23   :  { %4956 = vmatmul.msk.bf16.gmra.mxu0 %vm154_vm0, %v5680_v31  ;;  %389 = vmatmul.bf16.vlgmr.msra.gmra.mxu3 %v6299_v32 }
  0x24   :  { %4964 = vmatmul.msk.bf16.gmra.mxu1 %vm154_vm0, %v5680_v31 }
  0x33   :  { %4957 = vmatmul.msk.bf16.gmra.mxu0 %vm154_vm0, %v5681_v33 }
  0x34   :  { %4965 = vmatmul.msk.bf16.gmra.mxu1 %vm154_vm0, %v5681_v33 }
  0x43   :  { %4958 = vmatmul.msk.bf16.gmra.mxu0 %vm154_vm0, %v5682_v34 }
  0x44   :  { %4966 = vmatmul.msk.bf16.gmra.mxu1 %vm154_vm0, %v5682_v34 }
  0x53   :  { %4959 = vmatmul.msk.bf16.gmra.mxu0 %vm154_vm0, %v5683_v35 }
  0x54   :  { %4967 = vmatmul.msk.bf16.gmra.mxu1 %vm154_vm0, %v5683_v35 }
  0x63   :  { %4960 = vmatmul.msk.bf16.gmra.mxu0 %vm154_vm0, %v5684_v36 }
  0x64   :  { %4968 = vmatmul.msk.bf16.gmra.mxu1 %vm154_vm0, %v5684_v36 }
  0x73   :  { %4961 = vmatmul.msk.bf16.gmra.mxu0 %vm154_vm0, %v5685_v37 }
  0x74   :  { %4969 = vmatmul.msk.bf16.gmra.mxu1 %vm154_vm0, %v5685_v37 }
  0x83   :  { %4962 = vmatmul.msk.bf16.gmra.mxu0 %vm154_vm0, %v5686_v38 }
  0x84   :  { %4970 = vmatmul.msk.bf16.gmra.mxu1 %vm154_vm0, %v5686_v38 }
  0x90   :  { %v188_v42 = vpop.f32.mrf.mxu0 }
  0x91   :  { %v189_v43 = vadd.f32 %v188_v42, %v6455_v40  ;;  %v237_v44 = vpop.f32.mrf.mxu1 }
  0x92   :  { %v238_v45 = vadd.f32 %v237_v44, %v6457_v41 }
  0x94   :  { %v277_v46 = vpack.c.bf16 %v238_v45, %v189_v43 }
  0x96   :  { %293 = vst [vmem:[#allocation2] sm:$0xff] %v277_v46 }
  0x98   :  { %v190_v47 = vpop.f32.mrf.mxu0 }
  0x99   :  { %v191_v48 = vadd.f32 %v190_v47, %v6455_v40  ;;  %v239_v49 = vpop.f32.mrf.mxu1 }
  0x9a   :  { %v240_v50 = vadd.f32 %v239_v49, %v6457_v41 }
  0x9c   :  { %v278_v51 = vpack.c.bf16 %v240_v50, %v191_v48 }
  0x9d   :  { %v6495_v42 = vld [vmem:[#allocation2] sm:$0xf] }
  0x9e   :  { %294 = vst [vmem:[#allocation2 + $0x8] sm:$0xff] %v278_v51  ;;  %v400_v47 = vunpack.c.l.bf16 %v6495_v42 }
  0xa0   :  { %v193_v53 = vpop.f32.mrf.mxu0 }
  0xa1   :  { %v194_v55 = vadd.f32 %v193_v53, %v6455_v40  ;;  %v242_v56 = vpop.f32.mrf.mxu1 }
  0xa2   :  { %v243_v57 = vadd.f32 %v242_v56, %v6457_v41 }
  0xa4   :  { %v376_v58 = vpop.f32.mrf.mxu2  ;;  %v279_v59 = vpack.c.bf16 %v243_v57, %v194_v55 }
  0xa5   :  { %v6468_v60 = vadd.f32 %v376_v58, %v319_v54  ;;  %v6503_v50 = vld [vmem:[#allocation2 + $0x8] sm:$0xf] }
  0xa6   :  { %295 = vst [vmem:[#allocation2 + $0x10] sm:$0xff] %v279_v59  ;;  %v390_v62 = vpop.f32.mrf.mxu3  ;;  %v401_v56 = vunpack.c.l.bf16 %v6503_v50 }
  0xa7   :  { %444 = vrot.lane.b32.xlu0 %v6468_v60, %s6300_s6  ;;  %v6472_v0 = vadd.f32 %v390_v62, %v320_v61  ;;  %v402_v49 = vadd.f32 %v400_v47, %v6468_v60 }
  0xa8   :  { %v195_v63 = vpop.f32.mrf.mxu0 }
  0xa9   :  { %v196_v1 = vadd.f32 %v195_v63, %v6455_v40  ;;  %v244_v2 = vpop.f32.mrf.mxu1  ;;  %540 = vrot.lane.b32.xlu1 %v6472_v0, %s6300_s6  ;;  %v5003_v55 = vmul.f32 -1.442695, %v402_v49 }
  0xaa   :  { %v245_v3 = vadd.f32 %v244_v2, %v6457_v41 }
  0xab   :  { %5834 = vpow2.f32 %v5003_v55 }
  0xac   :  { %v378_v4 = vpop.f32.mrf.mxu2  ;;  %v280_v5 = vpack.c.bf16 %v245_v3, %v196_v1 }
  0xad   :  { %v379_v6 = vadd.f32 %v378_v4, %v319_v54 }
  0xae   :  { %296 = vst [vmem:[#allocation2 + $0x18] sm:$0xff] %v280_v5  ;;  %v392_v7 = vpop.f32.mrf.mxu3 }
  0xaf   :  { %446 = vrot.lane.b32.xlu0 %v379_v6, %s6300_s6  ;;  %v6479_v9 = vadd.f32 %v392_v7, %v320_v61  ;;  %v403_v58 = vadd.f32 %v401_v56, %v379_v6 }
  0xb0   :  { %v198_v8 = vpop.f32.mrf.mxu0 }
  0xb1   :  { %v199_v10 = vadd.f32 %v198_v8, %v6455_v40  ;;  %v247_v11 = vpop.f32.mrf.mxu1  ;;  %542 = vrot.lane.b32.xlu1 %v6479_v9, %s6300_s6  ;;  %v5004_v63 = vmul.f32 -1.442695, %v403_v58  ;;  %v5835_v2 = vpop.eup %5834 }
  0xb2   :  { %v248_v12 = vadd.f32 %v247_v11, %v6457_v41  ;;  %v410_v3 = vadd.f32 1.0, %v5835_v2 }
  0xb3   :  { %5836 = vpow2.f32 %v5004_v63 }
  0xb4   :  { %v281_v13 = vpack.c.bf16 %v248_v12, %v199_v10  ;;  %5838 = vrcp.f32 %v410_v3  ;;  %vm417_vm2 = vweird.f32 %v410_v3 }
  0xb6   :  { %297 = vst [vmem:[#allocation2 + $0x20] sm:$0xff] %v281_v13 }
  0xb8   :  { %v200_v14 = vpop.f32.mrf.mxu0 }
  0xb9   :  { %v201_v15 = vadd.f32 %v200_v14, %v6455_v40  ;;  %v249_v16 = vpop.f32.mrf.mxu1  ;;  %v5837_v10 = vpop.eup %5836 }
  0xba   :  { %v250_v17 = vadd.f32 %v249_v16, %v6457_v41  ;;  %v411_v11 = vadd.f32 1.0, %v5837_v10 }
  0xbc   :  { %v282_v18 = vpack.c.bf16 %v250_v17, %v201_v15  ;;  %v5839_v15 = vpop.eup %5838  ;;  %5840 = vrcp.f32 %v411_v11  ;;  %v438_v49 = vand.u32 2147483648, %v411_v11  ;;  %vm432_vm6 = vweird.f32 %v411_v11 }
  0xbd   :  { %vm418_vm1 = vweird.f32 %v5839_v15 }
  0xbe   :  { %298 = vst [vmem:[#allocation2 + $0x28] sm:$0xff] %v282_v18  ;;  %v413_v18 = vmul.f32 %v5839_v15, %v410_v3  ;;  %vm419_vm3 = vmor %vm417_vm2, %vm418_vm1  ;;  %v439_v55 = vor.u32 1.1754944e-38, %v438_v49  ;;  %vm577_vm1 = vcmask 523520   ;;  %vm488_vm2 = vcmask 261120  }
  0xc0   :  { %v203_v19 = vpop.f32.mrf.mxu0 }
  0xc1   :  { %v204_v20 = vadd.f32 %v203_v19, %v6455_v40  ;;  %v252_v21 = vpop.f32.mrf.mxu1 }
  0xc2   :  { %v253_v22 = vadd.f32 %v252_v21, %v6457_v41 }
  0xc4   :  { %v283_v23 = vpack.c.bf16 %v253_v22, %v204_v20  ;;  %v414_v22 = vsub.f32 1.0, %v413_v18 }
  0xc6   :  { %299 = vst [vmem:[#allocation2 + $0x30] sm:$0xff] %v283_v23  ;;  %v5841_v23 = vpop.eup %5840 }
  0xc7   :  { %vm433_vm5 = vweird.f32 %v5841_v23 }
  0xc8   :  { %v205_v24 = vpop.f32.mrf.mxu0  ;;  %vm434_vm7 = vmor %vm432_vm6, %vm433_vm5 }
  0xc9   :  { %v206_v25 = vadd.f32 %v205_v24, %v6455_v40  ;;  %v254_v26 = vpop.f32.mrf.mxu1 }
  0xca   :  { %v255_v27 = vadd.f32 %v254_v26, %v6457_v41  ;;  %v415_v26 = vmul.f32 %v5839_v15, %v414_v22 }
  0xcc   :  { %v284_v28 = vpack.c.bf16 %v255_v27, %v206_v25  ;;  %v428_v27 = vmul.f32 %v5841_v23, %v411_v11 }
  0xce   :  { %300 = vst [vmem:[#allocation2 + $0x38] sm:$0xff] %v284_v28 }
  0xd0   :  { %v208_v29 = vpop.f32.mrf.mxu0 }
  0xd1   :  { %v209_v30 = vadd.f32 %v208_v29, %v6455_v40  ;;  %v257_v31 = vpop.f32.mrf.mxu1 }
  0xd2   :  { %v258_v33 = vadd.f32 %v257_v31, %v6457_v41  ;;  %v416_v31 = vadd.f32 %v5839_v15, %v415_v26 }
  0xd4   :  { %v285_v34 = vpack.c.bf16 %v258_v33, %v209_v30  ;;  %v423_v33 = vand.u32 2147483648, %v410_v3 }
  0xd6   :  { %301 = vst [vmem:[#allocation2 + $0x40] sm:$0xff] %v285_v34 }
  0xd8   :  { %v210_v35 = vpop.f32.mrf.mxu0 }
  0xd9   :  { %v211_v36 = vadd.f32 %v210_v35, %v6455_v40  ;;  %v259_v37 = vpop.f32.mrf.mxu1  ;;  %v421_v35 = vand.u32 2147483647, %v410_v3 }
  0xda   :  { %v260_v38 = vadd.f32 %v259_v37, %v6457_v41 }
  0xdb   :  { %vm422_vm4 = vcmp.eq.f32.partialorder %v421_v35, 8.507059e+37 }
  0xdc   :  { %v286_v39 = vpack.c.bf16 %v260_v38, %v211_v36  ;;  %v424_v38 = vor.u32 1.1754944e-38, %v423_v33 }
  0xde   :  { %302 = vst [vmem:[#allocation2 + $0x48] sm:$0xff] %v286_v39 }
  0xe0   :  { %v213_v43 = vpop.f32.mrf.mxu0 }
  0xe1   :  { %v214_v44 = vadd.f32 %v213_v43, %v6455_v40  ;;  %v262_v45 = vpop.f32.mrf.mxu1 }
  0xe2   :  { %v263_v46 = vadd.f32 %v262_v45, %v6457_v41 }
  0xe4   :  { %v287_v48 = vpack.c.bf16 %v263_v46, %v214_v44 }
  0xe6   :  { %303 = vst [vmem:[#allocation2 + $0x50] sm:$0xff] %v287_v48 }
  0xe8   :  { %v215_v51 = vpop.f32.mrf.mxu0 }
  0xe9   :  { %v216_v52 = vadd.f32 %v215_v51, %v6455_v40  ;;  %v264_v53 = vpop.f32.mrf.mxu1 }
  0xea   :  { %v265_v54 = vadd.f32 %v264_v53, %v6457_v41 }
  0xec   :  { %v288_v57 = vpack.c.bf16 %v265_v54, %v216_v52  ;;  %v436_v52 = vand.u32 2147483647, %v411_v11 }
  0xee   :  { %304 = vst [vmem:[#allocation2 + $0x58] sm:$0xff] %v288_v57  ;;  %vm437_vm8 = vcmp.eq.f32.partialorder %v436_v52, 8.507059e+37 }
  0xf0   :  { %v218_v59 = vpop.f32.mrf.mxu0 }
  0xf1   :  { %v219_v60 = vadd.f32 %v218_v59, %v6455_v40  ;;  %v267_v61 = vpop.f32.mrf.mxu1 }
  0xf2   :  { %v268_v62 = vadd.f32 %v267_v61, %v6457_v41 }
  0xf4   :  { %v289_v1 = vpack.c.bf16 %v268_v62, %v219_v60 }
  0xf6   :  { %305 = vst [vmem:[#allocation2 + $0x60] sm:$0xff] %v289_v1 }
  0xf8   :  { %v220_v4 = vpop.f32.mrf.mxu0 }
  0xf9   :  { %v221_v5 = vadd.f32 %v220_v4, %v6455_v40  ;;  %v269_v7 = vpop.f32.mrf.mxu1 }
  0xfa   :  { %v270_v8 = vadd.f32 %v269_v7, %v6457_v41 }
  0xfc   :  { %v290_v6 = vpack.c.bf16 %v270_v8, %v221_v5 }
  0xfe   :  { %306 = vst [vmem:[#allocation2 + $0x68] sm:$0xff] %v290_v6 }
 0x100   :  { %v223_v12 = vpop.f32.mrf.mxu0 }
 0x101   :  { %v224_v13 = vadd.f32 %v223_v12, %v6455_v40  ;;  %v272_v14 = vpop.f32.mrf.mxu1 }
 0x102   :  { %v273_v16 = vadd.f32 %v272_v14, %v6457_v41 }
 0x104   :  { %v291_v17 = vpack.c.bf16 %v273_v16, %v224_v13 }
 0x106   :  { %307 = vst [vmem:[#allocation2 + $0x70] sm:$0xff] %v291_v17 }
 0x108   :  { %v225_v19 = vpop.f32.mrf.mxu0 }
 0x109   :  { %v226_v20 = vadd.f32 %v225_v19, %v6455_v40  ;;  %v274_v21 = vpop.f32.mrf.mxu1  ;;  %v429_v40 = vsub.f32 1.0, %v428_v27 }
 0x10a   :  { %v275_v24 = vadd.f32 %v274_v21, %v6457_v41  ;;  %v420_v41 = vsel %vm419_vm3, %v5839_v15, %v416_v31  ;;  %vm363_vm3 = vcmask 523264  }
 0x10b   :  { %v430_v36 = vmul.f32 %v5841_v23, %v429_v40  ;;  %v6527_v44 = vsel %vm422_vm4, %v424_v38, %v420_v41 }
 0x10c   :  { %v292_v25 = vpack.c.bf16 %v275_v24, %v226_v20  ;;  %v476_v35 = vmul.f32 0.0, %v6527_v44 }
 0x10d   :  { %v6518_v28 = vld [vmem:[#allocation2 + $0x74] sm:$0xf]  ;;  %v431_v46 = vadd.f32 %v5841_v23, %v430_v36 }
 0x10e   :  { %308 = vst [vmem:[#allocation2 + $0x78] sm:$0xff] %v292_v25  ;;  %v496_v29 = vunpack.c.l.bf16 %v6518_v28 }
 0x10f   :  { %v435_v54 = vsel %vm434_vm7, %v5841_v23, %v431_v46 }
 0x110   :  { %v498_v30 = vadd.f32 %v496_v29, %v6472_v0 }
 0x112   :  { %v5005_v34 = vmul.f32 -1.442695, %v498_v30 }
 0x114   :  { %5842 = vpow2.f32 %v5005_v34 }
 0x115   :  { %v6524_v37 = vld [vmem:[#allocation2 + $0x7c] sm:$0xf] }
 0x116   :  { %v497_v39 = vunpack.c.l.bf16 %v6524_v37 }
 0x118   :  { %v499_v0 = vadd.f32 %v497_v39, %v6479_v9  ;;  %v6534_v9 = vsel %vm437_vm8, %v439_v55, %v435_v54  ;;  %v5035_v54 = vld [vmem:[%s8299_s2 + $0x30] sm:$0xf]  ;;  %v5704_v55 = vld [vmem:[%s8299_s2 + $0x34] sm:$0xf0] }
 0x119   :  { %v445_v43 = vpop.permute.xlu0 %444  ;;  %v477_v37 = vmul.f32 0.0, %v6534_v9 }
 0x11a   :  { %v450_v45 = vmul.f32 %v445_v43, %v6527_v44  ;;  %v5843_v48 = vpop.eup %5842  ;;  %v5006_v51 = vmul.f32 -1.442695, %v499_v0 }
 0x11b   :  { %v506_v53 = vadd.f32 1.0, %v5843_v48  ;;  %v541_v4 = vpop.permute.xlu1 %540 }
 0x11c   :  { %454 = vrot.lane.b32.xlu2 %v450_v45, %s6300_s6  ;;  %5844 = vpow2.f32 %v5006_v51 }
 0x11d   :  { %5846 = vrcp.f32 %v506_v53  ;;  %v519_v1 = vand.u32 2147483648, %v506_v53  ;;  %v517_v3 = vand.u32 2147483647, %v506_v53  ;;  %vm513_vm10 = vweird.f32 %v506_v53 }
 0x11f   :  { %v520_v8 = vor.u32 1.1754944e-38, %v519_v1  ;;  %vm518_vm12 = vcmp.eq.f32.partialorder %v517_v3, 8.507059e+37  ;;  %v5019_v3 = vld [vmem:[%s8299_s2 + $0x10] sm:$0xf] }
 0x121   :  { %v447_v57 = vpop.permute.xlu0 %446 }
 0x122   :  { %v451_v58 = vmul.f32 %v447_v57, %v6534_v9  ;;  %v5845_v59 = vpop.eup %5844  ;;  %v5703_v57 = vld [vmem:[%s8299_s2 + $0x34] sm:$0xf] }
 0x123   :  { %v5847_v60 = vpop.eup %5846  ;;  %v507_v61 = vadd.f32 1.0, %v5845_v59  ;;  %v543_v18 = vpop.permute.xlu1 %542  ;;  %v5027_v59 = vld [vmem:[%s8299_s2 + $0x20] sm:$0xf] }
 0x124   :  { %456 = vrot.lane.b32.xlu2 %v451_v58, %s6300_s6  ;;  %v509_v62 = vmul.f32 %v5847_v60, %v506_v53  ;;  %vm514_vm9 = vweird.f32 %v5847_v60  ;;  %v5037_v58 = vld [vmem:[%s8299_s2 + $0x38] sm:$0xf0] }
 0x125   :  { %5848 = vrcp.f32 %v507_v61  ;;  %vm515_vm11 = vmor %vm513_vm10, %vm514_vm9  ;;  %v534_v14 = vand.u32 2147483648, %v507_v61  ;;  %v532_v16 = vand.u32 2147483647, %v507_v61  ;;  %vm528_vm14 = vweird.f32 %v507_v61 }
 0x126   :  { %v510_v63 = vsub.f32 1.0, %v509_v62  ;;  %v5701_v62 = vld [vmem:[%s8299_s2 + $0x24] sm:$0xf] }
 0x127   :  { %v535_v19 = vor.u32 1.1754944e-38, %v534_v14  ;;  %vm533_vm0 = vcmp.eq.f32.partialorder %v532_v16, 8.507059e+37  ;;  %v5013_v14 = vld [vmem:[%s8299_s2 + $0x8] sm:$0xf0] }
 0x128   :  { %v511_v2 = vmul.f32 %v5847_v60, %v510_v63  ;;  %v5029_v63 = vld [vmem:[%s8299_s2 + $0x28] sm:$0xf0] }
 0x12a   :  { %v512_v5 = vadd.f32 %v5847_v60, %v511_v2  ;;  %v5032_v2 = vor.u32 %v5701_v62, %v5029_v63 }
 0x12b   :  { %v5849_v7 = vpop.eup %5848 }
 0x12c   :  { %v516_v6 = vsel %vm515_vm11, %v5847_v60, %v512_v5  ;;  %v524_v10 = vmul.f32 %v5849_v7, %v507_v61  ;;  %vm529_vm13 = vweird.f32 %v5849_v7  ;;  %v5702_v60 = vld [vmem:[%s8299_s2 + $0x24] sm:$0xf0]  ;;  %v5040_v61 = vor.u32 %v5703_v57, %v5037_v58  ;;  %v5699_v5 = vld [vmem:[%s8299_s2 + $0x14] sm:$0xf] }
 0x12d   :  { %v521_v11 = vsel %vm518_vm12, %v520_v8, %v516_v6  ;;  %vm530_vm15 = vmor %vm528_vm14, %vm529_vm13  ;;  %v5028_v1 = vor.u32 %v5702_v60, %v5027_v59 }
 0x12e   :  { %v546_v12 = vmul.f32 %v541_v4, %v521_v11  ;;  %v525_v13 = vsub.f32 1.0, %v524_v10  ;;  %v572_v51 = vmul.f32 0.0, %v521_v11  ;;  %658 = vmatpush.bf16.msrb.mxu3 %v5040_v61  ;;  %v5700_v4 = vld [vmem:[%s8299_s2 + $0x14] sm:$0xf0]  ;;  %v5011_v10 = vld [vmem:[%s8299_s2] sm:$0xf] }
 0x12f   :  { %v5020_v8 = vor.u32 %v5700_v4, %v5019_v3 }
 0x130   :  { %550 = vrot.lane.b32.xlu0 %v546_v12, %s6300_s6  ;;  %v526_v15 = vmul.f32 %v5849_v7, %v525_v13  ;;  %v5697_v13 = vld [vmem:[%s8299_s2 + $0x4] sm:$0xf] }
 0x132   :  { %v527_v17 = vadd.f32 %v5849_v7, %v526_v15  ;;  %659 = vmatpush.bf16.msrb.mxu3 %v5032_v2  ;;  %v5016_v15 = vor.u32 %v5697_v13, %v5013_v14 }
 0x134   :  { %v531_v20 = vsel %vm530_vm15, %v5849_v7, %v527_v17  ;;  %v5021_v7 = vld [vmem:[%s8299_s2 + $0x18] sm:$0xf0] }
 0x135   :  { %v536_v21 = vsel %vm533_vm0, %v535_v19, %v531_v20  ;;  %v5024_v6 = vor.u32 %v5699_v5, %v5021_v7 }
 0x136   :  { %v547_v22 = vmul.f32 %v543_v18, %v536_v21  ;;  %v561_v43 = vsub.f32 1.0, %v536_v21  ;;  %v573_v45 = vmul.f32 0.0, %v536_v21  ;;  %v591_v21 = vld [vmem:[%s8301_s4] sm:$0x3] }
 0x137   :  { %660 = vmatpush.bf16.msrb.mxu3 %v5024_v6 }
 0x138   :  { %552 = vrot.lane.b32.xlu1 %v547_v22, %s6300_s6  ;;  %v593_v22 = vperm.slane %v591_v21, 0 }
 0x13b   :  { %661 = vmatpush.bf16.msrb.mxu3 %v5016_v15 }
 0x176   :  { %v455_v23 = vpop.permute.xlu2 %454 }
 0x177   :  { %v460_v24 = vadd.f32 %v455_v23, %v400_v47  ;;  %v594_v23 = vperm.slane %v591_v21, 1 }
 0x179   :  { %5850 = vtanh.f32 %v460_v24 }
 0x17e   :  { %v457_v25 = vpop.permute.xlu2 %456 }
 0x17f   :  { %v5851_v26 = vpop.eup %5850  ;;  %v461_v27 = vadd.f32 %v457_v25, %v401_v56  ;;  %v464_v56 = vsub.f32 1.0, %v6527_v44  ;;  %v560_v44 = vsub.f32 1.0, %v521_v11  ;;  %v5698_v11 = vld [vmem:[%s8299_s2 + $0x4] sm:$0xf0] }
 0x180   :  { %468 = vrot.lane.b32.xlu2 %v5851_v26, %s6301_s26  ;;  %v5012_v12 = vor.u32 %v5698_v11, %v5011_v10 }
 0x181   :  { %5852 = vtanh.f32 %v461_v27 }
 0x187   :  { %v5853_v30 = vpop.eup %5852 }
 0x188   :  { %470 = vrot.lane.b32.xlu0 %v5853_v30, %s6301_s26 }
 0x1a2   :  { %v551_v31 = vpop.permute.xlu0 %550 }
 0x1a3   :  { %v556_v40 = vadd.f32 %v551_v31, %v496_v29  ;;  %v465_v29 = vsub.f32 1.0, %v6534_v9  ;;  %v5036_v9 = vor.u32 %v5704_v55, %v5035_v54 }
 0x1a5   :  { %5854 = vtanh.f32 %v556_v40  ;;  %644 = vmatpush.bf16.msrb.mxu2 %v5036_v9 }
 0x1a9   :  { %645 = vmatpush.bf16.msrb.mxu2 %v5028_v1 }
 0x1aa   :  { %v553_v42 = vpop.permute.xlu1 %552 }
 0x1ab   :  { %v5855_v47 = vpop.eup %5854  ;;  %v557_v33 = vadd.f32 %v553_v42, %v497_v39 }
 0x1ac   :  { %564 = vrot.lane.b32.xlu1 %v5855_v47, %s6301_s26  ;;  %v6639_v47 = vld [vmem:[#allocation2 + $0x10] sm:$0xf] }
 0x1ad   :  { %5856 = vtanh.f32 %v557_v33  ;;  %646 = vmatpush.bf16.msrb.mxu2 %v5020_v8  ;;  %v673_v33 = vunpack.c.l.bf16 %v6639_v47 }
 0x1b1   :  { %647 = vmatpush.bf16.msrb.mxu2 %v5012_v12 }
 0x1b3   :  { %v5857_v50 = vpop.eup %5856 }
 0x1b4   :  { %566 = vrot.lane.b32.xlu2 %v5857_v50, %s6301_s26 }
 0x1da   :  { %v469_v34 = vpop.permute.xlu2 %468 }
 0x1db   :  { %v474_v41 = vmul.f32 %v469_v34, %v464_v56  ;;  %v6644_v56 = vld [vmem:[#allocation2 + $0x6c] sm:$0xf] }
 0x1dd   :  { %v478_v28 = vadd.f32 %v476_v35, %v474_v41  ;;  %v778_v35 = vunpack.c.l.bf16 %v6644_v56 }
 0x1df   :  { %482 = vrot.lane.b32.xlu0 %v478_v28, %s6301_s26 }
 0x1fa   :  { %v471_v36 = vpop.permute.xlu0 %470 }
 0x1fb   :  { %v475_v38 = vmul.f32 %v471_v36, %v465_v29 }
 0x1fd   :  { %v479_v39 = vadd.f32 %v477_v37, %v475_v38  ;;  %v6649_v37 = vld [vmem:[#allocation2 + $0x64] sm:$0xf] }
 0x1ff   :  { %484 = vrot.lane.b32.xlu1 %v479_v39, %s6301_s26  ;;  %v777_v39 = vunpack.c.l.bf16 %v6649_v37 }
 0x20e   :  { %v567_v0 = vpop.permute.xlu2 %566 }
 0x20f   :  { %v571_v46 = vmul.f32 %v567_v0, %v561_v43 }
 0x211   :  { %v575_v48 = vadd.f32 %v573_v45, %v571_v46  ;;  %v6654_v46 = vld [vmem:[#allocation2 + $0x18] sm:$0xf] }
 0x213   :  { %5008 = vst.msk [vmem:[%s8306_s9 + $0x78] sm:$0xff] %vm577_vm1, %v575_v48 }
 0x21e   :  { %v565_v49 = vpop.permute.xlu1 %564 }
 0x21f   :  { %v570_v52 = vmul.f32 %v565_v49, %v560_v44  ;;  %v674_v44 = vunpack.c.l.bf16 %v6654_v46 }
 0x221   :  { %v574_v53 = vadd.f32 %v572_v51, %v570_v52 }
 0x223   :  { %5007 = vst.msk [vmem:[%s8306_s9 + $0x70] sm:$0xff] %vm577_vm1, %v574_v53 }
 0x251   :  { %v483_v16 = vpop.permute.xlu0 %482 }
 0x252   :  { %489 = vst.msk [vmem:[%s8306_s9] sm:$0xff] %vm488_vm2, %v483_v16  ;;  %v6619_v18 = vsel %vm488_vm2, %v483_v16, %v574_v53 }
 0x271   :  { %v485_v17 = vpop.permute.xlu1 %484 }
 0x272   :  { %490 = vst.msk [vmem:[%s8306_s9 + $0x8] sm:$0xff] %vm488_vm2, %v485_v17  ;;  %v6626_v19 = vsel %vm488_vm2, %v485_v17, %v575_v48 }
 0x273   :  { %v582_v20 = vpack.c.bf16 %v6626_v19, %v6619_v18 }
 0x275   :  { %5041 = vmatmul.msk.bf16.vlgmr.msrb.gmra.mxu2 %vm363_vm3, %v582_v20  ;;  %5042 = vmatmul.msk.bf16.vlgmr.msrb.gmra.mxu3 %vm363_vm3, %v582_v20 }
 0x2f8   :  { %v649_v24 = vpop.f32.mrf.mxu2  ;;  %v663_v25 = vpop.f32.mrf.mxu3 }
 0x2f9   :  { %v650_v26 = vadd.f32 %v649_v24, %v593_v22  ;;  %v664_v27 = vadd.f32 %v663_v25, %v594_v23 }
 0x2fb   :  { %821 = vrot.lane.b32.xlu1 %v664_v27, %s6300_s6  ;;  %717 = vrot.lane.b32.xlu2 %v650_v26, %s6300_s6  ;;  %v675_v50 = vadd.f32 %v673_v33, %v650_v26  ;;  %v779_v43 = vadd.f32 %v777_v39, %v664_v27 }
 0x2fd   :  { %v5043_v34 = vmul.f32 -1.442695, %v675_v50  ;;  %v5047_v48 = vmul.f32 -1.442695, %v779_v43 }
 0x2ff   :  { %5858 = vpow2.f32 %v5043_v34 }
 0x300   :  { %v651_v30 = vpop.f32.mrf.mxu2  ;;  %v665_v31 = vpop.f32.mrf.mxu3 }
 0x301   :  { %v652_v40 = vadd.f32 %v651_v30, %v593_v22  ;;  %v666_v42 = vadd.f32 %v665_v31, %v594_v23 }
 0x303   :  { %719 = vrot.lane.b32.xlu0 %v652_v40, %s6300_s6  ;;  %823 = vrot.lane.b32.xlu2 %v666_v42, %s6300_s6  ;;  %v780_v41 = vadd.f32 %v778_v35, %v666_v42  ;;  %v676_v51 = vadd.f32 %v674_v44, %v652_v40 }
 0x305   :  { %v5048_v28 = vmul.f32 -1.442695, %v780_v41  ;;  %v5859_v29 = vpop.eup %5858  ;;  %v5044_v54 = vmul.f32 -1.442695, %v676_v51 }
 0x306   :  { %v683_v36 = vadd.f32 1.0, %v5859_v29 }
 0x307   :  { %5860 = vpow2.f32 %v5048_v28 }
 0x308   :  { %5862 = vrcp.f32 %v683_v36  ;;  %v696_v61 = vand.u32 2147483648, %v683_v36  ;;  %vm690_vm5 = vweird.f32 %v683_v36  ;;  %v694_v62 = vand.u32 2147483647, %v683_v36 }
 0x30a   :  { %v697_v3 = vor.u32 1.1754944e-38, %v696_v61  ;;  %vm695_vm7 = vcmp.eq.f32.partialorder %v694_v62, 8.507059e+37 }
 0x30d   :  { %v5861_v38 = vpop.eup %5860 }
 0x30e   :  { %v788_v0 = vadd.f32 1.0, %v5861_v38  ;;  %v5863_v45 = vpop.eup %5862 }
 0x30f   :  { %v686_v49 = vmul.f32 %v5863_v45, %v683_v36  ;;  %vm691_vm4 = vweird.f32 %v5863_v45 }
 0x310   :  { %5864 = vrcp.f32 %v788_v0  ;;  %vm692_vm6 = vmor %vm690_vm5, %vm691_vm4  ;;  %v815_v11 = vand.u32 2147483648, %v788_v0  ;;  %vm809_vm9 = vweird.f32 %v788_v0  ;;  %v813_v12 = vand.u32 2147483647, %v788_v0 }
 0x311   :  { %5866 = vpow2.f32 %v5047_v48  ;;  %v687_v52 = vsub.f32 1.0, %v686_v49 }
 0x312   :  { %5868 = vpow2.f32 %v5044_v54  ;;  %v816_v15 = vor.u32 1.1754944e-38, %v815_v11  ;;  %vm814_vm11 = vcmp.eq.f32.partialorder %v813_v12, 8.507059e+37 }
 0x313   :  { %v688_v57 = vmul.f32 %v5863_v45, %v687_v52 }
 0x315   :  { %v689_v59 = vadd.f32 %v5863_v45, %v688_v57 }
 0x316   :  { %v5865_v53 = vpop.eup %5864 }
 0x317   :  { %v5867_v55 = vpop.eup %5866  ;;  %v805_v9 = vmul.f32 %v5865_v53, %v788_v0  ;;  %v693_v1 = vsel %vm692_vm6, %v5863_v45, %v689_v59  ;;  %vm810_vm8 = vweird.f32 %v5865_v53 }
 0x318   :  { %v787_v58 = vadd.f32 1.0, %v5867_v55  ;;  %v5869_v63 = vpop.eup %5868  ;;  %v6659_v7 = vsel %vm695_vm7, %v697_v3, %v693_v1  ;;  %vm811_vm10 = vmor %vm809_vm9, %vm810_vm8 }
 0x319   :  { %v806_v60 = vsub.f32 1.0, %v805_v9  ;;  %v684_v4 = vadd.f32 1.0, %v5869_v63  ;;  %v737_v59 = vsub.f32 1.0, %v6659_v7 }
 0x31a   :  { %5870 = vrcp.f32 %v787_v58  ;;  %v800_v27 = vand.u32 2147483648, %v787_v58  ;;  %vm794_vm13 = vweird.f32 %v787_v58  ;;  %v798_v30 = vand.u32 2147483647, %v787_v58 }
 0x31b   :  { %v807_v2 = vmul.f32 %v5865_v53, %v806_v60  ;;  %5872 = vrcp.f32 %v684_v4  ;;  %v711_v29 = vand.u32 2147483648, %v684_v4  ;;  %vm705_vm4 = vweird.f32 %v684_v4 }
 0x31c   :  { %v801_v42 = vor.u32 1.1754944e-38, %v800_v27  ;;  %vm799_vm15 = vcmp.eq.f32.partialorder %v798_v30, 8.507059e+37  ;;  %v709_v36 = vand.u32 2147483647, %v684_v4  ;;  %v5708_v27 = vld [vmem:[%s8299_s2 + $0x14] sm:$0xf0] }
 0x31d   :  { %v808_v6 = vadd.f32 %v5865_v53, %v807_v2  ;;  %v712_v43 = vor.u32 1.1754944e-38, %v711_v29  ;;  %v5707_v30 = vld [vmem:[%s8299_s2 + $0x14] sm:$0xf]  ;;  %v5055_v29 = vld [vmem:[%s8299_s2 + $0x8] sm:$0xf0] }
 0x31e   :  { %vm710_vm6 = vcmp.eq.f32.partialorder %v709_v36, 8.507059e+37 }
 0x31f   :  { %v812_v13 = vsel %vm811_vm10, %v5865_v53, %v808_v6 }
 0x320   :  { %v5871_v10 = vpop.eup %5870  ;;  %v6663_v16 = vsel %vm814_vm11, %v816_v15, %v812_v13  ;;  %v5711_v15 = vld [vmem:[%s8299_s2 + $0x34] sm:$0xf] }
 0x321   :  { %v790_v14 = vmul.f32 %v5871_v10, %v787_v58  ;;  %v5873_v22 = vpop.eup %5872  ;;  %vm795_vm12 = vweird.f32 %v5871_v10  ;;  %v842_v37 = vsub.f32 1.0, %v6663_v16  ;;  %v854_v3 = vmul.f32 %v6663_v16, %v6626_v19 }
 0x322   :  { %v701_v24 = vmul.f32 %v5873_v22, %v684_v4  ;;  %vm796_vm14 = vmor %vm794_vm13, %vm795_vm12  ;;  %vm706_vm0 = vweird.f32 %v5873_v22 }
 0x323   :  { %v791_v21 = vsub.f32 1.0, %v790_v14  ;;  %vm707_vm5 = vmor %vm705_vm4, %vm706_vm0  ;;  %v5712_v14 = vld [vmem:[%s8299_s2 + $0x34] sm:$0xf0] }
 0x324   :  { %v702_v26 = vsub.f32 1.0, %v701_v24 }
 0x325   :  { %v792_v23 = vmul.f32 %v5871_v10, %v791_v21 }
 0x326   :  { %v703_v40 = vmul.f32 %v5873_v22, %v702_v26  ;;  %v5061_v26 = vld [vmem:[%s8299_s2 + $0x10] sm:$0xf] }
 0x327   :  { %v793_v25 = vadd.f32 %v5871_v10, %v792_v23  ;;  %v5071_v23 = vld [vmem:[%s8299_s2 + $0x28] sm:$0xf0] }
 0x328   :  { %v704_v28 = vadd.f32 %v5873_v22, %v703_v40  ;;  %v5062_v40 = vor.u32 %v5708_v27, %v5061_v26 }
 0x329   :  { %v797_v31 = vsel %vm796_vm14, %v5871_v10, %v793_v25 }
 0x32a   :  { %v802_v34 = vsel %vm799_vm15, %v801_v42, %v797_v31  ;;  %v708_v38 = vsel %vm707_vm5, %v5873_v22, %v704_v28  ;;  %v5709_v22 = vld [vmem:[%s8299_s2 + $0x24] sm:$0xf]  ;;  %v5063_v31 = vld [vmem:[%s8299_s2 + $0x18] sm:$0xf0] }
 0x32b   :  { %v713_v45 = vsel %vm710_vm6, %v712_v43, %v708_v38  ;;  %v853_v11 = vmul.f32 %v802_v34, %v6619_v18  ;;  %v5074_v25 = vor.u32 %v5709_v22, %v5071_v23  ;;  %v5066_v42 = vor.u32 %v5707_v30, %v5063_v31  ;;  %v5705_v28 = vld [vmem:[%s8299_s2 + $0x4] sm:$0xf] }
 0x32c   :  { %v738_v62 = vsub.f32 1.0, %v713_v45  ;;  %v5058_v36 = vor.u32 %v5705_v28, %v5055_v29 }
 0x355   :  { %v718_v5 = vpop.permute.xlu2 %717 }
 0x356   :  { %v723_v8 = vmul.f32 %v718_v5, %v6659_v7 }
 0x358   :  { %727 = vrot.lane.b32.xlu0 %v723_v8, %s6300_s6 }
 0x35d   :  { %v824_v17 = vpop.permute.xlu2 %823 }
 0x35e   :  { %v828_v20 = vmul.f32 %v824_v17, %v6663_v16  ;;  %v5079_v16 = vld [vmem:[%s8299_s2 + $0x38] sm:$0xf0]  ;;  %v5069_v17 = vld [vmem:[%s8299_s2 + $0x20] sm:$0xf] }
 0x35f   :  { %v5082_v21 = vor.u32 %v5711_v15, %v5079_v16 }
 0x360   :  { %833 = vrot.lane.b32.xlu0 %v828_v20, %s6300_s6  ;;  %v5710_v20 = vld [vmem:[%s8299_s2 + $0x24] sm:$0xf0] }
 0x361   :  { %v5070_v24 = vor.u32 %v5710_v20, %v5069_v17  ;;  %938 = vmatpush.bf16.msra.mxu3 %v5082_v21 }
 0x365   :  { %939 = vmatpush.bf16.msra.mxu3 %v5074_v25 }
 0x368   :  { %751 = vrot.lane.b32.xlu0 %v6619_v18, %s6302_s5 }
 0x369   :  { %940 = vmatpush.bf16.msra.mxu3 %v5066_v42 }
 0x36d   :  { %v822_v50 = vpop.permute.xlu1 %821  ;;  %941 = vmatpush.bf16.msra.mxu3 %v5058_v36 }
 0x36e   :  { %v827_v41 = vmul.f32 %v822_v50, %v802_v34  ;;  %v5053_v50 = vld [vmem:[%s8299_s2] sm:$0xf] }
 0x370   :  { %831 = vrot.lane.b32.xlu2 %v827_v41, %s6300_s6 }
 0x375   :  { %v720_v0 = vpop.permute.xlu0 %719 }
 0x376   :  { %v724_v48 = vmul.f32 %v720_v0, %v713_v45 }
 0x378   :  { %729 = vrot.lane.b32.xlu1 %v724_v48, %s6300_s6 }
 0x3ca   :  { %v728_v49 = vpop.permute.xlu0 %727 }
 0x3cb   :  { %v733_v51 = vadd.f32 %v728_v49, %v673_v33  ;;  %v832_v33 = vpop.permute.xlu2 %831  ;;  %v871_v49 = vld [vmem:[%s8301_s4] sm:$0x3] }
 0x3cc   :  { %v837_v56 = vadd.f32 %v832_v33, %v777_v39 }
 0x3cd   :  { %5874 = vtanh.f32 %v733_v51  ;;  %v873_v51 = vperm.slane %v871_v49, 0 }
 0x3d2   :  { %v834_v52 = vpop.permute.xlu0 %833 }
 0x3d3   :  { %v838_v53 = vadd.f32 %v834_v52, %v778_v35  ;;  %v5875_v54 = vpop.eup %5874  ;;  %v874_v52 = vperm.slane %v871_v49, 1 }
 0x3d4   :  { %741 = vrot.lane.b32.xlu1 %v5875_v54, %s6301_s26 }
 0x3d5   :  { %5876 = vtanh.f32 %v838_v53 }
 0x3da   :  { %v752_v58 = vpop.permute.xlu0 %751 }
 0x3db   :  { %v5877_v55 = vpop.eup %5876  ;;  %v757_v61 = vmul.f32 %v752_v58, %v6659_v7  ;;  %v841_v7 = vsub.f32 1.0, %v802_v34  ;;  %v5706_v34 = vld [vmem:[%s8299_s2 + $0x4] sm:$0xf0] }
 0x3dc   :  { %847 = vrot.lane.b32.xlu0 %v5877_v55, %s6301_s26  ;;  %753 = vrot.lane.b32.xlu1 %v6626_v19, %s6302_s5  ;;  %v5077_v19 = vld [vmem:[%s8299_s2 + $0x30] sm:$0xf]  ;;  %v5054_v41 = vor.u32 %v5706_v34, %v5053_v50 }
 0x3dd   :  { %v5078_v18 = vor.u32 %v5712_v14, %v5077_v19 }
 0x3df   :  { %924 = vmatpush.bf16.msra.mxu2 %v5078_v18 }
 0x3e3   :  { %925 = vmatpush.bf16.msra.mxu2 %v5070_v24 }
 0x3e7   :  { %926 = vmatpush.bf16.msra.mxu2 %v5062_v40 }
 0x3ea   :  { %v730_v57 = vpop.permute.xlu1 %729 }
 0x3eb   :  { %v734_v47 = vadd.f32 %v730_v57, %v674_v44  ;;  %927 = vmatpush.bf16.msra.mxu2 %v5054_v41 }
 0x3ed   :  { %5878 = vtanh.f32 %v734_v47 }
 0x3ee   :  { %5880 = vtanh.f32 %v837_v56 }
 0x3f3   :  { %v5879_v35 = vpop.eup %5878 }
 0x3f4   :  { %743 = vrot.lane.b32.xlu2 %v5879_v35, %s6301_s26  ;;  %v5881_v9 = vpop.eup %5880 }
 0x3fc   :  { %845 = vrot.lane.b32.xlu2 %v5881_v9, %s6301_s26  ;;  %v6774_v9 = vld [vmem:[#allocation2 + $0x54] sm:$0xf] }
 0x3fd   :  { %v1057_v58 = vunpack.c.l.bf16 %v6774_v9 }
 0x446   :  { %v742_v60 = vpop.permute.xlu1 %741 }
 0x447   :  { %v747_v46 = vmul.f32 %v742_v60, %v737_v59 }
 0x449   :  { %v759_v44 = vadd.f32 %v757_v61, %v747_v46 }
 0x44b   :  { %763 = vrot.lane.b32.xlu1 %v759_v44, %s6301_s26  ;;  %v6779_v44 = vld [vmem:[#allocation2 + $0x20] sm:$0xf] }
 0x44e   :  { %v744_v39 = vpop.permute.xlu2 %743  ;;  %v848_v63 = vpop.permute.xlu0 %847 }
 0x44f   :  { %v748_v1 = vmul.f32 %v744_v39, %v738_v62  ;;  %v754_v2 = vpop.permute.xlu1 %753  ;;  %v852_v4 = vmul.f32 %v848_v63, %v842_v37  ;;  %v953_v62 = vunpack.c.l.bf16 %v6779_v44  ;;  %v6784_v39 = vld [vmem:[#allocation2 + $0x28] sm:$0xf] }
 0x450   :  { %v758_v5 = vmul.f32 %v754_v2, %v713_v45 }
 0x451   :  { %v856_v8 = vadd.f32 %v854_v3, %v852_v4  ;;  %v954_v3 = vunpack.c.l.bf16 %v6784_v39 }
 0x452   :  { %v760_v6 = vadd.f32 %v758_v5, %v748_v1  ;;  %v6786_v1 = vld [vmem:[#allocation2 + $0x5c] sm:$0xf] }
 0x453   :  { %5050 = vst.msk [vmem:[%s8306_s9 + $0x68] sm:$0xff] %vm577_vm1, %v856_v8  ;;  %v1058_v4 = vunpack.c.l.bf16 %v6786_v1 }
 0x454   :  { %765 = vrot.lane.b32.xlu2 %v760_v6, %s6301_s26 }
 0x456   :  { %v846_v10 = vpop.permute.xlu2 %845 }
 0x457   :  { %v851_v12 = vmul.f32 %v846_v10, %v841_v7 }
 0x459   :  { %v855_v13 = vadd.f32 %v853_v11, %v851_v12 }
 0x45b   :  { %5049 = vst.msk [vmem:[%s8306_s9 + $0x60] sm:$0xff] %vm577_vm1, %v855_v13 }
 0x4ae   :  { %v766_v38 = vpop.permute.xlu2 %765 }
 0x4af   :  { %5046 = vst.msk [vmem:[%s8306_s9 + $0x18] sm:$0xff] %vm488_vm2, %v766_v38  ;;  %v6754_v0 = vsel %vm488_vm2, %v766_v38, %v856_v8 }
 0x4bd   :  { %v764_v43 = vpop.permute.xlu1 %763 }
 0x4be   :  { %5045 = vst.msk [vmem:[%s8306_s9 + $0x10] sm:$0xff] %vm488_vm2, %v764_v43  ;;  %v6761_v45 = vsel %vm488_vm2, %v764_v43, %v855_v13 }
 0x4bf   :  { %v862_v48 = vpack.c.bf16 %v6754_v0, %v6761_v45 }
 0x4c1   :  { %5083 = vmatmul.msk.bf16.vlgmr.msra.gmra.mxu2 %vm363_vm3, %v862_v48  ;;  %5084 = vmatmul.msk.bf16.vlgmr.msra.gmra.mxu3 %vm363_vm3, %v862_v48 }
 0x544   :  { %v929_v53 = vpop.f32.mrf.mxu2  ;;  %v943_v54 = vpop.f32.mrf.mxu3 }
 0x545   :  { %v930_v55 = vadd.f32 %v929_v53, %v873_v51  ;;  %v944_v57 = vadd.f32 %v943_v54, %v874_v52 }
 0x547   :  { %1101 = vrot.lane.b32.xlu2 %v944_v57, %s6300_s6  ;;  %997 = vrot.lane.b32.xlu0 %v930_v55, %s6300_s6  ;;  %v1059_v59 = vadd.f32 %v1057_v58, %v944_v57  ;;  %v955_v37 = vadd.f32 %v953_v62, %v930_v55 }
 0x549   :  { %v5089_v60 = vmul.f32 -1.442695, %v1059_v59  ;;  %v5085_v2 = vmul.f32 -1.442695, %v955_v37 }
 0x54b   :  { %5882 = vpow2.f32 %v5089_v60 }
 0x54c   :  { %v931_v47 = vpop.f32.mrf.mxu2  ;;  %v945_v33 = vpop.f32.mrf.mxu3 }
 0x54d   :  { %v932_v56 = vadd.f32 %v931_v47, %v873_v51  ;;  %v946_v35 = vadd.f32 %v945_v33, %v874_v52 }
 0x54f   :  { %999 = vrot.lane.b32.xlu1 %v932_v56, %s6300_s6  ;;  %1103 = vrot.lane.b32.xlu0 %v946_v35, %s6300_s6  ;;  %v956_v8 = vadd.f32 %v954_v3, %v932_v56  ;;  %v1060_v6 = vadd.f32 %v1058_v4, %v946_v35 }
 0x551   :  { %v5883_v61 = vpop.eup %5882  ;;  %v5086_v10 = vmul.f32 -1.442695, %v956_v8  ;;  %v5090_v11 = vmul.f32 -1.442695, %v1060_v6 }
 0x552   :  { %v1067_v46 = vadd.f32 1.0, %v5883_v61 }
 0x554   :  { %5884 = vrcp.f32 %v1067_v46  ;;  %v1080_v15 = vand.u32 2147483648, %v1067_v46  ;;  %vm1074_vm8 = vweird.f32 %v1067_v46  ;;  %v1078_v18 = vand.u32 2147483647, %v1067_v46 }
 0x555   :  { %5886 = vpow2.f32 %v5085_v2 }
 0x556   :  { %5888 = vpow2.f32 %v5086_v10  ;;  %v1081_v21 = vor.u32 1.1754944e-38, %v1080_v15  ;;  %vm1079_vm10 = vcmp.eq.f32.partialorder %v1078_v18, 8.507059e+37 }
 0x557   :  { %5890 = vpow2.f32 %v5090_v11 }
 0x55a   :  { %v5885_v63 = vpop.eup %5884 }
 0x55b   :  { %v1070_v5 = vmul.f32 %v5885_v63, %v1067_v46  ;;  %v5887_v12 = vpop.eup %5886  ;;  %vm1075_vm7 = vweird.f32 %v5885_v63 }
 0x55c   :  { %v963_v19 = vadd.f32 1.0, %v5887_v12  ;;  %v5889_v16 = vpop.eup %5888  ;;  %vm1076_vm9 = vmor %vm1074_vm8, %vm1075_vm7 }
 0x55d   :  { %v1071_v7 = vsub.f32 1.0, %v1070_v5  ;;  %v5891_v17 = vpop.eup %5890  ;;  %v964_v22 = vadd.f32 1.0, %v5889_v16 }
 0x55e   :  { %5892 = vrcp.f32 %v963_v19  ;;  %v1068_v23 = vadd.f32 1.0, %v5891_v17  ;;  %v976_v38 = vand.u32 2147483648, %v963_v19  ;;  %vm970_vm12 = vweird.f32 %v963_v19 }
 0x55f   :  { %v1072_v13 = vmul.f32 %v5885_v63, %v1071_v7  ;;  %5894 = vrcp.f32 %v964_v22  ;;  %v974_v43 = vand.u32 2147483647, %v963_v19  ;;  %vm985_vm4 = vweird.f32 %v964_v22 }
 0x560   :  { %5896 = vrcp.f32 %v1068_v23  ;;  %v977_v52 = vor.u32 1.1754944e-38, %v976_v38  ;;  %v991_v33 = vand.u32 2147483648, %v964_v22  ;;  %v1095_v56 = vand.u32 2147483648, %v1068_v23  ;;  %v5121_v38 = vld [vmem:[%s8299_s2 + $0x38] sm:$0xf0] }
 0x561   :  { %v1073_v14 = vadd.f32 %v5885_v63, %v1072_v13  ;;  %vm975_vm14 = vcmp.eq.f32.partialorder %v974_v43, 8.507059e+37  ;;  %v989_v35 = vand.u32 2147483647, %v964_v22  ;;  %vm1089_vm6 = vweird.f32 %v1068_v23  ;;  %v5111_v43 = vld [vmem:[%s8299_s2 + $0x20] sm:$0xf] }
 0x562   :  { %v1093_v59 = vand.u32 2147483647, %v1068_v23  ;;  %v992_v46 = vor.u32 1.1754944e-38, %v991_v33  ;;  %v1096_v37 = vor.u32 1.1754944e-38, %v1095_v56  ;;  %v5105_v33 = vld [vmem:[%s8299_s2 + $0x18] sm:$0xf0] }
 0x563   :  { %v1077_v20 = vsel %vm1076_vm9, %v5885_v63, %v1073_v14  ;;  %vm990_vm8 = vcmp.eq.f32.partialorder %v989_v35, 8.507059e+37 }
 0x564   :  { %v6794_v25 = vsel %vm1079_vm10, %v1081_v21, %v1077_v20  ;;  %v5893_v27 = vpop.eup %5892  ;;  %vm1094_vm9 = vcmp.eq.f32.partialorder %v1093_v59, 8.507059e+37  ;;  %v5095_v59 = vld [vmem:[%s8299_s2] sm:$0xf] }
 0x565   :  { %v966_v30 = vmul.f32 %v5893_v27, %v963_v19  ;;  %v5895_v31 = vpop.eup %5894  ;;  %vm971_vm11 = vweird.f32 %v5893_v27 }
 0x566   :  { %v5897_v42 = vpop.eup %5896  ;;  %v981_v34 = vmul.f32 %v5895_v31, %v964_v22  ;;  %vm972_vm13 = vmor %vm970_vm12, %vm971_vm11  ;;  %vm986_vm15 = vweird.f32 %v5895_v31 }
 0x567   :  { %v967_v40 = vsub.f32 1.0, %v966_v30  ;;  %v1085_v41 = vmul.f32 %v5897_v42, %v1068_v23  ;;  %vm1090_vm0 = vweird.f32 %v5897_v42  ;;  %vm987_vm5 = vmor %vm985_vm4, %vm986_vm15 }
 0x568   :  { %v982_v29 = vsub.f32 1.0, %v981_v34  ;;  %vm1091_vm7 = vmor %vm1089_vm6, %vm1090_vm0 }
 0x569   :  { %v968_v50 = vmul.f32 %v5893_v27, %v967_v40  ;;  %v1086_v36 = vsub.f32 1.0, %v1085_v41 }
 0x56a   :  { %v983_v49 = vmul.f32 %v5895_v31, %v982_v29 }
 0x56b   :  { %v969_v28 = vadd.f32 %v5893_v27, %v968_v50  ;;  %v1087_v51 = vmul.f32 %v5897_v42, %v1086_v36  ;;  %v5719_v36 = vld [vmem:[%s8299_s2 + $0x34] sm:$0xf] }
 0x56c   :  { %v984_v57 = vadd.f32 %v5895_v31, %v983_v49  ;;  %v5124_v49 = vor.u32 %v5719_v36, %v5121_v38 }
 0x56d   :  { %v973_v48 = vsel %vm972_vm13, %v5893_v27, %v969_v28  ;;  %v1088_v47 = vadd.f32 %v5897_v42, %v1087_v51  ;;  %v1121_v27 = vsub.f32 1.0, %v6794_v25  ;;  %v5717_v51 = vld [vmem:[%s8299_s2 + $0x24] sm:$0xf] }
 0x56e   :  { %v978_v54 = vsel %vm975_vm14, %v977_v52, %v973_v48  ;;  %v988_v60 = vsel %vm987_vm5, %v5895_v31, %v984_v57  ;;  %v1133_v31 = vmul.f32 %v6794_v25, %v6761_v45  ;;  %v5718_v48 = vld [vmem:[%s8299_s2 + $0x24] sm:$0xf0]  ;;  %v5113_v52 = vld [vmem:[%s8299_s2 + $0x28] sm:$0xf0]  ;;  %1218 = vmatpush.bf16.msrb.mxu3 %v5124_v49  ;;  %v5716_v57 = vld [vmem:[%s8299_s2 + $0x14] sm:$0xf0] }
 0x56f   :  { %v1092_v61 = vsel %vm1091_vm7, %v5897_v42, %v1088_v47  ;;  %v993_v2 = vsel %vm990_vm8, %v992_v46, %v988_v60  ;;  %v1017_v44 = vsub.f32 1.0, %v978_v54  ;;  %v5715_v47 = vld [vmem:[%s8299_s2 + $0x14] sm:$0xf]  ;;  %v5714_v60 = vld [vmem:[%s8299_s2 + $0x4] sm:$0xf0] }
 0x570   :  { %v1097_v5 = vsel %vm1094_vm9, %v1096_v37, %v1092_v61  ;;  %v1018_v22 = vsub.f32 1.0, %v993_v2  ;;  %v5108_v35 = vor.u32 %v5715_v47, %v5105_v33  ;;  %v5096_v61 = vor.u32 %v5714_v60, %v5095_v59  ;;  %v5713_v37 = vld [vmem:[%s8299_s2 + $0x4] sm:$0xf] }
 0x571   :  { %v1122_v50 = vsub.f32 1.0, %v1097_v5  ;;  %v1134_v41 = vmul.f32 %v1097_v5, %v6754_v0 }
 0x5a1   :  { %v1102_v24 = vpop.permute.xlu2 %1101 }
 0x5a2   :  { %v1107_v26 = vmul.f32 %v1102_v24, %v6794_v25  ;;  %v5720_v25 = vld [vmem:[%s8299_s2 + $0x34] sm:$0xf0] }
 0x5a4   :  { %1111 = vrot.lane.b32.xlu0 %v1107_v26, %s6300_s6 }
 0x5b9   :  { %v998_v53 = vpop.permute.xlu0 %997 }
 0x5ba   :  { %v1003_v55 = vmul.f32 %v998_v53, %v978_v54  ;;  %v5112_v53 = vor.u32 %v5718_v48, %v5111_v43 }
 0x5bc   :  { %1007 = vrot.lane.b32.xlu1 %v1003_v55, %s6300_s6  ;;  %v5103_v55 = vld [vmem:[%s8299_s2 + $0x10] sm:$0xf] }
 0x5bd   :  { %v5104_v56 = vor.u32 %v5716_v57, %v5103_v55 }
 0x5c1   :  { %v1000_v63 = vpop.permute.xlu1 %999  ;;  %v1104_v8 = vpop.permute.xlu0 %1103 }
 0x5c2   :  { %v1004_v6 = vmul.f32 %v1000_v63, %v993_v2  ;;  %v1108_v7 = vmul.f32 %v1104_v8, %v1097_v5  ;;  %v5097_v63 = vld [vmem:[%s8299_s2 + $0x8] sm:$0xf0] }
 0x5c4   :  { %1009 = vrot.lane.b32.xlu2 %v1004_v6, %s6300_s6  ;;  %1113 = vrot.lane.b32.xlu1 %v1108_v7, %s6300_s6 }
 0x5cc   :  { %1031 = vrot.lane.b32.xlu1 %v6761_v45, %s6302_s5  ;;  %v5119_v45 = vld [vmem:[%s8299_s2 + $0x30] sm:$0xf] }
 0x616   :  { %v1112_v12 = vpop.permute.xlu0 %1111 }
 0x617   :  { %v1117_v13 = vadd.f32 %v1112_v12, %v1057_v58 }
 0x61e   :  { %v1010_v10 = vpop.permute.xlu2 %1009 }
 0x61f   :  { %v1014_v11 = vadd.f32 %v1010_v10, %v954_v3  ;;  %v1151_v10 = vld [vmem:[%s8301_s4] sm:$0x3] }
 0x620   :  { %v1154_v12 = vperm.slane %v1151_v10, 1 }
 0x621   :  { %5898 = vtanh.f32 %v1014_v11  ;;  %v1153_v11 = vperm.slane %v1151_v10, 0 }
 0x622   :  { %5900 = vtanh.f32 %v1117_v13 }
 0x627   :  { %v5899_v19 = vpop.eup %5898 }
 0x628   :  { %1023 = vrot.lane.b32.xlu0 %v5899_v19, %s6301_s26  ;;  %v5901_v15 = vpop.eup %5900 }
 0x62e   :  { %v1008_v14 = vpop.permute.xlu1 %1007 }
 0x62f   :  { %v1013_v18 = vadd.f32 %v1008_v14, %v953_v62 }
 0x630   :  { %1125 = vrot.lane.b32.xlu0 %v5901_v15, %s6301_s26 }
 0x631   :  { %5902 = vtanh.f32 %v1013_v18 }
 0x636   :  { %v1114_v16 = vpop.permute.xlu1 %1113 }
 0x637   :  { %v5903_v39 = vpop.eup %5902  ;;  %v1118_v3 = vadd.f32 %v1114_v16, %v1058_v4 }
 0x638   :  { %1021 = vrot.lane.b32.xlu2 %v5903_v39, %s6301_s26 }
 0x639   :  { %5904 = vtanh.f32 %v1118_v3 }
 0x63e   :  { %v1032_v58 = vpop.permute.xlu1 %1031 }
 0x63f   :  { %v5905_v9 = vpop.eup %5904  ;;  %v1037_v17 = vmul.f32 %v1032_v58, %v978_v54  ;;  %v5116_v54 = vor.u32 %v5717_v51, %v5113_v52 }
 0x640   :  { %1033 = vrot.lane.b32.xlu2 %v6754_v0, %s6302_s5  ;;  %1127 = vrot.lane.b32.xlu1 %v5905_v9, %s6301_s26  ;;  %v5120_v0 = vor.u32 %v5720_v25, %v5119_v45  ;;  %v6904_v9 = vld [vmem:[#allocation2 + $0x38] sm:$0xff]  }
 0x641   :  { %1219 = vmatpush.bf16.msrb.mxu3 %v5116_v54  ;;  %v1234_v58 = vunpack.c.l.bf16 %v6904_v9 }
 0x642   :  { %1204 = vmatpush.bf16.msrb.mxu2 %v5120_v0 }
 0x645   :  { %1220 = vmatpush.bf16.msrb.mxu3 %v5108_v35 }
 0x646   :  { %1205 = vmatpush.bf16.msrb.mxu2 %v5112_v53 }
 0x64a   :  { %1206 = vmatpush.bf16.msrb.mxu2 %v5104_v56 }
 0x64e   :  { %1207 = vmatpush.bf16.msrb.mxu2 %v5096_v61 }
 0x692   :  { %v1022_v62 = vpop.permute.xlu2 %1021 }
 0x693   :  { %v1027_v20 = vmul.f32 %v1022_v62, %v1017_v44 }
 0x695   :  { %v1039_v21 = vadd.f32 %v1037_v17, %v1027_v20  ;;  %v6909_v17 = vld [vmem:[#allocation2 + $0x30] sm:$0xff]   ;;  %v6911_v20 = vld [vmem:[#allocation2 + $0x44] sm:$0xff]  }
 0x697   :  { %1043 = vrot.lane.b32.xlu2 %v1039_v21, %s6301_s26  ;;  %v1233_v21 = vunpack.c.l.bf16 %v6909_v17 }
 0x69a   :  { %v1024_v1 = vpop.permute.xlu0 %1023  ;;  %v1034_v4 = vpop.permute.xlu2 %1033 }
 0x69b   :  { %v1028_v23 = vmul.f32 %v1024_v1, %v1018_v22  ;;  %v1038_v24 = vmul.f32 %v1034_v4, %v993_v2  ;;  %v5100_v2 = vor.u32 %v5713_v37, %v5097_v63  ;;  %v1337_v1 = vunpack.c.l.bf16 %v6911_v20 }
 0x69d   :  { %v1040_v26 = vadd.f32 %v1038_v24, %v1028_v23  ;;  %1221 = vmatpush.bf16.msrb.mxu3 %v5100_v2 }
 0x69f   :  { %1045 = vrot.lane.b32.xlu0 %v1040_v26, %s6301_s26 }
 0x6a2   :  { %v1126_v30 = vpop.permute.xlu0 %1125 }
 0x6a3   :  { %v1131_v40 = vmul.f32 %v1126_v30, %v1121_v27  ;;  %v6919_v27 = vld [vmem:[#allocation2 + $0x4c] sm:$0xf] }
 0x6a5   :  { %v1135_v42 = vadd.f32 %v1133_v31, %v1131_v40  ;;  %v1338_v31 = vunpack.c.l.bf16 %v6919_v27 }
 0x6a7   :  { %5091 = vst.msk [vmem:[%s8306_s9 + $0x50] sm:$0xff] %vm577_vm1, %v1135_v42 }
 0x6b2   :  { %v1128_v34 = vpop.permute.xlu1 %1127 }
 0x6b3   :  { %v1132_v28 = vmul.f32 %v1128_v34, %v1122_v50 }
 0x6b5   :  { %v1136_v29 = vadd.f32 %v1134_v41, %v1132_v28 }
 0x6b7   :  { %5092 = vst.msk [vmem:[%s8306_s9 + $0x58] sm:$0xff] %vm577_vm1, %v1136_v29 }
 0x6f1   :  { %v1044_v46 = vpop.permute.xlu2 %1043 }
 0x6f2   :  { %5087 = vst.msk [vmem:[%s8306_s9 + $0x20] sm:$0xff] %vm488_vm2, %v1044_v46  ;;  %v6884_v8 = vsel %vm488_vm2, %v1044_v46, %v1135_v42 }
 0x711   :  { %v1046_v5 = vpop.permute.xlu0 %1045 }
 0x712   :  { %5088 = vst.msk [vmem:[%s8306_s9 + $0x28] sm:$0xff] %vm488_vm2, %v1046_v5  ;;  %v6891_v6 = vsel %vm488_vm2, %v1046_v5, %v1136_v29 }
 0x713   :  { %v1142_v7 = vpack.c.bf16 %v6891_v6, %v6884_v8 }
 0x715   :  { %5125 = vmatmul.msk.bf16.vlgmr.msrb.gmra.mxu2 %vm363_vm3, %v1142_v7  ;;  %5126 = vmatmul.msk.bf16.vlgmr.msrb.gmra.mxu3 %vm363_vm3, %v1142_v7 }
 0x798   :  { %v1209_v13 = vpop.f32.mrf.mxu2  ;;  %v1223_v19 = vpop.f32.mrf.mxu3 }
 0x799   :  { %v1210_v14 = vadd.f32 %v1209_v13, %v1153_v11  ;;  %v1224_v15 = vadd.f32 %v1223_v19, %v1154_v12 }
 0x79b   :  { %1381 = vrot.lane.b32.xlu0 %v1224_v15, %s6300_s6  ;;  %1277 = vrot.lane.b32.xlu1 %v1210_v14, %s6300_s6  ;;  %v1235_v4 = vadd.f32 %v1233_v21, %v1210_v14  ;;  %v1339_v23 = vadd.f32 %v1337_v1, %v1224_v15 }
 0x79d   :  { %v5127_v26 = vmul.f32 -1.442695, %v1235_v4  ;;  %v5131_v30 = vmul.f32 -1.442695, %v1339_v23 }
 0x7a0   :  { %v1211_v18 = vpop.f32.mrf.mxu2  ;;  %v1225_v16 = vpop.f32.mrf.mxu3 }
 0x7a1   :  { %v1212_v39 = vadd.f32 %v1211_v18, %v1153_v11  ;;  %v1226_v3 = vadd.f32 %v1225_v16, %v1154_v12 }
 0x7a3   :  { %1279 = vrot.lane.b32.xlu2 %v1212_v39, %s6300_s6  ;;  %1383 = vrot.lane.b32.xlu1 %v1226_v3, %s6300_s6  ;;  %v1236_v44 = vadd.f32 %v1234_v58, %v1212_v39  ;;  %v1340_v40 = vadd.f32 %v1338_v31, %v1226_v3 }
 0x7a5   :  { %v5128_v62 = vmul.f32 -1.442695, %v1236_v44  ;;  %v5132_v50 = vmul.f32 -1.442695, %v1340_v40 }
 0x7a7   :  { %5906 = vpow2.f32 %v5128_v62 }
 0x7ad   :  { %v5907_v22 = vpop.eup %5906 }
 0x7ae   :  { %v1244_v24 = vadd.f32 1.0, %v5907_v22 }
 0x7b0   :  { %5908 = vrcp.f32 %v1244_v24  ;;  %v1271_v51 = vand.u32 2147483648, %v1244_v24  ;;  %vm1265_vm11 = vweird.f32 %v1244_v24  ;;  %v1269_v52 = vand.u32 2147483647, %v1244_v24 }
 0x7b1   :  { %5910 = vpow2.f32 %v5127_v26 }
 0x7b2   :  { %5912 = vpow2.f32 %v5131_v30  ;;  %v1272_v57 = vor.u32 1.1754944e-38, %v1271_v51  ;;  %vm1270_vm13 = vcmp.eq.f32.partialorder %v1269_v52, 8.507059e+37 }
 0x7b3   :  { %5914 = vpow2.f32 %v5132_v50 }
 0x7b6   :  { %v5909_v42 = vpop.eup %5908 }
 0x7b7   :  { %v5911_v34 = vpop.eup %5910  ;;  %v1261_v28 = vmul.f32 %v5909_v42, %v1244_v24  ;;  %vm1266_vm10 = vweird.f32 %v5909_v42 }
 0x7b8   :  { %v5913_v41 = vpop.eup %5912  ;;  %v1243_v29 = vadd.f32 1.0, %v5911_v34  ;;  %vm1267_vm12 = vmor %vm1265_vm11, %vm1266_vm10 }
 0x7b9   :  { %v1347_v45 = vadd.f32 1.0, %v5913_v41  ;;  %v1262_v25 = vsub.f32 1.0, %v1261_v28  ;;  %v5915_v36 = vpop.eup %5914 }
 0x7ba   :  { %5916 = vrcp.f32 %v1243_v29  ;;  %v1348_v38 = vadd.f32 1.0, %v5915_v36  ;;  %vm1250_vm0 = vweird.f32 %v1243_v29  ;;  %v1256_v10 = vand.u32 2147483648, %v1243_v29 }
 0x7bb   :  { %5918 = vrcp.f32 %v1347_v45  ;;  %v1263_v0 = vmul.f32 %v5909_v42, %v1262_v25  ;;  %v1360_v7 = vand.u32 2147483648, %v1347_v45  ;;  %vm1354_vm4 = vweird.f32 %v1347_v45 }
 0x7bc   :  { %5920 = vrcp.f32 %v1348_v38  ;;  %v1358_v11 = vand.u32 2147483647, %v1347_v45  ;;  %v1254_v12 = vand.u32 2147483647, %v1243_v29  ;;  %v1257_v18 = vor.u32 1.1754944e-38, %v1256_v10 }
 0x7bd   :  { %v1264_v48 = vadd.f32 %v5909_v42, %v1263_v0  ;;  %v1361_v15 = vor.u32 1.1754944e-38, %v1360_v7  ;;  %v1375_v23 = vand.u32 2147483648, %v1348_v38  ;;  %vm1369_vm10 = vweird.f32 %v1348_v38 }
 0x7be   :  { %vm1359_vm7 = vcmp.eq.f32.partialorder %v1358_v11, 8.507059e+37  ;;  %vm1255_vm8 = vcmp.eq.f32.partialorder %v1254_v12, 8.507059e+37  ;;  %v1373_v24 = vand.u32 2147483647, %v1348_v38 }
 0x7bf   :  { %v1268_v53 = vsel %vm1267_vm12, %v5909_v42, %v1264_v48  ;;  %v1376_v30 = vor.u32 1.1754944e-38, %v1375_v23 }
 0x7c0   :  { %v5917_v43 = vpop.eup %5916  ;;  %v6924_v33 = vsel %vm1270_vm13, %v1272_v57, %v1268_v53  ;;  %vm1374_vm12 = vcmp.eq.f32.partialorder %v1373_v24, 8.507059e+37  ;;  %v5728_v53 = vld [vmem:[%s8299_s2 + $0x34] sm:$0xf0]  ;;  %v5153_v57 = vld [vmem:[%s8299_s2 + $0x20] sm:$0xf] }
 0x7c1   :  { %v5919_v49 = vpop.eup %5918  ;;  %v1246_v55 = vmul.f32 %v5917_v43, %v1243_v29  ;;  %vm1251_vm14 = vweird.f32 %v5917_v43 }
 0x7c2   :  { %v1350_v54 = vmul.f32 %v5919_v49, %v1347_v45  ;;  %v5921_v60 = vpop.eup %5920  ;;  %vm1355_vm15 = vweird.f32 %v5919_v49  ;;  %vm1252_vm5 = vmor %vm1250_vm0, %vm1251_vm14 }
 0x7c3   :  { %v1247_v59 = vsub.f32 1.0, %v1246_v55  ;;  %v1365_v37 = vmul.f32 %v5921_v60, %v1348_v38  ;;  %vm1356_vm6 = vmor %vm1354_vm4, %vm1355_vm15  ;;  %vm1370_vm9 = vweird.f32 %v5921_v60  ;;  %v5163_v55 = vld [vmem:[%s8299_s2 + $0x38] sm:$0xf0] }
 0x7c4   :  { %v1351_v35 = vsub.f32 1.0, %v1350_v54  ;;  %vm1371_vm11 = vmor %vm1369_vm10, %vm1370_vm9  ;;  %v5727_v54 = vld [vmem:[%s8299_s2 + $0x34] sm:$0xf] }
 0x7c5   :  { %v1248_v46 = vmul.f32 %v5917_v43, %v1247_v59  ;;  %v1366_v5 = vsub.f32 1.0, %v1365_v37 }
 0x7c6   :  { %v1352_v61 = vmul.f32 %v5919_v49, %v1351_v35 }
 0x7c7   :  { %v1249_v2 = vadd.f32 %v5917_v43, %v1248_v46  ;;  %v1367_v14 = vmul.f32 %v5921_v60, %v1366_v5 }
 0x7c8   :  { %v1353_v63 = vadd.f32 %v5919_v49, %v1352_v61 }
 0x7c9   :  { %v1253_v19 = vsel %vm1252_vm5, %v5917_v43, %v1249_v2  ;;  %v1368_v4 = vadd.f32 %v5921_v60, %v1367_v14 }
 0x7ca   :  { %v1357_v13 = vsel %vm1356_vm6, %v5919_v49, %v1353_v63  ;;  %v1258_v44 = vsel %vm1255_vm8, %v1257_v18, %v1253_v19  ;;  %v1298_v63 = vsub.f32 1.0, %v6924_v33  ;;  %v5155_v18 = vld [vmem:[%s8299_s2 + $0x28] sm:$0xf0] }
 0x7cb   :  { %v6928_v39 = vsel %vm1359_vm7, %v1361_v15, %v1357_v13  ;;  %v1372_v26 = vsel %vm1371_vm11, %v5921_v60, %v1368_v4  ;;  %v1297_v59 = vsub.f32 1.0, %v1258_v44  ;;  %v5722_v4 = vld [vmem:[%s8299_s2 + $0x4] sm:$0xf0] }
 0x7cc   :  { %v1377_v40 = vsel %vm1374_vm12, %v1376_v30, %v1372_v26  ;;  %v1401_v12 = vsub.f32 1.0, %v6928_v39  ;;  %v1413_v19 = vmul.f32 %v6928_v39, %v6884_v8  ;;  %v5721_v26 = vld [vmem:[%s8299_s2 + $0x4] sm:$0xf]  ;;  %v5139_v30 = vld [vmem:[%s8299_s2 + $0x8] sm:$0xf0] }
 0x7cd   :  { %v1402_v43 = vsub.f32 1.0, %v1377_v40  ;;  %v1414_v49 = vmul.f32 %v1377_v40, %v6891_v6 }
 0x7fd   :  { %v1280_v47 = vpop.permute.xlu2 %1279 }
 0x7fe   :  { %v1284_v56 = vmul.f32 %v1280_v47, %v6924_v33  ;;  %v5726_v47 = vld [vmem:[%s8299_s2 + $0x24] sm:$0xf0] }
 0x7ff   :  { %v5154_v35 = vor.u32 %v5726_v47, %v5153_v57  ;;  %v1610_v47 = vunpack.c.h.bf16 %v6909_v17 }
 0x800   :  { %1289 = vrot.lane.b32.xlu0 %v1284_v56, %s6300_s6  ;;  %v5166_v56 = vor.u32 %v5727_v54, %v5163_v55 }
 0x802   :  { %1498 = vmatpush.bf16.msra.mxu3 %v5166_v56 }
 0x80d   :  { %v1382_v16 = vpop.permute.xlu0 %1381  ;;  %v1278_v3 = vpop.permute.xlu1 %1277 }
 0x80e   :  { %v1387_v62 = vmul.f32 %v1382_v16, %v6928_v39  ;;  %v1283_v22 = vmul.f32 %v1278_v3, %v1258_v44  ;;  %v5145_v16 = vld [vmem:[%s8299_s2 + $0x10] sm:$0xf]  ;;  %v5724_v39 = vld [vmem:[%s8299_s2 + $0x14] sm:$0xf0]  ;;  %v5723_v3 = vld [vmem:[%s8299_s2 + $0x14] sm:$0xf] }
 0x810   :  { %1391 = vrot.lane.b32.xlu1 %v1387_v62, %s6300_s6  ;;  %1287 = vrot.lane.b32.xlu2 %v1283_v22, %s6300_s6  ;;  %v5146_v62 = vor.u32 %v5724_v39, %v5145_v16  ;;  %v5137_v22 = vld [vmem:[%s8299_s2] sm:$0xf] }
 0x811   :  { %v5138_v24 = vor.u32 %v5722_v4, %v5137_v22 }
 0x815   :  { %v1384_v42 = vpop.permute.xlu1 %1383 }
 0x816   :  { %v1388_v50 = vmul.f32 %v1384_v42, %v1377_v40  ;;  %v5142_v40 = vor.u32 %v5721_v26, %v5139_v30 }
 0x818   :  { %1393 = vrot.lane.b32.xlu2 %v1388_v50, %s6300_s6 }
 0x820   :  { %1311 = vrot.lane.b32.xlu2 %v6884_v8, %s6302_s5 }
 0x86a   :  { %v1288_v34 = vpop.permute.xlu2 %1287 }
 0x86b   :  { %v1293_v41 = vadd.f32 %v1288_v34, %v1233_v21 }
 0x86d   :  { %5922 = vtanh.f32 %v1293_v41 }
 0x872   :  { %v1290_v28 = vpop.permute.xlu0 %1289  ;;  %v1394_v29 = vpop.permute.xlu2 %1393 }
 0x873   :  { %v5923_v45 = vpop.eup %5922  ;;  %v1294_v25 = vadd.f32 %v1290_v28, %v1234_v58  ;;  %v1398_v36 = vadd.f32 %v1394_v29, %v1338_v31  ;;  %v1431_v29 = vld [vmem:[%s8301_s4] sm:$0x3] }
 0x874   :  { %1301 = vrot.lane.b32.xlu0 %v5923_v45, %s6301_s26  ;;  %v1433_v45 = vperm.slane %v1431_v29, 0 }
 0x875   :  { %5924 = vtanh.f32 %v1294_v25  ;;  %v1434_v25 = vperm.slane %v1431_v29, 1 }
 0x876   :  { %5926 = vtanh.f32 %v1398_v36 }
 0x87a   :  { %v1312_v31 = vpop.permute.xlu2 %1311 }
 0x87b   :  { %v5925_v0 = vpop.eup %5924  ;;  %v1317_v61 = vmul.f32 %v1312_v31, %v1258_v44  ;;  %v5147_v44 = vld [vmem:[%s8299_s2 + $0x18] sm:$0xf0] }
 0x87c   :  { %v5927_v38 = vpop.eup %5926  ;;  %1303 = vrot.lane.b32.xlu1 %v5925_v0, %s6301_s26  ;;  %1313 = vrot.lane.b32.xlu0 %v6891_v6, %s6302_s5  ;;  %v5150_v23 = vor.u32 %v5723_v3, %v5147_v44 }
 0x87d   :  { %1407 = vrot.lane.b32.xlu2 %v5927_v38, %s6301_s26 }
 0x882   :  { %v1392_v21 = vpop.permute.xlu1 %1391 }
 0x883   :  { %v1397_v58 = vadd.f32 %v1392_v21, %v1337_v1  ;;  %v5161_v1 = vld [vmem:[%s8299_s2 + $0x30] sm:$0xf] }
 0x884   :  { %v5162_v6 = vor.u32 %v5728_v53, %v5161_v1  ;;  %v1611_v1 = vunpack.c.h.bf16 %v6904_v9 }
 0x885   :  { %5928 = vtanh.f32 %v1397_v58 }
 0x886   :  { %1484 = vmatpush.bf16.msra.mxu2 %v5162_v6 }
 0x88a   :  { %1485 = vmatpush.bf16.msra.mxu2 %v5154_v35 }
 0x88b   :  { %v5929_v27 = vpop.eup %5928 }
 0x88c   :  { %1405 = vrot.lane.b32.xlu1 %v5929_v27, %s6301_s26 }
 0x88e   :  { %1486 = vmatpush.bf16.msra.mxu2 %v5146_v62 }
 0x892   :  { %1487 = vmatpush.bf16.msra.mxu2 %v5138_v24 }
 0x8d7   :  { %v1408_v48 = vpop.permute.xlu2 %1407 }
 0x8d8   :  { %v1412_v51 = vmul.f32 %v1408_v48, %v1402_v43  ;;  %v7039_v48 = vld [vmem:[#allocation2 + $0x40] sm:$0xf] }
 0x8da   :  { %v1416_v52 = vadd.f32 %v1414_v49, %v1412_v51  ;;  %v1510_v49 = vunpack.c.l.bf16 %v7039_v48 }
 0x8dc   :  { %5134 = vst.msk [vmem:[%s8306_s9 + $0x48] sm:$0xff] %vm577_vm1, %v1416_v52 }
 0x8e6   :  { %v1302_v60 = vpop.permute.xlu0 %1301 }
 0x8e7   :  { %v1307_v46 = vmul.f32 %v1302_v60, %v1297_v59 }
 0x8e9   :  { %v1319_v37 = vadd.f32 %v1317_v61, %v1307_v46  ;;  %v1511_v61 = vunpack.c.h.bf16 %v6911_v20 }
 0x8eb   :  { %1323 = vrot.lane.b32.xlu0 %v1319_v37, %s6301_s26 }
 0x8ee   :  { %v1304_v2 = vpop.permute.xlu1 %1303  ;;  %v1314_v5 = vpop.permute.xlu0 %1313 }
 0x8ef   :  { %v1308_v7 = vmul.f32 %v1304_v2, %v1298_v63  ;;  %v1318_v10 = vmul.f32 %v1314_v5, %v6924_v33  ;;  %v5725_v33 = vld [vmem:[%s8299_s2 + $0x24] sm:$0xf] }
 0x8f0   :  { %v5158_v8 = vor.u32 %v5725_v33, %v5155_v18 }
 0x8f1   :  { %v1320_v11 = vadd.f32 %v1318_v10, %v1308_v7 }
 0x8f2   :  { %1499 = vmatpush.bf16.msra.mxu3 %v5158_v8 }
 0x8f3   :  { %1325 = vrot.lane.b32.xlu1 %v1320_v11, %s6301_s26 }
 0x8f6   :  { %1500 = vmatpush.bf16.msra.mxu3 %v5150_v23 }
 0x8fa   :  { %1501 = vmatpush.bf16.msra.mxu3 %v5142_v40 }
 0x8fe   :  { %v1406_v13 = vpop.permute.xlu1 %1405 }
 0x8ff   :  { %v1411_v14 = vmul.f32 %v1406_v13, %v1401_v12 }
 0x901   :  { %v1415_v15 = vadd.f32 %v1413_v19, %v1411_v14 }
 0x903   :  { %5133 = vst.msk [vmem:[%s8306_s9 + $0x40] sm:$0xff] %vm577_vm1, %v1415_v15 }
 0x95d   :  { %v1324_v42 = vpop.permute.xlu0 %1323 }
 0x95e   :  { %5129 = vst.msk [vmem:[%s8306_s9 + $0x30] sm:$0xff] %vm488_vm2, %v1324_v42  ;;  %v7019_v34 = vsel %vm488_vm2, %v1324_v42, %v1415_v15 }
 0x965   :  { %v1326_v50 = vpop.permute.xlu1 %1325 }
 0x966   :  { %5130 = vst.msk [vmem:[%s8306_s9 + $0x38] sm:$0xff] %vm488_vm2, %v1326_v50  ;;  %v7026_v41 = vsel %vm488_vm2, %v1326_v50, %v1416_v52 }
 0x967   :  { %v1422_v28 = vpack.c.bf16 %v7026_v41, %v7019_v34 }
 0x969   :  { %5167 = vmatmul.msk.bf16.vlgmr.msra.gmra.mxu2 %vm363_vm3, %v1422_v28  ;;  %5168 = vmatmul.msk.bf16.vlgmr.msra.gmra.mxu3 %vm363_vm3, %v1422_v28 }
 0x9ec   :  { %v1489_v36 = vpop.f32.mrf.mxu2  ;;  %v1503_v0 = vpop.f32.mrf.mxu3 }
 0x9ed   :  { %v1490_v38 = vadd.f32 %v1489_v36, %v1433_v45  ;;  %v1504_v21 = vadd.f32 %v1503_v0, %v1434_v25 }
 0x9ef   :  { %1654 = vrot.lane.b32.xlu1 %v1504_v21, %s6300_s6  ;;  %1554 = vrot.lane.b32.xlu2 %v1490_v38, %s6300_s6  ;;  %v1512_v51 = vadd.f32 %v1510_v49, %v1490_v38  ;;  %v1612_v56 = vadd.f32 %v1610_v47, %v1504_v21 }
 0x9f1   :  { %v5169_v52 = vmul.f32 -1.442695, %v1512_v51  ;;  %v5173_v60 = vmul.f32 -1.442695, %v1612_v56 }
 0x9f3   :  { %5930 = vpow2.f32 %v5169_v52 }
 0x9f4   :  { %v1491_v58 = vpop.f32.mrf.mxu2  ;;  %v1505_v27 = vpop.f32.mrf.mxu3 }
 0x9f5   :  { %v1492_v31 = vadd.f32 %v1491_v58, %v1433_v45  ;;  %v1506_v43 = vadd.f32 %v1505_v27, %v1434_v25 }
 0x9f7   :  { %1556 = vrot.lane.b32.xlu0 %v1492_v31, %s6300_s6  ;;  %1656 = vrot.lane.b32.xlu2 %v1506_v43, %s6300_s6  ;;  %v1613_v53 = vadd.f32 %v1611_v1, %v1506_v43  ;;  %v1513_v37 = vadd.f32 %v1511_v61, %v1492_v31 }
 0x9f9   :  { %v5174_v54 = vmul.f32 -1.442695, %v1613_v53  ;;  %v5931_v6 = vpop.eup %5930  ;;  %v5170_v5 = vmul.f32 -1.442695, %v1513_v37 }
 0x9fa   :  { %v1520_v55 = vadd.f32 1.0, %v5931_v6 }
 0x9fb   :  { %5932 = vpow2.f32 %v5174_v54 }
 0x9fc   :  { %5934 = vrcp.f32 %v1520_v55  ;;  %v1533_v14 = vand.u32 2147483648, %v1520_v55  ;;  %vm1527_vm14 = vweird.f32 %v1520_v55  ;;  %v1531_v15 = vand.u32 2147483647, %v1520_v55 }
 0x9fe   :  { %v1534_v8 = vor.u32 1.1754944e-38, %v1533_v14  ;;  %vm1532_vm0 = vcmp.eq.f32.partialorder %v1531_v15, 8.507059e+37 }
 0xa01   :  { %v5933_v57 = vpop.eup %5932 }
 0xa02   :  { %v1621_v35 = vadd.f32 1.0, %v5933_v57  ;;  %v5935_v59 = vpop.eup %5934 }
 0xa03   :  { %v1523_v46 = vmul.f32 %v5935_v59, %v1520_v55  ;;  %vm1528_vm13 = vweird.f32 %v5935_v59 }
 0xa04   :  { %5936 = vrcp.f32 %v1621_v35  ;;  %vm1529_vm15 = vmor %vm1527_vm14, %vm1528_vm13  ;;  %v1648_v23 = vand.u32 2147483648, %v1621_v35  ;;  %vm1642_vm5 = vweird.f32 %v1621_v35  ;;  %v1646_v24 = vand.u32 2147483647, %v1621_v35 }
 0xa05   :  { %5938 = vpow2.f32 %v5173_v60  ;;  %v1524_v63 = vsub.f32 1.0, %v1523_v46 }
 0xa06   :  { %5940 = vpow2.f32 %v5170_v5  ;;  %v1649_v40 = vor.u32 1.1754944e-38, %v1648_v23  ;;  %vm1647_vm7 = vcmp.eq.f32.partialorder %v1646_v24, 8.507059e+37 }
 0xa07   :  { %v1525_v10 = vmul.f32 %v5935_v59, %v1524_v63 }
 0xa09   :  { %v1526_v13 = vadd.f32 %v5935_v59, %v1525_v10 }
 0xa0a   :  { %v5937_v2 = vpop.eup %5936 }
 0xa0b   :  { %v5939_v7 = vpop.eup %5938  ;;  %v1638_v11 = vmul.f32 %v5937_v2, %v1621_v35  ;;  %v1530_v18 = vsel %vm1529_vm15, %v5935_v59, %v1526_v13  ;;  %vm1643_vm4 = vweird.f32 %v5937_v2 }
 0xa0c   :  { %v1620_v12 = vadd.f32 1.0, %v5939_v7  ;;  %v5941_v33 = vpop.eup %5940  ;;  %v7053_v44 = vsel %vm1532_vm0, %v1534_v8, %v1530_v18  ;;  %vm1644_vm6 = vmor %vm1642_vm5, %vm1643_vm4 }
 0xa0d   :  { %v1639_v19 = vsub.f32 1.0, %v1638_v11  ;;  %v1521_v39 = vadd.f32 1.0, %v5941_v33  ;;  %v1574_v13 = vsub.f32 1.0, %v7053_v44 }
 0xa0e   :  { %5942 = vrcp.f32 %v1620_v12  ;;  %v1633_v21 = vand.u32 2147483648, %v1620_v12  ;;  %vm1627_vm9 = vweird.f32 %v1620_v12  ;;  %v1631_v58 = vand.u32 2147483647, %v1620_v12 }
 0xa0f   :  { %v1640_v16 = vmul.f32 %v5937_v2, %v1639_v19  ;;  %5944 = vrcp.f32 %v1521_v39  ;;  %v1548_v6 = vand.u32 2147483648, %v1521_v39  ;;  %vm1542_vm13 = vweird.f32 %v1521_v39 }
 0xa10   :  { %v1634_v43 = vor.u32 1.1754944e-38, %v1633_v21  ;;  %vm1632_vm11 = vcmp.eq.f32.partialorder %v1631_v58, 8.507059e+37  ;;  %v1546_v55 = vand.u32 2147483647, %v1521_v39  ;;  %v5732_v21 = vld [vmem:[%s8299_s2 + $0x14] sm:$0xf0] }
 0xa11   :  { %v1641_v22 = vadd.f32 %v5937_v2, %v1640_v16  ;;  %v1549_v56 = vor.u32 1.1754944e-38, %v1548_v6  ;;  %v5731_v58 = vld [vmem:[%s8299_s2 + $0x14] sm:$0xf]  ;;  %v5181_v6 = vld [vmem:[%s8299_s2 + $0x8] sm:$0xf0] }
 0xa12   :  { %vm1547_vm15 = vcmp.eq.f32.partialorder %v1546_v55, 8.507059e+37 }
 0xa13   :  { %v1645_v26 = vsel %vm1644_vm6, %v5937_v2, %v1641_v22 }
 0xa14   :  { %v5943_v4 = vpop.eup %5942  ;;  %v7057_v42 = vsel %vm1647_vm7, %v1649_v40, %v1645_v26  ;;  %v5735_v40 = vld [vmem:[%s8299_s2 + $0x34] sm:$0xf] }
 0xa15   :  { %v1623_v30 = vmul.f32 %v5943_v4, %v1620_v12  ;;  %v5945_v45 = vpop.eup %5944  ;;  %vm1628_vm8 = vweird.f32 %v5943_v4  ;;  %v1675_v17 = vsub.f32 1.0, %v7057_v42  ;;  %v1687_v8 = vmul.f32 %v7057_v42, %v7026_v41 }
 0xa16   :  { %v1538_v36 = vmul.f32 %v5945_v45, %v1521_v39  ;;  %vm1629_vm10 = vmor %vm1627_vm9, %vm1628_vm8  ;;  %vm1543_vm12 = vweird.f32 %v5945_v45 }
 0xa17   :  { %v1624_v29 = vsub.f32 1.0, %v1623_v30  ;;  %vm1544_vm14 = vmor %vm1542_vm13, %vm1543_vm12  ;;  %v5736_v30 = vld [vmem:[%s8299_s2 + $0x34] sm:$0xf0] }
 0xa18   :  { %v1539_v38 = vsub.f32 1.0, %v1538_v36 }
 0xa19   :  { %v1625_v25 = vmul.f32 %v5943_v4, %v1624_v29 }
 0xa1a   :  { %v1540_v31 = vmul.f32 %v5945_v45, %v1539_v38  ;;  %v5187_v38 = vld [vmem:[%s8299_s2 + $0x10] sm:$0xf] }
 0xa1b   :  { %v1626_v0 = vadd.f32 %v5943_v4, %v1625_v25  ;;  %v5197_v25 = vld [vmem:[%s8299_s2 + $0x28] sm:$0xf0] }
 0xa1c   :  { %v1541_v54 = vadd.f32 %v5945_v45, %v1540_v31  ;;  %v5188_v31 = vor.u32 %v5732_v21, %v5187_v38 }
 0xa1d   :  { %v1630_v27 = vsel %vm1629_vm10, %v5943_v4, %v1626_v0 }
 0xa1e   :  { %v1635_v52 = vsel %vm1632_vm11, %v1634_v43, %v1630_v27  ;;  %v1545_v57 = vsel %vm1544_vm14, %v5945_v45, %v1541_v54  ;;  %v5733_v45 = vld [vmem:[%s8299_s2 + $0x24] sm:$0xf]  ;;  %v5189_v27 = vld [vmem:[%s8299_s2 + $0x18] sm:$0xf0] }
 0xa1f   :  { %v1550_v59 = vsel %vm1547_vm15, %v1549_v56, %v1545_v57  ;;  %v1686_v23 = vmul.f32 %v1635_v52, %v7019_v34  ;;  %v5200_v0 = vor.u32 %v5733_v45, %v5197_v25  ;;  %v5192_v43 = vor.u32 %v5731_v58, %v5189_v27  ;;  %v5729_v54 = vld [vmem:[%s8299_s2 + $0x4] sm:$0xf] }
 0xa20   :  { %v1575_v15 = vsub.f32 1.0, %v1550_v59  ;;  %v5184_v55 = vor.u32 %v5729_v54, %v5181_v6 }
 0xa49   :  { %v1555_v3 = vpop.permute.xlu2 %1554 }
 0xa4a   :  { %v1560_v62 = vmul.f32 %v1555_v3, %v7053_v44 }
 0xa4c   :  { %1564 = vrot.lane.b32.xlu0 %v1560_v62, %s6300_s6 }
 0xa51   :  { %v1657_v50 = vpop.permute.xlu2 %1656 }
 0xa52   :  { %v1661_v28 = vmul.f32 %v1657_v50, %v7057_v42  ;;  %v5205_v42 = vld [vmem:[%s8299_s2 + $0x38] sm:$0xf0]  ;;  %v5195_v50 = vld [vmem:[%s8299_s2 + $0x20] sm:$0xf] }
 0xa53   :  { %v5208_v29 = vor.u32 %v5735_v40, %v5205_v42 }
 0xa54   :  { %1666 = vrot.lane.b32.xlu0 %v1661_v28, %s6300_s6  ;;  %v5734_v28 = vld [vmem:[%s8299_s2 + $0x24] sm:$0xf0] }
 0xa55   :  { %v5196_v36 = vor.u32 %v5734_v28, %v5195_v50  ;;  %1770 = vmatpush.bf16.msrb.mxu3 %v5208_v29 }
 0xa59   :  { %1771 = vmatpush.bf16.msrb.mxu3 %v5200_v0 }
 0xa5c   :  { %1588 = vrot.lane.b32.xlu0 %v7019_v34, %s6302_s5 }
 0xa5d   :  { %1772 = vmatpush.bf16.msrb.mxu3 %v5192_v43 }
 0xa61   :  { %v1655_v51 = vpop.permute.xlu1 %1654  ;;  %1773 = vmatpush.bf16.msrb.mxu3 %v5184_v55 }
 0xa62   :  { %v1660_v53 = vmul.f32 %v1655_v51, %v1635_v52  ;;  %v5179_v51 = vld [vmem:[%s8299_s2] sm:$0xf] }
 0xa64   :  { %1664 = vrot.lane.b32.xlu2 %v1660_v53, %s6300_s6 }
 0xa69   :  { %v1557_v35 = vpop.permute.xlu0 %1556 }
 0xa6a   :  { %v1561_v60 = vmul.f32 %v1557_v35, %v1550_v59 }
 0xa6c   :  { %1566 = vrot.lane.b32.xlu1 %v1561_v60, %s6300_s6 }
 0xabe   :  { %v1565_v46 = vpop.permute.xlu0 %1564 }
 0xabf   :  { %v1570_v37 = vadd.f32 %v1565_v46, %v1510_v49  ;;  %v1665_v49 = vpop.permute.xlu2 %1664  ;;  %v1703_v46 = vld [vmem:[%s8301_s4] sm:$0x3] }
 0xac0   :  { %v1670_v9 = vadd.f32 %v1665_v49, %v1610_v47 }
 0xac1   :  { %5946 = vtanh.f32 %v1570_v37  ;;  %v1705_v37 = vperm.slane %v1703_v46, 0 }
 0xac6   :  { %v1667_v63 = vpop.permute.xlu0 %1666 }
 0xac7   :  { %v1671_v2 = vadd.f32 %v1667_v63, %v1611_v1  ;;  %v5947_v5 = vpop.eup %5946  ;;  %v1706_v63 = vperm.slane %v1703_v46, 1 }
 0xac8   :  { %1578 = vrot.lane.b32.xlu1 %v5947_v5, %s6301_s26 }
 0xac9   :  { %5948 = vtanh.f32 %v1671_v2 }
 0xace   :  { %v1589_v12 = vpop.permute.xlu0 %1588 }
 0xacf   :  { %v5949_v7 = vpop.eup %5948  ;;  %v1594_v14 = vmul.f32 %v1589_v12, %v7053_v44  ;;  %v1674_v44 = vsub.f32 1.0, %v1635_v52  ;;  %v5730_v52 = vld [vmem:[%s8299_s2 + $0x4] sm:$0xf0] }
 0xad0   :  { %1680 = vrot.lane.b32.xlu0 %v5949_v7, %s6301_s26  ;;  %1590 = vrot.lane.b32.xlu1 %v7026_v41, %s6302_s5  ;;  %v5203_v41 = vld [vmem:[%s8299_s2 + $0x30] sm:$0xf]  ;;  %v5180_v53 = vor.u32 %v5730_v52, %v5179_v51 }
 0xad1   :  { %v5204_v34 = vor.u32 %v5736_v30, %v5203_v41 }
 0xad3   :  { %1756 = vmatpush.bf16.msrb.mxu2 %v5204_v34 }
 0xad7   :  { %1757 = vmatpush.bf16.msrb.mxu2 %v5196_v36 }
 0xadb   :  { %1758 = vmatpush.bf16.msrb.mxu2 %v5188_v31 }
 0xade   :  { %v1567_v10 = vpop.permute.xlu1 %1566 }
 0xadf   :  { %v1571_v48 = vadd.f32 %v1567_v10, %v1511_v61  ;;  %1759 = vmatpush.bf16.msrb.mxu2 %v5180_v53 }
 0xae1   :  { %5950 = vtanh.f32 %v1571_v48 }
 0xae2   :  { %5952 = vtanh.f32 %v1670_v9 }
 0xae7   :  { %v5951_v1 = vpop.eup %5950 }
 0xae8   :  { %1580 = vrot.lane.b32.xlu2 %v5951_v1, %s6301_s26  ;;  %v5953_v11 = vpop.eup %5952 }
 0xaf0   :  { %1678 = vrot.lane.b32.xlu2 %v5953_v11, %s6301_s26  ;;  %v7168_v11 = vld [vmem:[#allocation2 + $0x24] sm:$0xf] }
 0xaf1   :  { %v1882_v12 = vunpack.c.l.bf16 %v7168_v11 }
 0xb3a   :  { %v1579_v19 = vpop.permute.xlu1 %1578 }
 0xb3b   :  { %v1584_v20 = vmul.f32 %v1579_v19, %v1574_v13 }
 0xb3d   :  { %v1596_v61 = vadd.f32 %v1594_v14, %v1584_v20 }
 0xb3f   :  { %1600 = vrot.lane.b32.xlu1 %v1596_v61, %s6301_s26  ;;  %v7173_v61 = vld [vmem:[#allocation2 + $0x50] sm:$0xf] }
 0xb42   :  { %v1581_v47 = vpop.permute.xlu2 %1580  ;;  %v1681_v33 = vpop.permute.xlu0 %1680 }
 0xb43   :  { %v1585_v18 = vmul.f32 %v1581_v47, %v1575_v15  ;;  %v1591_v16 = vpop.permute.xlu1 %1590  ;;  %v1685_v39 = vmul.f32 %v1681_v33, %v1675_v17  ;;  %v1782_v15 = vunpack.c.l.bf16 %v7173_v61  ;;  %v7178_v47 = vld [vmem:[#allocation2 + $0x58] sm:$0xf] }
 0xb44   :  { %v1595_v3 = vmul.f32 %v1591_v16, %v1550_v59 }
 0xb45   :  { %v1689_v62 = vadd.f32 %v1687_v8, %v1685_v39  ;;  %v1783_v8 = vunpack.c.l.bf16 %v7178_v47 }
 0xb46   :  { %v1597_v22 = vadd.f32 %v1595_v3, %v1585_v18  ;;  %v7180_v18 = vld [vmem:[#allocation2 + $0x2c] sm:$0xf] }
 0xb47   :  { %5176 = vst.msk [vmem:[%s8306_s9 + $0x38] sm:$0xff] %vm577_vm1, %v1689_v62  ;;  %v1883_v39 = vunpack.c.l.bf16 %v7180_v18 }
 0xb48   :  { %1602 = vrot.lane.b32.xlu2 %v1597_v22, %s6301_s26 }
 0xb4a   :  { %v1679_v4 = vpop.permute.xlu2 %1678 }
 0xb4b   :  { %v1684_v24 = vmul.f32 %v1679_v4, %v1674_v44 }
 0xb4d   :  { %v1688_v26 = vadd.f32 %v1686_v23, %v1684_v24 }
 0xb4f   :  { %5175 = vst.msk [vmem:[%s8306_s9 + $0x30] sm:$0xff] %vm577_vm1, %v1688_v26 }
 0xba2   :  { %v1603_v57 = vpop.permute.xlu2 %1602 }
 0xba3   :  { %5172 = vst.msk [vmem:[%s8306_s9 + $0x48] sm:$0xff] %vm488_vm2, %v1603_v57  ;;  %v7148_v35 = vsel %vm488_vm2, %v1603_v57, %v1689_v62 }
 0xbb1   :  { %v1601_v56 = vpop.permute.xlu1 %1600 }
 0xbb2   :  { %5171 = vst.msk [vmem:[%s8306_s9 + $0x40] sm:$0xff] %vm488_vm2, %v1601_v56  ;;  %v7155_v59 = vsel %vm488_vm2, %v1601_v56, %v1688_v26 }
 0xbb3   :  { %v1694_v60 = vpack.c.bf16 %v7148_v35, %v7155_v59 }
 0xbb5   :  { %5209 = vmatmul.msk.bf16.vlgmr.msrb.gmra.mxu2 %vm363_vm3, %v1694_v60  ;;  %5210 = vmatmul.msk.bf16.vlgmr.msrb.gmra.mxu3 %vm363_vm3, %v1694_v60 }
 0xc38   :  { %v1761_v2 = vpop.f32.mrf.mxu2  ;;  %v1775_v5 = vpop.f32.mrf.mxu3 }
 0xc39   :  { %v1762_v7 = vadd.f32 %v1761_v2, %v1705_v37  ;;  %v1776_v10 = vadd.f32 %v1775_v5, %v1706_v63 }
 0xc3b   :  { %1926 = vrot.lane.b32.xlu2 %v1776_v10, %s6300_s6  ;;  %1826 = vrot.lane.b32.xlu0 %v1762_v7, %s6300_s6  ;;  %v1884_v13 = vadd.f32 %v1882_v12, %v1776_v10  ;;  %v1784_v17 = vadd.f32 %v1782_v15, %v1762_v7 }
 0xc3d   :  { %v5215_v19 = vmul.f32 -1.442695, %v1884_v13  ;;  %v5211_v16 = vmul.f32 -1.442695, %v1784_v17 }
 0xc3f   :  { %5954 = vpow2.f32 %v5215_v19 }
 0xc40   :  { %v1763_v48 = vpop.f32.mrf.mxu2  ;;  %v1777_v49 = vpop.f32.mrf.mxu3 }
 0xc41   :  { %v1764_v9 = vadd.f32 %v1763_v48, %v1705_v37  ;;  %v1778_v1 = vadd.f32 %v1777_v49, %v1706_v63 }
 0xc43   :  { %1828 = vrot.lane.b32.xlu1 %v1764_v9, %s6300_s6  ;;  %1928 = vrot.lane.b32.xlu0 %v1778_v1, %s6300_s6  ;;  %v1785_v62 = vadd.f32 %v1783_v8, %v1764_v9  ;;  %v1885_v22 = vadd.f32 %v1883_v39, %v1778_v1 }
 0xc45   :  { %v5955_v14 = vpop.eup %5954  ;;  %v5212_v4 = vmul.f32 -1.442695, %v1785_v62  ;;  %v5216_v23 = vmul.f32 -1.442695, %v1885_v22 }
 0xc46   :  { %v1892_v20 = vadd.f32 1.0, %v5955_v14 }
 0xc48   :  { %5956 = vrcp.f32 %v1892_v20  ;;  %v1905_v40 = vand.u32 2147483648, %v1892_v20  ;;  %vm1899_vm4 = vweird.f32 %v1892_v20  ;;  %v1903_v34 = vand.u32 2147483647, %v1892_v20 }
 0xc49   :  { %5958 = vpow2.f32 %v5211_v16 }
 0xc4a   :  { %5960 = vpow2.f32 %v5212_v4  ;;  %v1906_v29 = vor.u32 1.1754944e-38, %v1905_v40  ;;  %vm1904_vm6 = vcmp.eq.f32.partialorder %v1903_v34, 8.507059e+37 }
 0xc4b   :  { %5962 = vpow2.f32 %v5216_v23 }
 0xc4e   :  { %v5957_v33 = vpop.eup %5956 }
 0xc4f   :  { %v1895_v3 = vmul.f32 %v5957_v33, %v1892_v20  ;;  %v5959_v24 = vpop.eup %5958  ;;  %vm1900_vm0 = vweird.f32 %v5957_v33 }
 0xc50   :  { %v1792_v41 = vadd.f32 1.0, %v5959_v24  ;;  %v5961_v42 = vpop.eup %5960  ;;  %vm1901_vm5 = vmor %vm1899_vm4, %vm1900_vm0 }
 0xc51   :  { %v1896_v44 = vsub.f32 1.0, %v1895_v3  ;;  %v5963_v50 = vpop.eup %5962  ;;  %v1793_v45 = vadd.f32 1.0, %v5961_v42 }
 0xc52   :  { %5964 = vrcp.f32 %v1792_v41  ;;  %v1893_v25 = vadd.f32 1.0, %v5963_v50  ;;  %v1805_v57 = vand.u32 2147483648, %v1792_v41  ;;  %vm1799_vm8 = vweird.f32 %v1792_v41 }
 0xc53   :  { %v1897_v26 = vmul.f32 %v5957_v33, %v1896_v44  ;;  %5966 = vrcp.f32 %v1793_v45  ;;  %v1803_v56 = vand.u32 2147483647, %v1792_v41  ;;  %vm1814_vm13 = vweird.f32 %v1793_v45 }
 0xc54   :  { %5968 = vrcp.f32 %v1893_v25  ;;  %v1806_v63 = vor.u32 1.1754944e-38, %v1805_v57  ;;  %v1820_v49 = vand.u32 2147483648, %v1793_v45  ;;  %v1920_v9 = vand.u32 2147483648, %v1893_v25  ;;  %v5247_v57 = vld [vmem:[%s8299_s2 + $0x38] sm:$0xf0] }
 0xc55   :  { %v1898_v30 = vadd.f32 %v5957_v33, %v1897_v26  ;;  %vm1804_vm10 = vcmp.eq.f32.partialorder %v1803_v56, 8.507059e+37  ;;  %v1818_v1 = vand.u32 2147483647, %v1793_v45  ;;  %vm1914_vm15 = vweird.f32 %v1893_v25  ;;  %v5237_v56 = vld [vmem:[%s8299_s2 + $0x20] sm:$0xf] }
 0xc56   :  { %v1918_v13 = vand.u32 2147483647, %v1893_v25  ;;  %v1821_v20 = vor.u32 1.1754944e-38, %v1820_v49  ;;  %v1921_v17 = vor.u32 1.1754944e-38, %v1920_v9  ;;  %v5231_v49 = vld [vmem:[%s8299_s2 + $0x18] sm:$0xf0] }
 0xc57   :  { %v1902_v28 = vsel %vm1901_vm5, %v5957_v33, %v1898_v30  ;;  %vm1819_vm4 = vcmp.eq.f32.partialorder %v1818_v1, 8.507059e+37 }
 0xc58   :  { %v7188_v0 = vsel %vm1904_vm6, %v1906_v29, %v1902_v28  ;;  %v5965_v21 = vpop.eup %5964  ;;  %vm1919_vm5 = vcmp.eq.f32.partialorder %v1918_v13, 8.507059e+37  ;;  %v5221_v13 = vld [vmem:[%s8299_s2] sm:$0xf] }
 0xc59   :  { %v1795_v58 = vmul.f32 %v5965_v21, %v1792_v41  ;;  %v5967_v27 = vpop.eup %5966  ;;  %vm1800_vm7 = vweird.f32 %v5965_v21 }
 0xc5a   :  { %v5969_v43 = vpop.eup %5968  ;;  %v1810_v52 = vmul.f32 %v5967_v27, %v1793_v45  ;;  %vm1801_vm9 = vmor %vm1799_vm8, %vm1800_vm7  ;;  %vm1815_vm11 = vweird.f32 %v5967_v27 }
 0xc5b   :  { %v1796_v31 = vsub.f32 1.0, %v1795_v58  ;;  %v1910_v53 = vmul.f32 %v5969_v43, %v1893_v25  ;;  %vm1915_vm12 = vweird.f32 %v5969_v43  ;;  %vm1816_vm14 = vmor %vm1814_vm13, %vm1815_vm11 }
 0xc5c   :  { %v1811_v6 = vsub.f32 1.0, %v1810_v52  ;;  %vm1916_vm0 = vmor %vm1914_vm15, %vm1915_vm12 }
 0xc5d   :  { %v1797_v51 = vmul.f32 %v5965_v21, %v1796_v31  ;;  %v1911_v55 = vsub.f32 1.0, %v1910_v53 }
 0xc5e   :  { %v1812_v46 = vmul.f32 %v5967_v27, %v1811_v6 }
 0xc5f   :  { %v1798_v54 = vadd.f32 %v5965_v21, %v1797_v51  ;;  %v1912_v37 = vmul.f32 %v5969_v43, %v1911_v55  ;;  %v5743_v55 = vld [vmem:[%s8299_s2 + $0x34] sm:$0xf] }
 0xc60   :  { %v1813_v10 = vadd.f32 %v5967_v27, %v1812_v46  ;;  %v5250_v46 = vor.u32 %v5743_v55, %v5247_v57 }
 0xc61   :  { %v1802_v60 = vsel %vm1801_vm9, %v5965_v21, %v1798_v54  ;;  %v1913_v48 = vadd.f32 %v5969_v43, %v1912_v37  ;;  %v1946_v21 = vsub.f32 1.0, %v7188_v0  ;;  %v5741_v37 = vld [vmem:[%s8299_s2 + $0x24] sm:$0xf] }
 0xc62   :  { %v1807_v5 = vsel %vm1804_vm10, %v1806_v63, %v1802_v60  ;;  %v1817_v19 = vsel %vm1816_vm14, %v5967_v27, %v1813_v10  ;;  %v1958_v27 = vmul.f32 %v7188_v0, %v7155_v59  ;;  %v5742_v60 = vld [vmem:[%s8299_s2 + $0x24] sm:$0xf0]  ;;  %v5239_v63 = vld [vmem:[%s8299_s2 + $0x28] sm:$0xf0]  ;;  %2042 = vmatpush.bf16.msra.mxu3 %v5250_v46  ;;  %v5740_v10 = vld [vmem:[%s8299_s2 + $0x14] sm:$0xf0] }
 0xc63   :  { %v1917_v14 = vsel %vm1916_vm0, %v5969_v43, %v1913_v48  ;;  %v1822_v16 = vsel %vm1819_vm4, %v1821_v20, %v1817_v19  ;;  %v1846_v61 = vsub.f32 1.0, %v1807_v5  ;;  %v5739_v48 = vld [vmem:[%s8299_s2 + $0x14] sm:$0xf]  ;;  %v5738_v19 = vld [vmem:[%s8299_s2 + $0x4] sm:$0xf0] }
 0xc64   :  { %v1922_v3 = vsel %vm1919_vm5, %v1921_v17, %v1917_v14  ;;  %v1847_v45 = vsub.f32 1.0, %v1822_v16  ;;  %v5234_v1 = vor.u32 %v5739_v48, %v5231_v49  ;;  %v5222_v14 = vor.u32 %v5738_v19, %v5221_v13  ;;  %v5737_v17 = vld [vmem:[%s8299_s2 + $0x4] sm:$0xf] }
 0xc65   :  { %v1947_v51 = vsub.f32 1.0, %v1922_v3  ;;  %v1959_v53 = vmul.f32 %v1922_v3, %v7148_v35 }
 0xc95   :  { %v1927_v36 = vpop.permute.xlu2 %1926 }
 0xc96   :  { %v1932_v38 = vmul.f32 %v1927_v36, %v7188_v0  ;;  %v5744_v0 = vld [vmem:[%s8299_s2 + $0x34] sm:$0xf0] }
 0xc98   :  { %1936 = vrot.lane.b32.xlu0 %v1932_v38, %s6300_s6 }
 0xcad   :  { %v1827_v2 = vpop.permute.xlu0 %1826 }
 0xcae   :  { %v1832_v7 = vmul.f32 %v1827_v2, %v1807_v5  ;;  %v5238_v2 = vor.u32 %v5742_v60, %v5237_v56 }
 0xcb0   :  { %1836 = vrot.lane.b32.xlu1 %v1832_v7, %s6300_s6  ;;  %v5229_v7 = vld [vmem:[%s8299_s2 + $0x10] sm:$0xf] }
 0xcb1   :  { %v5230_v9 = vor.u32 %v5740_v10, %v5229_v7 }
 0xcb5   :  { %v1829_v33 = vpop.permute.xlu1 %1828  ;;  %v1929_v62 = vpop.permute.xlu0 %1928 }
 0xcb6   :  { %v1833_v22 = vmul.f32 %v1829_v33, %v1822_v16  ;;  %v1933_v44 = vmul.f32 %v1929_v62, %v1922_v3  ;;  %v5223_v33 = vld [vmem:[%s8299_s2 + $0x8] sm:$0xf0] }
 0xcb8   :  { %1838 = vrot.lane.b32.xlu2 %v1833_v22, %s6300_s6  ;;  %1938 = vrot.lane.b32.xlu1 %v1933_v44, %s6300_s6 }
 0xcc0   :  { %1860 = vrot.lane.b32.xlu1 %v7155_v59, %s6302_s5  ;;  %v5245_v59 = vld [vmem:[%s8299_s2 + $0x30] sm:$0xf] }
 0xd0a   :  { %v1937_v24 = vpop.permute.xlu0 %1936 }
 0xd0b   :  { %v1942_v26 = vadd.f32 %v1937_v24, %v1882_v12 }
 0xd12   :  { %v1839_v4 = vpop.permute.xlu2 %1838 }
 0xd13   :  { %v1843_v23 = vadd.f32 %v1839_v4, %v1783_v8  ;;  %v1975_v4 = vld [vmem:[%s8301_s4] sm:$0x3] }
 0xd14   :  { %v1978_v24 = vperm.slane %v1975_v4, 1 }
 0xd15   :  { %5970 = vtanh.f32 %v1843_v23  ;;  %v1977_v23 = vperm.slane %v1975_v4, 0 }
 0xd16   :  { %5972 = vtanh.f32 %v1942_v26 }
 0xd1b   :  { %v5971_v41 = vpop.eup %5970 }
 0xd1c   :  { %1852 = vrot.lane.b32.xlu0 %v5971_v41, %s6301_s26  ;;  %v5973_v40 = vpop.eup %5972 }
 0xd22   :  { %v1837_v30 = vpop.permute.xlu1 %1836 }
 0xd23   :  { %v1842_v34 = vadd.f32 %v1837_v30, %v1782_v15 }
 0xd24   :  { %1950 = vrot.lane.b32.xlu0 %v5973_v40, %s6301_s26 }
 0xd25   :  { %5974 = vtanh.f32 %v1842_v34 }
 0xd2a   :  { %v1939_v42 = vpop.permute.xlu1 %1938 }
 0xd2b   :  { %v5975_v47 = vpop.eup %5974  ;;  %v1943_v8 = vadd.f32 %v1939_v42, %v1883_v39 }
 0xd2c   :  { %1850 = vrot.lane.b32.xlu2 %v5975_v47, %s6301_s26 }
 0xd2d   :  { %5976 = vtanh.f32 %v1943_v8 }
 0xd32   :  { %v1861_v12 = vpop.permute.xlu1 %1860 }
 0xd33   :  { %v5977_v11 = vpop.eup %5976  ;;  %v1866_v50 = vmul.f32 %v1861_v12, %v1807_v5  ;;  %v5242_v5 = vor.u32 %v5741_v37, %v5239_v63 }
 0xd34   :  { %1862 = vrot.lane.b32.xlu2 %v7148_v35, %s6302_s5  ;;  %1952 = vrot.lane.b32.xlu1 %v5977_v11, %s6301_s26  ;;  %v5246_v35 = vor.u32 %v5744_v0, %v5245_v59  ;;  %v7298_v11 = vld [vmem:[#allocation2 + $0x68] sm:$0xf] }
 0xd35   :  { %2043 = vmatpush.bf16.msra.mxu3 %v5242_v5  ;;  %v2055_v12 = vunpack.c.l.bf16 %v7298_v11 }
 0xd36   :  { %2028 = vmatpush.bf16.msra.mxu2 %v5246_v35 }
 0xd39   :  { %2044 = vmatpush.bf16.msra.mxu3 %v5234_v1 }
 0xd3a   :  { %2029 = vmatpush.bf16.msra.mxu2 %v5238_v2 }
 0xd3e   :  { %2030 = vmatpush.bf16.msra.mxu2 %v5230_v9 }
 0xd42   :  { %2031 = vmatpush.bf16.msra.mxu2 %v5222_v14 }
 0xd86   :  { %v1851_v15 = vpop.permute.xlu2 %1850 }
 0xd87   :  { %v1856_v28 = vmul.f32 %v1851_v15, %v1846_v61 }
 0xd89   :  { %v1868_v29 = vadd.f32 %v1866_v50, %v1856_v28  ;;  %v7303_v50 = vld [vmem:[#allocation2 + $0x60] sm:$0xf]  ;;  %v7305_v28 = vld [vmem:[#allocation2 + $0x14] sm:$0xf] }
 0xd8b   :  { %1872 = vrot.lane.b32.xlu2 %v1868_v29, %s6301_s26  ;;  %v2054_v29 = vunpack.c.l.bf16 %v7303_v50 }
 0xd8e   :  { %v1853_v18 = vpop.permute.xlu0 %1852  ;;  %v1863_v39 = vpop.permute.xlu2 %1862 }
 0xd8f   :  { %v1857_v25 = vmul.f32 %v1853_v18, %v1847_v45  ;;  %v1867_v36 = vmul.f32 %v1863_v39, %v1822_v16  ;;  %v5226_v16 = vor.u32 %v5737_v17, %v5223_v33  ;;  %v2154_v18 = vunpack.c.l.bf16 %v7305_v28  ;;  %v5751_v28 = vld [vmem:[%s8299_s2 + $0x34] sm:$0xf] }
 0xd91   :  { %v1869_v38 = vadd.f32 %v1867_v36, %v1857_v25  ;;  %2045 = vmatpush.bf16.msra.mxu3 %v5226_v16 }
 0xd93   :  { %1874 = vrot.lane.b32.xlu0 %v1869_v38, %s6301_s26 }
 0xd96   :  { %v1951_v58 = vpop.permute.xlu0 %1950 }
 0xd97   :  { %v1956_v31 = vmul.f32 %v1951_v58, %v1946_v21  ;;  %v7313_v21 = vld [vmem:[#allocation2 + $0x1c] sm:$0xf] }
 0xd99   :  { %v1960_v43 = vadd.f32 %v1958_v27, %v1956_v31  ;;  %v2155_v27 = vunpack.c.l.bf16 %v7313_v21 }
 0xd9b   :  { %5217 = vst.msk [vmem:[%s8306_s9 + $0x20] sm:$0xff] %vm577_vm1, %v1960_v43 }
 0xda6   :  { %v1953_v52 = vpop.permute.xlu1 %1952 }
 0xda7   :  { %v1957_v54 = vmul.f32 %v1953_v52, %v1947_v51 }
 0xda9   :  { %v1961_v6 = vadd.f32 %v1959_v53, %v1957_v54 }
 0xdab   :  { %5218 = vst.msk [vmem:[%s8306_s9 + $0x28] sm:$0xff] %vm577_vm1, %v1961_v6 }
 0xde5   :  { %v1873_v20 = vpop.permute.xlu2 %1872 }
 0xde6   :  { %5213 = vst.msk [vmem:[%s8306_s9 + $0x50] sm:$0xff] %vm488_vm2, %v1873_v20  ;;  %v7278_v62 = vsel %vm488_vm2, %v1873_v20, %v1960_v43 }
 0xe05   :  { %v1875_v3 = vpop.permute.xlu0 %1874 }
 0xe06   :  { %5214 = vst.msk [vmem:[%s8306_s9 + $0x58] sm:$0xff] %vm488_vm2, %v1875_v3  ;;  %v7285_v22 = vsel %vm488_vm2, %v1875_v3, %v1961_v6 }
 0xe07   :  { %v1966_v44 = vpack.c.bf16 %v7285_v22, %v7278_v62 }
 0xe09   :  { %5251 = vmatmul.msk.bf16.vlgmr.msra.gmra.mxu2 %vm363_vm3, %v1966_v44  ;;  %5252 = vmatmul.msk.bf16.vlgmr.msra.gmra.mxu3 %vm363_vm3, %v1966_v44 }
 0xe8c   :  { %v2033_v26 = vpop.f32.mrf.mxu2  ;;  %v2047_v41 = vpop.f32.mrf.mxu3 }
 0xe8d   :  { %v2034_v30 = vadd.f32 %v2033_v26, %v1977_v23  ;;  %v2048_v40 = vadd.f32 %v2047_v41, %v1978_v24 }
 0xe8f   :  { %2198 = vrot.lane.b32.xlu0 %v2048_v40, %s6300_s6  ;;  %2098 = vrot.lane.b32.xlu1 %v2034_v30, %s6300_s6  ;;  %v2056_v39 = vadd.f32 %v2054_v29, %v2034_v30  ;;  %v2156_v25 = vadd.f32 %v2154_v18, %v2048_v40 }
 0xe91   :  { %v5253_v38 = vmul.f32 -1.442695, %v2056_v39  ;;  %v5257_v58 = vmul.f32 -1.442695, %v2156_v25 }
 0xe94   :  { %v2035_v34 = vpop.f32.mrf.mxu2  ;;  %v2049_v42 = vpop.f32.mrf.mxu3 }
 0xe95   :  { %v2036_v47 = vadd.f32 %v2035_v34, %v1977_v23  ;;  %v2050_v8 = vadd.f32 %v2049_v42, %v1978_v24 }
 0xe97   :  { %2100 = vrot.lane.b32.xlu2 %v2036_v47, %s6300_s6  ;;  %2200 = vrot.lane.b32.xlu1 %v2050_v8, %s6300_s6  ;;  %v2057_v61 = vadd.f32 %v2055_v12, %v2036_v47  ;;  %v2157_v31 = vadd.f32 %v2155_v27, %v2050_v8 }
 0xe99   :  { %v5254_v15 = vmul.f32 -1.442695, %v2057_v61  ;;  %v5258_v51 = vmul.f32 -1.442695, %v2157_v31 }
 0xe9b   :  { %5978 = vpow2.f32 %v5254_v15 }
 0xea1   :  { %v5979_v45 = vpop.eup %5978 }
 0xea2   :  { %v2065_v36 = vadd.f32 1.0, %v5979_v45 }
 0xea4   :  { %5980 = vrcp.f32 %v2065_v36  ;;  %v2092_v37 = vand.u32 2147483648, %v2065_v36  ;;  %vm2086_vm7 = vweird.f32 %v2065_v36  ;;  %v2090_v63 = vand.u32 2147483647, %v2065_v36 }
 0xea5   :  { %5982 = vpow2.f32 %v5253_v38 }
 0xea6   :  { %5984 = vpow2.f32 %v5257_v58  ;;  %v2093_v10 = vor.u32 1.1754944e-38, %v2092_v37  ;;  %vm2091_vm9 = vcmp.eq.f32.partialorder %v2090_v63, 8.507059e+37  ;;  %v5287_v37 = vld [vmem:[%s8299_s2 + $0x30] sm:$0xf]  ;;  %v5752_v63 = vld [vmem:[%s8299_s2 + $0x34] sm:$0xf0] }
 0xea7   :  { %5986 = vpow2.f32 %v5258_v51 }
 0xeaa   :  { %v5981_v43 = vpop.eup %5980 }
 0xeab   :  { %v5983_v52 = vpop.eup %5982  ;;  %v2082_v54 = vmul.f32 %v5981_v43, %v2065_v36  ;;  %vm2087_vm6 = vweird.f32 %v5981_v43 }
 0xeac   :  { %v5985_v53 = vpop.eup %5984  ;;  %v2064_v6 = vadd.f32 1.0, %v5983_v52  ;;  %vm2088_vm8 = vmor %vm2086_vm7, %vm2087_vm6 }
 0xead   :  { %v2164_v59 = vadd.f32 1.0, %v5985_v53  ;;  %v2083_v0 = vsub.f32 1.0, %v2082_v54  ;;  %v5987_v55 = vpop.eup %5986 }
 0xeae   :  { %5988 = vrcp.f32 %v2064_v6  ;;  %v2165_v57 = vadd.f32 1.0, %v5987_v55  ;;  %vm2071_vm12 = vweird.f32 %v2064_v6  ;;  %v2077_v4 = vand.u32 2147483648, %v2064_v6 }
 0xeaf   :  { %5990 = vrcp.f32 %v2164_v59  ;;  %v2084_v35 = vmul.f32 %v5981_v43, %v2083_v0  ;;  %v2177_v44 = vand.u32 2147483648, %v2164_v59  ;;  %vm2171_vm13 = vweird.f32 %v2164_v59 }
 0xeb0   :  { %5992 = vrcp.f32 %v2165_v57  ;;  %v2175_v23 = vand.u32 2147483647, %v2164_v59  ;;  %v2075_v24 = vand.u32 2147483647, %v2064_v6  ;;  %v2078_v34 = vor.u32 1.1754944e-38, %v2077_v4 }
 0xeb1   :  { %v2085_v60 = vadd.f32 %v5981_v43, %v2084_v35  ;;  %v2178_v40 = vor.u32 1.1754944e-38, %v2177_v44  ;;  %v2192_v25 = vand.u32 2147483648, %v2165_v57  ;;  %vm2186_vm6 = vweird.f32 %v2165_v57 }
 0xeb2   :  { %vm2176_vm0 = vcmp.eq.f32.partialorder %v2175_v23, 8.507059e+37  ;;  %vm2076_vm4 = vcmp.eq.f32.partialorder %v2075_v24, 8.507059e+37  ;;  %v2190_v36 = vand.u32 2147483647, %v2165_v57 }
 0xeb3   :  { %v2089_v2 = vsel %vm2088_vm8, %v5981_v43, %v2085_v60  ;;  %v2193_v58 = vor.u32 1.1754944e-38, %v2192_v25  ;;  %v5746_v25 = vld [vmem:[%s8299_s2 + $0x4] sm:$0xf0] }
 0xeb4   :  { %v5989_v56 = vpop.eup %5988  ;;  %v7318_v49 = vsel %vm2091_vm9, %v2093_v10, %v2089_v2  ;;  %vm2191_vm8 = vcmp.eq.f32.partialorder %v2190_v36, 8.507059e+37  ;;  %v5749_v2 = vld [vmem:[%s8299_s2 + $0x24] sm:$0xf]  ;;  %v5288_v10 = vor.u32 %v5752_v63, %v5287_v37 }
 0xeb5   :  { %v5991_v46 = vpop.eup %5990  ;;  %v2067_v7 = vmul.f32 %v5989_v56, %v2064_v6  ;;  %vm2072_vm10 = vweird.f32 %v5989_v56 }
 0xeb6   :  { %v2167_v5 = vmul.f32 %v5991_v46, %v2164_v59  ;;  %v5993_v19 = vpop.eup %5992  ;;  %vm2172_vm11 = vweird.f32 %v5991_v46  ;;  %vm2073_vm14 = vmor %vm2071_vm12, %vm2072_vm10  ;;  %2300 = vmatpush.bf16.msrb.mxu2 %v5288_v10 }
 0xeb7   :  { %v2068_v13 = vsub.f32 1.0, %v2067_v7  ;;  %v2182_v17 = vmul.f32 %v5993_v19, %v2165_v57  ;;  %vm2173_vm15 = vmor %vm2171_vm13, %vm2172_vm11  ;;  %vm2187_vm5 = vweird.f32 %v5993_v19 }
 0xeb8   :  { %v2168_v1 = vsub.f32 1.0, %v2167_v5  ;;  %vm2188_vm7 = vmor %vm2186_vm6, %vm2187_vm5  ;;  %v5281_v5 = vld [vmem:[%s8299_s2 + $0x28] sm:$0xf0] }
 0xeb9   :  { %v2069_v20 = vmul.f32 %v5989_v56, %v2068_v13  ;;  %v2183_v3 = vsub.f32 1.0, %v2182_v17 }
 0xeba   :  { %v2169_v14 = vmul.f32 %v5991_v46, %v2168_v1 }
 0xebb   :  { %v2070_v16 = vadd.f32 %v5989_v56, %v2069_v20  ;;  %v2184_v30 = vmul.f32 %v5993_v19, %v2183_v3 }
 0xebc   :  { %v2170_v33 = vadd.f32 %v5991_v46, %v2169_v14  ;;  %v2119_v14 = vsub.f32 1.0, %v7318_v49 }
 0xebd   :  { %v2074_v41 = vsel %vm2073_vm14, %v5989_v56, %v2070_v16  ;;  %v2185_v39 = vadd.f32 %v5993_v19, %v2184_v30  ;;  %v5747_v30 = vld [vmem:[%s8299_s2 + $0x14] sm:$0xf] }
 0xebe   :  { %v2174_v26 = vsel %vm2173_vm15, %v5991_v46, %v2170_v33  ;;  %v2079_v61 = vsel %vm2076_vm4, %v2078_v34, %v2074_v41  ;;  %v5750_v41 = vld [vmem:[%s8299_s2 + $0x24] sm:$0xf0]  ;;  %v5271_v34 = vld [vmem:[%s8299_s2 + $0x10] sm:$0xf] }
 0xebf   :  { %v7322_v47 = vsel %vm2176_vm0, %v2178_v40, %v2174_v26  ;;  %v2189_v38 = vsel %vm2188_vm7, %v5993_v19, %v2185_v39  ;;  %v2118_v7 = vsub.f32 1.0, %v2079_v61  ;;  %v5273_v40 = vld [vmem:[%s8299_s2 + $0x18] sm:$0xf0]  ;;  %v5263_v39 = vld [vmem:[%s8299_s2] sm:$0xf] }
 0xec0   :  { %v2194_v31 = vsel %vm2191_vm8, %v2193_v58, %v2189_v38  ;;  %v2218_v44 = vsub.f32 1.0, %v7322_v47  ;;  %v2230_v23 = vmul.f32 %v7322_v47, %v7278_v62  ;;  %v5264_v36 = vor.u32 %v5746_v25, %v5263_v39 }
 0xec1   :  { %v2219_v21 = vsub.f32 1.0, %v2194_v31  ;;  %v2231_v56 = vmul.f32 %v2194_v31, %v7285_v22 }
 0xef1   :  { %v2101_v48 = vpop.permute.xlu2 %2100 }
 0xef2   :  { %v2105_v9 = vmul.f32 %v2101_v48, %v7318_v49 }
 0xef4   :  { %2110 = vrot.lane.b32.xlu0 %v2105_v9, %s6300_s6  ;;  %v5284_v9 = vor.u32 %v5749_v2, %v5281_v5 }
 0xf01   :  { %v2199_v42 = vpop.permute.xlu0 %2198  ;;  %v2099_v8 = vpop.permute.xlu1 %2098 }
 0xf02   :  { %v2204_v15 = vmul.f32 %v2199_v42, %v7322_v47  ;;  %v2104_v45 = vmul.f32 %v2099_v8, %v2079_v61  ;;  %v5748_v42 = vld [vmem:[%s8299_s2 + $0x14] sm:$0xf0]  ;;  %v5276_v47 = vor.u32 %v5747_v30, %v5273_v40  ;;  %v5745_v8 = vld [vmem:[%s8299_s2 + $0x4] sm:$0xf] }
 0xf04   :  { %2208 = vrot.lane.b32.xlu1 %v2204_v15, %s6300_s6  ;;  %2108 = vrot.lane.b32.xlu2 %v2104_v45, %s6300_s6  ;;  %v5272_v15 = vor.u32 %v5748_v42, %v5271_v34 }
 0xf09   :  { %v2201_v43 = vpop.permute.xlu1 %2200 }
 0xf0a   :  { %v2205_v51 = vmul.f32 %v2201_v43, %v2194_v31 }
 0xf0c   :  { %2210 = vrot.lane.b32.xlu2 %v2205_v51, %s6300_s6 }
 0xf14   :  { %2132 = vrot.lane.b32.xlu2 %v7278_v62, %s6302_s5 }
 0xf5e   :  { %v2109_v52 = vpop.permute.xlu2 %2108 }
 0xf5f   :  { %v2114_v53 = vadd.f32 %v2109_v52, %v2054_v29  ;;  %v2247_v52 = vld [vmem:[%s8301_s4] sm:$0x3] }
 0xf61   :  { %5994 = vtanh.f32 %v2114_v53  ;;  %v2250_v53 = vperm.slane %v2247_v52, 1 }
 0xf66   :  { %v2111_v54 = vpop.permute.xlu0 %2110  ;;  %v2211_v6 = vpop.permute.xlu2 %2210 }
 0xf67   :  { %v5995_v59 = vpop.eup %5994  ;;  %v2115_v0 = vadd.f32 %v2111_v54, %v2055_v12  ;;  %v2215_v55 = vadd.f32 %v2211_v6, %v2155_v27 }
 0xf68   :  { %2122 = vrot.lane.b32.xlu0 %v5995_v59, %s6301_s26 }
 0xf69   :  { %5996 = vtanh.f32 %v2115_v0 }
 0xf6a   :  { %5998 = vtanh.f32 %v2215_v55  ;;  %v2249_v55 = vperm.slane %v2247_v52, 0 }
 0xf6e   :  { %v2133_v29 = vpop.permute.xlu2 %2132 }
 0xf6f   :  { %v5997_v35 = vpop.eup %5996  ;;  %v2138_v1 = vmul.f32 %v2133_v29, %v2079_v61  ;;  %v5265_v61 = vld [vmem:[%s8299_s2 + $0x8] sm:$0xf0] }
 0xf70   :  { %v5999_v57 = vpop.eup %5998  ;;  %2124 = vrot.lane.b32.xlu1 %v5997_v35, %s6301_s26  ;;  %2134 = vrot.lane.b32.xlu0 %v7285_v22, %s6302_s5  ;;  %v5268_v45 = vor.u32 %v5745_v8, %v5265_v61 }
 0xf71   :  { %2224 = vrot.lane.b32.xlu2 %v5999_v57, %s6301_s26 }
 0xf76   :  { %v2209_v50 = vpop.permute.xlu1 %2208 }
 0xf77   :  { %v2214_v11 = vadd.f32 %v2209_v50, %v2154_v18  ;;  %v5289_v18 = vld [vmem:[%s8299_s2 + $0x38] sm:$0xf0]  ;;  %v7432_v50 = vld [vmem:[#allocation2 + $0x4] sm:$0xf] }
 0xf78   :  { %v5292_v22 = vor.u32 %v5751_v28, %v5289_v18 }
 0xf79   :  { %6000 = vtanh.f32 %v2214_v11  ;;  %v2426_v11 = vunpack.c.l.bf16 %v7432_v50 }
 0xf7a   :  { %2314 = vmatpush.bf16.msrb.mxu3 %v5292_v22  ;;  %v7442_v22 = vld [vmem:[#allocation2 + $0x70] sm:$0xf] }
 0xf7b   :  { %v2326_v2 = vunpack.c.l.bf16 %v7442_v22 }
 0xf7e   :  { %2315 = vmatpush.bf16.msrb.mxu3 %v5284_v9 }
 0xf7f   :  { %v6001_v12 = vpop.eup %6000 }
 0xf80   :  { %2222 = vrot.lane.b32.xlu1 %v6001_v12, %s6301_s26 }
 0xf82   :  { %2316 = vmatpush.bf16.msrb.mxu3 %v5276_v47 }
 0xf86   :  { %2317 = vmatpush.bf16.msrb.mxu3 %v5268_v45 }
 0xfcb   :  { %v2225_v27 = vpop.permute.xlu2 %2224 }
 0xfcc   :  { %v2229_v60 = vmul.f32 %v2225_v27, %v2219_v21 }
 0xfce   :  { %v2233_v46 = vadd.f32 %v2231_v56, %v2229_v60  ;;  %v7437_v60 = vld [vmem:[#allocation2 + $0xc] sm:$0xf] }
 0xfd0   :  { %5260 = vst.msk [vmem:[%s8306_s9 + $0x18] sm:$0xff] %vm577_vm1, %v2233_v46 }
 0xfda   :  { %v2123_v48 = vpop.permute.xlu0 %2122 }
 0xfdb   :  { %v2128_v13 = vmul.f32 %v2123_v48, %v2118_v7 }
 0xfdd   :  { %v2140_v19 = vadd.f32 %v2138_v1, %v2128_v13 }
 0xfdf   :  { %2144 = vrot.lane.b32.xlu0 %v2140_v19, %s6301_s26 }
 0xfe2   :  { %v2125_v20 = vpop.permute.xlu1 %2124  ;;  %v2135_v17 = vpop.permute.xlu0 %2134 }
 0xfe3   :  { %v2129_v33 = vmul.f32 %v2125_v20, %v2119_v14  ;;  %v2139_v16 = vmul.f32 %v2135_v17, %v7318_v49  ;;  %v5279_v49 = vld [vmem:[%s8299_s2 + $0x20] sm:$0xf] }
 0xfe4   :  { %v5280_v62 = vor.u32 %v5750_v41, %v5279_v49 }
 0xfe5   :  { %v2141_v3 = vadd.f32 %v2139_v16, %v2129_v33 }
 0xfe6   :  { %2301 = vmatpush.bf16.msrb.mxu2 %v5280_v62 }
 0xfe7   :  { %2146 = vrot.lane.b32.xlu1 %v2141_v3, %s6301_s26 }
 0xfea   :  { %2302 = vmatpush.bf16.msrb.mxu2 %v5272_v15 }
 0xfee   :  { %2303 = vmatpush.bf16.msrb.mxu2 %v5264_v36 }
 0xff2   :  { %v2223_v4 = vpop.permute.xlu1 %2222 }
 0xff3   :  { %v2228_v24 = vmul.f32 %v2223_v4, %v2218_v44 }
 0xff5   :  { %v2232_v26 = vadd.f32 %v2230_v23, %v2228_v24 }
 0xff7   :  { %5259 = vst.msk [vmem:[%s8306_s9 + $0x10] sm:$0xff] %vm577_vm1, %v2232_v26 }
0x1051   :  { %v2145_v38 = vpop.permute.xlu0 %2144 }
0x1052   :  { %5255 = vst.msk [vmem:[%s8306_s9 + $0x60] sm:$0xff] %vm488_vm2, %v2145_v38  ;;  %v7413_v31 = vsel %vm488_vm2, %v2145_v38, %v2232_v26 }
0x1059   :  { %v2147_v58 = vpop.permute.xlu1 %2146 }
0x105a   :  { %5256 = vst.msk [vmem:[%s8306_s9 + $0x68] sm:$0xff] %vm488_vm2, %v2147_v58  ;;  %v7420_v43 = vsel %vm488_vm2, %v2147_v58, %v2233_v46  ;;  %v2427_v46 = vunpack.c.l.bf16 %v7437_v60  ;;  %v5375_v60 = vld [vmem:[#allocation7 + $0x30] sm:$0xf] }
0x105b   :  { %v2238_v51 = vpack.c.bf16 %v7420_v43, %v7413_v31 }
0x105d   :  { %5293 = vmatmul.msk.bf16.vlgmr.msrb.gmra.mxu2 %vm363_vm3, %v2238_v51  ;;  %5294 = vmatmul.msk.bf16.vlgmr.msrb.gmra.mxu3 %vm363_vm3, %v2238_v51 }
0x10e0   :  { %v2319_v54 = vpop.f32.mrf.mxu3  ;;  %v2305_v35 = vpop.f32.mrf.mxu2 }
0x10e1   :  { %v2320_v6 = vadd.f32 %v2319_v54, %v2250_v53  ;;  %v2306_v57 = vadd.f32 %v2305_v35, %v2249_v55 }
0x10e3   :  { %2470 = vrot.lane.b32.xlu2 %v2320_v6, %s6300_s6  ;;  %v2428_v12 = vadd.f32 %v2426_v11, %v2320_v6  ;;  %v2328_v7 = vadd.f32 %v2326_v2, %v2306_v57 }
0x10e5   :  { %v5299_v29 = vmul.f32 -1.442695, %v2428_v12  ;;  %v5295_v9 = vmul.f32 -1.442695, %v2328_v7 }
0x10e7   :  { %6002 = vpow2.f32 %v5299_v29 }
0x10e8   :  { %v2321_v59 = vpop.f32.mrf.mxu3  ;;  %v2307_v44 = vpop.f32.mrf.mxu2 }
0x10e9   :  { %v2322_v0 = vadd.f32 %v2321_v59, %v2250_v53  ;;  %v2308_v23 = vadd.f32 %v2307_v44, %v2249_v55  ;;  %v7460_v59 = vld [vmem:[#allocation2 + $0x78] sm:$0xf]  ;;  %v5764_v44 = vld [vmem:[#allocation7 + $0x14] sm:$0xf0] }
0x10eb   :  { %2472 = vrot.lane.b32.xlu0 %v2322_v0, %s6300_s6  ;;  %v2429_v18 = vadd.f32 %v2427_v46, %v2322_v0  ;;  %v2327_v0 = vunpack.c.l.bf16 %v7460_v59  ;;  %v5767_v59 = vld [vmem:[#allocation7 + $0x34] sm:$0xf] }
0x10ed   :  { %v6003_v21 = vpop.eup %6002  ;;  %v5300_v63 = vmul.f32 -1.442695, %v2429_v18  ;;  %v2329_v55 = vadd.f32 %v2327_v0, %v2308_v23 }
0x10ee   :  { %v2436_v27 = vadd.f32 1.0, %v6003_v21 }
0x10ef   :  { %v5296_v35 = vmul.f32 -1.442695, %v2329_v55 }
0x10f0   :  { %6004 = vrcp.f32 %v2436_v27  ;;  %v2449_v48 = vand.u32 2147483648, %v2436_v27  ;;  %vm2443_vm10 = vweird.f32 %v2436_v27  ;;  %v2447_v1 = vand.u32 2147483647, %v2436_v27 }
0x10f1   :  { %6006 = vpow2.f32 %v5300_v63 }
0x10f2   :  { %v2450_v14 = vor.u32 1.1754944e-38, %v2449_v48  ;;  %6008 = vpow2.f32 %v5295_v9  ;;  %vm2448_vm12 = vcmp.eq.f32.partialorder %v2447_v1, 8.507059e+37 }
0x10f3   :  { %2370 = vrot.lane.b32.xlu0 %v2306_v57, %s6300_s6 }
0x10f6   :  { %v6005_v56 = vpop.eup %6004 }
0x10f7   :  { %v2439_v28 = vmul.f32 %v6005_v56, %v2436_v27  ;;  %vm2444_vm9 = vweird.f32 %v6005_v56  ;;  %v6007_v13 = vpop.eup %6006 }
0x10f8   :  { %vm2445_vm11 = vmor %vm2443_vm10, %vm2444_vm9  ;;  %v2437_v20 = vadd.f32 1.0, %v6007_v13  ;;  %v6009_v3 = vpop.eup %6008 }
0x10f9   :  { %v2440_v37 = vsub.f32 1.0, %v2439_v28  ;;  %v2336_v4 = vadd.f32 1.0, %v6009_v3  ;;  %v5359_v3 = vld [vmem:[#allocation7 + $0x10] sm:$0xf] }
0x10fa   :  { %6010 = vrcp.f32 %v2437_v20  ;;  %v2464_v42 = vand.u32 2147483648, %v2437_v20  ;;  %vm2458_vm14 = vweird.f32 %v2437_v20  ;;  %v2462_v47 = vand.u32 2147483647, %v2437_v20 }
0x10fb   :  { %v2441_v5 = vmul.f32 %v6005_v56, %v2440_v37  ;;  %6012 = vrcp.f32 %v2336_v4  ;;  %v2349_v38 = vand.u32 2147483648, %v2336_v4  ;;  %vm2343_vm5 = vweird.f32 %v2336_v4 }
0x10fc   :  { %v2465_v15 = vor.u32 1.1754944e-38, %v2464_v42  ;;  %vm2463_vm0 = vcmp.eq.f32.partialorder %v2462_v47, 8.507059e+37  ;;  %v2347_v58 = vand.u32 2147483647, %v2336_v4  ;;  %6014 = vpow2.f32 %v5296_v35  ;;  %v5755_v35 = vld [vmem:[#allocation5 + $0x14] sm:$0xf] }
0x10fd   :  { %v2442_v10 = vadd.f32 %v6005_v56, %v2441_v5  ;;  %v2350_v52 = vor.u32 1.1754944e-38, %v2349_v38 }
0x10fe   :  { %vm2348_vm7 = vcmp.eq.f32.partialorder %v2347_v58, 8.507059e+37 }
0x10ff   :  { %v2446_v19 = vsel %vm2445_vm11, %v6005_v56, %v2442_v10 }
0x1100   :  { %v7447_v33 = vsel %vm2448_vm12, %v2450_v14, %v2446_v19  ;;  %v6011_v24 = vpop.eup %6010  ;;  %v5367_v14 = vld [vmem:[#allocation7 + $0x20] sm:$0xf] }
0x1101   :  { %v2454_v26 = vmul.f32 %v6011_v24, %v2437_v20  ;;  %v6013_v41 = vpop.eup %6012  ;;  %vm2459_vm13 = vweird.f32 %v6011_v24  ;;  %v2490_v58 = vsub.f32 1.0, %v7447_v33  ;;  %v2502_v22 = vmul.f32 %v7447_v33, %v7413_v31 }
0x1102   :  { %v2339_v62 = vmul.f32 %v6013_v41, %v2336_v4  ;;  %vm2460_vm15 = vmor %vm2458_vm14, %vm2459_vm13  ;;  %vm2344_vm4 = vweird.f32 %v6013_v41  ;;  %v6015_v57 = vpop.eup %6014  ;;  %v5351_v4 = vld [vmem:[#allocation7] sm:$0xf] }
0x1103   :  { %v2455_v49 = vsub.f32 1.0, %v2454_v26  ;;  %vm2345_vm6 = vmor %vm2343_vm5, %vm2344_vm4  ;;  %v2337_v12 = vadd.f32 1.0, %v6015_v57  ;;  %v5327_v26 = vld [vmem:[#allocation5 + $0x30] sm:$0xf]  ;;  %v5313_v57 = vld [vmem:[#allocation5 + $0x18] sm:$0xf0] }
0x1104   :  { %v2340_v34 = vsub.f32 1.0, %v2339_v62  ;;  %v5329_v62 = vld [vmem:[#allocation5 + $0x38] sm:$0xf0] }
0x1105   :  { %v2456_v30 = vmul.f32 %v6011_v24, %v2455_v49  ;;  %6016 = vrcp.f32 %v2337_v12  ;;  %v2364_v10 = vand.u32 2147483648, %v2337_v12  ;;  %vm2358_vm9 = vweird.f32 %v2337_v12  ;;  %v5760_v49 = vld [vmem:[#allocation5 + $0x34] sm:$0xf0] }
0x1106   :  { %v2341_v61 = vmul.f32 %v6013_v41, %v2340_v34  ;;  %v2362_v48 = vand.u32 2147483647, %v2337_v12 }
0x1107   :  { %v2457_v40 = vadd.f32 %v6011_v24, %v2456_v30  ;;  %v2365_v50 = vor.u32 1.1754944e-38, %v2364_v10  ;;  %v5759_v30 = vld [vmem:[#allocation5 + $0x34] sm:$0xf] }
0x1108   :  { %v2342_v36 = vadd.f32 %v6013_v41, %v2341_v61  ;;  %vm2363_vm11 = vcmp.eq.f32.partialorder %v2362_v48, 8.507059e+37  ;;  %v5332_v34 = vor.u32 %v5759_v30, %v5329_v62  ;;  %v5319_v61 = vld [vmem:[#allocation5 + $0x20] sm:$0xf] }
0x1109   :  { %v2461_v8 = vsel %vm2460_vm15, %v6011_v24, %v2457_v40  ;;  %v5762_v24 = vld [vmem:[#allocation7 + $0x4] sm:$0xf0] }
0x110a   :  { %v7452_v39 = vsel %vm2463_vm0, %v2465_v15, %v2461_v8  ;;  %v2346_v51 = vsel %vm2345_vm6, %v6013_v41, %v2342_v36  ;;  %v5328_v41 = vor.u32 %v5760_v49, %v5327_v26  ;;  %v5352_v40 = vor.u32 %v5762_v24, %v5351_v4  ;;  %2663 = vmatpush.bf16.msrb.mxu1 %v5332_v34  ;;  %v5758_v15 = vld [vmem:[#allocation5 + $0x24] sm:$0xf0]  ;;  %v5321_v36 = vld [vmem:[#allocation5 + $0x28] sm:$0xf0] }
0x110b   :  { %v7456_v54 = vsel %vm2348_vm7, %v2350_v52, %v2346_v51  ;;  %v6017_v29 = vpop.eup %6016 }
0x110c   :  { %v2354_v21 = vmul.f32 %v6017_v29, %v2337_v12  ;;  %vm2359_vm8 = vweird.f32 %v6017_v29  ;;  %2614 = vmatpush.bf16.msrb.mxu0 %v5328_v41  ;;  %v5303_v12 = vld [vmem:[#allocation5] sm:$0xf]  ;;  %v2390_v24 = vsub.f32 1.0, %v7456_v54 }
0x110d   :  { %vm2360_vm10 = vmor %vm2358_vm9, %vm2359_vm8 }
0x110e   :  { %v2355_v56 = vsub.f32 1.0, %v2354_v21  ;;  %v5754_v21 = vld [vmem:[#allocation5 + $0x4] sm:$0xf0] }
0x1110   :  { %v2356_v18 = vmul.f32 %v6017_v29, %v2355_v56  ;;  %v5305_v56 = vld [vmem:[#allocation5 + $0x8] sm:$0xf0] }
0x1112   :  { %v2357_v63 = vadd.f32 %v6017_v29, %v2356_v18 }
0x1114   :  { %v2361_v9 = vsel %vm2360_vm10, %v6017_v29, %v2357_v63  ;;  %v5316_v29 = vor.u32 %v5755_v35, %v5313_v57  ;;  %v2491_v63 = vsub.f32 1.0, %v7452_v39 }
0x113d   :  { %v2471_v17 = vpop.permute.xlu2 %2470 }
0x113e   :  { %v2476_v16 = vmul.f32 %v2471_v17, %v7447_v33  ;;  %v5766_v17 = vld [vmem:[#allocation7 + $0x24] sm:$0xf0] }
0x1140   :  { %2480 = vrot.lane.b32.xlu1 %v2476_v16, %s6300_s6  ;;  %v5368_v16 = vor.u32 %v5766_v17, %v5367_v14  ;;  %v5353_v17 = vld [vmem:[#allocation7 + $0x8] sm:$0xf0] }
0x1148   :  { %2372 = vrot.lane.b32.xlu1 %v2308_v23, %s6300_s6  ;;  %v5360_v23 = vor.u32 %v5764_v44, %v5359_v3  ;;  %v2510_v3 = vld [vmem:[%s8306_s9 + $0x10] sm:$0xff]  ;;  %v2511_v44 = vld [vmem:[%s8306_s9 + $0x18] sm:$0xff] }
0x1149   :  { %v2525_v4 = vpack.c.bf16 %v2511_v44, %v2510_v3 }
0x115d   :  { %v2473_v45 = vpop.permute.xlu0 %2472 }
0x115e   :  { %v2477_v25 = vmul.f32 %v2473_v45, %v7452_v39  ;;  %v5757_v45 = vld [vmem:[#allocation5 + $0x24] sm:$0xf] }
0x115f   :  { %v5324_v38 = vor.u32 %v5757_v45, %v5321_v36  ;;  %v2515_v45 = vld [vmem:[%s8306_s9 + $0x38] sm:$0xff]  ;;  %v2516_v36 = vld [vmem:[%s8306_s9 + $0x40] sm:$0xff] }
0x1160   :  { %2482 = vrot.lane.b32.xlu2 %v2477_v25, %s6300_s6  ;;  %v5320_v25 = vor.u32 %v5758_v15, %v5319_v61  ;;  %v2514_v15 = vld [vmem:[%s8306_s9 + $0x30] sm:$0xff] }
0x1161   :  { %2664 = vmatpush.bf16.msrb.mxu1 %v5324_v38  ;;  %v2517_v38 = vld [vmem:[%s8306_s9 + $0x48] sm:$0xff] }
0x1162   :  { %2615 = vmatpush.bf16.msrb.mxu0 %v5320_v25  ;;  %v2527_v25 = vpack.c.bf16 %v2515_v45, %v2514_v15 }
0x1165   :  { %v2371_v53 = vpop.permute.xlu0 %2370  ;;  %2665 = vmatpush.bf16.msrb.mxu1 %v5316_v29  ;;  %v2520_v29 = vld [vmem:[%s8306_s9 + $0x60] sm:$0xff] }
0x1166   :  { %v2376_v6 = vmul.f32 %v2371_v53, %v7456_v54  ;;  %v5311_v53 = vld [vmem:[#allocation5 + $0x10] sm:$0xf] }
0x1168   :  { %2380 = vrot.lane.b32.xlu1 %v2376_v6, %s6300_s6  ;;  %v5756_v6 = vld [vmem:[#allocation5 + $0x14] sm:$0xf0] }
0x1169   :  { %v5312_v55 = vor.u32 %v5756_v6, %v5311_v53 }
0x116b   :  { %2616 = vmatpush.bf16.msrb.mxu0 %v5312_v55 }
0x11b2   :  { %v2481_v27 = vpop.permute.xlu1 %2480 }
0x11b3   :  { %v2486_v28 = vadd.f32 %v2481_v27, %v2426_v11  ;;  %v7470_v11 = vsel %vm2363_vm11, %v2365_v50, %v2361_v9  ;;  %v5753_v27 = vld [vmem:[#allocation5 + $0x4] sm:$0xf]  ;;  %v5369_v50 = vld [vmem:[#allocation7 + $0x28] sm:$0xf0] }
0x11b4   :  { %v5308_v18 = vor.u32 %v5753_v27, %v5305_v56  ;;  %v2391_v53 = vsub.f32 1.0, %v7470_v11 }
0x11b5   :  { %6018 = vtanh.f32 %v2486_v28 }
0x11b6   :  { %2666 = vmatpush.bf16.msrb.mxu1 %v5308_v18 }
0x11ba   :  { %v2483_v37 = vpop.permute.xlu2 %2482  ;;  %v2373_v1 = vpop.permute.xlu1 %2372 }
0x11bb   :  { %v6019_v5 = vpop.eup %6018  ;;  %v2487_v7 = vadd.f32 %v2483_v37, %v2427_v46  ;;  %v2377_v13 = vmul.f32 %v2373_v1, %v7470_v11  ;;  %v5768_v46 = vld [vmem:[#allocation7 + $0x34] sm:$0xf0]  ;;  %v5765_v1 = vld [vmem:[#allocation7 + $0x24] sm:$0xf] }
0x11bc   :  { %2494 = vrot.lane.b32.xlu2 %v6019_v5, %s6301_s26  ;;  %v5376_v20 = vor.u32 %v5768_v46, %v5375_v60  ;;  %v5361_v60 = vld [vmem:[#allocation7 + $0x18] sm:$0xf0] }
0x11bd   :  { %6020 = vtanh.f32 %v2487_v7  ;;  %v2503_v7 = vmul.f32 %v7452_v39, %v7420_v43 }
0x11be   :  { %2798 = vmatpush.bf16.msra.mxu2 %v5376_v20  ;;  %v5761_v20 = vld [vmem:[#allocation7 + $0x4] sm:$0xf] }
0x11c2   :  { %2799 = vmatpush.bf16.msra.mxu2 %v5368_v16  ;;  %v5356_v16 = vor.u32 %v5761_v20, %v5353_v17 }
0x11c3   :  { %v6021_v19 = vpop.eup %6020 }
0x11c4   :  { %2382 = vrot.lane.b32.xlu2 %v2377_v13, %s6300_s6  ;;  %2496 = vrot.lane.b32.xlu0 %v6021_v19, %s6301_s26  ;;  %v5763_v13 = vld [vmem:[#allocation7 + $0x14] sm:$0xf]  ;;  %v5372_v19 = vor.u32 %v5765_v1, %v5369_v50 }
0x11c5   :  { %v5364_v46 = vor.u32 %v5763_v13, %v5361_v60 }
0x11c6   :  { %2800 = vmatpush.bf16.msra.mxu2 %v5360_v23 }
0x11ca   :  { %2801 = vmatpush.bf16.msra.mxu2 %v5352_v40 }
0x11cc   :  { %2404 = vrot.lane.b32.xlu2 %v7413_v31, %s6302_s5  ;;  %v5304_v31 = vor.u32 %v5754_v21, %v5303_v12  ;;  %v2521_v12 = vld [vmem:[%s8306_s9 + $0x68] sm:$0xff] }
0x11cd   :  { %2802 = vmatmul.bf16.vlgmr.msra.gmra.mxu2 %v6299_v32  ;;  %v2530_v21 = vpack.c.bf16 %v2521_v12, %v2520_v29 }
0x11ce   :  { %2617 = vmatpush.bf16.msrb.mxu0 %v5304_v31 }
0x11da   :  { %v2381_v42 = vpop.permute.xlu1 %2380 }
0x11db   :  { %v2386_v47 = vadd.f32 %v2381_v42, %v2326_v2  ;;  %v2513_v42 = vld [vmem:[%s8306_s9 + $0x28] sm:$0xff] }
0x11dd   :  { %6022 = vtanh.f32 %v2386_v47 }
0x11e3   :  { %v6023_v8 = vpop.eup %6022 }
0x11e4   :  { %2394 = vrot.lane.b32.xlu0 %v6023_v8, %s6301_s26  ;;  %v2512_v8 = vld [vmem:[%s8306_s9 + $0x20] sm:$0xff] }
0x11ec   :  { %2406 = vrot.lane.b32.xlu0 %v7420_v43, %s6302_s5 }
0x1216   :  { %v2495_v51 = vpop.permute.xlu2 %2494 }
0x1217   :  { %v2500_v2 = vmul.f32 %v2495_v51, %v2490_v58  ;;  %v2528_v58 = vpack.c.bf16 %v2517_v38, %v2516_v36  ;;  %v2519_v51 = vld [vmem:[%s8306_s9 + $0x58] sm:$0xff] }
0x1219   :  { %v2504_v52 = vadd.f32 %v2502_v22, %v2500_v2  ;;  %v2518_v22 = vld [vmem:[%s8306_s9 + $0x50] sm:$0xff] }
0x121a   :  { %v2529_v2 = vpack.c.bf16 %v2519_v51, %v2518_v22 }
0x121b   :  { %2506 = vst.msk [vmem:[%s8306_s9] sm:$0xff] %vm577_vm1, %v2504_v52 }
0x121e   :  { %v2383_v28 = vpop.permute.xlu2 %2382 }
0x121f   :  { %v2387_v33 = vadd.f32 %v2383_v28, %v2327_v0  ;;  %v5377_v0 = vld [vmem:[#allocation7 + $0x38] sm:$0xf0] }
0x1220   :  { %v5380_v9 = vor.u32 %v5767_v59, %v5377_v0 }
0x1221   :  { %6024 = vtanh.f32 %v2387_v33 }
0x1222   :  { %2812 = vmatpush.bf16.msra.mxu3 %v5380_v9  ;;  %v2508_v43 = vld [vmem:[%s8306_s9] sm:$0xff] }
0x1226   :  { %2813 = vmatpush.bf16.msra.mxu3 %v5372_v19  ;;  %v2405_v23 = vpop.permute.xlu2 %2404 }
0x1227   :  { %v6025_v37 = vpop.eup %6024  ;;  %v2410_v41 = vmul.f32 %v2405_v23, %v7456_v54  ;;  %v2526_v54 = vpack.c.bf16 %v2513_v42, %v2512_v8 }
0x1228   :  { %2396 = vrot.lane.b32.xlu1 %v6025_v37, %s6301_s26 }
0x122a   :  { %2814 = vmatpush.bf16.msra.mxu3 %v5364_v46 }
0x122e   :  { %2815 = vmatpush.bf16.msra.mxu3 %v5356_v16 }
0x1231   :  { %2816 = vmatmul.bf16.vlgmr.msra.gmra.mxu3 %v6299_v32  ;;  %v7521_v32 = vld [vmem:[%s8305_s8] sm:$0x3] }
0x1232   :  { %v2750_v49 = vperm.slane %v7521_v32, 0  ;;  %v2751_v9 = vperm.slane %v7521_v32, 1 }
0x1236   :  { %v2497_v5 = vpop.permute.xlu0 %2496 }
0x1237   :  { %v2501_v10 = vmul.f32 %v2497_v5, %v2491_v63 }
0x1239   :  { %v2505_v48 = vadd.f32 %v2503_v7, %v2501_v10 }
0x123b   :  { %2507 = vst.msk [vmem:[%s8306_s9 + $0x8] sm:$0xff] %vm577_vm1, %v2505_v48 }
0x1242   :  { %v2509_v39 = vld [vmem:[%s8306_s9 + $0x8] sm:$0xff] }
0x1243   :  { %v2524_v14 = vpack.c.bf16 %v2509_v39, %v2508_v43 }
0x1245   :  { %5333 = vmatmul.msk.bf16.vlgmr.msrb.gmra.mxu0 %vm363_vm3, %v2524_v14  ;;  %5341 = vmatmul.msk.bf16.vlgmr.msrb.gmra.mxu1 %vm363_vm3, %v2524_v14 }
0x1250   :  { %v2803_v40 = vpop.f32.mrf.mxu2 }
0x1251   :  { %v2804_v34 = vadd.f32 %v2803_v40, %v2750_v49 }
0x1253   :  { %2868 = vrot.lane.b32.xlu0 %v2804_v34, %s6300_s6 }
0x1255   :  { %5334 = vmatmul.msk.bf16.gmra.mxu0 %vm363_vm3, %v2525_v4  ;;  %5342 = vmatmul.msk.bf16.gmra.mxu1 %vm363_vm3, %v2525_v4 }
0x1256   :  { %v2395_v26 = vpop.permute.xlu0 %2394 }
0x1257   :  { %v2400_v30 = vmul.f32 %v2395_v26, %v2390_v24 }
0x1258   :  { %v2805_v47 = vpop.f32.mrf.mxu2 }
0x1259   :  { %v2412_v62 = vadd.f32 %v2410_v41, %v2400_v30  ;;  %v7533_v61 = vadd.f32 %v2805_v47, %v2750_v49 }
0x125b   :  { %2416 = vrot.lane.b32.xlu1 %v2412_v62, %s6301_s26 }
0x125e   :  { %v2407_v52 = vpop.permute.xlu0 %2406 }
0x125f   :  { %v2411_v55 = vmul.f32 %v2407_v52, %v7470_v11  ;;  %v2540_v11 = vld [vmem:[%s8304_s7] sm:$0x3] }
0x1260   :  { %v7577_v27 = vperm.slane %v2540_v11, 0  ;;  %v7579_v56 = vperm.slane %v2540_v11, 1 }
0x1263   :  { %2870 = vrot.lane.b32.xlu1 %v7533_v61, %s6300_s6 }
0x1265   :  { %5335 = vmatmul.msk.bf16.gmra.mxu0 %vm363_vm3, %v2526_v54  ;;  %5343 = vmatmul.msk.bf16.gmra.mxu1 %vm363_vm3, %v2526_v54 }
0x1275   :  { %5336 = vmatmul.msk.bf16.gmra.mxu0 %vm363_vm3, %v2527_v25  ;;  %5344 = vmatmul.msk.bf16.gmra.mxu1 %vm363_vm3, %v2527_v25 }
0x1285   :  { %5337 = vmatmul.msk.bf16.gmra.mxu0 %vm363_vm3, %v2528_v58  ;;  %5345 = vmatmul.msk.bf16.gmra.mxu1 %vm363_vm3, %v2528_v58 }
0x1295   :  { %5338 = vmatmul.msk.bf16.gmra.mxu0 %vm363_vm3, %v2529_v2  ;;  %5346 = vmatmul.msk.bf16.gmra.mxu1 %vm363_vm3, %v2529_v2 }
0x129a   :  { %v2397_v6 = vpop.permute.xlu1 %2396 }
0x129b   :  { %v2401_v35 = vmul.f32 %v2397_v6, %v2391_v53 }
0x129d   :  { %v2413_v57 = vadd.f32 %v2411_v55, %v2401_v35 }
0x129f   :  { %2418 = vrot.lane.b32.xlu2 %v2413_v57, %s6301_s26 }
0x12a5   :  { %5339 = vmatmul.msk.bf16.gmra.mxu0 %vm363_vm3, %v2530_v21  ;;  %5347 = vmatmul.msk.bf16.gmra.mxu1 %vm363_vm3, %v2530_v21 }
0x12b4   :  { %v2817_v50 = vpop.f32.mrf.mxu3 }
0x12b5   :  { %v7595_v13 = vadd.f32 %v2817_v50, %v2751_v9 }
0x12b7   :  { %2960 = vrot.lane.b32.xlu2 %v7595_v13, %s6300_s6 }
0x12c2   :  { %v2619_v28 = vpop.f32.mrf.mxu0  ;;  %v2668_v31 = vpop.f32.mrf.mxu1 }
0x12c3   :  { %v2620_v33 = vadd.f32 %v2619_v28, %v7577_v27  ;;  %v2669_v18 = vadd.f32 %v2668_v31, %v7579_v56 }
0x12c5   :  { %v2708_v37 = vpack.c.bf16 %v2669_v18, %v2620_v33  ;;  %v2869_v55 = vpop.permute.xlu0 %2868 }
0x12c7   :  { %2724 = vst [vmem:[#allocation2] sm:$0xff] %v2708_v37 }
0x12ca   :  { %v2621_v63 = vpop.f32.mrf.mxu0  ;;  %v2670_v5 = vpop.f32.mrf.mxu1 }
0x12cb   :  { %v2622_v7 = vadd.f32 %v2621_v63, %v7577_v27  ;;  %v2671_v10 = vadd.f32 %v2670_v5, %v7579_v56 }
0x12cd   :  { %v2709_v48 = vpack.c.bf16 %v2671_v10, %v2622_v7  ;;  %v2417_v59 = vpop.permute.xlu1 %2416 }
0x12ce   :  { %5297 = vst.msk [vmem:[%s8306_s9 + $0x70] sm:$0xff] %vm488_vm2, %v2417_v59  ;;  %v7589_v0 = vld [vmem:[#allocation2] sm:$0xf] }
0x12cf   :  { %2725 = vst [vmem:[#allocation2 + $0x8] sm:$0xff] %v2709_v48  ;;  %v2824_v1 = vunpack.c.l.bf16 %v7589_v0 }
0x12d1   :  { %v2826_v19 = vadd.f32 %v2824_v1, %v2804_v34 }
0x12d2   :  { %v2624_v60 = vpop.f32.mrf.mxu0  ;;  %v2673_v43 = vpop.f32.mrf.mxu1 }
0x12d3   :  { %v2625_v39 = vadd.f32 %v2624_v60, %v7577_v27  ;;  %v2674_v46 = vadd.f32 %v2673_v43, %v7579_v56  ;;  %v5381_v14 = vmul.f32 -1.442695, %v2826_v19 }
0x12d5   :  { %v2710_v20 = vpack.c.bf16 %v2674_v46, %v2625_v39  ;;  %6026 = vpow2.f32 %v5381_v14  ;;  %v2871_v48 = vpop.permute.xlu1 %2870 }
0x12d6   :  { %v7603_v17 = vld [vmem:[#allocation2 + $0x8] sm:$0xf] }
0x12d7   :  { %2726 = vst [vmem:[#allocation2 + $0x10] sm:$0xff] %v2710_v20  ;;  %v2825_v16 = vunpack.c.l.bf16 %v7603_v17 }
0x12d9   :  { %v2827_v3 = vadd.f32 %v2825_v16, %v7533_v61 }
0x12da   :  { %v2626_v44 = vpop.f32.mrf.mxu0  ;;  %v2675_v4 = vpop.f32.mrf.mxu1 }
0x12db   :  { %v6027_v23 = vpop.eup %6026  ;;  %v2627_v24 = vadd.f32 %v2626_v44, %v7577_v27  ;;  %v2676_v26 = vadd.f32 %v2675_v4, %v7579_v56  ;;  %v5382_v49 = vmul.f32 -1.442695, %v2827_v3  ;;  %v2522_v44 = vld [vmem:[%s8306_s9 + $0x70] sm:$0xff] }
0x12dc   :  { %v2834_v41 = vadd.f32 1.0, %v6027_v23 }
0x12dd   :  { %v2711_v30 = vpack.c.bf16 %v2676_v26, %v2627_v24  ;;  %6028 = vpow2.f32 %v5382_v49 }
0x12de   :  { %6030 = vrcp.f32 %v2834_v41  ;;  %v2847_v25 = vand.u32 2147483648, %v2834_v41  ;;  %v2845_v38 = vand.u32 2147483647, %v2834_v41  ;;  %vm2841_vm13 = vweird.f32 %v2834_v41 }
0x12df   :  { %2727 = vst [vmem:[#allocation2 + $0x18] sm:$0xff] %v2711_v30 }
0x12e0   :  { %v2848_v6 = vor.u32 1.1754944e-38, %v2847_v25  ;;  %vm2846_vm15 = vcmp.eq.f32.partialorder %v2845_v38, 8.507059e+37 }
0x12e2   :  { %v2629_v62 = vpop.f32.mrf.mxu0  ;;  %v2678_v40 = vpop.f32.mrf.mxu1 }
0x12e3   :  { %v6029_v34 = vpop.eup %6028  ;;  %v2630_v42 = vadd.f32 %v2629_v62, %v7577_v27  ;;  %v2679_v47 = vadd.f32 %v2678_v40, %v7579_v56 }
0x12e4   :  { %v6031_v8 = vpop.eup %6030  ;;  %v2835_v61 = vadd.f32 1.0, %v6029_v34 }
0x12e5   :  { %v2712_v54 = vpack.c.bf16 %v2679_v47, %v2630_v42  ;;  %v2837_v15 = vmul.f32 %v6031_v8, %v2834_v41  ;;  %vm2842_vm12 = vweird.f32 %v6031_v8 }
0x12e6   :  { %6032 = vrcp.f32 %v2835_v61  ;;  %vm2843_vm14 = vmor %vm2841_vm13, %vm2842_vm12  ;;  %v2862_v28 = vand.u32 2147483648, %v2835_v61  ;;  %v2860_v33 = vand.u32 2147483647, %v2835_v61  ;;  %vm2856_vm4 = vweird.f32 %v2835_v61 }
0x12e7   :  { %2728 = vst [vmem:[#allocation2 + $0x20] sm:$0xff] %v2712_v54  ;;  %v2838_v45 = vsub.f32 1.0, %v2837_v15 }
0x12e8   :  { %v2863_v10 = vor.u32 1.1754944e-38, %v2862_v28  ;;  %vm2861_vm6 = vcmp.eq.f32.partialorder %v2860_v33, 8.507059e+37 }
0x12e9   :  { %v2839_v36 = vmul.f32 %v6031_v8, %v2838_v45 }
0x12ea   :  { %v2631_v58 = vpop.f32.mrf.mxu0  ;;  %v2680_v51 = vpop.f32.mrf.mxu1 }
0x12eb   :  { %v2632_v22 = vadd.f32 %v2631_v58, %v7577_v27  ;;  %v2681_v2 = vadd.f32 %v2680_v51, %v7579_v56  ;;  %v2840_v52 = vadd.f32 %v6031_v8, %v2839_v36 }
0x12ec   :  { %v6033_v53 = vpop.eup %6032 }
0x12ed   :  { %v2713_v35 = vpack.c.bf16 %v2681_v2, %v2632_v22  ;;  %v2844_v57 = vsel %vm2843_vm14, %v6031_v8, %v2840_v52  ;;  %v2852_v12 = vmul.f32 %v6033_v53, %v2835_v61  ;;  %vm2857_vm0 = vweird.f32 %v6033_v53  ;;  %v2819_v8 = vpop.f32.mrf.mxu3 }
0x12ee   :  { %v7615_v29 = vsel %vm2846_vm15, %v2848_v6, %v2844_v57  ;;  %vm2858_vm5 = vmor %vm2856_vm4, %vm2857_vm0  ;;  %v2820_v61 = vadd.f32 %v2819_v8, %v2751_v9 }
0x12ef   :  { %2729 = vst [vmem:[#allocation2 + $0x28] sm:$0xff] %v2713_v35  ;;  %v2874_v21 = vmul.f32 %v2869_v55, %v7615_v29  ;;  %v2853_v11 = vsub.f32 1.0, %v2852_v12 }
0x12f0   :  { %2962 = vrot.lane.b32.xlu0 %v2820_v61, %s6300_s6 }
0x12f1   :  { %2878 = vrot.lane.b32.xlu1 %v2874_v21, %s6300_s6  ;;  %v2854_v31 = vmul.f32 %v6033_v53, %v2853_v11 }
0x12f2   :  { %v2634_v18 = vpop.f32.mrf.mxu0  ;;  %v2683_v37 = vpop.f32.mrf.mxu1 }
0x12f3   :  { %v2635_v63 = vadd.f32 %v2634_v18, %v7577_v27  ;;  %v2684_v5 = vadd.f32 %v2683_v37, %v7579_v56  ;;  %v2855_v7 = vadd.f32 %v6033_v53, %v2854_v31 }
0x12f5   :  { %v2714_v59 = vpack.c.bf16 %v2684_v5, %v2635_v63  ;;  %v2859_v50 = vsel %vm2858_vm5, %v6033_v53, %v2855_v7 }
0x12f6   :  { %v7621_v19 = vsel %vm2861_vm6, %v2863_v10, %v2859_v50 }
0x12f7   :  { %2730 = vst [vmem:[#allocation2 + $0x30] sm:$0xff] %v2714_v59  ;;  %v2875_v60 = vmul.f32 %v2871_v48, %v7621_v19 }
0x12f9   :  { %v2419_v43 = vpop.permute.xlu2 %2418  ;;  %2880 = vrot.lane.b32.xlu2 %v2875_v60, %s6300_s6 }
0x12fa   :  { %5298 = vst.msk [vmem:[%s8306_s9 + $0x78] sm:$0xff] %vm488_vm2, %v2419_v43  ;;  %v2636_v39 = vpop.f32.mrf.mxu0  ;;  %v2685_v46 = vpop.f32.mrf.mxu1 }
0x12fb   :  { %v2637_v14 = vadd.f32 %v2636_v39, %v7577_v27  ;;  %v2686_v20 = vadd.f32 %v2685_v46, %v7579_v56 }
0x12fd   :  { %v2715_v3 = vpack.c.bf16 %v2686_v20, %v2637_v14 }
0x12ff   :  { %2731 = vst [vmem:[#allocation2 + $0x38] sm:$0xff] %v2715_v3 }
0x1301   :  { %v2523_v4 = vld [vmem:[%s8306_s9 + $0x78] sm:$0xff] }
0x1302   :  { %v2639_v23 = vpop.f32.mrf.mxu0  ;;  %v2688_v24 = vpop.f32.mrf.mxu1  ;;  %v2531_v26 = vpack.c.bf16 %v2523_v4, %v2522_v44 }
0x1303   :  { %v2640_v49 = vadd.f32 %v2639_v23, %v7577_v27  ;;  %v2689_v41 = vadd.f32 %v2688_v24, %v7579_v56 }
0x1304   :  { %5340 = vmatmul.msk.bf16.gmra.mxu0 %vm363_vm3, %v2531_v26  ;;  %5348 = vmatmul.msk.bf16.gmra.mxu1 %vm363_vm3, %v2531_v26 }
0x1305   :  { %v2716_v30 = vpack.c.bf16 %v2689_v41, %v2640_v49 }
0x1307   :  { %2732 = vst [vmem:[#allocation2 + $0x40] sm:$0xff] %v2716_v30 }
0x130a   :  { %v2641_v62 = vpop.f32.mrf.mxu0  ;;  %v2690_v40 = vpop.f32.mrf.mxu1 }
0x130b   :  { %v2642_v34 = vadd.f32 %v2641_v62, %v7577_v27  ;;  %v2691_v42 = vadd.f32 %v2690_v40, %v7579_v56 }
0x130d   :  { %v2717_v47 = vpack.c.bf16 %v2691_v42, %v2642_v34 }
0x130f   :  { %2733 = vst [vmem:[#allocation2 + $0x48] sm:$0xff] %v2717_v47 }
0x1312   :  { %v2644_v54 = vpop.f32.mrf.mxu0  ;;  %v2693_v15 = vpop.f32.mrf.mxu1 }
0x1313   :  { %v2645_v45 = vadd.f32 %v2644_v54, %v7577_v27  ;;  %v2694_v25 = vadd.f32 %v2693_v15, %v7579_v56 }
0x1315   :  { %v2718_v36 = vpack.c.bf16 %v2694_v25, %v2645_v45 }
0x1317   :  { %2734 = vst [vmem:[#allocation2 + $0x50] sm:$0xff] %v2718_v36 }
0x131a   :  { %v2646_v38 = vpop.f32.mrf.mxu0  ;;  %v2695_v58 = vpop.f32.mrf.mxu1 }
0x131b   :  { %v2647_v51 = vadd.f32 %v2646_v38, %v7577_v27  ;;  %v2696_v22 = vadd.f32 %v2695_v58, %v7579_v56 }
0x131d   :  { %v2719_v2 = vpack.c.bf16 %v2696_v22, %v2647_v51 }
0x131f   :  { %2735 = vst [vmem:[#allocation2 + $0x58] sm:$0xff] %v2719_v2 }
0x1322   :  { %v2649_v32 = vpop.f32.mrf.mxu0  ;;  %v2698_v9 = vpop.f32.mrf.mxu1 }
0x1323   :  { %v2650_v52 = vadd.f32 %v2649_v32, %v7577_v27  ;;  %v2699_v53 = vadd.f32 %v2698_v9, %v7579_v56  ;;  %v2888_v32 = vsub.f32 1.0, %v7615_v29 }
0x1325   :  { %v2720_v6 = vpack.c.bf16 %v2699_v53, %v2650_v52  ;;  %v2900_v52 = vmul.f32 0.0, %v7615_v29 }
0x1327   :  { %2736 = vst [vmem:[#allocation2 + $0x60] sm:$0xff] %v2720_v6 }
0x132a   :  { %v2651_v55 = vpop.f32.mrf.mxu0  ;;  %v2700_v35 = vpop.f32.mrf.mxu1 }
0x132b   :  { %v2652_v57 = vadd.f32 %v2651_v55, %v7577_v27  ;;  %v2701_v12 = vadd.f32 %v2700_v35, %v7579_v56 }
0x132d   :  { %v2721_v21 = vpack.c.bf16 %v2701_v12, %v2652_v57 }
0x132f   :  { %2737 = vst [vmem:[#allocation2 + $0x68] sm:$0xff] %v2721_v21 }
0x1362   :  { %v2963_v58 = vpop.permute.xlu0 %2962 }
0x1363   :  { %v2879_v11 = vpop.permute.xlu1 %2878 }
0x1364   :  { %v2884_v28 = vadd.f32 %v2879_v11, %v2824_v1 }
0x1366   :  { %6034 = vtanh.f32 %v2884_v28  ;;  %v2889_v28 = vsub.f32 1.0, %v7621_v19 }
0x136c   :  { %v6035_v31 = vpop.eup %6034 }
0x136d   :  { %2892 = vrot.lane.b32.xlu2 %v6035_v31, %s6301_s26 }
0x1381   :  { %v2654_v33 = vpop.f32.mrf.mxu0  ;;  %v2703_v18 = vpop.f32.mrf.mxu1 }
0x1382   :  { %v2655_v37 = vadd.f32 %v2654_v33, %v7577_v27  ;;  %v2704_v63 = vadd.f32 %v2703_v18, %v7579_v56  ;;  %v2901_v33 = vmul.f32 0.0, %v7621_v19 }
0x1384   :  { %v2722_v5 = vpack.c.bf16 %v2704_v63, %v2655_v37  ;;  %v5413_v63 = vld [vmem:[#allocation7 + $0x30] sm:$0xf] }
0x1386   :  { %2738 = vst [vmem:[#allocation2 + $0x70] sm:$0xff] %v2722_v5  ;;  %v5776_v5 = vld [vmem:[#allocation7 + $0x34] sm:$0xf0] }
0x1389   :  { %v2656_v7 = vpop.f32.mrf.mxu0  ;;  %v2705_v10 = vpop.f32.mrf.mxu1 }
0x138a   :  { %v2657_v48 = vadd.f32 %v2656_v7, %v7577_v27  ;;  %v2706_v59 = vadd.f32 %v2705_v10, %v7579_v56  ;;  %v2961_v27 = vpop.permute.xlu2 %2960  ;;  %v5775_v7 = vld [vmem:[#allocation7 + $0x34] sm:$0xf]  ;;  %v5414_v10 = vor.u32 %v5776_v5, %v5413_v63  ;;  %v7736_v5 = vld [vmem:[#allocation2 + $0x18] sm:$0xf] }
0x138c   :  { %v2723_v0 = vpack.c.bf16 %v2706_v59, %v2657_v48  ;;  %v5415_v48 = vld [vmem:[#allocation7 + $0x38] sm:$0xf0]  ;;  %v5405_v59 = vld [vmem:[#allocation7 + $0x20] sm:$0xf]  ;;  %3062 = vmatpush.bf16.msrb.mxu2 %v5414_v10  ;;  %v3089_v10 = vunpack.c.l.bf16 %v7736_v5 }
0x138d   :  { %v7661_v1 = vld [vmem:[#allocation2 + $0x74] sm:$0xf]  ;;  %v5418_v19 = vor.u32 %v5775_v7, %v5415_v48 }
0x138e   :  { %2739 = vst [vmem:[#allocation2 + $0x78] sm:$0xff] %v2723_v0  ;;  %v2916_v50 = vunpack.c.l.bf16 %v7661_v1  ;;  %v5774_v0 = vld [vmem:[#allocation7 + $0x24] sm:$0xf0] }
0x138f   :  { %v5406_v1 = vor.u32 %v5774_v0, %v5405_v59  ;;  %3076 = vmatpush.bf16.msrb.mxu3 %v5418_v19 }
0x1390   :  { %v2918_v60 = vadd.f32 %v2916_v50, %v7595_v13 }
0x1391   :  { %3063 = vmatpush.bf16.msrb.mxu2 %v5406_v1 }
0x1392   :  { %v5383_v43 = vmul.f32 -1.442695, %v2918_v60  ;;  %v2881_v30 = vpop.permute.xlu2 %2880  ;;  %v5407_v60 = vld [vmem:[#allocation7 + $0x28] sm:$0xf0] }
0x1393   :  { %v2885_v8 = vadd.f32 %v2881_v30, %v2825_v16 }
0x1394   :  { %6036 = vpow2.f32 %v5383_v43 }
0x1395   :  { %v2915_v39 = vld [vmem:[#allocation2 + $0x7c] sm:$0xf] }
0x1396   :  { %v2917_v46 = vunpack.c.l.bf16 %v2915_v39  ;;  %v5397_v39 = vld [vmem:[#allocation7 + $0x10] sm:$0xf] }
0x1398   :  { %v2919_v14 = vadd.f32 %v2917_v46, %v2820_v61 }
0x139a   :  { %v6037_v20 = vpop.eup %6036  ;;  %v5384_v3 = vmul.f32 -1.442695, %v2919_v14  ;;  %v5771_v14 = vld [vmem:[#allocation7 + $0x14] sm:$0xf] }
0x139b   :  { %v2926_v44 = vadd.f32 1.0, %v6037_v20 }
0x139c   :  { %6038 = vpow2.f32 %v5384_v3  ;;  %v5399_v3 = vld [vmem:[#allocation7 + $0x18] sm:$0xf0] }
0x139d   :  { %6040 = vrcp.f32 %v2926_v44  ;;  %v2939_v49 = vand.u32 2147483648, %v2926_v44  ;;  %v2937_v13 = vand.u32 2147483647, %v2926_v44  ;;  %vm2933_vm8 = vweird.f32 %v2926_v44 }
0x139f   :  { %v2940_v34 = vor.u32 1.1754944e-38, %v2939_v49  ;;  %vm2938_vm10 = vcmp.eq.f32.partialorder %v2937_v13, 8.507059e+37 }
0x13a2   :  { %v6039_v56 = vpop.eup %6038 }
0x13a3   :  { %v6041_v4 = vpop.eup %6040  ;;  %v2927_v23 = vadd.f32 1.0, %v6039_v56  ;;  %v5402_v56 = vor.u32 %v5771_v14, %v5399_v3 }
0x13a4   :  { %v2929_v24 = vmul.f32 %v6041_v4, %v2926_v44  ;;  %vm2934_vm7 = vweird.f32 %v6041_v4  ;;  %v5389_v44 = vld [vmem:[#allocation7] sm:$0xf] }
0x13a5   :  { %6042 = vrcp.f32 %v2927_v23  ;;  %vm2935_vm9 = vmor %vm2933_vm8, %vm2934_vm7  ;;  %v2954_v45 = vand.u32 2147483648, %v2927_v23  ;;  %v2952_v36 = vand.u32 2147483647, %v2927_v23  ;;  %vm2948_vm12 = vweird.f32 %v2927_v23 }
0x13a6   :  { %v2930_v26 = vsub.f32 1.0, %v2929_v24  ;;  %6044 = vtanh.f32 %v2885_v8  ;;  %v5391_v24 = vld [vmem:[#allocation7 + $0x8] sm:$0xf0] }
0x13a7   :  { %v2955_v51 = vor.u32 1.1754944e-38, %v2954_v45  ;;  %vm2953_vm14 = vcmp.eq.f32.partialorder %v2952_v36, 8.507059e+37 }
0x13a8   :  { %v2931_v41 = vmul.f32 %v6041_v4, %v2930_v26 }
0x13aa   :  { %v2932_v62 = vadd.f32 %v6041_v4, %v2931_v41 }
0x13ab   :  { %v6043_v40 = vpop.eup %6042 }
0x13ac   :  { %v2936_v42 = vsel %vm2935_vm9, %v6041_v4, %v2932_v62  ;;  %v2944_v47 = vmul.f32 %v6043_v40, %v2927_v23  ;;  %vm2949_vm11 = vweird.f32 %v6043_v40  ;;  %v6045_v2 = vpop.eup %6044  ;;  %v5769_v23 = vld [vmem:[#allocation7 + $0x4] sm:$0xf] }
0x13ad   :  { %v7667_v61 = vsel %vm2938_vm10, %v2940_v34, %v2936_v42  ;;  %vm2950_vm13 = vmor %vm2948_vm12, %vm2949_vm11  ;;  %v5394_v26 = vor.u32 %v5769_v23, %v5391_v24 }
0x13ae   :  { %v2966_v54 = vmul.f32 %v2961_v27, %v7667_v61  ;;  %v2945_v15 = vsub.f32 1.0, %v2944_v47  ;;  %v5770_v27 = vld [vmem:[#allocation7 + $0x4] sm:$0xf0]  ;;  %v2992_v42 = vmul.f32 0.0, %v7667_v61 }
0x13af   :  { %v5390_v4 = vor.u32 %v5770_v27, %v5389_v44 }
0x13b0   :  { %2970 = vrot.lane.b32.xlu0 %v2966_v54, %s6300_s6  ;;  %v2946_v25 = vmul.f32 %v6043_v40, %v2945_v15 }
0x13b2   :  { %v2947_v38 = vadd.f32 %v6043_v40, %v2946_v25  ;;  %v3009_v25 = vld [vmem:[%s8305_s8] sm:$0x3] }
0x13b3   :  { %v3011_v36 = vperm.slane %v3009_v25, 0 }
0x13b4   :  { %v2951_v22 = vsel %vm2950_vm13, %v6043_v40, %v2947_v38  ;;  %v2980_v40 = vsub.f32 1.0, %v7667_v61  ;;  %v3012_v38 = vperm.slane %v3009_v25, 1 }
0x13b5   :  { %v7671_v17 = vsel %vm2953_vm14, %v2955_v51, %v2951_v22 }
0x13b6   :  { %v2967_v16 = vmul.f32 %v2963_v58, %v7671_v17  ;;  %v2981_v49 = vsub.f32 1.0, %v7671_v17  ;;  %v2993_v13 = vmul.f32 0.0, %v7671_v17 }
0x13b8   :  { %2972 = vrot.lane.b32.xlu1 %v2967_v16, %s6300_s6  ;;  %2894 = vrot.lane.b32.xlu0 %v6045_v2, %s6301_s26 }
0x13c7   :  { %v2893_v9 = vpop.permute.xlu2 %2892 }
0x13c8   :  { %v2898_v53 = vmul.f32 %v2893_v9, %v2888_v32 }
0x13ca   :  { %v2902_v6 = vadd.f32 %v2900_v52, %v2898_v53  ;;  %v7721_v52 = vld [vmem:[#allocation2 + $0x10] sm:$0xf] }
0x13cb   :  { %v3088_v53 = vunpack.c.l.bf16 %v7721_v52 }
0x13cc   :  { %2906 = vrot.lane.b32.xlu0 %v2902_v6, %s6301_s26 }
0x1422   :  { %v2971_v55 = vpop.permute.xlu0 %2970 }
0x1423   :  { %v2976_v35 = vadd.f32 %v2971_v55, %v2916_v50  ;;  %v5773_v50 = vld [vmem:[#allocation7 + $0x24] sm:$0xf]  ;;  %v7726_v55 = vld [vmem:[#allocation2 + $0x6c] sm:$0xf] }
0x1424   :  { %v5410_v43 = vor.u32 %v5773_v50, %v5407_v60 }
0x1425   :  { %6046 = vtanh.f32 %v2976_v35 }
0x1426   :  { %3077 = vmatpush.bf16.msrb.mxu3 %v5410_v43 }
0x142a   :  { %v2973_v57 = vpop.permute.xlu1 %2972  ;;  %v2895_v11 = vpop.permute.xlu0 %2894  ;;  %3078 = vmatpush.bf16.msrb.mxu3 %v5402_v56 }
0x142b   :  { %v6047_v12 = vpop.eup %6046  ;;  %v2977_v21 = vadd.f32 %v2973_v57, %v2917_v46  ;;  %v2899_v31 = vmul.f32 %v2895_v11, %v2889_v28  ;;  %v5772_v46 = vld [vmem:[#allocation7 + $0x14] sm:$0xf0]  ;;  %v3189_v57 = vunpack.c.l.bf16 %v7726_v55 }
0x142c   :  { %2984 = vrot.lane.b32.xlu1 %v6047_v12, %s6301_s26  ;;  %v5398_v20 = vor.u32 %v5772_v46, %v5397_v39 }
0x142d   :  { %6048 = vtanh.f32 %v2977_v21  ;;  %v2903_v29 = vadd.f32 %v2901_v33, %v2899_v31  ;;  %v7731_v31 = vld [vmem:[#allocation2 + $0x64] sm:$0xf] }
0x142e   :  { %3064 = vmatpush.bf16.msrb.mxu2 %v5398_v20  ;;  %3079 = vmatpush.bf16.msrb.mxu3 %v5394_v26 }
0x1432   :  { %3065 = vmatpush.bf16.msrb.mxu2 %v5390_v4 }
0x1433   :  { %v6049_v18 = vpop.eup %6048 }
0x1434   :  { %2986 = vrot.lane.b32.xlu2 %v6049_v18, %s6301_s26  ;;  %2908 = vrot.lane.b32.xlu1 %v2903_v29, %s6301_s26  ;;  %v3188_v29 = vunpack.c.l.bf16 %v7731_v31 }
0x143e   :  { %v2907_v37 = vpop.permute.xlu0 %2906 }
0x143f   :  { %2912 = vst.msk [vmem:[%s8306_s9] sm:$0xff] %vm488_vm2, %v2907_v37 }
0x148e   :  { %v2987_v41 = vpop.permute.xlu2 %2986 }
0x148f   :  { %v2991_v30 = vmul.f32 %v2987_v41, %v2981_v49 }
0x1491   :  { %v2995_v62 = vadd.f32 %v2993_v13, %v2991_v30 }
0x1493   :  { %5386 = vst.msk [vmem:[%s8306_s9 + $0x78] sm:$0xff] %vm577_vm1, %v2995_v62 }
0x149e   :  { %v2985_v34 = vpop.permute.xlu1 %2984 }
0x149f   :  { %v2990_v47 = vmul.f32 %v2985_v34, %v2980_v40 }
0x14a1   :  { %v2994_v8 = vadd.f32 %v2992_v42, %v2990_v47 }
0x14a3   :  { %5385 = vst.msk [vmem:[%s8306_s9 + $0x70] sm:$0xff] %vm577_vm1, %v2994_v8  ;;  %v7705_v15 = vsel %vm488_vm2, %v2907_v37, %v2994_v8 }
0x14a6   :  { %v2909_v54 = vpop.permute.xlu1 %2908 }
0x14a7   :  { %2913 = vst.msk [vmem:[%s8306_s9 + $0x8] sm:$0xff] %vm488_vm2, %v2909_v54  ;;  %v7708_v45 = vsel %vm488_vm2, %v2909_v54, %v2995_v62 }
0x14a8   :  { %v3000_v61 = vpack.c.bf16 %v7708_v45, %v7705_v15 }
0x14aa   :  { %5419 = vmatmul.msk.bf16.vlgmr.msrb.gmra.mxu2 %vm363_vm3, %v3000_v61  ;;  %5420 = vmatmul.msk.bf16.vlgmr.msrb.gmra.mxu3 %vm363_vm3, %v3000_v61 }
0x152d   :  { %v3067_v58 = vpop.f32.mrf.mxu2  ;;  %v3081_v51 = vpop.f32.mrf.mxu3 }
0x152e   :  { %v3068_v22 = vadd.f32 %v3067_v58, %v3011_v36  ;;  %v3082_v17 = vadd.f32 %v3081_v51, %v3012_v38 }
0x1530   :  { %3232 = vrot.lane.b32.xlu1 %v3082_v17, %s6300_s6  ;;  %3132 = vrot.lane.b32.xlu2 %v3068_v22, %s6300_s6  ;;  %v3090_v6 = vadd.f32 %v3088_v53, %v3068_v22  ;;  %v3190_v18 = vadd.f32 %v3188_v29, %v3082_v17 }
0x1532   :  { %v5421_v35 = vmul.f32 -1.442695, %v3090_v6  ;;  %v5425_v7 = vmul.f32 -1.442695, %v3190_v18 }
0x1534   :  { %6050 = vpow2.f32 %v5421_v35 }
0x1535   :  { %v3069_v16 = vpop.f32.mrf.mxu2  ;;  %v3083_v2 = vpop.f32.mrf.mxu3 }
0x1536   :  { %v3070_v32 = vadd.f32 %v3069_v16, %v3011_v36  ;;  %v3084_v9 = vadd.f32 %v3083_v2, %v3012_v38 }
0x1538   :  { %3134 = vrot.lane.b32.xlu0 %v3070_v32, %s6300_s6  ;;  %3234 = vrot.lane.b32.xlu2 %v3084_v9, %s6300_s6  ;;  %v3191_v12 = vadd.f32 %v3189_v57, %v3084_v9  ;;  %v3091_v59 = vadd.f32 %v3089_v10, %v3070_v32 }
0x153a   :  { %v5426_v21 = vmul.f32 -1.442695, %v3191_v12  ;;  %v6051_v11 = vpop.eup %6050  ;;  %v5422_v1 = vmul.f32 -1.442695, %v3091_v59 }
0x153b   :  { %v3098_v28 = vadd.f32 1.0, %v6051_v11 }
0x153c   :  { %6052 = vpow2.f32 %v5426_v21 }
0x153d   :  { %6054 = vrcp.f32 %v3098_v28  ;;  %v3111_v20 = vand.u32 2147483648, %v3098_v28  ;;  %vm3105_vm0 = vweird.f32 %v3098_v28  ;;  %v3109_v3 = vand.u32 2147483647, %v3098_v28 }
0x153f   :  { %v3112_v4 = vor.u32 1.1754944e-38, %v3111_v20  ;;  %vm3110_vm5 = vcmp.eq.f32.partialorder %v3109_v3, 8.507059e+37 }
0x1542   :  { %v6053_v33 = vpop.eup %6052 }
0x1543   :  { %v3199_v37 = vadd.f32 1.0, %v6053_v33  ;;  %v6055_v63 = vpop.eup %6054 }
0x1544   :  { %v3101_v48 = vmul.f32 %v6055_v63, %v3098_v28  ;;  %vm3106_vm15 = vweird.f32 %v6055_v63 }
0x1545   :  { %6056 = vrcp.f32 %v3199_v37  ;;  %vm3107_vm4 = vmor %vm3105_vm0, %vm3106_vm15  ;;  %v3226_v30 = vand.u32 2147483648, %v3199_v37  ;;  %vm3220_vm7 = vweird.f32 %v3199_v37  ;;  %v3224_v62 = vand.u32 2147483647, %v3199_v37 }
0x1546   :  { %6058 = vpow2.f32 %v5425_v7  ;;  %v3102_v0 = vsub.f32 1.0, %v3101_v48 }
0x1547   :  { %6060 = vpow2.f32 %v5422_v1  ;;  %v3227_v42 = vor.u32 1.1754944e-38, %v3226_v30  ;;  %vm3225_vm9 = vcmp.eq.f32.partialorder %v3224_v62, 8.507059e+37 }
0x1548   :  { %v3103_v60 = vmul.f32 %v6055_v63, %v3102_v0 }
0x154a   :  { %v3104_v46 = vadd.f32 %v6055_v63, %v3103_v60 }
0x154b   :  { %v6057_v19 = vpop.eup %6056 }
0x154c   :  { %v6059_v50 = vpop.eup %6058  ;;  %v3216_v43 = vmul.f32 %v6057_v19, %v3199_v37  ;;  %v3108_v27 = vsel %vm3107_vm4, %v6055_v63, %v3104_v46  ;;  %vm3221_vm6 = vweird.f32 %v6057_v19 }
0x154d   :  { %v3198_v39 = vadd.f32 1.0, %v6059_v50  ;;  %v6061_v44 = vpop.eup %6060  ;;  %v7741_v26 = vsel %vm3110_vm5, %v3112_v4, %v3108_v27  ;;  %vm3222_vm8 = vmor %vm3220_vm7, %vm3221_vm6 }
0x154e   :  { %v3217_v14 = vsub.f32 1.0, %v3216_v43  ;;  %v3099_v23 = vadd.f32 1.0, %v6061_v44 }
0x154f   :  { %6062 = vrcp.f32 %v3198_v39  ;;  %v3211_v22 = vand.u32 2147483648, %v3198_v39  ;;  %vm3205_vm11 = vweird.f32 %v3198_v39  ;;  %v3209_v17 = vand.u32 2147483647, %v3198_v39 }
0x1550   :  { %v3218_v56 = vmul.f32 %v6057_v19, %v3217_v14  ;;  %6064 = vrcp.f32 %v3099_v23  ;;  %v3126_v21 = vand.u32 2147483648, %v3099_v23  ;;  %vm3120_vm15 = vweird.f32 %v3099_v23 }
0x1551   :  { %v3212_v32 = vor.u32 1.1754944e-38, %v3211_v22  ;;  %vm3210_vm13 = vcmp.eq.f32.partialorder %v3209_v17, 8.507059e+37  ;;  %v3124_v11 = vand.u32 2147483647, %v3099_v23  ;;  %v5779_v22 = vld [vmem:[#allocation7 + $0x14] sm:$0xf] }
0x1552   :  { %v3219_v41 = vadd.f32 %v6057_v19, %v3218_v56  ;;  %v3127_v33 = vor.u32 1.1754944e-38, %v3126_v21  ;;  %v5441_v17 = vld [vmem:[#allocation7 + $0x18] sm:$0xf0] }
0x1553   :  { %vm3125_vm4 = vcmp.eq.f32.partialorder %v3124_v11, 8.507059e+37 }
0x1554   :  { %v3223_v40 = vsel %vm3222_vm8, %v6057_v19, %v3219_v41 }
0x1555   :  { %v6063_v13 = vpop.eup %6062  ;;  %v7745_v47 = vsel %vm3225_vm9, %v3227_v42, %v3223_v40  ;;  %v5784_v40 = vld [vmem:[#allocation7 + $0x34] sm:$0xf0] }
0x1556   :  { %v3201_v34 = vmul.f32 %v6063_v13, %v3198_v39  ;;  %v6065_v25 = vpop.eup %6064  ;;  %vm3206_vm10 = vweird.f32 %v6063_v13  ;;  %v3152_v39 = vsub.f32 1.0, %v7741_v26  ;;  %v3253_v31 = vsub.f32 1.0, %v7745_v47 }
0x1557   :  { %v3116_v38 = vmul.f32 %v6065_v25, %v3099_v23  ;;  %vm3207_vm12 = vmor %vm3205_vm11, %vm3206_vm10  ;;  %vm3121_vm14 = vweird.f32 %v6065_v25  ;;  %v3265_v56 = vmul.f32 %v7745_v47, %v7708_v45 }
0x1558   :  { %v3202_v61 = vsub.f32 1.0, %v3201_v34  ;;  %vm3122_vm0 = vmor %vm3120_vm15, %vm3121_vm14  ;;  %v5783_v34 = vld [vmem:[#allocation7 + $0x34] sm:$0xf] }
0x1559   :  { %v3117_v51 = vsub.f32 1.0, %v3116_v38 }
0x155a   :  { %v3203_v36 = vmul.f32 %v6063_v13, %v3202_v61 }
0x155b   :  { %v3118_v2 = vmul.f32 %v6065_v25, %v3117_v51  ;;  %v5780_v51 = vld [vmem:[#allocation7 + $0x14] sm:$0xf0] }
0x155c   :  { %v3204_v58 = vadd.f32 %v6063_v13, %v3203_v36  ;;  %v5449_v36 = vld [vmem:[#allocation7 + $0x28] sm:$0xf0] }
0x155d   :  { %v3119_v12 = vadd.f32 %v6065_v25, %v3118_v2  ;;  %v5444_v2 = vor.u32 %v5779_v22, %v5441_v17 }
0x155e   :  { %v3208_v16 = vsel %vm3207_vm12, %v6063_v13, %v3204_v58  ;;  %v5439_v58 = vld [vmem:[#allocation7 + $0x10] sm:$0xf] }
0x155f   :  { %v3213_v6 = vsel %vm3210_vm13, %v3212_v32, %v3208_v16  ;;  %v3123_v28 = vsel %vm3122_vm0, %v6065_v25, %v3119_v12  ;;  %v5781_v25 = vld [vmem:[#allocation7 + $0x24] sm:$0xf]  ;;  %v5440_v16 = vor.u32 %v5780_v51, %v5439_v58  ;;  %v5431_v32 = vld [vmem:[#allocation7] sm:$0xf]  ;;  %v5433_v12 = vld [vmem:[#allocation7 + $0x8] sm:$0xf0] }
0x1560   :  { %v3128_v37 = vsel %vm3125_vm4, %v3127_v33, %v3123_v28  ;;  %v3264_v13 = vmul.f32 %v3213_v6, %v7705_v15 }
0x1561   :  { %v3153_v20 = vsub.f32 1.0, %v3128_v37 }
0x158a   :  { %v3133_v24 = vpop.permute.xlu2 %3132 }
0x158b   :  { %v3138_v49 = vmul.f32 %v3133_v24, %v7741_v26 }
0x158d   :  { %3142 = vrot.lane.b32.xlu0 %v3138_v49, %s6300_s6 }
0x1592   :  { %v3235_v8 = vpop.permute.xlu2 %3234 }
0x1593   :  { %v3239_v54 = vmul.f32 %v3235_v8, %v7745_v47  ;;  %v5457_v47 = vld [vmem:[#allocation7 + $0x38] sm:$0xf0]  ;;  %v5447_v8 = vld [vmem:[#allocation7 + $0x20] sm:$0xf] }
0x1594   :  { %v5460_v61 = vor.u32 %v5783_v34, %v5457_v47 }
0x1595   :  { %3244 = vrot.lane.b32.xlu0 %v3239_v54, %s6300_s6  ;;  %v5782_v54 = vld [vmem:[#allocation7 + $0x24] sm:$0xf0] }
0x1596   :  { %v5448_v38 = vor.u32 %v5782_v54, %v5447_v8  ;;  %3348 = vmatpush.bf16.msra.mxu3 %v5460_v61 }
0x159d   :  { %3166 = vrot.lane.b32.xlu0 %v7705_v15, %s6302_s5  ;;  %v5452_v15 = vor.u32 %v5781_v25, %v5449_v36 }
0x159f   :  { %3349 = vmatpush.bf16.msra.mxu3 %v5452_v15 }
0x15a2   :  { %v3233_v9 = vpop.permute.xlu1 %3232 }
0x15a3   :  { %v3238_v35 = vmul.f32 %v3233_v9, %v3213_v6  ;;  %v5778_v9 = vld [vmem:[#allocation7 + $0x4] sm:$0xf0]  ;;  %3350 = vmatpush.bf16.msra.mxu3 %v5444_v2 }
0x15a5   :  { %3242 = vrot.lane.b32.xlu2 %v3238_v35, %s6300_s6  ;;  %v5777_v35 = vld [vmem:[#allocation7 + $0x4] sm:$0xf] }
0x15a6   :  { %v5436_v21 = vor.u32 %v5777_v35, %v5433_v12 }
0x15a8   :  { %3351 = vmatpush.bf16.msra.mxu3 %v5436_v21 }
0x15aa   :  { %v3135_v18 = vpop.permute.xlu0 %3134 }
0x15ab   :  { %v3139_v63 = vmul.f32 %v3135_v18, %v3128_v37 }
0x15ad   :  { %3144 = vrot.lane.b32.xlu1 %v3139_v63, %s6300_s6  ;;  %v3281_v63 = vld [vmem:[%s8305_s8] sm:$0x3] }
0x15ff   :  { %v3143_v7 = vpop.permute.xlu0 %3142 }
0x1600   :  { %v3148_v48 = vadd.f32 %v3143_v7, %v3088_v53  ;;  %v3243_v53 = vpop.permute.xlu2 %3242  ;;  %v3283_v7 = vperm.slane %v3281_v63, 0 }
0x1601   :  { %v3248_v55 = vadd.f32 %v3243_v53, %v3188_v29 }
0x1602   :  { %6066 = vtanh.f32 %v3148_v48  ;;  %v3284_v48 = vperm.slane %v3281_v63, 1 }
0x1607   :  { %v3245_v59 = vpop.permute.xlu0 %3244 }
0x1608   :  { %v3249_v0 = vadd.f32 %v3245_v59, %v3189_v57  ;;  %v6067_v19 = vpop.eup %6066 }
0x1609   :  { %3156 = vrot.lane.b32.xlu1 %v6067_v19, %s6301_s26 }
0x160a   :  { %6068 = vtanh.f32 %v3249_v0 }
0x160f   :  { %v3167_v43 = vpop.permute.xlu0 %3166 }
0x1610   :  { %v6069_v1 = vpop.eup %6068  ;;  %v3172_v14 = vmul.f32 %v3167_v43, %v7741_v26  ;;  %v3252_v26 = vsub.f32 1.0, %v3213_v6  ;;  %v5432_v6 = vor.u32 %v5778_v9, %v5431_v32 }
0x1611   :  { %3258 = vrot.lane.b32.xlu0 %v6069_v1, %s6301_s26  ;;  %3168 = vrot.lane.b32.xlu1 %v7708_v45, %s6302_s5  ;;  %v5455_v45 = vld [vmem:[#allocation7 + $0x30] sm:$0xf] }
0x1612   :  { %v5456_v42 = vor.u32 %v5784_v40, %v5455_v45 }
0x1614   :  { %3334 = vmatpush.bf16.msra.mxu2 %v5456_v42 }
0x1618   :  { %3335 = vmatpush.bf16.msra.mxu2 %v5448_v38 }
0x161c   :  { %3336 = vmatpush.bf16.msra.mxu2 %v5440_v16 }
0x161f   :  { %v3145_v50 = vpop.permute.xlu1 %3144 }
0x1620   :  { %v3149_v52 = vadd.f32 %v3145_v50, %v3089_v10  ;;  %3337 = vmatpush.bf16.msra.mxu2 %v5432_v6 }
0x1622   :  { %6070 = vtanh.f32 %v3149_v52 }
0x1623   :  { %6072 = vtanh.f32 %v3248_v55 }
0x1628   :  { %v6071_v57 = vpop.eup %6070 }
0x1629   :  { %3158 = vrot.lane.b32.xlu2 %v6071_v57, %s6301_s26  ;;  %v6073_v60 = vpop.eup %6072  ;;  %v7808_v57 = vld [vmem:[#allocation2 + $0x54] sm:$0xf] }
0x1631   :  { %3256 = vrot.lane.b32.xlu2 %v6073_v60, %s6301_s26  ;;  %v3460_v60 = vunpack.c.l.bf16 %v7808_v57 }
0x167b   :  { %v3157_v46 = vpop.permute.xlu1 %3156 }
0x167c   :  { %v3162_v5 = vmul.f32 %v3157_v46, %v3152_v39 }
0x167e   :  { %v3174_v10 = vadd.f32 %v3172_v14, %v3162_v5  ;;  %v7813_v5 = vld [vmem:[#allocation2 + $0x20] sm:$0xf] }
0x1680   :  { %3178 = vrot.lane.b32.xlu1 %v3174_v10, %s6301_s26  ;;  %v3360_v10 = vunpack.c.l.bf16 %v7813_v5 }
0x1683   :  { %v3159_v29 = vpop.permute.xlu2 %3158  ;;  %v3259_v3 = vpop.permute.xlu0 %3258 }
0x1684   :  { %v3163_v44 = vmul.f32 %v3159_v29, %v3153_v20  ;;  %v3169_v27 = vpop.permute.xlu1 %3168  ;;  %v3263_v4 = vmul.f32 %v3259_v3, %v3253_v31  ;;  %v7818_v31 = vld [vmem:[#allocation2 + $0x28] sm:$0xf]  ;;  %v7820_v3 = vld [vmem:[#allocation2 + $0x5c] sm:$0xf] }
0x1685   :  { %v3173_v23 = vmul.f32 %v3169_v27, %v3128_v37  ;;  %v3361_v27 = vunpack.c.l.bf16 %v7818_v31 }
0x1686   :  { %v3267_v24 = vadd.f32 %v3265_v56, %v3263_v4  ;;  %v3461_v56 = vunpack.c.l.bf16 %v7820_v3 }
0x1687   :  { %v3175_v49 = vadd.f32 %v3173_v23, %v3163_v44 }
0x1688   :  { %5428 = vst.msk [vmem:[%s8306_s9 + $0x68] sm:$0xff] %vm577_vm1, %v3267_v24 }
0x1689   :  { %3180 = vrot.lane.b32.xlu2 %v3175_v49, %s6301_s26 }
0x168b   :  { %v3257_v41 = vpop.permute.xlu2 %3256 }
0x168c   :  { %v3262_v30 = vmul.f32 %v3257_v41, %v3252_v26 }
0x168e   :  { %v3266_v62 = vadd.f32 %v3264_v13, %v3262_v30 }
0x1690   :  { %5427 = vst.msk [vmem:[%s8306_s9 + $0x60] sm:$0xff] %vm577_vm1, %v3266_v62 }
0x16e3   :  { %v3181_v11 = vpop.permute.xlu2 %3180 }
0x16e4   :  { %5424 = vst.msk [vmem:[%s8306_s9 + $0x18] sm:$0xff] %vm488_vm2, %v3181_v11  ;;  %v7788_v33 = vsel %vm488_vm2, %v3181_v11, %v3267_v24 }
0x16f2   :  { %v3179_v28 = vpop.permute.xlu1 %3178 }
0x16f3   :  { %5423 = vst.msk [vmem:[%s8306_s9 + $0x10] sm:$0xff] %vm488_vm2, %v3179_v28  ;;  %v7795_v18 = vsel %vm488_vm2, %v3179_v28, %v3266_v62 }
0x16f4   :  { %v3272_v37 = vpack.c.bf16 %v7788_v33, %v7795_v18 }
0x16f6   :  { %5461 = vmatmul.msk.bf16.vlgmr.msra.gmra.mxu2 %vm363_vm3, %v3272_v37  ;;  %5462 = vmatmul.msk.bf16.vlgmr.msra.gmra.mxu3 %vm363_vm3, %v3272_v37 }
0x1779   :  { %v3339_v59 = vpop.f32.mrf.mxu2  ;;  %v3353_v0 = vpop.f32.mrf.mxu3 }
0x177a   :  { %v3340_v19 = vadd.f32 %v3339_v59, %v3283_v7  ;;  %v3354_v1 = vadd.f32 %v3353_v0, %v3284_v48 }
0x177c   :  { %3504 = vrot.lane.b32.xlu2 %v3354_v1, %s6300_s6  ;;  %3404 = vrot.lane.b32.xlu0 %v3340_v19, %s6300_s6  ;;  %v3462_v43 = vadd.f32 %v3460_v60, %v3354_v1  ;;  %v3362_v20 = vadd.f32 %v3360_v10, %v3340_v19 }
0x177e   :  { %v5467_v39 = vmul.f32 -1.442695, %v3462_v43  ;;  %v5463_v44 = vmul.f32 -1.442695, %v3362_v20 }
0x1780   :  { %6074 = vpow2.f32 %v5467_v39 }
0x1781   :  { %v3341_v50 = vpop.f32.mrf.mxu2  ;;  %v3355_v52 = vpop.f32.mrf.mxu3 }
0x1782   :  { %v3342_v53 = vadd.f32 %v3341_v50, %v3283_v7  ;;  %v3356_v55 = vadd.f32 %v3355_v52, %v3284_v48 }
0x1784   :  { %3406 = vrot.lane.b32.xlu1 %v3342_v53, %s6300_s6  ;;  %3506 = vrot.lane.b32.xlu0 %v3356_v55, %s6300_s6  ;;  %v3363_v23 = vadd.f32 %v3361_v27, %v3342_v53  ;;  %v3463_v24 = vadd.f32 %v3461_v56, %v3356_v55 }
0x1786   :  { %v6075_v46 = vpop.eup %6074  ;;  %v5464_v26 = vmul.f32 -1.442695, %v3363_v23  ;;  %v5468_v41 = vmul.f32 -1.442695, %v3463_v24 }
0x1787   :  { %v3470_v14 = vadd.f32 1.0, %v6075_v46 }
0x1789   :  { %6076 = vrcp.f32 %v3470_v14  ;;  %v3483_v40 = vand.u32 2147483648, %v3470_v14  ;;  %vm3477_vm6 = vweird.f32 %v3470_v14  ;;  %v3481_v34 = vand.u32 2147483647, %v3470_v14 }
0x178a   :  { %6078 = vpow2.f32 %v5463_v44 }
0x178b   :  { %6080 = vpow2.f32 %v5464_v26  ;;  %v3484_v54 = vor.u32 1.1754944e-38, %v3483_v40  ;;  %vm3482_vm8 = vcmp.eq.f32.partialorder %v3481_v34, 8.507059e+37 }
0x178c   :  { %6082 = vpow2.f32 %v5468_v41 }
0x178f   :  { %v6077_v29 = vpop.eup %6076 }
0x1790   :  { %v3473_v4 = vmul.f32 %v6077_v29, %v3470_v14  ;;  %v6079_v13 = vpop.eup %6078  ;;  %vm3478_vm5 = vweird.f32 %v6077_v29 }
0x1791   :  { %v3370_v62 = vadd.f32 1.0, %v6079_v13  ;;  %v6081_v42 = vpop.eup %6080  ;;  %vm3479_vm7 = vmor %vm3477_vm6, %vm3478_vm5 }
0x1792   :  { %v3474_v49 = vsub.f32 1.0, %v3473_v4  ;;  %v6083_v47 = vpop.eup %6082  ;;  %v3371_v61 = vadd.f32 1.0, %v6081_v42 }
0x1793   :  { %6084 = vrcp.f32 %v3370_v62  ;;  %v3471_v25 = vadd.f32 1.0, %v6083_v47  ;;  %v3383_v21 = vand.u32 2147483648, %v3370_v62  ;;  %vm3377_vm10 = vweird.f32 %v3370_v62 }
0x1794   :  { %v3475_v30 = vmul.f32 %v6077_v29, %v3474_v49  ;;  %6086 = vrcp.f32 %v3371_v61  ;;  %v3381_v11 = vand.u32 2147483647, %v3370_v62  ;;  %vm3392_vm15 = vweird.f32 %v3371_v61 }
0x1795   :  { %6088 = vrcp.f32 %v3471_v25  ;;  %v3384_v7 = vor.u32 1.1754944e-38, %v3383_v21  ;;  %v3398_v50 = vand.u32 2147483648, %v3371_v61  ;;  %v3498_v52 = vand.u32 2147483648, %v3471_v25  ;;  %v5499_v21 = vld [vmem:[#allocation7 + $0x38] sm:$0xf0] }
0x1796   :  { %v3476_v45 = vadd.f32 %v6077_v29, %v3475_v30  ;;  %vm3382_vm12 = vcmp.eq.f32.partialorder %v3381_v11, 8.507059e+37  ;;  %v3396_v53 = vand.u32 2147483647, %v3371_v61  ;;  %vm3492_vm4 = vweird.f32 %v3471_v25  ;;  %v5489_v11 = vld [vmem:[#allocation7 + $0x20] sm:$0xf] }
0x1797   :  { %v3496_v55 = vand.u32 2147483647, %v3471_v25  ;;  %v3399_v46 = vor.u32 1.1754944e-38, %v3398_v50  ;;  %v3499_v14 = vor.u32 1.1754944e-38, %v3498_v52 }
0x1798   :  { %v3480_v8 = vsel %vm3479_vm7, %v6077_v29, %v3476_v45  ;;  %vm3397_vm6 = vcmp.eq.f32.partialorder %v3396_v53, 8.507059e+37  ;;  %v5473_v53 = vld [vmem:[#allocation7] sm:$0xf] }
0x1799   :  { %v7828_v38 = vsel %vm3482_vm8, %v3484_v54, %v3480_v8  ;;  %v6085_v58 = vpop.eup %6084  ;;  %vm3497_vm7 = vcmp.eq.f32.partialorder %v3496_v55, 8.507059e+37  ;;  %v5786_v55 = vld [vmem:[#allocation7 + $0x4] sm:$0xf0] }
0x179a   :  { %v3373_v51 = vmul.f32 %v6085_v58, %v3370_v62  ;;  %v6087_v22 = vpop.eup %6086  ;;  %vm3378_vm9 = vweird.f32 %v6085_v58 }
0x179b   :  { %v6089_v16 = vpop.eup %6088  ;;  %v3388_v32 = vmul.f32 %v6087_v22, %v3371_v61  ;;  %vm3379_vm11 = vmor %vm3377_vm10, %vm3378_vm9  ;;  %vm3393_vm13 = vweird.f32 %v6087_v22 }
0x179c   :  { %v3374_v17 = vsub.f32 1.0, %v3373_v51  ;;  %v3488_v9 = vmul.f32 %v6089_v16, %v3471_v25  ;;  %vm3493_vm14 = vweird.f32 %v6089_v16  ;;  %vm3394_vm0 = vmor %vm3392_vm15, %vm3393_vm13  ;;  %v3536_v51 = vmul.f32 %v7828_v38, %v7795_v18 }
0x179d   :  { %v3389_v35 = vsub.f32 1.0, %v3388_v32  ;;  %vm3494_vm5 = vmor %vm3492_vm4, %vm3493_vm14 }
0x179e   :  { %v3375_v2 = vmul.f32 %v6085_v58, %v3374_v17  ;;  %v3489_v12 = vsub.f32 1.0, %v3488_v9 }
0x179f   :  { %v3390_v37 = vmul.f32 %v6087_v22, %v3389_v35  ;;  %v5497_v35 = vld [vmem:[#allocation7 + $0x30] sm:$0xf] }
0x17a0   :  { %v3376_v6 = vadd.f32 %v6085_v58, %v3375_v2  ;;  %v3490_v63 = vmul.f32 %v6089_v16, %v3489_v12 }
0x17a1   :  { %v3391_v19 = vadd.f32 %v6087_v22, %v3390_v37 }
0x17a2   :  { %v3380_v28 = vsel %vm3379_vm11, %v6085_v58, %v3376_v6  ;;  %v3491_v1 = vadd.f32 %v6089_v16, %v3490_v63  ;;  %v5789_v63 = vld [vmem:[#allocation7 + $0x24] sm:$0xf] }
0x17a3   :  { %v3385_v59 = vsel %vm3382_vm12, %v3384_v7, %v3380_v28  ;;  %v3395_v43 = vsel %vm3394_vm0, %v6087_v22, %v3391_v19  ;;  %v5790_v28 = vld [vmem:[#allocation7 + $0x24] sm:$0xf0]  ;;  %v5491_v7 = vld [vmem:[#allocation7 + $0x28] sm:$0xf0]  ;;  %v5787_v19 = vld [vmem:[#allocation7 + $0x14] sm:$0xf] }
0x17a4   :  { %v3495_v39 = vsel %vm3494_vm5, %v6089_v16, %v3491_v1  ;;  %v3400_v29 = vsel %vm3397_vm6, %v3399_v46, %v3395_v43  ;;  %v3424_v5 = vsub.f32 1.0, %v3385_v59  ;;  %v5483_v1 = vld [vmem:[#allocation7 + $0x18] sm:$0xf0]  ;;  %v5474_v43 = vor.u32 %v5786_v55, %v5473_v53  ;;  %v5785_v46 = vld [vmem:[#allocation7 + $0x4] sm:$0xf] }
0x17a5   :  { %v3500_v44 = vsel %vm3497_vm7, %v3499_v14, %v3495_v39  ;;  %v3425_v54 = vsub.f32 1.0, %v3400_v29  ;;  %v5486_v52 = vor.u32 %v5787_v19, %v5483_v1  ;;  %v5475_v14 = vld [vmem:[#allocation7 + $0x8] sm:$0xf0] }
0x17a6   :  { %v3525_v16 = vsub.f32 1.0, %v3500_v44  ;;  %v3537_v32 = vmul.f32 %v3500_v44, %v7788_v33 }
0x17d6   :  { %v3505_v36 = vpop.permute.xlu2 %3504 }
0x17d7   :  { %v3510_v15 = vmul.f32 %v3505_v36, %v7828_v38 }
0x17d9   :  { %3514 = vrot.lane.b32.xlu0 %v3510_v15, %s6300_s6  ;;  %v3524_v15 = vsub.f32 1.0, %v7828_v38  ;;  %v5791_v38 = vld [vmem:[#allocation7 + $0x34] sm:$0xf] }
0x17da   :  { %v5502_v37 = vor.u32 %v5791_v38, %v5499_v21 }
0x17dc   :  { %3620 = vmatpush.bf16.msrb.mxu3 %v5502_v37 }
0x17ee   :  { %v3405_v48 = vpop.permute.xlu0 %3404 }
0x17ef   :  { %v3410_v0 = vmul.f32 %v3405_v48, %v3385_v59  ;;  %v5490_v48 = vor.u32 %v5790_v28, %v5489_v11 }
0x17f1   :  { %3414 = vrot.lane.b32.xlu1 %v3410_v0, %s6300_s6  ;;  %v5788_v0 = vld [vmem:[#allocation7 + $0x14] sm:$0xf0] }
0x17f6   :  { %v3407_v20 = vpop.permute.xlu1 %3406  ;;  %v3507_v4 = vpop.permute.xlu0 %3506 }
0x17f7   :  { %v3411_v23 = vmul.f32 %v3407_v20, %v3400_v29  ;;  %v3511_v24 = vmul.f32 %v3507_v4, %v3500_v44  ;;  %v5478_v20 = vor.u32 %v5785_v46, %v5475_v14 }
0x17f9   :  { %3416 = vrot.lane.b32.xlu2 %v3411_v23, %s6300_s6  ;;  %3516 = vrot.lane.b32.xlu1 %v3511_v24, %s6300_s6  ;;  %v3553_v24 = vld [vmem:[%s8305_s8] sm:$0x3] }
0x1801   :  { %3438 = vrot.lane.b32.xlu1 %v7795_v18, %s6302_s5  ;;  %v5792_v18 = vld [vmem:[#allocation7 + $0x34] sm:$0xf0] }
0x1802   :  { %v5498_v12 = vor.u32 %v5792_v18, %v5497_v35 }
0x1804   :  { %3606 = vmatpush.bf16.msrb.mxu2 %v5498_v12 }
0x1808   :  { %3607 = vmatpush.bf16.msrb.mxu2 %v5490_v48 }
0x184b   :  { %v3515_v41 = vpop.permute.xlu0 %3514 }
0x184c   :  { %v3520_v13 = vadd.f32 %v3515_v41, %v3460_v60 }
0x1853   :  { %v3417_v49 = vpop.permute.xlu2 %3416 }
0x1854   :  { %v3421_v26 = vadd.f32 %v3417_v49, %v3361_v27  ;;  %v3555_v49 = vperm.slane %v3553_v24, 0 }
0x1856   :  { %6090 = vtanh.f32 %v3421_v26  ;;  %v3556_v26 = vperm.slane %v3553_v24, 1 }
0x1857   :  { %6092 = vtanh.f32 %v3520_v13 }
0x185c   :  { %v6091_v30 = vpop.eup %6090 }
0x185d   :  { %3430 = vrot.lane.b32.xlu0 %v6091_v30, %s6301_s26  ;;  %v6093_v45 = vpop.eup %6092 }
0x1863   :  { %v3415_v62 = vpop.permute.xlu1 %3414 }
0x1864   :  { %v3420_v40 = vadd.f32 %v3415_v62, %v3360_v10 }
0x1865   :  { %3528 = vrot.lane.b32.xlu0 %v6093_v45, %s6301_s26 }
0x1866   :  { %6094 = vtanh.f32 %v3420_v40 }
0x186b   :  { %v3517_v34 = vpop.permute.xlu1 %3516 }
0x186c   :  { %v6095_v31 = vpop.eup %6094  ;;  %v3521_v27 = vadd.f32 %v3517_v34, %v3461_v56 }
0x186d   :  { %3428 = vrot.lane.b32.xlu2 %v6095_v31, %s6301_s26 }
0x186e   :  { %6096 = vtanh.f32 %v3521_v27  ;;  %v7890_v27 = vld [vmem:[#allocation2 + $0x38] sm:$0xff]  }
0x1873   :  { %v3439_v60 = vpop.permute.xlu1 %3438 }
0x1874   :  { %v6097_v57 = vpop.eup %6096  ;;  %v3444_v42 = vmul.f32 %v3439_v60, %v3385_v59  ;;  %v5481_v59 = vld [vmem:[#allocation7 + $0x10] sm:$0xf] }
0x1875   :  { %3440 = vrot.lane.b32.xlu2 %v7788_v33, %s6302_s5  ;;  %3530 = vrot.lane.b32.xlu1 %v6097_v57, %s6301_s26  ;;  %v5494_v33 = vor.u32 %v5789_v63, %v5491_v7  ;;  %v5482_v50 = vor.u32 %v5788_v0, %v5481_v59  ;;  %v3633_v57 = vunpack.c.l.bf16 %v7890_v27 }
0x1877   :  { %3621 = vmatpush.bf16.msrb.mxu3 %v5494_v33  ;;  %3608 = vmatpush.bf16.msrb.mxu2 %v5482_v50 }
0x187b   :  { %3622 = vmatpush.bf16.msrb.mxu3 %v5486_v52  ;;  %3609 = vmatpush.bf16.msrb.mxu2 %v5474_v43 }
0x187f   :  { %3623 = vmatpush.bf16.msrb.mxu3 %v5478_v20 }
0x18c7   :  { %v3429_v10 = vpop.permute.xlu2 %3428 }
0x18c8   :  { %v3434_v47 = vmul.f32 %v3429_v10, %v3424_v5  ;;  %v7895_v10 = vld [vmem:[#allocation2 + $0x30] sm:$0xff]  }
0x18ca   :  { %v3446_v8 = vadd.f32 %v3444_v42, %v3434_v47  ;;  %v7897_v42 = vld [vmem:[#allocation2 + $0x44] sm:$0xff]   ;;  %v3632_v47 = vunpack.c.l.bf16 %v7895_v10 }
0x18cc   :  { %3450 = vrot.lane.b32.xlu2 %v3446_v8, %s6301_s26 }
0x18cf   :  { %v3431_v3 = vpop.permute.xlu0 %3430  ;;  %v3441_v56 = vpop.permute.xlu2 %3440 }
0x18d0   :  { %v3435_v61 = vmul.f32 %v3431_v3, %v3425_v54  ;;  %v3445_v25 = vmul.f32 %v3441_v56, %v3400_v29  ;;  %v3732_v54 = vunpack.c.l.bf16 %v7897_v42 }
0x18d2   :  { %v3447_v36 = vadd.f32 %v3445_v25, %v3435_v61 }
0x18d4   :  { %3452 = vrot.lane.b32.xlu0 %v3447_v36, %s6301_s26  ;;  %v7905_v36 = vld [vmem:[#allocation2 + $0x4c] sm:$0xf] }
0x18d7   :  { %v3529_v58 = vpop.permute.xlu0 %3528 }
0x18d8   :  { %v3534_v22 = vmul.f32 %v3529_v58, %v3524_v15  ;;  %v3733_v58 = vunpack.c.l.bf16 %v7905_v36 }
0x18da   :  { %v3538_v17 = vadd.f32 %v3536_v51, %v3534_v22 }
0x18dc   :  { %5469 = vst.msk [vmem:[%s8306_s9 + $0x50] sm:$0xff] %vm577_vm1, %v3538_v17 }
0x18e7   :  { %v3531_v2 = vpop.permute.xlu1 %3530 }
0x18e8   :  { %v3535_v9 = vmul.f32 %v3531_v2, %v3525_v16 }
0x18ea   :  { %v3539_v6 = vadd.f32 %v3537_v32, %v3535_v9 }
0x18ec   :  { %5470 = vst.msk [vmem:[%s8306_s9 + $0x58] sm:$0xff] %vm577_vm1, %v3539_v6 }
0x1926   :  { %v3451_v39 = vpop.permute.xlu2 %3450 }
0x1927   :  { %5465 = vst.msk [vmem:[%s8306_s9 + $0x20] sm:$0xff] %vm488_vm2, %v3451_v39  ;;  %v7870_v44 = vsel %vm488_vm2, %v3451_v39, %v3538_v17 }
0x1946   :  { %v3453_v29 = vpop.permute.xlu0 %3452 }
0x1947   :  { %5466 = vst.msk [vmem:[%s8306_s9 + $0x28] sm:$0xff] %vm488_vm2, %v3453_v29  ;;  %v7877_v4 = vsel %vm488_vm2, %v3453_v29, %v3539_v6 }
0x1948   :  { %v3544_v23 = vpack.c.bf16 %v7877_v4, %v7870_v44 }
0x194a   :  { %5503 = vmatmul.msk.bf16.vlgmr.msrb.gmra.mxu2 %vm363_vm3, %v3544_v23  ;;  %5504 = vmatmul.msk.bf16.vlgmr.msrb.gmra.mxu3 %vm363_vm3, %v3544_v23 }
0x19cd   :  { %v3611_v41 = vpop.f32.mrf.mxu2  ;;  %v3625_v13 = vpop.f32.mrf.mxu3 }
0x19ce   :  { %v3612_v30 = vadd.f32 %v3611_v41, %v3555_v49  ;;  %v3626_v62 = vadd.f32 %v3625_v13, %v3556_v26 }
0x19d0   :  { %3776 = vrot.lane.b32.xlu0 %v3626_v62, %s6300_s6  ;;  %3676 = vrot.lane.b32.xlu1 %v3612_v30, %s6300_s6  ;;  %v3634_v3 = vadd.f32 %v3632_v47, %v3612_v30  ;;  %v3734_v56 = vadd.f32 %v3732_v54, %v3626_v62 }
0x19d2   :  { %v5505_v25 = vmul.f32 -1.442695, %v3634_v3  ;;  %v5509_v15 = vmul.f32 -1.442695, %v3734_v56 }
0x19d5   :  { %v3613_v45 = vpop.f32.mrf.mxu2  ;;  %v3627_v40 = vpop.f32.mrf.mxu3 }
0x19d6   :  { %v3614_v34 = vadd.f32 %v3613_v45, %v3555_v49  ;;  %v3628_v31 = vadd.f32 %v3627_v40, %v3556_v26 }
0x19d8   :  { %3678 = vrot.lane.b32.xlu2 %v3614_v34, %s6300_s6  ;;  %3778 = vrot.lane.b32.xlu1 %v3628_v31, %s6300_s6  ;;  %v3635_v60 = vadd.f32 %v3633_v57, %v3614_v34  ;;  %v3735_v51 = vadd.f32 %v3733_v58, %v3628_v31 }
0x19da   :  { %v5506_v5 = vmul.f32 -1.442695, %v3635_v60  ;;  %v5510_v17 = vmul.f32 -1.442695, %v3735_v51 }
0x19dc   :  { %6098 = vpow2.f32 %v5506_v5 }
0x19e2   :  { %v6099_v8 = vpop.eup %6098 }
0x19e3   :  { %v3643_v61 = vadd.f32 1.0, %v6099_v8 }
0x19e5   :  { %6100 = vrcp.f32 %v3643_v61  ;;  %v3670_v37 = vand.u32 2147483648, %v3643_v61  ;;  %vm3664_vm9 = vweird.f32 %v3643_v61  ;;  %v3668_v63 = vand.u32 2147483647, %v3643_v61 }
0x19e6   :  { %6102 = vpow2.f32 %v5505_v25 }
0x19e7   :  { %6104 = vpow2.f32 %v5509_v15  ;;  %v3671_v59 = vor.u32 1.1754944e-38, %v3670_v37  ;;  %vm3669_vm11 = vcmp.eq.f32.partialorder %v3668_v63, 8.507059e+37  ;;  %v5539_v63 = vld [vmem:[#allocation7 + $0x30] sm:$0xf] }
0x19e8   :  { %6106 = vpow2.f32 %v5510_v17 }
0x19eb   :  { %v6101_v22 = vpop.eup %6100 }
0x19ec   :  { %v6103_v16 = vpop.eup %6102  ;;  %v3660_v32 = vmul.f32 %v6101_v22, %v3643_v61  ;;  %vm3665_vm8 = vweird.f32 %v6101_v22 }
0x19ed   :  { %v6105_v2 = vpop.eup %6104  ;;  %v3642_v9 = vadd.f32 1.0, %v6103_v16  ;;  %vm3666_vm10 = vmor %vm3664_vm9, %vm3665_vm8 }
0x19ee   :  { %v3742_v6 = vadd.f32 1.0, %v6105_v2  ;;  %v3661_v35 = vsub.f32 1.0, %v3660_v32  ;;  %v6107_v18 = vpop.eup %6106 }
0x19ef   :  { %6108 = vrcp.f32 %v3642_v9  ;;  %v3743_v12 = vadd.f32 1.0, %v6107_v18  ;;  %vm3649_vm14 = vweird.f32 %v3642_v9  ;;  %v3655_v23 = vand.u32 2147483648, %v3642_v9 }
0x19f0   :  { %6110 = vrcp.f32 %v3742_v6  ;;  %v3662_v38 = vmul.f32 %v6101_v22, %v3661_v35  ;;  %v3755_v29 = vand.u32 2147483648, %v3742_v6  ;;  %vm3749_vm15 = vweird.f32 %v3742_v6 }
0x19f1   :  { %6112 = vrcp.f32 %v3743_v12  ;;  %v3753_v24 = vand.u32 2147483647, %v3742_v6  ;;  %v3653_v49 = vand.u32 2147483647, %v3642_v9  ;;  %v3656_v62 = vor.u32 1.1754944e-38, %v3655_v23 }
0x19f2   :  { %v3663_v11 = vadd.f32 %v6101_v22, %v3662_v38  ;;  %v3756_v30 = vor.u32 1.1754944e-38, %v3755_v29  ;;  %v3770_v3 = vand.u32 2147483648, %v3743_v12  ;;  %vm3764_vm8 = vweird.f32 %v3743_v12 }
0x19f3   :  { %vm3754_vm5 = vcmp.eq.f32.partialorder %v3753_v24, 8.507059e+37  ;;  %vm3654_vm6 = vcmp.eq.f32.partialorder %v3653_v49, 8.507059e+37  ;;  %v3768_v56 = vand.u32 2147483647, %v3743_v12 }
0x19f4   :  { %v3667_v7 = vsel %vm3666_vm10, %v6101_v22, %v3663_v11  ;;  %v3771_v25 = vor.u32 1.1754944e-38, %v3770_v3  ;;  %v5794_v3 = vld [vmem:[#allocation7 + $0x4] sm:$0xf0] }
0x19f5   :  { %v6109_v21 = vpop.eup %6108  ;;  %v7910_v19 = vsel %vm3669_vm11, %v3671_v59, %v3667_v7  ;;  %vm3769_vm10 = vcmp.eq.f32.partialorder %v3768_v56, 8.507059e+37  ;;  %v5800_v7 = vld [vmem:[#allocation7 + $0x34] sm:$0xf0]  ;;  %v5531_v59 = vld [vmem:[#allocation7 + $0x20] sm:$0xf] }
0x19f6   :  { %v6111_v28 = vpop.eup %6110  ;;  %v3645_v33 = vmul.f32 %v6109_v21, %v3642_v9  ;;  %vm3650_vm12 = vweird.f32 %v6109_v21 }
0x19f7   :  { %v3745_v48 = vmul.f32 %v6111_v28, %v3742_v6  ;;  %v6113_v53 = vpop.eup %6112  ;;  %vm3750_vm13 = vweird.f32 %v6111_v28  ;;  %vm3651_vm0 = vmor %vm3649_vm14, %vm3650_vm12 }
0x19f8   :  { %v3646_v52 = vsub.f32 1.0, %v3645_v33  ;;  %v3760_v39 = vmul.f32 %v6113_v53, %v3743_v12  ;;  %vm3751_vm4 = vmor %vm3749_vm15, %vm3750_vm13  ;;  %vm3765_vm7 = vweird.f32 %v6113_v53  ;;  %v5541_v33 = vld [vmem:[#allocation7 + $0x38] sm:$0xf0] }
0x19f9   :  { %v3746_v50 = vsub.f32 1.0, %v3745_v48  ;;  %vm3766_vm9 = vmor %vm3764_vm8, %vm3765_vm7  ;;  %v5799_v48 = vld [vmem:[#allocation7 + $0x34] sm:$0xf] }
0x19fa   :  { %v3647_v43 = vmul.f32 %v6109_v21, %v3646_v52  ;;  %v3761_v20 = vsub.f32 1.0, %v3760_v39  ;;  %v3697_v39 = vsub.f32 1.0, %v7910_v19 }
0x19fb   :  { %v3747_v55 = vmul.f32 %v6111_v28, %v3746_v50  ;;  %v5544_v50 = vor.u32 %v5799_v48, %v5541_v33 }
0x19fc   :  { %v3648_v14 = vadd.f32 %v6109_v21, %v3647_v43  ;;  %v3762_v13 = vmul.f32 %v6113_v53, %v3761_v20 }
0x19fd   :  { %v3748_v46 = vadd.f32 %v6111_v28, %v3747_v55  ;;  %3892 = vmatpush.bf16.msra.mxu3 %v5544_v50 }
0x19fe   :  { %v3652_v41 = vsel %vm3651_vm0, %v6109_v21, %v3648_v14  ;;  %v3763_v8 = vadd.f32 %v6113_v53, %v3762_v13 }
0x19ff   :  { %v3752_v26 = vsel %vm3751_vm4, %v6111_v28, %v3748_v46  ;;  %v3657_v31 = vsel %vm3654_vm6, %v3656_v62, %v3652_v41  ;;  %v5533_v62 = vld [vmem:[#allocation7 + $0x28] sm:$0xf0] }
0x1a00   :  { %v7914_v40 = vsel %vm3754_vm5, %v3756_v30, %v3752_v26  ;;  %v3767_v61 = vsel %vm3766_vm9, %v6113_v53, %v3763_v8  ;;  %v5797_v30 = vld [vmem:[#allocation7 + $0x24] sm:$0xf]  ;;  %v5515_v8 = vld [vmem:[#allocation7] sm:$0xf] }
0x1a01   :  { %v3772_v15 = vsel %vm3769_vm10, %v3771_v25, %v3767_v61  ;;  %v3796_v24 = vsub.f32 1.0, %v7914_v40  ;;  %v3808_v26 = vmul.f32 %v7914_v40, %v7870_v44  ;;  %v5517_v61 = vld [vmem:[#allocation7 + $0x8] sm:$0xf0] }
0x1a02   :  { %v3797_v12 = vsub.f32 1.0, %v3772_v15  ;;  %v3809_v11 = vmul.f32 %v3772_v15, %v7877_v4 }
0x1a32   :  { %v3679_v0 = vpop.permute.xlu2 %3678 }
0x1a33   :  { %v3683_v1 = vmul.f32 %v3679_v0, %v7910_v19  ;;  %v5798_v0 = vld [vmem:[#allocation7 + $0x24] sm:$0xf0] }
0x1a34   :  { %v5532_v53 = vor.u32 %v5798_v0, %v5531_v59  ;;  %v4004_v59 = vunpack.c.h.bf16 %v7895_v10 }
0x1a35   :  { %3688 = vrot.lane.b32.xlu0 %v3683_v1, %s6300_s6  ;;  %v3696_v1 = vsub.f32 1.0, %v3657_v31 }
0x1a42   :  { %v3777_v45 = vpop.permute.xlu0 %3776  ;;  %v3677_v34 = vpop.permute.xlu1 %3676 }
0x1a43   :  { %v3782_v60 = vmul.f32 %v3777_v45, %v7914_v40  ;;  %v3682_v5 = vmul.f32 %v3677_v34, %v3657_v31  ;;  %v5523_v45 = vld [vmem:[#allocation7 + $0x10] sm:$0xf]  ;;  %v5796_v34 = vld [vmem:[#allocation7 + $0x14] sm:$0xf0]  ;;  %v5793_v40 = vld [vmem:[#allocation7 + $0x4] sm:$0xf] }
0x1a44   :  { %v5520_v25 = vor.u32 %v5793_v40, %v5517_v61 }
0x1a45   :  { %3786 = vrot.lane.b32.xlu1 %v3782_v60, %s6300_s6  ;;  %3686 = vrot.lane.b32.xlu2 %v3682_v5, %s6300_s6  ;;  %v5525_v60 = vld [vmem:[#allocation7 + $0x18] sm:$0xf0]  ;;  %v5524_v5 = vor.u32 %v5796_v34, %v5523_v45 }
0x1a4a   :  { %v3779_v51 = vpop.permute.xlu1 %3778 }
0x1a4b   :  { %v3783_v22 = vmul.f32 %v3779_v51, %v3772_v15 }
0x1a4d   :  { %3788 = vrot.lane.b32.xlu2 %v3783_v22, %s6300_s6 }
0x1a55   :  { %3710 = vrot.lane.b32.xlu2 %v7870_v44, %s6302_s5  ;;  %v5516_v44 = vor.u32 %v5794_v3, %v5515_v8 }
0x1a9f   :  { %v3687_v17 = vpop.permute.xlu2 %3686 }
0x1aa0   :  { %v3692_v16 = vadd.f32 %v3687_v17, %v3632_v47 }
0x1aa2   :  { %6114 = vtanh.f32 %v3692_v16 }
0x1aa7   :  { %v3689_v2 = vpop.permute.xlu0 %3688  ;;  %v3789_v32 = vpop.permute.xlu2 %3788 }
0x1aa8   :  { %v6115_v9 = vpop.eup %6114  ;;  %v3693_v6 = vadd.f32 %v3689_v2, %v3633_v57  ;;  %v3793_v35 = vadd.f32 %v3789_v32, %v3733_v58  ;;  %v3825_v2 = vld [vmem:[%s8305_s8] sm:$0x3] }
0x1aa9   :  { %3700 = vrot.lane.b32.xlu0 %v6115_v9, %s6301_s26  ;;  %v3827_v32 = vperm.slane %v3825_v2, 0  ;;  %v3828_v9 = vperm.slane %v3825_v2, 1 }
0x1aaa   :  { %6116 = vtanh.f32 %v3693_v6 }
0x1aab   :  { %6118 = vtanh.f32 %v3793_v35 }
0x1aaf   :  { %v3711_v58 = vpop.permute.xlu2 %3710 }
0x1ab0   :  { %v6117_v18 = vpop.eup %6116 }
0x1ab1   :  { %v6119_v38 = vpop.eup %6118  ;;  %3702 = vrot.lane.b32.xlu1 %v6117_v18, %s6301_s26  ;;  %3712 = vrot.lane.b32.xlu0 %v7877_v4, %s6302_s5  ;;  %v3716_v4 = vmul.f32 %v3711_v58, %v3657_v31  ;;  %v5795_v31 = vld [vmem:[#allocation7 + $0x14] sm:$0xf] }
0x1ab2   :  { %3802 = vrot.lane.b32.xlu2 %v6119_v38, %s6301_s26  ;;  %v5528_v56 = vor.u32 %v5795_v31, %v5525_v60 }
0x1ab7   :  { %v3787_v47 = vpop.permute.xlu1 %3786 }
0x1ab8   :  { %v3792_v57 = vadd.f32 %v3787_v47, %v3732_v54  ;;  %v5540_v54 = vor.u32 %v5800_v7, %v5539_v63 }
0x1aba   :  { %6120 = vtanh.f32 %v3792_v57  ;;  %3878 = vmatpush.bf16.msra.mxu2 %v5540_v54 }
0x1abe   :  { %3879 = vmatpush.bf16.msra.mxu2 %v5532_v53  ;;  %v3905_v53 = vunpack.c.h.bf16 %v7897_v42 }
0x1ac0   :  { %v6121_v36 = vpop.eup %6120 }
0x1ac1   :  { %3800 = vrot.lane.b32.xlu1 %v6121_v36, %s6301_s26 }
0x1ac2   :  { %3880 = vmatpush.bf16.msra.mxu2 %v5524_v5 }
0x1ac6   :  { %3881 = vmatpush.bf16.msra.mxu2 %v5516_v44 }
0x1b0c   :  { %v3803_v21 = vpop.permute.xlu2 %3802 }
0x1b0d   :  { %v3807_v28 = vmul.f32 %v3803_v21, %v3797_v12  ;;  %v7977_v12 = vld [vmem:[#allocation2 + $0x40] sm:$0xf] }
0x1b0e   :  { %v3904_v21 = vunpack.c.l.bf16 %v7977_v12 }
0x1b0f   :  { %v3811_v37 = vadd.f32 %v3809_v11, %v3807_v28 }
0x1b11   :  { %5512 = vst.msk [vmem:[%s8306_s9 + $0x48] sm:$0xff] %vm577_vm1, %v3811_v37 }
0x1b1b   :  { %v3701_v52 = vpop.permute.xlu0 %3700 }
0x1b1c   :  { %v3706_v55 = vmul.f32 %v3701_v52, %v3696_v1 }
0x1b1e   :  { %v3718_v43 = vadd.f32 %v3716_v4, %v3706_v55 }
0x1b20   :  { %3722 = vrot.lane.b32.xlu0 %v3718_v43, %s6301_s26 }
0x1b23   :  { %v3703_v46 = vpop.permute.xlu1 %3702  ;;  %v3713_v14 = vpop.permute.xlu0 %3712 }
0x1b24   :  { %v3707_v20 = vmul.f32 %v3703_v46, %v3697_v39  ;;  %v3717_v29 = vmul.f32 %v3713_v14, %v7910_v19  ;;  %v5536_v19 = vor.u32 %v5797_v30, %v5533_v62 }
0x1b26   :  { %v3719_v23 = vadd.f32 %v3717_v29, %v3707_v20  ;;  %3893 = vmatpush.bf16.msra.mxu3 %v5536_v19 }
0x1b28   :  { %3724 = vrot.lane.b32.xlu1 %v3719_v23, %s6301_s26 }
0x1b2a   :  { %3894 = vmatpush.bf16.msra.mxu3 %v5528_v56 }
0x1b2e   :  { %3895 = vmatpush.bf16.msra.mxu3 %v5520_v25 }
0x1b33   :  { %v3801_v49 = vpop.permute.xlu1 %3800 }
0x1b34   :  { %v3806_v41 = vmul.f32 %v3801_v49, %v3796_v24 }
0x1b36   :  { %v3810_v13 = vadd.f32 %v3808_v26, %v3806_v41 }
0x1b38   :  { %5511 = vst.msk [vmem:[%s8306_s9 + $0x40] sm:$0xff] %vm577_vm1, %v3810_v13 }
0x1b92   :  { %v3723_v15 = vpop.permute.xlu0 %3722 }
0x1b93   :  { %5507 = vst.msk [vmem:[%s8306_s9 + $0x30] sm:$0xff] %vm488_vm2, %v3723_v15  ;;  %v7957_v22 = vsel %vm488_vm2, %v3723_v15, %v3810_v13 }
0x1b9a   :  { %v3725_v51 = vpop.permute.xlu1 %3724 }
0x1b9b   :  { %5508 = vst.msk [vmem:[%s8306_s9 + $0x38] sm:$0xff] %vm488_vm2, %v3725_v51  ;;  %v7964_v17 = vsel %vm488_vm2, %v3725_v51, %v3811_v37  ;;  %v4005_v37 = vunpack.c.h.bf16 %v7890_v27 }
0x1b9c   :  { %v3816_v16 = vpack.c.bf16 %v7964_v17, %v7957_v22 }
0x1b9e   :  { %5545 = vmatmul.msk.bf16.vlgmr.msra.gmra.mxu2 %vm363_vm3, %v3816_v16  ;;  %5546 = vmatmul.msk.bf16.vlgmr.msra.gmra.mxu3 %vm363_vm3, %v3816_v16 }
0x1c21   :  { %v3883_v6 = vpop.f32.mrf.mxu2  ;;  %v3897_v35 = vpop.f32.mrf.mxu3 }
0x1c22   :  { %v3884_v18 = vadd.f32 %v3883_v6, %v3827_v32  ;;  %v3898_v38 = vadd.f32 %v3897_v35, %v3828_v9 }
0x1c24   :  { %4048 = vrot.lane.b32.xlu1 %v3898_v38, %s6300_s6  ;;  %3948 = vrot.lane.b32.xlu2 %v3884_v18, %s6300_s6  ;;  %v3906_v11 = vadd.f32 %v3904_v21, %v3884_v18  ;;  %v4006_v0 = vadd.f32 %v4004_v59, %v3898_v38 }
0x1c26   :  { %v5547_v28 = vmul.f32 -1.442695, %v3906_v11  ;;  %v5551_v52 = vmul.f32 -1.442695, %v4006_v0 }
0x1c28   :  { %6122 = vpow2.f32 %v5547_v28 }
0x1c29   :  { %v3885_v47 = vpop.f32.mrf.mxu2  ;;  %v3899_v57 = vpop.f32.mrf.mxu3 }
0x1c2a   :  { %v3886_v36 = vadd.f32 %v3885_v47, %v3827_v32  ;;  %v3900_v58 = vadd.f32 %v3899_v57, %v3828_v9 }
0x1c2c   :  { %3950 = vrot.lane.b32.xlu0 %v3886_v36, %s6300_s6  ;;  %4050 = vrot.lane.b32.xlu2 %v3900_v58, %s6300_s6  ;;  %v4007_v63 = vadd.f32 %v4005_v37, %v3900_v58  ;;  %v3907_v55 = vadd.f32 %v3905_v53, %v3886_v36 }
0x1c2e   :  { %v5552_v7 = vmul.f32 -1.442695, %v4007_v63  ;;  %v6123_v48 = vpop.eup %6122  ;;  %v5548_v46 = vmul.f32 -1.442695, %v3907_v55 }
0x1c2f   :  { %v3914_v54 = vadd.f32 1.0, %v6123_v48 }
0x1c30   :  { %6124 = vpow2.f32 %v5552_v7 }
0x1c31   :  { %6126 = vrcp.f32 %v3914_v54  ;;  %v3927_v26 = vand.u32 2147483648, %v3914_v54  ;;  %vm3921_vm12 = vweird.f32 %v3914_v54  ;;  %v3925_v41 = vand.u32 2147483647, %v3914_v54 }
0x1c33   :  { %v3928_v45 = vor.u32 1.1754944e-38, %v3927_v26  ;;  %vm3926_vm14 = vcmp.eq.f32.partialorder %v3925_v41, 8.507059e+37 }
0x1c36   :  { %v6125_v33 = vpop.eup %6124 }
0x1c37   :  { %v4015_v1 = vadd.f32 1.0, %v6125_v33  ;;  %v6127_v50 = vpop.eup %6126 }
0x1c38   :  { %v3917_v4 = vmul.f32 %v6127_v50, %v3914_v54  ;;  %vm3922_vm11 = vweird.f32 %v6127_v50 }
0x1c39   :  { %6128 = vrcp.f32 %v4015_v1  ;;  %vm3923_vm13 = vmor %vm3921_vm12, %vm3922_vm11  ;;  %v4042_v3 = vand.u32 2147483648, %v4015_v1  ;;  %vm4036_vm0 = vweird.f32 %v4015_v1  ;;  %v4040_v56 = vand.u32 2147483647, %v4015_v1 }
0x1c3a   :  { %6130 = vpow2.f32 %v5551_v52  ;;  %v3918_v43 = vsub.f32 1.0, %v3917_v4 }
0x1c3b   :  { %6132 = vpow2.f32 %v5548_v46  ;;  %v4043_v61 = vor.u32 1.1754944e-38, %v4042_v3  ;;  %vm4041_vm5 = vcmp.eq.f32.partialorder %v4040_v56, 8.507059e+37 }
0x1c3c   :  { %v3919_v20 = vmul.f32 %v6127_v50, %v3918_v43 }
0x1c3e   :  { %v3920_v24 = vadd.f32 %v6127_v50, %v3919_v20 }
0x1c3f   :  { %v6129_v39 = vpop.eup %6128 }
0x1c40   :  { %v6131_v14 = vpop.eup %6130  ;;  %v4032_v29 = vmul.f32 %v6129_v39, %v4015_v1  ;;  %v3924_v30 = vsel %vm3923_vm13, %v6127_v50, %v3920_v24  ;;  %vm4037_vm15 = vweird.f32 %v6129_v39 }
0x1c41   :  { %v4014_v23 = vadd.f32 1.0, %v6131_v14  ;;  %v6133_v13 = vpop.eup %6132  ;;  %v7991_v31 = vsel %vm3926_vm14, %v3928_v45, %v3924_v30  ;;  %vm4038_vm4 = vmor %vm4036_vm0, %vm4037_vm15 }
0x1c42   :  { %v4033_v49 = vsub.f32 1.0, %v4032_v29  ;;  %v3915_v19 = vadd.f32 1.0, %v6133_v13 }
0x1c43   :  { %6134 = vrcp.f32 %v4014_v23  ;;  %v4027_v18 = vand.u32 2147483648, %v4014_v23  ;;  %vm4021_vm7 = vweird.f32 %v4014_v23  ;;  %v4025_v38 = vand.u32 2147483647, %v4014_v23 }
0x1c44   :  { %v4034_v62 = vmul.f32 %v6129_v39, %v4033_v49  ;;  %6136 = vrcp.f32 %v3915_v19  ;;  %v3942_v7 = vand.u32 2147483648, %v3915_v19  ;;  %vm3936_vm11 = vweird.f32 %v3915_v19 }
0x1c45   :  { %v4028_v36 = vor.u32 1.1754944e-38, %v4027_v18  ;;  %vm4026_vm9 = vcmp.eq.f32.partialorder %v4025_v38, 8.507059e+37  ;;  %v3940_v48 = vand.u32 2147483647, %v3915_v19  ;;  %v5803_v18 = vld [vmem:[#allocation7 + $0x14] sm:$0xf] }
0x1c46   :  { %v4035_v5 = vadd.f32 %v6129_v39, %v4034_v62  ;;  %v3943_v33 = vor.u32 1.1754944e-38, %v3942_v7  ;;  %v5567_v38 = vld [vmem:[#allocation7 + $0x18] sm:$0xf0] }
0x1c47   :  { %vm3941_vm13 = vcmp.eq.f32.partialorder %v3940_v48, 8.507059e+37 }
0x1c48   :  { %v4039_v44 = vsel %vm4038_vm4, %v6129_v39, %v4035_v5 }
0x1c49   :  { %v6135_v8 = vpop.eup %6134  ;;  %v7995_v25 = vsel %vm4041_vm5, %v4043_v61, %v4039_v44  ;;  %v5808_v44 = vld [vmem:[#allocation7 + $0x34] sm:$0xf0] }
0x1c4a   :  { %v4017_v40 = vmul.f32 %v6135_v8, %v4014_v23  ;;  %v6137_v2 = vpop.eup %6136  ;;  %vm4022_vm6 = vweird.f32 %v6135_v8  ;;  %v3968_v23 = vsub.f32 1.0, %v7991_v31  ;;  %v4069_v10 = vsub.f32 1.0, %v7995_v25 }
0x1c4b   :  { %v3932_v9 = vmul.f32 %v6137_v2, %v3915_v19  ;;  %vm4023_vm8 = vmor %vm4021_vm7, %vm4022_vm6  ;;  %vm3937_vm10 = vweird.f32 %v6137_v2  ;;  %v4081_v62 = vmul.f32 %v7995_v25, %v7964_v17 }
0x1c4c   :  { %v4018_v16 = vsub.f32 1.0, %v4017_v40  ;;  %vm3938_vm12 = vmor %vm3936_vm11, %vm3937_vm10  ;;  %v5807_v40 = vld [vmem:[#allocation7 + $0x34] sm:$0xf] }
0x1c4d   :  { %v3933_v35 = vsub.f32 1.0, %v3932_v9 }
0x1c4e   :  { %v4019_v32 = vmul.f32 %v6135_v8, %v4018_v16 }
0x1c4f   :  { %v3934_v57 = vmul.f32 %v6137_v2, %v3933_v35  ;;  %v5804_v35 = vld [vmem:[#allocation7 + $0x14] sm:$0xf0] }
0x1c50   :  { %v4020_v6 = vadd.f32 %v6135_v8, %v4019_v32  ;;  %v5575_v32 = vld [vmem:[#allocation7 + $0x28] sm:$0xf0] }
0x1c51   :  { %v3935_v63 = vadd.f32 %v6137_v2, %v3934_v57  ;;  %v5570_v57 = vor.u32 %v5803_v18, %v5567_v38 }
0x1c52   :  { %v4024_v47 = vsel %vm4023_vm8, %v6135_v8, %v4020_v6  ;;  %v5565_v6 = vld [vmem:[#allocation7 + $0x10] sm:$0xf] }
0x1c53   :  { %v4029_v11 = vsel %vm4026_vm9, %v4028_v36, %v4024_v47  ;;  %v3939_v54 = vsel %vm3938_vm12, %v6137_v2, %v3935_v63  ;;  %v5805_v2 = vld [vmem:[#allocation7 + $0x24] sm:$0xf]  ;;  %v5566_v47 = vor.u32 %v5804_v35, %v5565_v6  ;;  %v5557_v36 = vld [vmem:[#allocation7] sm:$0xf]  ;;  %v5559_v63 = vld [vmem:[#allocation7 + $0x8] sm:$0xf0] }
0x1c54   :  { %v3944_v1 = vsel %vm3941_vm13, %v3943_v33, %v3939_v54  ;;  %v4080_v8 = vmul.f32 %v4029_v11, %v7957_v22 }
0x1c55   :  { %v3969_v26 = vsub.f32 1.0, %v3944_v1 }
0x1c7e   :  { %v3949_v34 = vpop.permute.xlu2 %3948 }
0x1c7f   :  { %v3954_v60 = vmul.f32 %v3949_v34, %v7991_v31 }
0x1c81   :  { %3958 = vrot.lane.b32.xlu0 %v3954_v60, %s6300_s6 }
0x1c86   :  { %v4051_v15 = vpop.permute.xlu2 %4050 }
0x1c87   :  { %v4055_v51 = vmul.f32 %v4051_v15, %v7995_v25  ;;  %v5583_v25 = vld [vmem:[#allocation7 + $0x38] sm:$0xf0]  ;;  %v5573_v15 = vld [vmem:[#allocation7 + $0x20] sm:$0xf] }
0x1c88   :  { %v5586_v16 = vor.u32 %v5807_v40, %v5583_v25 }
0x1c89   :  { %4060 = vrot.lane.b32.xlu0 %v4055_v51, %s6300_s6  ;;  %v5806_v51 = vld [vmem:[#allocation7 + $0x24] sm:$0xf0] }
0x1c8a   :  { %v5574_v9 = vor.u32 %v5806_v51, %v5573_v15  ;;  %4164 = vmatpush.bf16.msrb.mxu3 %v5586_v16 }
0x1c91   :  { %3982 = vrot.lane.b32.xlu0 %v7957_v22, %s6302_s5  ;;  %v5578_v22 = vor.u32 %v5805_v2, %v5575_v32 }
0x1c93   :  { %4165 = vmatpush.bf16.msrb.mxu3 %v5578_v22 }
0x1c96   :  { %v4049_v58 = vpop.permute.xlu1 %4048 }
0x1c97   :  { %v4054_v28 = vmul.f32 %v4049_v58, %v4029_v11  ;;  %v5802_v58 = vld [vmem:[#allocation7 + $0x4] sm:$0xf0]  ;;  %4166 = vmatpush.bf16.msrb.mxu3 %v5570_v57 }
0x1c99   :  { %4058 = vrot.lane.b32.xlu2 %v4054_v28, %s6300_s6  ;;  %v5801_v28 = vld [vmem:[#allocation7 + $0x4] sm:$0xf] }
0x1c9a   :  { %v5562_v7 = vor.u32 %v5801_v28, %v5559_v63 }
0x1c9c   :  { %4167 = vmatpush.bf16.msrb.mxu3 %v5562_v7 }
0x1c9e   :  { %v3951_v0 = vpop.permute.xlu0 %3950 }
0x1c9f   :  { %v3955_v50 = vmul.f32 %v3951_v0, %v3944_v1 }
0x1ca1   :  { %3960 = vrot.lane.b32.xlu1 %v3955_v50, %s6300_s6  ;;  %v4097_v50 = vld [vmem:[%s8305_s8] sm:$0x3] }
0x1cf3   :  { %v3959_v52 = vpop.permute.xlu0 %3958 }
0x1cf4   :  { %v3964_v4 = vadd.f32 %v3959_v52, %v3904_v21  ;;  %v4059_v21 = vpop.permute.xlu2 %4058  ;;  %v4099_v52 = vperm.slane %v4097_v50, 0 }
0x1cf5   :  { %v4064_v27 = vadd.f32 %v4059_v21, %v4004_v59 }
0x1cf6   :  { %6138 = vtanh.f32 %v3964_v4  ;;  %v4100_v4 = vperm.slane %v4097_v50, 1 }
0x1cfb   :  { %v4061_v55 = vpop.permute.xlu0 %4060 }
0x1cfc   :  { %v4065_v43 = vadd.f32 %v4061_v55, %v4005_v37  ;;  %v6139_v39 = vpop.eup %6138 }
0x1cfd   :  { %3972 = vrot.lane.b32.xlu1 %v6139_v39, %s6301_s26 }
0x1cfe   :  { %6140 = vtanh.f32 %v4065_v43 }
0x1d03   :  { %v3983_v29 = vpop.permute.xlu0 %3982 }
0x1d04   :  { %v6141_v46 = vpop.eup %6140  ;;  %v3988_v49 = vmul.f32 %v3983_v29, %v7991_v31  ;;  %v4068_v31 = vsub.f32 1.0, %v4029_v11  ;;  %v5558_v11 = vor.u32 %v5802_v58, %v5557_v36 }
0x1d05   :  { %4074 = vrot.lane.b32.xlu0 %v6141_v46, %s6301_s26  ;;  %3984 = vrot.lane.b32.xlu1 %v7964_v17, %s6302_s5  ;;  %v5581_v17 = vld [vmem:[#allocation7 + $0x30] sm:$0xf] }
0x1d06   :  { %v5582_v61 = vor.u32 %v5808_v44, %v5581_v17 }
0x1d08   :  { %4150 = vmatpush.bf16.msrb.mxu2 %v5582_v61 }
0x1d0c   :  { %4151 = vmatpush.bf16.msrb.mxu2 %v5574_v9 }
0x1d10   :  { %4152 = vmatpush.bf16.msrb.mxu2 %v5566_v47 }
0x1d13   :  { %v3961_v14 = vpop.permute.xlu1 %3960 }
0x1d14   :  { %v3965_v12 = vadd.f32 %v3961_v14, %v3905_v53  ;;  %4153 = vmatpush.bf16.msrb.mxu2 %v5558_v11 }
0x1d16   :  { %6142 = vtanh.f32 %v3965_v12 }
0x1d17   :  { %6144 = vtanh.f32 %v4064_v27 }
0x1d1c   :  { %v6143_v37 = vpop.eup %6142 }
0x1d1d   :  { %3974 = vrot.lane.b32.xlu2 %v6143_v37, %s6301_s26  ;;  %v6145_v20 = vpop.eup %6144  ;;  %v8058_v37 = vld [vmem:[#allocation2 + $0x24] sm:$0xf] }
0x1d25   :  { %4072 = vrot.lane.b32.xlu2 %v6145_v20, %s6301_s26  ;;  %v4276_v20 = vunpack.c.l.bf16 %v8058_v37 }
0x1d6f   :  { %v3973_v24 = vpop.permute.xlu1 %3972 }
0x1d70   :  { %v3978_v42 = vmul.f32 %v3973_v24, %v3968_v23 }
0x1d72   :  { %v3990_v53 = vadd.f32 %v3988_v49, %v3978_v42  ;;  %v8063_v42 = vld [vmem:[#allocation2 + $0x50] sm:$0xf] }
0x1d74   :  { %3994 = vrot.lane.b32.xlu1 %v3990_v53, %s6301_s26  ;;  %v4176_v53 = vunpack.c.l.bf16 %v8063_v42 }
0x1d77   :  { %v3975_v59 = vpop.permute.xlu2 %3974  ;;  %v4075_v41 = vpop.permute.xlu0 %4074 }
0x1d78   :  { %v3979_v13 = vmul.f32 %v3975_v59, %v3969_v26  ;;  %v3985_v30 = vpop.permute.xlu1 %3984  ;;  %v4079_v45 = vmul.f32 %v4075_v41, %v4069_v10  ;;  %v8068_v10 = vld [vmem:[#allocation2 + $0x58] sm:$0xf]  ;;  %v8070_v41 = vld [vmem:[#allocation2 + $0x2c] sm:$0xf] }
0x1d79   :  { %v3989_v19 = vmul.f32 %v3985_v30, %v3944_v1  ;;  %v4177_v30 = vunpack.c.l.bf16 %v8068_v10 }
0x1d7a   :  { %v4083_v34 = vadd.f32 %v4081_v62, %v4079_v45  ;;  %v4277_v62 = vunpack.c.l.bf16 %v8070_v41 }
0x1d7b   :  { %v3991_v60 = vadd.f32 %v3989_v19, %v3979_v13 }
0x1d7c   :  { %5554 = vst.msk [vmem:[%s8306_s9 + $0x38] sm:$0xff] %vm577_vm1, %v4083_v34 }
0x1d7d   :  { %3996 = vrot.lane.b32.xlu2 %v3991_v60, %s6301_s26 }
0x1d7f   :  { %v4073_v5 = vpop.permute.xlu2 %4072 }
0x1d80   :  { %v4078_v3 = vmul.f32 %v4073_v5, %v4068_v31 }
0x1d82   :  { %v4082_v56 = vadd.f32 %v4080_v8, %v4078_v3 }
0x1d84   :  { %5553 = vst.msk [vmem:[%s8306_s9 + $0x30] sm:$0xff] %vm577_vm1, %v4082_v56 }
0x1dd7   :  { %v3997_v48 = vpop.permute.xlu2 %3996 }
0x1dd8   :  { %5550 = vst.msk [vmem:[%s8306_s9 + $0x48] sm:$0xff] %vm488_vm2, %v3997_v48  ;;  %v8038_v33 = vsel %vm488_vm2, %v3997_v48, %v4083_v34 }
0x1de6   :  { %v3995_v54 = vpop.permute.xlu1 %3994 }
0x1de7   :  { %5549 = vst.msk [vmem:[%s8306_s9 + $0x40] sm:$0xff] %vm488_vm2, %v3995_v54  ;;  %v8045_v0 = vsel %vm488_vm2, %v3995_v54, %v4082_v56 }
0x1de8   :  { %v4088_v1 = vpack.c.bf16 %v8038_v33, %v8045_v0 }
0x1dea   :  { %5587 = vmatmul.msk.bf16.vlgmr.msrb.gmra.mxu2 %vm363_vm3, %v4088_v1  ;;  %5588 = vmatmul.msk.bf16.vlgmr.msrb.gmra.mxu3 %vm363_vm3, %v4088_v1 }
0x1e6d   :  { %v4155_v55 = vpop.f32.mrf.mxu2  ;;  %v4169_v43 = vpop.f32.mrf.mxu3 }
0x1e6e   :  { %v4156_v39 = vadd.f32 %v4155_v55, %v4099_v52  ;;  %v4170_v46 = vadd.f32 %v4169_v43, %v4100_v4 }
0x1e70   :  { %4320 = vrot.lane.b32.xlu2 %v4170_v46, %s6300_s6  ;;  %4220 = vrot.lane.b32.xlu0 %v4156_v39, %s6300_s6  ;;  %v4278_v29 = vadd.f32 %v4276_v20, %v4170_v46  ;;  %v4178_v26 = vadd.f32 %v4176_v53, %v4156_v39 }
0x1e72   :  { %v5593_v23 = vmul.f32 -1.442695, %v4278_v29  ;;  %v5589_v13 = vmul.f32 -1.442695, %v4178_v26 }
0x1e74   :  { %6146 = vpow2.f32 %v5593_v23 }
0x1e75   :  { %v4157_v14 = vpop.f32.mrf.mxu2  ;;  %v4171_v12 = vpop.f32.mrf.mxu3 }
0x1e76   :  { %v4158_v21 = vadd.f32 %v4157_v14, %v4099_v52  ;;  %v4172_v27 = vadd.f32 %v4171_v12, %v4100_v4 }
0x1e78   :  { %4222 = vrot.lane.b32.xlu1 %v4158_v21, %s6300_s6  ;;  %4322 = vrot.lane.b32.xlu0 %v4172_v27, %s6300_s6  ;;  %v4179_v19 = vadd.f32 %v4177_v30, %v4158_v21  ;;  %v4279_v34 = vadd.f32 %v4277_v62, %v4172_v27 }
0x1e7a   :  { %v6147_v24 = vpop.eup %6146  ;;  %v5590_v31 = vmul.f32 -1.442695, %v4179_v19  ;;  %v5594_v5 = vmul.f32 -1.442695, %v4279_v34 }
0x1e7b   :  { %v4286_v49 = vadd.f32 1.0, %v6147_v24 }
0x1e7d   :  { %6148 = vrcp.f32 %v4286_v49  ;;  %v4299_v44 = vand.u32 2147483648, %v4286_v49  ;;  %vm4293_vm15 = vweird.f32 %v4286_v49  ;;  %v4297_v40 = vand.u32 2147483647, %v4286_v49 }
0x1e7e   :  { %6150 = vpow2.f32 %v5589_v13 }
0x1e7f   :  { %6152 = vpow2.f32 %v5590_v31  ;;  %v4300_v51 = vor.u32 1.1754944e-38, %v4299_v44  ;;  %vm4298_vm4 = vcmp.eq.f32.partialorder %v4297_v40, 8.507059e+37 }
0x1e80   :  { %6154 = vpow2.f32 %v5594_v5 }
0x1e83   :  { %v6149_v59 = vpop.eup %6148 }
0x1e84   :  { %v4289_v45 = vmul.f32 %v6149_v59, %v4286_v49  ;;  %v6151_v8 = vpop.eup %6150  ;;  %vm4294_vm14 = vweird.f32 %v6149_v59 }
0x1e85   :  { %v4186_v56 = vadd.f32 1.0, %v6151_v8  ;;  %v6153_v61 = vpop.eup %6152  ;;  %vm4295_vm0 = vmor %vm4293_vm15, %vm4294_vm14 }
0x1e86   :  { %v4290_v60 = vsub.f32 1.0, %v4289_v45  ;;  %v6155_v25 = vpop.eup %6154  ;;  %v4187_v16 = vadd.f32 1.0, %v6153_v61 }
0x1e87   :  { %6156 = vrcp.f32 %v4186_v56  ;;  %v4287_v2 = vadd.f32 1.0, %v6155_v25  ;;  %v4199_v7 = vand.u32 2147483648, %v4186_v56  ;;  %vm4193_vm6 = vweird.f32 %v4186_v56 }
0x1e88   :  { %v4291_v3 = vmul.f32 %v6149_v59, %v4290_v60  ;;  %6158 = vrcp.f32 %v4187_v16  ;;  %v4197_v48 = vand.u32 2147483647, %v4186_v56  ;;  %vm4208_vm11 = vweird.f32 %v4187_v16 }
0x1e89   :  { %6160 = vrcp.f32 %v4287_v2  ;;  %v4200_v52 = vor.u32 1.1754944e-38, %v4199_v7  ;;  %v4214_v14 = vand.u32 2147483648, %v4187_v16  ;;  %v4314_v12 = vand.u32 2147483648, %v4287_v2  ;;  %v5625_v7 = vld [vmem:[#allocation7 + $0x38] sm:$0xf0] }
0x1e8a   :  { %v4292_v17 = vadd.f32 %v6149_v59, %v4291_v3  ;;  %vm4198_vm8 = vcmp.eq.f32.partialorder %v4197_v48, 8.507059e+37  ;;  %v4212_v21 = vand.u32 2147483647, %v4187_v16  ;;  %vm4308_vm13 = vweird.f32 %v4287_v2  ;;  %v5615_v48 = vld [vmem:[#allocation7 + $0x20] sm:$0xf] }
0x1e8b   :  { %v4312_v27 = vand.u32 2147483647, %v4287_v2  ;;  %v4215_v24 = vor.u32 1.1754944e-38, %v4214_v14  ;;  %v4315_v49 = vor.u32 1.1754944e-38, %v4314_v12 }
0x1e8c   :  { %v4296_v15 = vsel %vm4295_vm0, %v6149_v59, %v4292_v17  ;;  %vm4213_vm15 = vcmp.eq.f32.partialorder %v4212_v21, 8.507059e+37  ;;  %v5599_v21 = vld [vmem:[#allocation7] sm:$0xf] }
0x1e8d   :  { %v8078_v9 = vsel %vm4298_vm4, %v4300_v51, %v4296_v15  ;;  %v6157_v6 = vpop.eup %6156  ;;  %vm4313_vm0 = vcmp.eq.f32.partialorder %v4312_v27, 8.507059e+37  ;;  %v5810_v27 = vld [vmem:[#allocation7 + $0x4] sm:$0xf0] }
0x1e8e   :  { %v4189_v35 = vmul.f32 %v6157_v6, %v4186_v56  ;;  %v6159_v18 = vpop.eup %6158  ;;  %vm4194_vm5 = vweird.f32 %v6157_v6 }
0x1e8f   :  { %v6161_v47 = vpop.eup %6160  ;;  %v4204_v36 = vmul.f32 %v6159_v18, %v4187_v16  ;;  %vm4195_vm7 = vmor %vm4193_vm6, %vm4194_vm5  ;;  %vm4209_vm9 = vweird.f32 %v6159_v18 }
0x1e90   :  { %v4190_v38 = vsub.f32 1.0, %v4189_v35  ;;  %v4304_v58 = vmul.f32 %v6161_v47, %v4287_v2  ;;  %vm4309_vm10 = vweird.f32 %v6161_v47  ;;  %vm4210_vm12 = vmor %vm4208_vm11, %vm4209_vm9  ;;  %v4352_v35 = vmul.f32 %v8078_v9, %v8045_v0 }
0x1e91   :  { %v4205_v28 = vsub.f32 1.0, %v4204_v36  ;;  %vm4310_vm14 = vmor %vm4308_vm13, %vm4309_vm10 }
0x1e92   :  { %v4191_v57 = vmul.f32 %v6157_v6, %v4190_v38  ;;  %v4305_v63 = vsub.f32 1.0, %v4304_v58 }
0x1e93   :  { %v4206_v1 = vmul.f32 %v6159_v18, %v4205_v28  ;;  %v5623_v28 = vld [vmem:[#allocation7 + $0x30] sm:$0xf] }
0x1e94   :  { %v4192_v11 = vadd.f32 %v6157_v6, %v4191_v57  ;;  %v4306_v50 = vmul.f32 %v6161_v47, %v4305_v63 }
0x1e95   :  { %v4207_v39 = vadd.f32 %v6159_v18, %v4206_v1 }
0x1e96   :  { %v4196_v54 = vsel %vm4195_vm7, %v6157_v6, %v4192_v11  ;;  %v4307_v46 = vadd.f32 %v6161_v47, %v4306_v50  ;;  %v5813_v50 = vld [vmem:[#allocation7 + $0x24] sm:$0xf] }
0x1e97   :  { %v4201_v55 = vsel %vm4198_vm8, %v4200_v52, %v4196_v54  ;;  %v4211_v29 = vsel %vm4210_vm12, %v6159_v18, %v4207_v39  ;;  %v5814_v54 = vld [vmem:[#allocation7 + $0x24] sm:$0xf0]  ;;  %v5617_v52 = vld [vmem:[#allocation7 + $0x28] sm:$0xf0]  ;;  %v5811_v39 = vld [vmem:[#allocation7 + $0x14] sm:$0xf] }
0x1e98   :  { %v4311_v23 = vsel %vm4310_vm14, %v6161_v47, %v4307_v46  ;;  %v4216_v59 = vsel %vm4213_vm15, %v4215_v24, %v4211_v29  ;;  %v4240_v42 = vsub.f32 1.0, %v4201_v55  ;;  %v5609_v46 = vld [vmem:[#allocation7 + $0x18] sm:$0xf0]  ;;  %v5600_v29 = vor.u32 %v5810_v27, %v5599_v21  ;;  %v5809_v24 = vld [vmem:[#allocation7 + $0x4] sm:$0xf] }
0x1e99   :  { %v4316_v13 = vsel %vm4313_vm0, %v4315_v49, %v4311_v23  ;;  %v4241_v51 = vsub.f32 1.0, %v4216_v59  ;;  %v5612_v12 = vor.u32 %v5811_v39, %v5609_v46  ;;  %v5601_v49 = vld [vmem:[#allocation7 + $0x8] sm:$0xf0] }
0x1e9a   :  { %v4341_v47 = vsub.f32 1.0, %v4316_v13  ;;  %v4353_v36 = vmul.f32 %v4316_v13, %v8038_v33 }
0x1eca   :  { %v4321_v32 = vpop.permute.xlu2 %4320 }
0x1ecb   :  { %v4326_v22 = vmul.f32 %v4321_v32, %v8078_v9 }
0x1ecd   :  { %4330 = vrot.lane.b32.xlu0 %v4326_v22, %s6300_s6  ;;  %v4340_v22 = vsub.f32 1.0, %v8078_v9  ;;  %v5815_v9 = vld [vmem:[#allocation7 + $0x34] sm:$0xf] }
0x1ece   :  { %v5628_v1 = vor.u32 %v5815_v9, %v5625_v7 }
0x1ed0   :  { %4436 = vmatpush.bf16.msra.mxu3 %v5628_v1 }
0x1ee2   :  { %v4221_v4 = vpop.permute.xlu0 %4220 }
0x1ee3   :  { %v4226_v43 = vmul.f32 %v4221_v4, %v4201_v55  ;;  %v5616_v4 = vor.u32 %v5814_v54, %v5615_v48 }
0x1ee5   :  { %4230 = vrot.lane.b32.xlu1 %v4226_v43, %s6300_s6  ;;  %v5812_v43 = vld [vmem:[#allocation7 + $0x14] sm:$0xf0] }
0x1eea   :  { %v4223_v26 = vpop.permute.xlu1 %4222  ;;  %v4323_v45 = vpop.permute.xlu0 %4322 }
0x1eeb   :  { %v4227_v19 = vmul.f32 %v4223_v26, %v4216_v59  ;;  %v4327_v34 = vmul.f32 %v4323_v45, %v4316_v13  ;;  %v5604_v26 = vor.u32 %v5809_v24, %v5601_v49 }
0x1eed   :  { %4232 = vrot.lane.b32.xlu2 %v4227_v19, %s6300_s6  ;;  %4332 = vrot.lane.b32.xlu1 %v4327_v34, %s6300_s6  ;;  %v4369_v34 = vld [vmem:[%s8305_s8] sm:$0x3] }
0x1ef5   :  { %4254 = vrot.lane.b32.xlu1 %v8045_v0, %s6302_s5  ;;  %v5816_v0 = vld [vmem:[#allocation7 + $0x34] sm:$0xf0] }
0x1ef6   :  { %v5624_v63 = vor.u32 %v5816_v0, %v5623_v28 }
0x1ef8   :  { %4422 = vmatpush.bf16.msra.mxu2 %v5624_v63 }
0x1efc   :  { %4423 = vmatpush.bf16.msra.mxu2 %v5616_v4 }
0x1f3f   :  { %v4331_v5 = vpop.permute.xlu0 %4330 }
0x1f40   :  { %v4336_v8 = vadd.f32 %v4331_v5, %v4276_v20 }
0x1f47   :  { %v4233_v60 = vpop.permute.xlu2 %4232 }
0x1f48   :  { %v4237_v31 = vadd.f32 %v4233_v60, %v4177_v30  ;;  %v4371_v60 = vperm.slane %v4369_v34, 0 }
0x1f4a   :  { %6162 = vtanh.f32 %v4237_v31  ;;  %v4372_v31 = vperm.slane %v4369_v34, 1 }
0x1f4b   :  { %6164 = vtanh.f32 %v4336_v8 }
0x1f50   :  { %v6163_v3 = vpop.eup %6162 }
0x1f51   :  { %4246 = vrot.lane.b32.xlu0 %v6163_v3, %s6301_s26  ;;  %v6165_v17 = vpop.eup %6164 }
0x1f57   :  { %v4231_v56 = vpop.permute.xlu1 %4230 }
0x1f58   :  { %v4236_v44 = vadd.f32 %v4231_v56, %v4176_v53 }
0x1f59   :  { %4344 = vrot.lane.b32.xlu0 %v6165_v17, %s6301_s26 }
0x1f5a   :  { %6166 = vtanh.f32 %v4236_v44 }
0x1f5f   :  { %v4333_v40 = vpop.permute.xlu1 %4332 }
0x1f60   :  { %v6167_v10 = vpop.eup %6166  ;;  %v4337_v30 = vadd.f32 %v4333_v40, %v4277_v62 }
0x1f61   :  { %4244 = vrot.lane.b32.xlu2 %v6167_v10, %s6301_s26 }
0x1f62   :  { %6168 = vtanh.f32 %v4337_v30  ;;  %v8140_v30 = vld [vmem:[#allocation2 + $0x68] sm:$0xf] }
0x1f67   :  { %v4255_v20 = vpop.permute.xlu1 %4254 }
0x1f68   :  { %v6169_v37 = vpop.eup %6168  ;;  %v4260_v61 = vmul.f32 %v4255_v20, %v4201_v55  ;;  %v5607_v55 = vld [vmem:[#allocation7 + $0x10] sm:$0xf] }
0x1f69   :  { %4256 = vrot.lane.b32.xlu2 %v8038_v33, %s6302_s5  ;;  %4346 = vrot.lane.b32.xlu1 %v6169_v37, %s6301_s26  ;;  %v5620_v33 = vor.u32 %v5813_v50, %v5617_v52  ;;  %v5608_v14 = vor.u32 %v5812_v43, %v5607_v55  ;;  %v4449_v37 = vunpack.c.l.bf16 %v8140_v30 }
0x1f6b   :  { %4437 = vmatpush.bf16.msra.mxu3 %v5620_v33  ;;  %4424 = vmatpush.bf16.msra.mxu2 %v5608_v14 }
0x1f6f   :  { %4438 = vmatpush.bf16.msra.mxu3 %v5612_v12  ;;  %4425 = vmatpush.bf16.msra.mxu2 %v5600_v29 }
0x1f73   :  { %4439 = vmatpush.bf16.msra.mxu3 %v5604_v26 }
0x1fbb   :  { %v4245_v53 = vpop.permute.xlu2 %4244 }
0x1fbc   :  { %v4250_v25 = vmul.f32 %v4245_v53, %v4240_v42  ;;  %v8145_v53 = vld [vmem:[#allocation2 + $0x60] sm:$0xf] }
0x1fbe   :  { %v4262_v15 = vadd.f32 %v4260_v61, %v4250_v25  ;;  %v8147_v61 = vld [vmem:[#allocation2 + $0x14] sm:$0xf]  ;;  %v4448_v25 = vunpack.c.l.bf16 %v8145_v53 }
0x1fc0   :  { %4266 = vrot.lane.b32.xlu2 %v4262_v15, %s6301_s26 }
0x1fc3   :  { %v4247_v41 = vpop.permute.xlu0 %4246  ;;  %v4257_v62 = vpop.permute.xlu2 %4256 }
0x1fc4   :  { %v4251_v16 = vmul.f32 %v4247_v41, %v4241_v51  ;;  %v4261_v2 = vmul.f32 %v4257_v62, %v4216_v59  ;;  %v4548_v51 = vunpack.c.l.bf16 %v8147_v61  ;;  %v5823_v61 = vld [vmem:[#allocation7 + $0x34] sm:$0xf] }
0x1fc6   :  { %v4263_v32 = vadd.f32 %v4261_v2, %v4251_v16 }
0x1fc8   :  { %4268 = vrot.lane.b32.xlu0 %v4263_v32, %s6301_s26  ;;  %v8155_v32 = vld [vmem:[#allocation2 + $0x1c] sm:$0xf] }
0x1fcb   :  { %v4345_v6 = vpop.permute.xlu0 %4344 }
0x1fcc   :  { %v4350_v18 = vmul.f32 %v4345_v6, %v4340_v22  ;;  %v4549_v6 = vunpack.c.l.bf16 %v8155_v32 }
0x1fce   :  { %v4354_v38 = vadd.f32 %v4352_v35, %v4350_v18 }
0x1fd0   :  { %5595 = vst.msk [vmem:[%s8306_s9 + $0x20] sm:$0xff] %vm577_vm1, %v4354_v38 }
0x1fdb   :  { %v4347_v57 = vpop.permute.xlu1 %4346 }
0x1fdc   :  { %v4351_v58 = vmul.f32 %v4347_v57, %v4341_v47 }
0x1fde   :  { %v4355_v11 = vadd.f32 %v4353_v36, %v4351_v58 }
0x1fe0   :  { %5596 = vst.msk [vmem:[%s8306_s9 + $0x28] sm:$0xff] %vm577_vm1, %v4355_v11 }
0x201a   :  { %v4267_v23 = vpop.permute.xlu2 %4266 }
0x201b   :  { %5591 = vst.msk [vmem:[%s8306_s9 + $0x50] sm:$0xff] %vm488_vm2, %v4267_v23  ;;  %v8120_v13 = vsel %vm488_vm2, %v4267_v23, %v4354_v38 }
0x203a   :  { %v4269_v59 = vpop.permute.xlu0 %4268 }
0x203b   :  { %5592 = vst.msk [vmem:[%s8306_s9 + $0x58] sm:$0xff] %vm488_vm2, %v4269_v59  ;;  %v8127_v45 = vsel %vm488_vm2, %v4269_v59, %v4355_v11 }
0x203c   :  { %v4360_v19 = vpack.c.bf16 %v8127_v45, %v8120_v13 }
0x203e   :  { %5629 = vmatmul.msk.bf16.vlgmr.msra.gmra.mxu2 %vm363_vm3, %v4360_v19  ;;  %5630 = vmatmul.msk.bf16.vlgmr.msra.gmra.mxu3 %vm363_vm3, %v4360_v19 }
0x20c1   :  { %v4427_v5 = vpop.f32.mrf.mxu2  ;;  %v4441_v8 = vpop.f32.mrf.mxu3 }
0x20c2   :  { %v4428_v3 = vadd.f32 %v4427_v5, %v4371_v60  ;;  %v4442_v56 = vadd.f32 %v4441_v8, %v4372_v31 }
0x20c4   :  { %4592 = vrot.lane.b32.xlu0 %v4442_v56, %s6300_s6  ;;  %4492 = vrot.lane.b32.xlu1 %v4428_v3, %s6300_s6  ;;  %v4450_v41 = vadd.f32 %v4448_v25, %v4428_v3  ;;  %v4550_v62 = vadd.f32 %v4548_v51, %v4442_v56 }
0x20c6   :  { %v5631_v2 = vmul.f32 -1.442695, %v4450_v41  ;;  %v5635_v22 = vmul.f32 -1.442695, %v4550_v62 }
0x20c9   :  { %v4429_v17 = vpop.f32.mrf.mxu2  ;;  %v4443_v44 = vpop.f32.mrf.mxu3 }
0x20ca   :  { %v4430_v40 = vadd.f32 %v4429_v17, %v4371_v60  ;;  %v4444_v10 = vadd.f32 %v4443_v44, %v4372_v31 }
0x20cc   :  { %4494 = vrot.lane.b32.xlu2 %v4430_v40, %s6300_s6  ;;  %4594 = vrot.lane.b32.xlu1 %v4444_v10, %s6300_s6  ;;  %v4451_v20 = vadd.f32 %v4449_v37, %v4430_v40  ;;  %v4551_v35 = vadd.f32 %v4549_v6, %v4444_v10 }
0x20ce   :  { %v5632_v42 = vmul.f32 -1.442695, %v4451_v20  ;;  %v5636_v38 = vmul.f32 -1.442695, %v4551_v35 }
0x20d0   :  { %6170 = vpow2.f32 %v5632_v42 }
0x20d6   :  { %v6171_v15 = vpop.eup %6170 }
0x20d7   :  { %v4459_v16 = vadd.f32 1.0, %v6171_v15 }
0x20d9   :  { %6172 = vrcp.f32 %v4459_v16  ;;  %v4486_v1 = vand.u32 2147483648, %v4459_v16  ;;  %vm4480_vm5 = vweird.f32 %v4459_v16  ;;  %v4484_v50 = vand.u32 2147483647, %v4459_v16 }
0x20da   :  { %6174 = vpow2.f32 %v5631_v2 }
0x20db   :  { %6176 = vpow2.f32 %v5635_v22  ;;  %v4487_v55 = vor.u32 1.1754944e-38, %v4486_v1  ;;  %vm4485_vm7 = vcmp.eq.f32.partialorder %v4484_v50, 8.507059e+37  ;;  %v5824_v1 = vld [vmem:[#allocation7 + $0x34] sm:$0xf0]  ;;  %v5667_v50 = vld [vmem:[#allocation7 + $0x38] sm:$0xf0] }
0x20dc   :  { %6178 = vpow2.f32 %v5636_v38 }
0x20df   :  { %v6173_v18 = vpop.eup %6172 }
0x20e0   :  { %v6175_v47 = vpop.eup %6174  ;;  %v4476_v36 = vmul.f32 %v6173_v18, %v4459_v16  ;;  %vm4481_vm4 = vweird.f32 %v6173_v18 }
0x20e1   :  { %v6177_v57 = vpop.eup %6176  ;;  %v4458_v58 = vadd.f32 1.0, %v6175_v47  ;;  %vm4482_vm6 = vmor %vm4480_vm5, %vm4481_vm4 }
0x20e2   :  { %v4558_v11 = vadd.f32 1.0, %v6177_v57  ;;  %v4477_v28 = vsub.f32 1.0, %v4476_v36  ;;  %v6179_v0 = vpop.eup %6178 }
0x20e3   :  { %6180 = vrcp.f32 %v4458_v58  ;;  %v4559_v63 = vadd.f32 1.0, %v6179_v0  ;;  %vm4465_vm10 = vweird.f32 %v4458_v58  ;;  %v4471_v19 = vand.u32 2147483648, %v4458_v58 }
0x20e4   :  { %6182 = vrcp.f32 %v4558_v11  ;;  %v4478_v9 = vmul.f32 %v6173_v18, %v4477_v28  ;;  %v4571_v59 = vand.u32 2147483648, %v4558_v11  ;;  %vm4565_vm11 = vweird.f32 %v4558_v11 }
0x20e5   :  { %6184 = vrcp.f32 %v4559_v63  ;;  %v4569_v34 = vand.u32 2147483647, %v4558_v11  ;;  %v4469_v60 = vand.u32 2147483647, %v4458_v58  ;;  %v4472_v56 = vor.u32 1.1754944e-38, %v4471_v19 }
0x20e6   :  { %v4479_v48 = vadd.f32 %v6173_v18, %v4478_v9  ;;  %v4572_v3 = vor.u32 1.1754944e-38, %v4571_v59  ;;  %v4586_v41 = vand.u32 2147483648, %v4559_v63  ;;  %vm4580_vm4 = vweird.f32 %v4559_v63 }
0x20e7   :  { %vm4570_vm14 = vcmp.eq.f32.partialorder %v4569_v34, 8.507059e+37  ;;  %vm4470_vm15 = vcmp.eq.f32.partialorder %v4469_v60, 8.507059e+37  ;;  %v4584_v62 = vand.u32 2147483647, %v4559_v63 }
0x20e8   :  { %v4483_v52 = vsel %vm4482_vm6, %v6173_v18, %v4479_v48  ;;  %v4587_v2 = vor.u32 1.1754944e-38, %v4586_v41 }
0x20e9   :  { %v6181_v7 = vpop.eup %6180  ;;  %v8160_v39 = vsel %vm4485_vm7, %v4487_v55, %v4483_v52  ;;  %vm4585_vm6 = vcmp.eq.f32.partialorder %v4584_v62, 8.507059e+37  ;;  %v5657_v52 = vld [vmem:[#allocation7 + $0x20] sm:$0xf]  ;;  %v5670_v55 = vor.u32 %v5823_v61, %v5667_v50  ;;  %v8237_v61 = vld [vmem:[#allocation2 + $0x4] sm:$0xf] }
0x20ea   :  { %v6183_v54 = vpop.eup %6182  ;;  %v4461_v33 = vmul.f32 %v6181_v7, %v4458_v58  ;;  %vm4466_vm8 = vweird.f32 %v6181_v7  ;;  %v4820_v50 = vunpack.c.l.bf16 %v8237_v61 }
0x20eb   :  { %v4561_v4 = vmul.f32 %v6183_v54, %v4558_v11  ;;  %v6185_v21 = vpop.eup %6184  ;;  %vm4566_vm9 = vweird.f32 %v6183_v54  ;;  %vm4467_vm12 = vmor %vm4465_vm10, %vm4466_vm8  ;;  %4708 = vmatpush.bf16.msrb.mxu3 %v5670_v55  ;;  %v8242_v55 = vld [vmem:[#allocation2 + $0x78] sm:$0xf] }
0x20ec   :  { %v4462_v12 = vsub.f32 1.0, %v4461_v33  ;;  %v4576_v23 = vmul.f32 %v6185_v21, %v4559_v63  ;;  %vm4567_vm13 = vmor %vm4565_vm11, %vm4566_vm9  ;;  %vm4581_vm0 = vweird.f32 %v6185_v21 }
0x20ed   :  { %v4562_v14 = vsub.f32 1.0, %v4561_v4  ;;  %vm4582_vm5 = vmor %vm4580_vm4, %vm4581_vm0  ;;  %v5822_v4 = vld [vmem:[#allocation7 + $0x24] sm:$0xf0] }
0x20ee   :  { %v4463_v29 = vmul.f32 %v6181_v7, %v4462_v12  ;;  %v4577_v26 = vsub.f32 1.0, %v4576_v23 }
0x20ef   :  { %v4563_v27 = vmul.f32 %v6183_v54, %v4562_v14 }
0x20f0   :  { %v4464_v49 = vadd.f32 %v6181_v7, %v4463_v29  ;;  %v4578_v8 = vmul.f32 %v6185_v21, %v4577_v26 }
0x20f1   :  { %v4564_v24 = vadd.f32 %v6183_v54, %v4563_v27 }
0x20f2   :  { %v4468_v5 = vsel %vm4467_vm12, %v6181_v7, %v4464_v49  ;;  %v4579_v15 = vadd.f32 %v6185_v21, %v4578_v8  ;;  %v5649_v8 = vld [vmem:[#allocation7 + $0x10] sm:$0xf] }
0x20f3   :  { %v4568_v31 = vsel %vm4567_vm13, %v6183_v54, %v4564_v24  ;;  %v4473_v10 = vsel %vm4470_vm15, %v4472_v56, %v4468_v5  ;;  %v5665_v54 = vld [vmem:[#allocation7 + $0x30] sm:$0xf]  ;;  %v5659_v5 = vld [vmem:[#allocation7 + $0x28] sm:$0xf0]  ;;  %v5819_v56 = vld [vmem:[#allocation7 + $0x14] sm:$0xf] }
0x20f4   :  { %v8164_v44 = vsel %vm4570_vm14, %v4572_v3, %v4568_v31  ;;  %v4583_v16 = vsel %vm4582_vm5, %v6185_v21, %v4579_v15  ;;  %v4512_v33 = vsub.f32 1.0, %v4473_v10  ;;  %v4513_v21 = vsub.f32 1.0, %v8160_v39  ;;  %v5821_v31 = vld [vmem:[#allocation7 + $0x24] sm:$0xf]  ;;  %v5820_v3 = vld [vmem:[#allocation7 + $0x14] sm:$0xf0] }
0x20f5   :  { %v4588_v22 = vsel %vm4585_vm6, %v4587_v2, %v4583_v16  ;;  %v4612_v26 = vsub.f32 1.0, %v8164_v44  ;;  %v4624_v19 = vmul.f32 %v8164_v44, %v8120_v13  ;;  %v5643_v15 = vld [vmem:[#allocation7 + $0x8] sm:$0xf0] }
0x20f6   :  { %v4613_v32 = vsub.f32 1.0, %v4588_v22  ;;  %v4625_v63 = vmul.f32 %v4588_v22, %v8127_v45 }
0x2126   :  { %v4495_v43 = vpop.permute.xlu2 %4494 }
0x2127   :  { %v4499_v46 = vmul.f32 %v4495_v43, %v8160_v39 }
0x2129   :  { %4504 = vrot.lane.b32.xlu0 %v4499_v46, %s6300_s6  ;;  %v5658_v46 = vor.u32 %v5822_v4, %v5657_v52 }
0x2136   :  { %v4593_v17 = vpop.permute.xlu0 %4592  ;;  %v4493_v40 = vpop.permute.xlu1 %4492 }
0x2137   :  { %v4598_v20 = vmul.f32 %v4593_v17, %v8164_v44  ;;  %v4498_v42 = vmul.f32 %v4493_v40, %v4473_v10  ;;  %v5651_v17 = vld [vmem:[#allocation7 + $0x18] sm:$0xf0]  ;;  %v5650_v40 = vor.u32 %v5820_v3, %v5649_v8  ;;  %v5817_v44 = vld [vmem:[#allocation7 + $0x4] sm:$0xf] }
0x2138   :  { %v5646_v41 = vor.u32 %v5817_v44, %v5643_v15 }
0x2139   :  { %4602 = vrot.lane.b32.xlu1 %v4598_v20, %s6300_s6  ;;  %4502 = vrot.lane.b32.xlu2 %v4498_v42, %s6300_s6  ;;  %v5818_v20 = vld [vmem:[#allocation7 + $0x4] sm:$0xf0]  ;;  %v5654_v42 = vor.u32 %v5819_v56, %v5651_v17 }
0x213e   :  { %v4595_v35 = vpop.permute.xlu1 %4594 }
0x213f   :  { %v4599_v18 = vmul.f32 %v4595_v35, %v4588_v22 }
0x2141   :  { %4604 = vrot.lane.b32.xlu2 %v4599_v18, %s6300_s6  ;;  %v4641_v18 = vld [vmem:[%s8305_s8] sm:$0x3] }
0x2149   :  { %4526 = vrot.lane.b32.xlu2 %v8120_v13, %s6302_s5 }
0x2193   :  { %v4503_v38 = vpop.permute.xlu2 %4502 }
0x2194   :  { %v4508_v47 = vadd.f32 %v4503_v38, %v4448_v25  ;;  %v4643_v38 = vperm.slane %v4641_v18, 0 }
0x2196   :  { %6186 = vtanh.f32 %v4508_v47  ;;  %v4644_v47 = vperm.slane %v4641_v18, 1 }
0x219b   :  { %v4505_v57 = vpop.permute.xlu0 %4504  ;;  %v4605_v36 = vpop.permute.xlu2 %4604 }
0x219c   :  { %v6187_v58 = vpop.eup %6186  ;;  %v4509_v11 = vadd.f32 %v4505_v57, %v4449_v37  ;;  %v4609_v28 = vadd.f32 %v4605_v36, %v4549_v6 }
0x219d   :  { %4516 = vrot.lane.b32.xlu0 %v6187_v58, %s6301_s26 }
0x219e   :  { %6188 = vtanh.f32 %v4509_v11 }
0x219f   :  { %6190 = vtanh.f32 %v4609_v28 }
0x21a3   :  { %v4527_v25 = vpop.permute.xlu2 %4526 }
0x21a4   :  { %v6189_v0 = vpop.eup %6188 }
0x21a5   :  { %v6191_v9 = vpop.eup %6190  ;;  %4518 = vrot.lane.b32.xlu1 %v6189_v0, %s6301_s26  ;;  %4528 = vrot.lane.b32.xlu0 %v8127_v45, %s6302_s5  ;;  %v4532_v45 = vmul.f32 %v4527_v25, %v4473_v10  ;;  %v5641_v10 = vld [vmem:[#allocation7] sm:$0xf] }
0x21a6   :  { %4618 = vrot.lane.b32.xlu2 %v6191_v9, %s6301_s26  ;;  %v5642_v13 = vor.u32 %v5818_v20, %v5641_v10 }
0x21ab   :  { %v4603_v53 = vpop.permute.xlu1 %4602 }
0x21ac   :  { %v4608_v30 = vadd.f32 %v4603_v53, %v4548_v51  ;;  %v5666_v51 = vor.u32 %v5824_v1, %v5665_v54 }
0x21ae   :  { %6192 = vtanh.f32 %v4608_v30  ;;  %4694 = vmatpush.bf16.msrb.mxu2 %v5666_v51  ;;  %v8227_v30 = vld [vmem:[#allocation2 + $0x70] sm:$0xf] }
0x21b2   :  { %4695 = vmatpush.bf16.msrb.mxu2 %v5658_v46  ;;  %v4721_v46 = vunpack.c.l.bf16 %v8242_v55 }
0x21b4   :  { %v6193_v37 = vpop.eup %6192 }
0x21b5   :  { %4616 = vrot.lane.b32.xlu1 %v6193_v37, %s6301_s26  ;;  %v4720_v37 = vunpack.c.l.bf16 %v8227_v30 }
0x21b6   :  { %4696 = vmatpush.bf16.msrb.mxu2 %v5650_v40 }
0x21ba   :  { %4697 = vmatpush.bf16.msrb.mxu2 %v5642_v13 }
0x2200   :  { %v4619_v6 = vpop.permute.xlu2 %4618 }
0x2201   :  { %v4623_v7 = vmul.f32 %v4619_v6, %v4613_v32  ;;  %v8232_v32 = vld [vmem:[#allocation2 + $0xc] sm:$0xf] }
0x2203   :  { %v4627_v48 = vadd.f32 %v4625_v63, %v4623_v7  ;;  %v4821_v63 = vunpack.c.l.bf16 %v8232_v32 }
0x2205   :  { %5638 = vst.msk [vmem:[%s8306_s9 + $0x18] sm:$0xff] %vm577_vm1, %v4627_v48 }
0x220f   :  { %v4517_v43 = vpop.permute.xlu0 %4516 }
0x2210   :  { %v4522_v14 = vmul.f32 %v4517_v43, %v4512_v33 }
0x2212   :  { %v4534_v12 = vadd.f32 %v4532_v45, %v4522_v14 }
0x2214   :  { %4538 = vrot.lane.b32.xlu0 %v4534_v12, %s6301_s26 }
0x2217   :  { %v4519_v27 = vpop.permute.xlu1 %4518  ;;  %v4529_v29 = vpop.permute.xlu0 %4528 }
0x2218   :  { %v4523_v23 = vmul.f32 %v4519_v27, %v4513_v21  ;;  %v4533_v24 = vmul.f32 %v4529_v29, %v8160_v39  ;;  %v5662_v39 = vor.u32 %v5821_v31, %v5659_v5 }
0x221a   :  { %v4535_v49 = vadd.f32 %v4533_v24, %v4523_v23  ;;  %4709 = vmatpush.bf16.msrb.mxu3 %v5662_v39 }
0x221c   :  { %4540 = vrot.lane.b32.xlu1 %v4535_v49, %s6301_s26 }
0x221e   :  { %4710 = vmatpush.bf16.msrb.mxu3 %v5654_v42 }
0x2222   :  { %4711 = vmatpush.bf16.msrb.mxu3 %v5646_v41 }
0x2227   :  { %v4617_v59 = vpop.permute.xlu1 %4616 }
0x2228   :  { %v4622_v34 = vmul.f32 %v4617_v59, %v4612_v26 }
0x222a   :  { %v4626_v60 = vadd.f32 %v4624_v19, %v4622_v34 }
0x222c   :  { %5637 = vst.msk [vmem:[%s8306_s9 + $0x10] sm:$0xff] %vm577_vm1, %v4626_v60 }
0x2286   :  { %v4539_v62 = vpop.permute.xlu0 %4538 }
0x2287   :  { %5633 = vst.msk [vmem:[%s8306_s9 + $0x60] sm:$0xff] %vm488_vm2, %v4539_v62  ;;  %v8207_v2 = vsel %vm488_vm2, %v4539_v62, %v4626_v60 }
0x228e   :  { %v4541_v16 = vpop.permute.xlu1 %4540 }
0x228f   :  { %5634 = vst.msk [vmem:[%s8306_s9 + $0x68] sm:$0xff] %vm488_vm2, %v4541_v16  ;;  %v8214_v22 = vsel %vm488_vm2, %v4541_v16, %v4627_v48 }
0x2290   :  { %v4632_v35 = vpack.c.bf16 %v8214_v22, %v8207_v2 }
0x2292   :  { %5671 = vmatmul.msk.bf16.vlgmr.msrb.gmra.mxu2 %vm363_vm3, %v4632_v35  ;;  %5672 = vmatmul.msk.bf16.vlgmr.msrb.gmra.mxu3 %vm363_vm3, %v4632_v35 }
0x2315   :  { %v4699_v57 = vpop.f32.mrf.mxu2  ;;  %v4713_v36 = vpop.f32.mrf.mxu3 }
0x2316   :  { %v4700_v58 = vadd.f32 %v4699_v57, %v4643_v38  ;;  %v4714_v11 = vadd.f32 %v4713_v36, %v4644_v47 }
0x2318   :  { %4864 = vrot.lane.b32.xlu1 %v4714_v11, %s6300_s6  ;;  %4764 = vrot.lane.b32.xlu2 %v4700_v58, %s6300_s6  ;;  %v4722_v25 = vadd.f32 %v4720_v37, %v4700_v58  ;;  %v4822_v52 = vadd.f32 %v4820_v50, %v4714_v11 }
0x231a   :  { %v5673_v6 = vmul.f32 -1.442695, %v4722_v25  ;;  %v5677_v43 = vmul.f32 -1.442695, %v4822_v52 }
0x231c   :  { %6194 = vpow2.f32 %v5673_v6 }
0x231d   :  { %v4701_v28 = vpop.f32.mrf.mxu2  ;;  %v4715_v0 = vpop.f32.mrf.mxu3 }
0x231e   :  { %v4702_v9 = vadd.f32 %v4701_v28, %v4643_v38  ;;  %v4716_v53 = vadd.f32 %v4715_v0, %v4644_v47 }
0x2320   :  { %4766 = vrot.lane.b32.xlu0 %v4702_v9, %s6300_s6  ;;  %4866 = vrot.lane.b32.xlu2 %v4716_v53, %s6300_s6  ;;  %v4823_v7 = vadd.f32 %v4821_v63, %v4716_v53  ;;  %v4723_v14 = vadd.f32 %v4721_v46, %v4702_v9 }
0x2322   :  { %v5678_v48 = vmul.f32 -1.442695, %v4823_v7  ;;  %v6195_v54 = vpop.eup %6194  ;;  %v5674_v27 = vmul.f32 -1.442695, %v4723_v14 }
0x2323   :  { %v4730_v1 = vadd.f32 1.0, %v6195_v54 }
0x2324   :  { %6196 = vpow2.f32 %v5678_v48 }
0x2325   :  { %6198 = vrcp.f32 %v4730_v1  ;;  %v4743_v19 = vand.u32 2147483648, %v4730_v1  ;;  %vm4737_vm7 = vweird.f32 %v4730_v1  ;;  %v4741_v34 = vand.u32 2147483647, %v4730_v1 }
0x2327   :  { %v4744_v8 = vor.u32 1.1754944e-38, %v4743_v19  ;;  %vm4742_vm9 = vcmp.eq.f32.partialorder %v4741_v34, 8.507059e+37 }
0x232a   :  { %v6197_v51 = vpop.eup %6196 }
0x232b   :  { %v4831_v4 = vadd.f32 1.0, %v6197_v51  ;;  %v6199_v33 = vpop.eup %6198 }
0x232c   :  { %v4733_v45 = vmul.f32 %v6199_v33, %v4730_v1  ;;  %vm4738_vm3 = vweird.f32 %v6199_v33 }
0x232d   :  { %6200 = vrcp.f32 %v4831_v4  ;;  %vm4739_vm8 = vmor %vm4737_vm7, %vm4738_vm3  ;;  %v4858_v20 = vand.u32 2147483648, %v4831_v4  ;;  %vm4852_vm11 = vweird.f32 %v4831_v4  ;;  %v4856_v42 = vand.u32 2147483647, %v4831_v4 }
0x232e   :  { %6202 = vpow2.f32 %v5677_v43  ;;  %v4734_v12 = vsub.f32 1.0, %v4733_v45 }
0x232f   :  { %6204 = vpow2.f32 %v5674_v27  ;;  %v4859_v15 = vor.u32 1.1754944e-38, %v4858_v20  ;;  %vm4857_vm13 = vcmp.eq.f32.partialorder %v4856_v42, 8.507059e+37 }
0x2330   :  { %v4735_v23 = vmul.f32 %v6199_v33, %v4734_v12 }
0x2332   :  { %v4736_v26 = vadd.f32 %v6199_v33, %v4735_v23 }
0x2333   :  { %v6201_v21 = vpop.eup %6200 }
0x2334   :  { %v6203_v29 = vpop.eup %6202  ;;  %v4848_v24 = vmul.f32 %v6201_v21, %v4831_v4  ;;  %v4740_v31 = vsel %vm4739_vm8, %v6199_v33, %v4736_v26  ;;  %vm4853_vm10 = vweird.f32 %v6201_v21 }
0x2335   :  { %v4830_v49 = vadd.f32 1.0, %v6203_v29  ;;  %v6205_v60 = vpop.eup %6204  ;;  %v8247_v56 = vsel %vm4742_vm9, %v4744_v8, %v4740_v31  ;;  %vm4854_vm12 = vmor %vm4852_vm11, %vm4853_vm10 }
0x2336   :  { %v4849_v59 = vsub.f32 1.0, %v4848_v24  ;;  %v4731_v39 = vadd.f32 1.0, %v6205_v60 }
0x2337   :  { %6206 = vrcp.f32 %v4830_v49  ;;  %v4843_v58 = vand.u32 2147483648, %v4830_v49  ;;  %vm4837_vm15 = vweird.f32 %v4830_v49  ;;  %v4841_v11 = vand.u32 2147483647, %v4830_v49 }
0x2338   :  { %v4850_v5 = vmul.f32 %v6201_v21, %v4849_v59  ;;  %6208 = vrcp.f32 %v4731_v39  ;;  %v4758_v48 = vand.u32 2147483648, %v4731_v39  ;;  %vm4752_vm6 = vweird.f32 %v4731_v39 }
0x2339   :  { %v4844_v9 = vor.u32 1.1754944e-38, %v4843_v58  ;;  %vm4842_vm4 = vcmp.eq.f32.partialorder %v4841_v11, 8.507059e+37  ;;  %v4756_v54 = vand.u32 2147483647, %v4731_v39 }
0x233a   :  { %v4851_v40 = vadd.f32 %v6201_v21, %v4850_v5  ;;  %v4759_v51 = vor.u32 1.1754944e-38, %v4758_v48 }
0x233b   :  { %vm4757_vm7 = vcmp.eq.f32.partialorder %v4756_v54, 8.507059e+37 }
0x233c   :  { %v4855_v13 = vsel %vm4854_vm12, %v6201_v21, %v4851_v40 }
0x233d   :  { %v6207_v10 = vpop.eup %6206  ;;  %v8251_v41 = vsel %vm4857_vm13, %v4859_v15, %v4855_v13 }
0x233e   :  { %v4833_v44 = vmul.f32 %v6207_v10, %v4830_v49  ;;  %v6209_v18 = vpop.eup %6208  ;;  %vm4838_vm14 = vweird.f32 %v6207_v10  ;;  %v4784_v49 = vsub.f32 1.0, %v8247_v56  ;;  %v4885_v61 = vsub.f32 1.0, %v8251_v41 }
0x233f   :  { %v4748_v47 = vmul.f32 %v6209_v18, %v4731_v39  ;;  %vm4839_vm0 = vmor %vm4837_vm15, %vm4838_vm14  ;;  %vm4753_vm5 = vweird.f32 %v6209_v18  ;;  %v4897_v5 = vmul.f32 %v8251_v41, %v8214_v22 }
0x2340   :  { %v4834_v35 = vsub.f32 1.0, %v4833_v44  ;;  %vm4754_vm3 = vmor %vm4752_vm6, %vm4753_vm5 }
0x2341   :  { %v4749_v36 = vsub.f32 1.0, %v4748_v47 }
0x2342   :  { %v4835_v38 = vmul.f32 %v6207_v10, %v4834_v35 }
0x2343   :  { %v4750_v0 = vmul.f32 %v6209_v18, %v4749_v36 }
0x2344   :  { %v4836_v57 = vadd.f32 %v6207_v10, %v4835_v38 }
0x2345   :  { %v4751_v7 = vadd.f32 %v6209_v18, %v4750_v0 }
0x2346   :  { %v4840_v28 = vsel %vm4839_vm0, %v6207_v10, %v4836_v57 }
0x2347   :  { %v4845_v25 = vsel %vm4842_vm4, %v4844_v9, %v4840_v28  ;;  %v4755_v1 = vsel %vm4754_vm3, %v6209_v18, %v4751_v7 }
0x2348   :  { %v4760_v4 = vsel %vm4757_vm7, %v4759_v51, %v4755_v1  ;;  %v4896_v10 = vmul.f32 %v4845_v25, %v8207_v2 }
0x2349   :  { %v4785_v19 = vsub.f32 1.0, %v4760_v4 }
0x2372   :  { %v4765_v3 = vpop.permute.xlu2 %4764 }
0x2373   :  { %v4770_v17 = vmul.f32 %v4765_v3, %v8247_v56 }
0x2375   :  { %4774 = vrot.lane.b32.xlu0 %v4770_v17, %s6300_s6 }
0x237a   :  { %v4867_v62 = vpop.permute.xlu2 %4866 }
0x237b   :  { %v4871_v16 = vmul.f32 %v4867_v62, %v8251_v41 }
0x237d   :  { %4876 = vrot.lane.b32.xlu0 %v4871_v16, %s6300_s6 }
0x2385   :  { %4798 = vrot.lane.b32.xlu0 %v8207_v2, %s6302_s5 }
0x238a   :  { %v4865_v53 = vpop.permute.xlu1 %4864 }
0x238b   :  { %v4870_v6 = vmul.f32 %v4865_v53, %v4845_v25 }
0x238d   :  { %4874 = vrot.lane.b32.xlu2 %v4870_v6, %s6300_s6 }
0x2392   :  { %v4767_v52 = vpop.permute.xlu0 %4766 }
0x2393   :  { %v4771_v33 = vmul.f32 %v4767_v52, %v4760_v4 }
0x2395   :  { %4776 = vrot.lane.b32.xlu1 %v4771_v33, %s6300_s6 }
0x23e7   :  { %v4775_v43 = vpop.permute.xlu0 %4774 }
0x23e8   :  { %v4780_v45 = vadd.f32 %v4775_v43, %v4720_v37  ;;  %v4875_v37 = vpop.permute.xlu2 %4874 }
0x23e9   :  { %v4880_v32 = vadd.f32 %v4875_v37, %v4820_v50 }
0x23ea   :  { %6210 = vtanh.f32 %v4780_v45 }
0x23ef   :  { %v4877_v14 = vpop.permute.xlu0 %4876 }
0x23f0   :  { %v4881_v12 = vadd.f32 %v4877_v14, %v4821_v63  ;;  %v6211_v21 = vpop.eup %6210 }
0x23f1   :  { %4788 = vrot.lane.b32.xlu1 %v6211_v21, %s6301_s26 }
0x23f2   :  { %6212 = vtanh.f32 %v4881_v12 }
0x23f7   :  { %v4799_v24 = vpop.permute.xlu0 %4798 }
0x23f8   :  { %v6213_v27 = vpop.eup %6212  ;;  %v4804_v59 = vmul.f32 %v4799_v24, %v8247_v56  ;;  %v4884_v56 = vsub.f32 1.0, %v4845_v25 }
0x23f9   :  { %4890 = vrot.lane.b32.xlu0 %v6213_v27, %s6301_s26  ;;  %4800 = vrot.lane.b32.xlu1 %v8214_v22, %s6302_s5 }
0x2407   :  { %v4777_v29 = vpop.permute.xlu1 %4776 }
0x2408   :  { %v4781_v30 = vadd.f32 %v4777_v29, %v4721_v46 }
0x240a   :  { %6214 = vtanh.f32 %v4781_v30 }
0x240b   :  { %6216 = vtanh.f32 %v4880_v32 }
0x2410   :  { %v6215_v63 = vpop.eup %6214 }
0x2411   :  { %4790 = vrot.lane.b32.xlu2 %v6215_v63, %s6301_s26  ;;  %v6217_v23 = vpop.eup %6216 }
0x2419   :  { %4888 = vrot.lane.b32.xlu2 %v6217_v23, %s6301_s26 }
0x2463   :  { %v4789_v26 = vpop.permute.xlu1 %4788 }
0x2464   :  { %v4794_v55 = vmul.f32 %v4789_v26, %v4784_v49 }
0x2466   :  { %v4806_v46 = vadd.f32 %v4804_v59, %v4794_v55 }
0x2468   :  { %4810 = vrot.lane.b32.xlu1 %v4806_v46, %s6301_s26 }
0x246b   :  { %v4791_v50 = vpop.permute.xlu2 %4790  ;;  %v4891_v34 = vpop.permute.xlu0 %4890 }
0x246c   :  { %v4795_v60 = vmul.f32 %v4791_v50, %v4785_v19  ;;  %v4801_v31 = vpop.permute.xlu1 %4800  ;;  %v4895_v8 = vmul.f32 %v4891_v34, %v4885_v61 }
0x246d   :  { %v4805_v39 = vmul.f32 %v4801_v31, %v4760_v4 }
0x246e   :  { %v4899_v3 = vadd.f32 %v4897_v5, %v4895_v8 }
0x246f   :  { %v4807_v17 = vadd.f32 %v4805_v39, %v4795_v60 }
0x2470   :  { %4901 = vst.msk [vmem:[%s8306_s9 + $0x8] sm:$0xff] %vm577_vm1, %v4899_v3 }
0x2471   :  { %4812 = vrot.lane.b32.xlu2 %v4807_v17, %s6301_s26 }
0x2473   :  { %v4889_v40 = vpop.permute.xlu2 %4888 }
0x2474   :  { %v4894_v20 = vmul.f32 %v4889_v40, %v4884_v56 }
0x2476   :  { %v4898_v42 = vadd.f32 %v4896_v10, %v4894_v20 }
0x2478   :  { %4900 = vst.msk [vmem:[%s8306_s9] sm:$0xff] %vm577_vm1, %v4898_v42 }
0x24cb   :  { %v4813_v22 = vpop.permute.xlu2 %4812 }
0x24cc   :  { %5676 = vst.msk [vmem:[%s8306_s9 + $0x78] sm:$0xff] %vm488_vm2, %v4813_v22 }
0x24da   :  { %v4811_v13 = vpop.permute.xlu1 %4810 }
0x24db   :  { %5675 = vst.msk [vmem:[%s8306_s9 + $0x70] sm:$0xff] %vm488_vm2, %v4811_v13 }
0x24dc   :  { %4906 = vsyncpa [#allocation4], 1 }
0x24dd   :  { %4907 = vsyncpa [#allocation6], 1 }

</bundles_post_ra>
